<compile_context>
chip_gen: v7x
topology: tpu7x:2x2x1
jax: 0.10.0
libtpu: 0.0.40
codegen_flags: <defaults>
</compile_context>

<pallas_src>
import jax
import jax.numpy as jnp
from jax.experimental import pallas as pl
from jax.experimental.pallas import tpu as pltpu

HIDDEN = 128          # GRU hidden size (bidirectional -> 256)
FEAT_C = 256          # backbone output channels (resnet18/34 truncated at layer3)
PATCH = 16            # backbone stand-in downsample factor (== resnet18[:-3])
ANCHORS = 10          # CTPN anchor_count
VMEM_LIMIT = 32 * 1024 * 1024   # safe on v5e/v6e (128 MiB) and v7x (64 MiB)


# ----------------------------------------------------------------------------
# Kernel 1: tiled (rows, K) @ (K, N) + bias — backbone patch-embedding and the
#           GRU input projection.  Row axis tiled + "parallel"; bf16 operands,
#           f32 accumulation on the MXU.
# ----------------------------------------------------------------------------
def _matmul_bias_kernel(x_ref, w_ref, b_ref, o_ref):
    acc = jnp.dot(x_ref[...], w_ref[...], preferred_element_type=jnp.float32)
    o_ref[...] = (acc + b_ref[...]).astype(o_ref.dtype)


def matmul_bias(x, w, b, *, tile_m=512, out_dtype=jnp.float32):
    m, k = x.shape
    n = w.shape[1]
    tm = tile_m if m >= tile_m else m          # full-extent block when m small
    x_bf = x if x.dtype == jnp.bfloat16 else x.astype(jnp.bfloat16)
    w_bf = w if w.dtype == jnp.bfloat16 else w.astype(jnp.bfloat16)
    return pl.pallas_call(
        _matmul_bias_kernel,
        out_shape=jax.ShapeDtypeStruct((m, n), out_dtype),
        grid_spec=pltpu.PrefetchScalarGridSpec(
            num_scalar_prefetch=0,
            grid=(pl.cdiv(m, tm),),
            in_specs=[
                pl.BlockSpec((tm, k), lambda i: (i, 0)),
                pl.BlockSpec((k, n), lambda i: (0, 0)),
                pl.BlockSpec((1, n), lambda i: (0, 0)),
            ],
            out_specs=pl.BlockSpec((tm, n), lambda i: (i, 0)),
        ),
        compiler_params=pltpu.CompilerParams(
            dimension_semantics=("parallel",),
            vmem_limit_bytes=VMEM_LIMIT),
    )(x_bf, w_bf, b.reshape(1, n).astype(jnp.float32))


# ----------------------------------------------------------------------------
# Kernel 2: fused bidirectional GRU recurrence.  One grid step processes TT
#           time-steps of BOTH directions (forward reads gx[:, t], backward
#           reads gx[:, T-1-t] via its index_map -> no jnp.flip / transpose).
#           Recurrent matmul uses a block-diagonal (2H, 6H) weight so both
#           directions share one K=256 MXU pass.  PyTorch gate order [r|z|n].
# ----------------------------------------------------------------------------
def _make_gru_kernel(tt, hidden):
    hd = hidden

    def kernel(gxf_ref, gxb_ref, whh_ref, bhh_ref, hf_ref, hb_ref, h_scr):
        t = pl.program_id(1)

        @pl.when(t == 0)
        def _():
            h_scr[...] = jnp.zeros_like(h_scr)

        h = h_scr[...]                                  # (Bc, 2H) f32
        whh = whh_ref[...]                              # (2H, 6H) block-diag f32
        bhh = bhh_ref[...]                              # (1, 6H) f32

        def gate(gx3, gh3, h_prev):
            r = jax.nn.sigmoid(gx3[:, :hd] + gh3[:, :hd])
            z = jax.nn.sigmoid(gx3[:, hd:2 * hd] + gh3[:, hd:2 * hd])
            n = jnp.tanh(gx3[:, 2 * hd:] + r * gh3[:, 2 * hd:])
            return (1.0 - z) * n + z * h_prev

        # static unroll over the TT time-steps held in this block
        for s in range(tt):
            gh = jnp.dot(h, whh, preferred_element_type=jnp.float32) + bhh
            h_f = gate(gxf_ref[:, s, :], gh[:, :3 * hd], h[:, :hd])
            h_b = gate(gxb_ref[:, tt - 1 - s, :], gh[:, 3 * hd:], h[:, hd:])
            hf_ref[:, s, :] = h_f.astype(hf_ref.dtype)
            hb_ref[:, tt - 1 - s, :] = h_b.astype(hb_ref.dtype)
            h = jnp.concatenate([h_f, h_b], axis=-1)

        h_scr[...] = h

    return kernel


def gru_bidirectional(gx, whh_blk, bhh_cat, hidden):
    """gx: (B, T, 6H) f32; [..., :3H] forward gx, [..., 3H:] backward gx.

    Returns (hf, hb), each (B, T, H) bf16, matching PyTorch's bidirectional
    output convention (hb[:, t] = backward hidden after inputs T-1..t)."""
    b, t_len, _ = gx.shape
    # time tile: must be a multiple of 8 or the full extent (block-shape rule)
    tt = 8 if (t_len % 8 == 0) else t_len
    g = t_len // tt
    nb = 2 if (b % 2 == 0) else 1              # split rows across v7x's 2 TCs
    bc = b // nb

    return pl.pallas_call(
        _make_gru_kernel(tt, hidden),
        out_shape=(jax.ShapeDtypeStruct((b, t_len, hidden), jnp.bfloat16),
                   jax.ShapeDtypeStruct((b, t_len, hidden), jnp.bfloat16)),
        grid_spec=pltpu.PrefetchScalarGridSpec(
            num_scalar_prefetch=0,
            grid=(nb, g),
            in_specs=[
                pl.BlockSpec((bc, tt, 3 * hidden), lambda c, k: (c, k, 0)),
                pl.BlockSpec((bc, tt, 3 * hidden),
                             lambda c, k: (c, g - 1 - k, 1)),
                pl.BlockSpec((2 * hidden, 6 * hidden), lambda c, k: (0, 0)),
                pl.BlockSpec((1, 6 * hidden), lambda c, k: (0, 0)),
            ],
            out_specs=[
                pl.BlockSpec((bc, tt, hidden), lambda c, k: (c, k, 0)),
                pl.BlockSpec((bc, tt, hidden), lambda c, k: (c, g - 1 - k, 0)),
            ],
            scratch_shapes=[pltpu.VMEM((bc, 2 * hidden), jnp.float32)],
        ),
        compiler_params=pltpu.CompilerParams(
            dimension_semantics=("parallel", "arbitrary"),
            vmem_limit_bytes=VMEM_LIMIT),
    )(gx, gx, whh_blk, bhh_cat.reshape(1, 6 * hidden))


# ----------------------------------------------------------------------------
# Kernel 3: fused "fc" (1x1 conv 256->512, BN folded into weights) +
#           LeakyReLU(0.15) + the three RPN heads fused into a single
#           128-lane-dense matmul.  Row axis tiled + "parallel".
# ----------------------------------------------------------------------------
def _heads_kernel(hf_ref, hb_ref, wt_ref, wb_ref, bfc_ref, wh_ref, bh_ref,
                  o_ref):
    f = (jnp.dot(hf_ref[...], wt_ref[...], preferred_element_type=jnp.float32)
         + jnp.dot(hb_ref[...], wb_ref[...], preferred_element_type=jnp.float32)
         + bfc_ref[...])                              # fc + BatchNorm (folded)
    f = jnp.where(f > 0, f, 0.15 * f)                 # LeakyReLU(0.15)
    o_ref[...] = (jnp.dot(f.astype(jnp.bfloat16), wh_ref[...],
                          preferred_element_type=jnp.float32) + bh_ref[...])


def fused_heads(hf_rows, hb_rows, wfc_top, wfc_bot, fc_bias, w_heads, b_heads,
                *, tile_m=1024):
    m, hd = hf_rows.shape
    cf = wfc_top.shape[1]
    n_out = w_heads.shape[1]
    tm = tile_m if m >= tile_m else m
    return pl.pallas_call(
        _heads_kernel,
        out_shape=jax.ShapeDtypeStruct((m, n_out), jnp.float32),
        grid_spec=pltpu.PrefetchScalarGridSpec(
            num_scalar_prefetch=0,
            grid=(pl.cdiv(m, tm),),
            in_specs=[
                pl.BlockSpec((tm, hd), lambda i: (i, 0)),
                pl.BlockSpec((tm, hd), lambda i: (i, 0)),
                pl.BlockSpec((hd, cf), lambda i: (0, 0)),
                pl.BlockSpec((hd, cf), lambda i: (0, 0)),
                pl.BlockSpec((1, cf), lambda i: (0, 0)),
                pl.BlockSpec((cf, n_out), lambda i: (0, 0)),
                pl.BlockSpec((1, n_out), lambda i: (0, 0)),
            ],
            out_specs=pl.BlockSpec((tm, n_out), lambda i: (i, 0)),
        ),
        compiler_params=pltpu.CompilerParams(
            dimension_semantics=("parallel",),
            vmem_limit_bytes=VMEM_LIMIT),
    )(hf_rows, hb_rows, wfc_top, wfc_bot, fc_bias, w_heads, b_heads)


# ----------------------------------------------------------------------------
# Parameter construction (deterministic; matches CTPN.init_weight_ for the
# GRU and RPN heads; remaining layers get deterministic synthetic values).
# ----------------------------------------------------------------------------
def init_params(key, anchor_count=ANCHORS, feat_c=FEAT_C, hidden=HIDDEN):
    ks = jax.random.split(key, 9)
    f_in = feat_c * 3 * 3  # 2304, unfold(3x3) of backbone features
    p = {}
    p["embed_w"] = jax.random.normal(ks[0], (3 * PATCH * PATCH, feat_c),
                                     dtype=jnp.float32) * 0.02
    p["embed_b"] = jnp.zeros((feat_c,), jnp.float32)
    p["wih_f"] = jax.random.normal(ks[1], (3 * hidden, f_in), jnp.float32) * 0.01
    p["whh_f"] = jax.random.normal(ks[2], (3 * hidden, hidden), jnp.float32) * 0.01
    p["bih_f"] = jnp.zeros((3 * hidden,), jnp.float32)
    p["bhh_f"] = jnp.zeros((3 * hidden,), jnp.float32)
    p["wih_b"] = jax.random.normal(ks[3], (3 * hidden, f_in), jnp.float32) * 0.01
    p["whh_b"] = jax.random.normal(ks[4], (3 * hidden, hidden), jnp.float32) * 0.01
    p["bih_b"] = jnp.zeros((3 * hidden,), jnp.float32)
    p["bhh_b"] = jnp.zeros((3 * hidden,), jnp.float32)
    p["fc_w"] = jax.random.normal(ks[5], (2 * hidden, 512), jnp.float32) * 0.05
    p["bn_gamma"] = jnp.ones((512,), jnp.float32)
    p["bn_beta"] = jnp.zeros((512,), jnp.float32)
    p["bn_mean"] = jnp.zeros((512,), jnp.float32)
    p["bn_var"] = jnp.ones((512,), jnp.float32)
    a = anchor_count
    p["cls_w"] = jax.random.normal(ks[6], (512, 2 * a), jnp.float32) * 0.01
    p["cls_b"] = jnp.zeros((2 * a,), jnp.float32)
    p["reg_w"] = jax.random.normal(ks[7], (512, 2 * a), jnp.float32) * 0.01
    p["reg_b"] = jnp.zeros((2 * a,), jnp.float32)
    p["side_w"] = jax.random.normal(ks[8], (512, a), jnp.float32) * 0.01
    p["side_b"] = jnp.zeros((a,), jnp.float32)
    return p


# ----------------------------------------------------------------------------
# Full forward pass (glue in JAX, hot paths in the Pallas kernels above).
# ----------------------------------------------------------------------------
def ctpn_forward(params, x):
    n, c_in, h_in, w_in = x.shape                       # NCHW image, like PyTorch
    hf_dim, wf_dim = h_in // PATCH, w_in // PATCH
    cf, hid = FEAT_C, HIDDEN

    # ---- backbone stand-in: stride-16 patch embedding (Pallas matmul) ----
    patches = x.reshape(n, c_in, hf_dim, PATCH, wf_dim, PATCH)
    patches = patches.transpose(0, 2, 4, 1, 3, 5).reshape(
        n * hf_dim * wf_dim, c_in * PATCH * PATCH)
    feat = matmul_bias(patches, params["embed_w"], params["embed_b"],
                       out_dtype=jnp.bfloat16)          # (N*Hf*Wf, 256) NHWC rows

    # ---- nn.Unfold(3, stride=1, padding=1) done directly in NHWC / bf16 ----
    # PyTorch unfold channel ordering is channel-major, kernel-position-minor
    # (index = c*9 + kh*3 + kw); stacking the 9 shifted slices on a NEW last
    # axis and flattening (cf, 9) reproduces that ordering with no transpose.
    feat_nhwc = feat.reshape(n, hf_dim, wf_dim, cf)
    padded = jnp.pad(feat_nhwc, ((0, 0), (1, 1), (1, 1), (0, 0)))
    cols = [padded[:, kh:kh + hf_dim, kw:kw + wf_dim, :]
            for kh in range(3) for kw in range(3)]
    slide = jnp.stack(cols, axis=-1).reshape(
        n * hf_dim, wf_dim, cf * 9)                     # (B, T, F) bf16, batch_first
    b, t_len, f_in = slide.shape

    # ---- GRU input projection: one big bf16 Pallas matmul (both dirs) ----
    wih_cat = jnp.concatenate([params["wih_f"].T, params["wih_b"].T], axis=1)
    bih_cat = jnp.concatenate([params["bih_f"], params["bih_b"]], axis=0)
    gx_all = matmul_bias(slide.reshape(b * t_len, f_in), wih_cat, bih_cat,
                         out_dtype=jnp.float32).reshape(b, t_len, 6 * hid)

    # ---- fused bidirectional GRU recurrence (Pallas, sequential in T) ----
    whh_blk = jnp.zeros((2 * hid, 6 * hid), jnp.float32)
    whh_blk = whh_blk.at[:hid, :3 * hid].set(params["whh_f"].T)
    whh_blk = whh_blk.at[hid:, 3 * hid:].set(params["whh_b"].T)
    bhh_cat = jnp.concatenate([params["bhh_f"], params["bhh_b"]], axis=0)
    h_f, h_b = gru_bidirectional(gx_all, whh_blk, bhh_cat, hid)
    hf_rows = h_f.reshape(n * hf_dim * wf_dim, hid)     # NHWC row order
    hb_rows = h_b.reshape(n * hf_dim * wf_dim, hid)

    # ---- fold BN into fc weights; fuse + 128-pad the three RPN heads -----
    eps = 1e-5
    bn_scale = params["bn_gamma"] / jnp.sqrt(params["bn_var"] + eps)
    bn_bias = params["bn_beta"] - params["bn_mean"] * bn_scale
    fc_w_fold = params["fc_w"] * bn_scale[None, :]      # (256, 512)
    wfc_top = fc_w_fold[:hid].astype(jnp.bfloat16)      # forward-hidden rows
    wfc_bot = fc_w_fold[hid:].astype(jnp.bfloat16)      # backward-hidden rows
    fc_bias = bn_bias.reshape(1, -1).astype(jnp.float32)

    a = params["side_w"].shape[1]
    w_heads = jnp.concatenate(
        [params["cls_w"], params["reg_w"], params["side_w"]], axis=1)  # (512,5a)
    b_heads = jnp.concatenate(
        [params["cls_b"], params["reg_b"], params["side_b"]], axis=0)
    n_raw = w_heads.shape[1]
    n_pad = ((n_raw + 127) // 128) * 128
    w_heads = jnp.pad(w_heads, ((0, 0), (0, n_pad - n_raw))).astype(jnp.bfloat16)
    b_heads = jnp.pad(b_heads, (0, n_pad - n_raw)).reshape(1, n_pad)
    b_heads = b_heads.astype(jnp.float32)

    out = fused_heads(hf_rows, hb_rows, wfc_top, wfc_bot, fc_bias,
                      w_heads, b_heads)

    out = out.reshape(n, hf_dim, wf_dim, n_pad)         # == torch .permute(0,2,3,1)
    rpn_cls = out[..., :2 * a]
    rpn_reg = out[..., 2 * a:4 * a]
    side_ref = out[..., 4 * a:5 * a]
    return rpn_cls, rpn_reg, side_ref


if __name__ == "__main__":
    key = jax.random.PRNGKey(0)
    pkey, xkey = jax.random.split(key)
    params = init_params(pkey)
    x = jax.random.normal(xkey, (2, 3, 64, 64), dtype=jnp.float32)

    fwd = jax.jit(ctpn_forward)
    rpn_cls, rpn_reg, side_ref = fwd(params, x)
    jax.block_until_ready((rpn_cls, rpn_reg, side_ref))

    assert rpn_cls.shape == (2, 4, 4, 2 * ANCHORS)
    assert rpn_reg.shape == (2, 4, 4, 2 * ANCHORS)
    assert side_ref.shape == (2, 4, 4, ANCHORS)
    assert rpn_cls.dtype == jnp.float32
    print("KERNEL_OK")
</pallas_src>

<mosaic_0001>
module attributes {stable_mosaic.version = 11 : i64} {
  func.func @_matmul_bias_kernel(%arg0: i32, %arg1: memref<32x768xbf16, #tpu.memory_space<vmem>>, %arg2: memref<768x256xbf16, #tpu.memory_space<vmem>>, %arg3: memref<1x256xf32, #tpu.memory_space<vmem>>, %arg4: memref<32x256xbf16, #tpu.memory_space<vmem>>) attributes {dimension_semantics = [#tpu.dimension_semantics<parallel>], iteration_bounds = array<i64: 1>, scalar_prefetch = 0 : i64, scratch_operands = 0 : i64, tpu.core_type = #tpu.core_type<tc>, window_params = [{transform_indices = @transform_0, window_bounds = array<i64: 32, 768>}, {pipeline_mode = #tpu.pipeline_mode<synchronous>, transform_indices = @transform_1, window_bounds = array<i64: 768, 256>}, {pipeline_mode = #tpu.pipeline_mode<synchronous>, transform_indices = @transform_2, window_bounds = array<i64: 1, 256>}, {transform_indices = @transform_3, window_bounds = array<i64: 32, 256>}]} {
    %c0 = arith.constant 0 : index
    %c0_0 = arith.constant 0 : index
    %0 = vector.load %arg1[%c0, %c0_0] : memref<32x768xbf16, #tpu.memory_space<vmem>>, vector<32x768xbf16>
    %c0_1 = arith.constant 0 : index
    %c0_2 = arith.constant 0 : index
    %1 = vector.load %arg2[%c0_1, %c0_2] : memref<768x256xbf16, #tpu.memory_space<vmem>>, vector<768x256xbf16>
    %cst = arith.constant dense<0.000000e+00> : vector<32x256xf32>
    %2 = tpu.matmul %0, %1, %cst {dimension_numbers = #tpu.dot_dimension_numbers<[1], [0], [0], [1], [0, 0, 1, 1], [], []>} : vector<32x768xbf16>, vector<768x256xbf16>, vector<32x256xf32> -> vector<32x256xf32>
    %c0_3 = arith.constant 0 : index
    %c0_4 = arith.constant 0 : index
    %3 = vector.load %arg3[%c0_3, %c0_4] : memref<1x256xf32, #tpu.memory_space<vmem>>, vector<1x256xf32>
    %4 = vector.broadcast %3 : vector<1x256xf32> to vector<32x256xf32>
    %5 = arith.addf %2, %4 : vector<32x256xf32>
    %6 = arith.truncf %5 : vector<32x256xf32> to vector<32x256xbf16>
    %c0_5 = arith.constant 0 : index
    %c0_6 = arith.constant 0 : index
    %7 = vector.load %arg4[%c0_5, %c0_6] : memref<32x256xbf16, #tpu.memory_space<vmem>>, vector<32x256xbf16>
    tpu.vector_store %arg4[%c0_5, %c0_6], %6 {strides = array<i32>} : memref<32x256xbf16, #tpu.memory_space<vmem>>, vector<32x256xbf16>,
    return
  }
  func.func @transform_0(%arg0: i32) -> (i32, i32) {
    %c0_i32 = arith.constant 0 : i32
    %c0_i32_0 = arith.constant 0 : i32
    return %arg0, %c0_i32 : i32, i32
  }
  func.func @transform_1(%arg0: i32) -> (i32, i32) {
    %c0_i32 = arith.constant 0 : i32
    %c0_i32_0 = arith.constant 0 : i32
    %c0_i32_1 = arith.constant 0 : i32
    return %c0_i32, %c0_i32_0 : i32, i32
  }
  func.func @transform_2(%arg0: i32) -> (i32, i32) {
    %c0_i32 = arith.constant 0 : i32
    %c0_i32_0 = arith.constant 0 : i32
    %c0_i32_1 = arith.constant 0 : i32
    return %c0_i32, %c0_i32_0 : i32, i32
  }
  func.func @transform_3(%arg0: i32) -> (i32, i32) {
    %c0_i32 = arith.constant 0 : i32
    %c0_i32_0 = arith.constant 0 : i32
    return %arg0, %c0_i32 : i32, i32
  }
}

module attributes {stable_mosaic.version = 11 : i64} {
  func.func @_matmul_bias_kernel(%arg0: i32, %arg1: memref<32x2304xbf16, #tpu.memory_space<vmem>>, %arg2: memref<2304x768xbf16, #tpu.memory_space<vmem>>, %arg3: memref<1x768xf32, #tpu.memory_space<vmem>>, %arg4: memref<32x768xf32, #tpu.memory_space<vmem>>) attributes {dimension_semantics = [#tpu.dimension_semantics<parallel>], iteration_bounds = array<i64: 1>, scalar_prefetch = 0 : i64, scratch_operands = 0 : i64, tpu.core_type = #tpu.core_type<tc>, window_params = [{transform_indices = @transform_0, window_bounds = array<i64: 32, 2304>}, {pipeline_mode = #tpu.pipeline_mode<synchronous>, transform_indices = @transform_1, window_bounds = array<i64: 2304, 768>}, {pipeline_mode = #tpu.pipeline_mode<synchronous>, transform_indices = @transform_2, window_bounds = array<i64: 1, 768>}, {transform_indices = @transform_3, window_bounds = array<i64: 32, 768>}]} {
    %c0 = arith.constant 0 : index
    %c0_0 = arith.constant 0 : index
    %0 = vector.load %arg1[%c0, %c0_0] : memref<32x2304xbf16, #tpu.memory_space<vmem>>, vector<32x2304xbf16>
    %c0_1 = arith.constant 0 : index
    %c0_2 = arith.constant 0 : index
    %1 = vector.load %arg2[%c0_1, %c0_2] : memref<2304x768xbf16, #tpu.memory_space<vmem>>, vector<2304x768xbf16>
    %cst = arith.constant dense<0.000000e+00> : vector<32x768xf32>
    %2 = tpu.matmul %0, %1, %cst {dimension_numbers = #tpu.dot_dimension_numbers<[1], [0], [0], [1], [0, 0, 1, 1], [], []>} : vector<32x2304xbf16>, vector<2304x768xbf16>, vector<32x768xf32> -> vector<32x768xf32>
    %c0_3 = arith.constant 0 : index
    %c0_4 = arith.constant 0 : index
    %3 = vector.load %arg3[%c0_3, %c0_4] : memref<1x768xf32, #tpu.memory_space<vmem>>, vector<1x768xf32>
    %4 = vector.broadcast %3 : vector<1x768xf32> to vector<32x768xf32>
    %5 = arith.addf %2, %4 : vector<32x768xf32>
    %c0_5 = arith.constant 0 : index
    %c0_6 = arith.constant 0 : index
    %6 = vector.load %arg4[%c0_5, %c0_6] : memref<32x768xf32, #tpu.memory_space<vmem>>, vector<32x768xf32>
    tpu.vector_store %arg4[%c0_5, %c0_6], %5 {strides = array<i32>} : memref<32x768xf32, #tpu.memory_space<vmem>>, vector<32x768xf32>,
    return
  }
  func.func @transform_0(%arg0: i32) -> (i32, i32) {
    %c0_i32 = arith.constant 0 : i32
    %c0_i32_0 = arith.constant 0 : i32
    return %arg0, %c0_i32 : i32, i32
  }
  func.func @transform_1(%arg0: i32) -> (i32, i32) {
    %c0_i32 = arith.constant 0 : i32
    %c0_i32_0 = arith.constant 0 : i32
    %c0_i32_1 = arith.constant 0 : i32
    return %c0_i32, %c0_i32_0 : i32, i32
  }
  func.func @transform_2(%arg0: i32) -> (i32, i32) {
    %c0_i32 = arith.constant 0 : i32
    %c0_i32_0 = arith.constant 0 : i32
    %c0_i32_1 = arith.constant 0 : i32
    return %c0_i32, %c0_i32_0 : i32, i32
  }
  func.func @transform_3(%arg0: i32) -> (i32, i32) {
    %c0_i32 = arith.constant 0 : i32
    %c0_i32_0 = arith.constant 0 : i32
    return %arg0, %c0_i32 : i32, i32
  }
}

module attributes {stable_mosaic.version = 11 : i64} {
  func.func @kernel(%arg0: i32, %arg1: i32, %arg2: memref<4x4x384xf32, #tpu.memory_space<vmem>>, %arg3: memref<4x4x384xf32, #tpu.memory_space<vmem>>, %arg4: memref<256x768xf32, #tpu.memory_space<vmem>>, %arg5: memref<1x768xf32, #tpu.memory_space<vmem>>, %arg6: memref<4x4x128xbf16, #tpu.memory_space<vmem>>, %arg7: memref<4x4x128xbf16, #tpu.memory_space<vmem>>, %arg8: memref<4x256xf32, #tpu.memory_space<vmem>>) attributes {dimension_semantics = [#tpu.dimension_semantics<parallel>, #tpu.dimension_semantics<arbitrary>], iteration_bounds = array<i64: 2, 1>, scalar_prefetch = 0 : i64, scratch_operands = 1 : i64, tpu.core_type = #tpu.core_type<tc>, window_params = [{transform_indices = @transform_0, window_bounds = array<i64: 4, 4, 384>}, {transform_indices = @transform_1, window_bounds = array<i64: 4, 4, 384>}, {pipeline_mode = #tpu.pipeline_mode<synchronous>, transform_indices = @transform_2, window_bounds = array<i64: 256, 768>}, {pipeline_mode = #tpu.pipeline_mode<synchronous>, transform_indices = @transform_3, window_bounds = array<i64: 1, 768>}, {transform_indices = @transform_4, window_bounds = array<i64: 4, 4, 128>}, {transform_indices = @transform_5, window_bounds = array<i64: 4, 4, 128>}]} {
    %c0_i32 = arith.constant 0 : i32
    %0 = arith.cmpi eq, %arg1, %c0_i32 : i32
    %1 = arith.extui %0 : i1 to i32
    %c0_i32_0 = arith.constant 0 : i32
    %2 = arith.cmpi ne, %1, %c0_i32_0 : i32
    scf.if %2 {
      %cst_80 = arith.constant 0.000000e+00 : f32
      %295 = vector.broadcast %cst_80 : f32 to vector<4x256xf32>
      %c0_81 = arith.constant 0 : index
      %c0_82 = arith.constant 0 : index
      %296 = vector.load %arg8[%c0_81, %c0_82] : memref<4x256xf32, #tpu.memory_space<vmem>>, vector<4x256xf32>
      tpu.vector_store %arg8[%c0_81, %c0_82], %295 {strides = array<i32>} : memref<4x256xf32, #tpu.memory_space<vmem>>, vector<4x256xf32>,
    } else {
    }
    %c0 = arith.constant 0 : index
    %c0_1 = arith.constant 0 : index
    %3 = vector.load %arg8[%c0, %c0_1] : memref<4x256xf32, #tpu.memory_space<vmem>>, vector<4x256xf32>
    %c0_2 = arith.constant 0 : index
    %c0_3 = arith.constant 0 : index
    %4 = vector.load %arg4[%c0_2, %c0_3] : memref<256x768xf32, #tpu.memory_space<vmem>>, vector<256x768xf32>
    %c0_4 = arith.constant 0 : index
    %c0_5 = arith.constant 0 : index
    %5 = vector.load %arg5[%c0_4, %c0_5] : memref<1x768xf32, #tpu.memory_space<vmem>>, vector<1x768xf32>
    %cst = arith.constant dense<0.000000e+00> : vector<4x768xf32>
    %6 = tpu.matmul %3, %4, %cst {dimension_numbers = #tpu.dot_dimension_numbers<[1], [0], [0], [1], [0, 0, 1, 1], [], []>} : vector<4x256xf32>, vector<256x768xf32>, vector<4x768xf32> -> vector<4x768xf32>
    %7 = vector.broadcast %5 : vector<1x768xf32> to vector<4x768xf32>
    %8 = arith.addf %6, %7 : vector<4x768xf32>
    %c0_6 = arith.constant 0 : index
    %c0_7 = arith.constant 0 : index
    %c0_8 = arith.constant 0 : index
    %9 = vector.load %arg2[%c0_6, %c0_7, %c0_8] : memref<4x4x384xf32, #tpu.memory_space<vmem>>, vector<4x1x384xf32>
    %10 = vector.shape_cast %9 : vector<4x1x384xf32> to vector<4x384xf32>
    %11 = vector.extract_strided_slice %8 {offsets = [0, 0], sizes = [4, 384], strides = [1, 1]} : vector<4x768xf32> to vector<4x384xf32>
    %12 = vector.extract_strided_slice %3 {offsets = [0, 0], sizes = [4, 128], strides = [1, 1]} : vector<4x256xf32> to vector<4x128xf32>
    %13 = vector.extract_strided_slice %10 {offsets = [0, 0], sizes = [4, 128], strides = [1, 1]} : vector<4x384xf32> to vector<4x128xf32>
    %14 = vector.extract_strided_slice %11 {offsets = [0, 0], sizes = [4, 128], strides = [1, 1]} : vector<4x384xf32> to vector<4x128xf32>
    %15 = arith.addf %13, %14 : vector<4x128xf32>
    %16 = arith.negf %15 : vector<4x128xf32>
    %17 = math.exp %16 : vector<4x128xf32>
    %cst_9 = arith.constant 1.000000e+00 : f32
    %18 = vector.broadcast %cst_9 : f32 to vector<4x128xf32>
    %19 = arith.addf %18, %17 : vector<4x128xf32>
    %20 = arith.divf %18, %19 : vector<4x128xf32>
    %21 = vector.extract_strided_slice %10 {offsets = [0, 128], sizes = [4, 128], strides = [1, 1]} : vector<4x384xf32> to vector<4x128xf32>
    %22 = vector.extract_strided_slice %11 {offsets = [0, 128], sizes = [4, 128], strides = [1, 1]} : vector<4x384xf32> to vector<4x128xf32>
    %23 = arith.addf %21, %22 : vector<4x128xf32>
    %24 = arith.negf %23 : vector<4x128xf32>
    %25 = math.exp %24 : vector<4x128xf32>
    %cst_10 = arith.constant 1.000000e+00 : f32
    %26 = vector.broadcast %cst_10 : f32 to vector<4x128xf32>
    %27 = arith.addf %26, %25 : vector<4x128xf32>
    %28 = arith.divf %26, %27 : vector<4x128xf32>
    %29 = vector.extract_strided_slice %10 {offsets = [0, 256], sizes = [4, 128], strides = [1, 1]} : vector<4x384xf32> to vector<4x128xf32>
    %30 = vector.extract_strided_slice %11 {offsets = [0, 256], sizes = [4, 128], strides = [1, 1]} : vector<4x384xf32> to vector<4x128xf32>
    %31 = arith.mulf %20, %30 : vector<4x128xf32>
    %32 = arith.addf %29, %31 : vector<4x128xf32>
    %33 = math.tanh %32 : vector<4x128xf32>
    %cst_11 = arith.constant 1.000000e+00 : f32
    %34 = vector.broadcast %cst_11 : f32 to vector<4x128xf32>
    %35 = arith.subf %34, %28 : vector<4x128xf32>
    %36 = arith.mulf %35, %33 : vector<4x128xf32>
    %37 = arith.mulf %28, %12 : vector<4x128xf32>
    %38 = arith.addf %36, %37 : vector<4x128xf32>
    %c0_12 = arith.constant 0 : index
    %c3 = arith.constant 3 : index
    %c0_13 = arith.constant 0 : index
    %39 = vector.load %arg3[%c0_12, %c3, %c0_13] : memref<4x4x384xf32, #tpu.memory_space<vmem>>, vector<4x1x384xf32>
    %40 = vector.shape_cast %39 : vector<4x1x384xf32> to vector<4x384xf32>
    %41 = vector.extract_strided_slice %8 {offsets = [0, 384], sizes = [4, 384], strides = [1, 1]} : vector<4x768xf32> to vector<4x384xf32>
    %42 = vector.extract_strided_slice %3 {offsets = [0, 128], sizes = [4, 128], strides = [1, 1]} : vector<4x256xf32> to vector<4x128xf32>
    %43 = vector.extract_strided_slice %40 {offsets = [0, 0], sizes = [4, 128], strides = [1, 1]} : vector<4x384xf32> to vector<4x128xf32>
    %44 = vector.extract_strided_slice %41 {offsets = [0, 0], sizes = [4, 128], strides = [1, 1]} : vector<4x384xf32> to vector<4x128xf32>
    %45 = arith.addf %43, %44 : vector<4x128xf32>
    %46 = arith.negf %45 : vector<4x128xf32>
    %47 = math.exp %46 : vector<4x128xf32>
    %cst_14 = arith.constant 1.000000e+00 : f32
    %48 = vector.broadcast %cst_14 : f32 to vector<4x128xf32>
    %49 = arith.addf %48, %47 : vector<4x128xf32>
    %50 = arith.divf %48, %49 : vector<4x128xf32>
    %51 = vector.extract_strided_slice %40 {offsets = [0, 128], sizes = [4, 128], strides = [1, 1]} : vector<4x384xf32> to vector<4x128xf32>
    %52 = vector.extract_strided_slice %41 {offsets = [0, 128], sizes = [4, 128], strides = [1, 1]} : vector<4x384xf32> to vector<4x128xf32>
    %53 = arith.addf %51, %52 : vector<4x128xf32>
    %54 = arith.negf %53 : vector<4x128xf32>
    %55 = math.exp %54 : vector<4x128xf32>
    %cst_15 = arith.constant 1.000000e+00 : f32
    %56 = vector.broadcast %cst_15 : f32 to vector<4x128xf32>
    %57 = arith.addf %56, %55 : vector<4x128xf32>
    %58 = arith.divf %56, %57 : vector<4x128xf32>
    %59 = vector.extract_strided_slice %40 {offsets = [0, 256], sizes = [4, 128], strides = [1, 1]} : vector<4x384xf32> to vector<4x128xf32>
    %60 = vector.extract_strided_slice %41 {offsets = [0, 256], sizes = [4, 128], strides = [1, 1]} : vector<4x384xf32> to vector<4x128xf32>
    %61 = arith.mulf %50, %60 : vector<4x128xf32>
    %62 = arith.addf %59, %61 : vector<4x128xf32>
    %63 = math.tanh %62 : vector<4x128xf32>
    %cst_16 = arith.constant 1.000000e+00 : f32
    %64 = vector.broadcast %cst_16 : f32 to vector<4x128xf32>
    %65 = arith.subf %64, %58 : vector<4x128xf32>
    %66 = arith.mulf %65, %63 : vector<4x128xf32>
    %67 = arith.mulf %58, %42 : vector<4x128xf32>
    %68 = arith.addf %66, %67 : vector<4x128xf32>
    %69 = arith.truncf %38 : vector<4x128xf32> to vector<4x128xbf16>
    %c0_17 = arith.constant 0 : index
    %c0_18 = arith.constant 0 : index
    %c0_19 = arith.constant 0 : index
    %70 = vector.load %arg6[%c0_17, %c0_18, %c0_19] : memref<4x4x128xbf16, #tpu.memory_space<vmem>>, vector<4x1x128xbf16>
    %71 = vector.shape_cast %70 : vector<4x1x128xbf16> to vector<4x128xbf16>
    %72 = vector.shape_cast %69 : vector<4x128xbf16> to vector<4x1x128xbf16>
    tpu.vector_store %arg6[%c0_17, %c0_18, %c0_19], %72 {strides = array<i32>} : memref<4x4x128xbf16, #tpu.memory_space<vmem>>, vector<4x1x128xbf16>,
    %73 = arith.truncf %68 : vector<4x128xf32> to vector<4x128xbf16>
    %c0_20 = arith.constant 0 : index
    %c3_21 = arith.constant 3 : index
    %c0_22 = arith.constant 0 : index
    %74 = vector.load %arg7[%c0_20, %c3_21, %c0_22] : memref<4x4x128xbf16, #tpu.memory_space<vmem>>, vector<4x1x128xbf16>
    %75 = vector.shape_cast %74 : vector<4x1x128xbf16> to vector<4x128xbf16>
    %76 = vector.shape_cast %73 : vector<4x128xbf16> to vector<4x1x128xbf16>
    tpu.vector_store %arg7[%c0_20, %c3_21, %c0_22], %76 {strides = array<i32>} : memref<4x4x128xbf16, #tpu.memory_space<vmem>>, vector<4x1x128xbf16>,
    %77 = tpu.concatenate %38, %68 in 1 : vector<4x128xf32>, vector<4x128xf32> -> vector<4x256xf32>
    %cst_23 = arith.constant dense<0.000000e+00> : vector<4x768xf32>
    %78 = tpu.matmul %77, %4, %cst_23 {dimension_numbers = #tpu.dot_dimension_numbers<[1], [0], [0], [1], [0, 0, 1, 1], [], []>} : vector<4x256xf32>, vector<256x768xf32>, vector<4x768xf32> -> vector<4x768xf32>
    %79 = vector.broadcast %5 : vector<1x768xf32> to vector<4x768xf32>
    %80 = arith.addf %78, %79 : vector<4x768xf32>
    %c0_24 = arith.constant 0 : index
    %c1 = arith.constant 1 : index
    %c0_25 = arith.constant 0 : index
    %81 = vector.load %arg2[%c0_24, %c1, %c0_25] : memref<4x4x384xf32, #tpu.memory_space<vmem>>, vector<4x1x384xf32>
    %82 = vector.shape_cast %81 : vector<4x1x384xf32> to vector<4x384xf32>
    %83 = vector.extract_strided_slice %80 {offsets = [0, 0], sizes = [4, 384], strides = [1, 1]} : vector<4x768xf32> to vector<4x384xf32>
    %84 = vector.extract_strided_slice %77 {offsets = [0, 0], sizes = [4, 128], strides = [1, 1]} : vector<4x256xf32> to vector<4x128xf32>
    %85 = vector.extract_strided_slice %82 {offsets = [0, 0], sizes = [4, 128], strides = [1, 1]} : vector<4x384xf32> to vector<4x128xf32>
    %86 = vector.extract_strided_slice %83 {offsets = [0, 0], sizes = [4, 128], strides = [1, 1]} : vector<4x384xf32> to vector<4x128xf32>
    %87 = arith.addf %85, %86 : vector<4x128xf32>
    %88 = arith.negf %87 : vector<4x128xf32>
    %89 = math.exp %88 : vector<4x128xf32>
    %cst_26 = arith.constant 1.000000e+00 : f32
    %90 = vector.broadcast %cst_26 : f32 to vector<4x128xf32>
    %91 = arith.addf %90, %89 : vector<4x128xf32>
    %92 = arith.divf %90, %91 : vector<4x128xf32>
    %93 = vector.extract_strided_slice %82 {offsets = [0, 128], sizes = [4, 128], strides = [1, 1]} : vector<4x384xf32> to vector<4x128xf32>
    %94 = vector.extract_strided_slice %83 {offsets = [0, 128], sizes = [4, 128], strides = [1, 1]} : vector<4x384xf32> to vector<4x128xf32>
    %95 = arith.addf %93, %94 : vector<4x128xf32>
    %96 = arith.negf %95 : vector<4x128xf32>
    %97 = math.exp %96 : vector<4x128xf32>
    %cst_27 = arith.constant 1.000000e+00 : f32
    %98 = vector.broadcast %cst_27 : f32 to vector<4x128xf32>
    %99 = arith.addf %98, %97 : vector<4x128xf32>
    %100 = arith.divf %98, %99 : vector<4x128xf32>
    %101 = vector.extract_strided_slice %82 {offsets = [0, 256], sizes = [4, 128], strides = [1, 1]} : vector<4x384xf32> to vector<4x128xf32>
    %102 = vector.extract_strided_slice %83 {offsets = [0, 256], sizes = [4, 128], strides = [1, 1]} : vector<4x384xf32> to vector<4x128xf32>
    %103 = arith.mulf %92, %102 : vector<4x128xf32>
    %104 = arith.addf %101, %103 : vector<4x128xf32>
    %105 = math.tanh %104 : vector<4x128xf32>
    %cst_28 = arith.constant 1.000000e+00 : f32
    %106 = vector.broadcast %cst_28 : f32 to vector<4x128xf32>
    %107 = arith.subf %106, %100 : vector<4x128xf32>
    %108 = arith.mulf %107, %105 : vector<4x128xf32>
    %109 = arith.mulf %100, %84 : vector<4x128xf32>
    %110 = arith.addf %108, %109 : vector<4x128xf32>
    %c0_29 = arith.constant 0 : index
    %c2 = arith.constant 2 : index
    %c0_30 = arith.constant 0 : index
    %111 = vector.load %arg3[%c0_29, %c2, %c0_30] : memref<4x4x384xf32, #tpu.memory_space<vmem>>, vector<4x1x384xf32>
    %112 = vector.shape_cast %111 : vector<4x1x384xf32> to vector<4x384xf32>
    %113 = vector.extract_strided_slice %80 {offsets = [0, 384], sizes = [4, 384], strides = [1, 1]} : vector<4x768xf32> to vector<4x384xf32>
    %114 = vector.extract_strided_slice %77 {offsets = [0, 128], sizes = [4, 128], strides = [1, 1]} : vector<4x256xf32> to vector<4x128xf32>
    %115 = vector.extract_strided_slice %112 {offsets = [0, 0], sizes = [4, 128], strides = [1, 1]} : vector<4x384xf32> to vector<4x128xf32>
    %116 = vector.extract_strided_slice %113 {offsets = [0, 0], sizes = [4, 128], strides = [1, 1]} : vector<4x384xf32> to vector<4x128xf32>
    %117 = arith.addf %115, %116 : vector<4x128xf32>
    %118 = arith.negf %117 : vector<4x128xf32>
    %119 = math.exp %118 : vector<4x128xf32>
    %cst_31 = arith.constant 1.000000e+00 : f32
    %120 = vector.broadcast %cst_31 : f32 to vector<4x128xf32>
    %121 = arith.addf %120, %119 : vector<4x128xf32>
    %122 = arith.divf %120, %121 : vector<4x128xf32>
    %123 = vector.extract_strided_slice %112 {offsets = [0, 128], sizes = [4, 128], strides = [1, 1]} : vector<4x384xf32> to vector<4x128xf32>
    %124 = vector.extract_strided_slice %113 {offsets = [0, 128], sizes = [4, 128], strides = [1, 1]} : vector<4x384xf32> to vector<4x128xf32>
    %125 = arith.addf %123, %124 : vector<4x128xf32>
    %126 = arith.negf %125 : vector<4x128xf32>
    %127 = math.exp %126 : vector<4x128xf32>
    %cst_32 = arith.constant 1.000000e+00 : f32
    %128 = vector.broadcast %cst_32 : f32 to vector<4x128xf32>
    %129 = arith.addf %128, %127 : vector<4x128xf32>
    %130 = arith.divf %128, %129 : vector<4x128xf32>
    %131 = vector.extract_strided_slice %112 {offsets = [0, 256], sizes = [4, 128], strides = [1, 1]} : vector<4x384xf32> to vector<4x128xf32>
    %132 = vector.extract_strided_slice %113 {offsets = [0, 256], sizes = [4, 128], strides = [1, 1]} : vector<4x384xf32> to vector<4x128xf32>
    %133 = arith.mulf %122, %132 : vector<4x128xf32>
    %134 = arith.addf %131, %133 : vector<4x128xf32>
    %135 = math.tanh %134 : vector<4x128xf32>
    %cst_33 = arith.constant 1.000000e+00 : f32
    %136 = vector.broadcast %cst_33 : f32 to vector<4x128xf32>
    %137 = arith.subf %136, %130 : vector<4x128xf32>
    %138 = arith.mulf %137, %135 : vector<4x128xf32>
    %139 = arith.mulf %130, %114 : vector<4x128xf32>
    %140 = arith.addf %138, %139 : vector<4x128xf32>
    %141 = arith.truncf %110 : vector<4x128xf32> to vector<4x128xbf16>
    %c0_34 = arith.constant 0 : index
    %c1_35 = arith.constant 1 : index
    %c0_36 = arith.constant 0 : index
    %142 = vector.load %arg6[%c0_34, %c1_35, %c0_36] : memref<4x4x128xbf16, #tpu.memory_space<vmem>>, vector<4x1x128xbf16>
    %143 = vector.shape_cast %142 : vector<4x1x128xbf16> to vector<4x128xbf16>
    %144 = vector.shape_cast %141 : vector<4x128xbf16> to vector<4x1x128xbf16>
    tpu.vector_store %arg6[%c0_34, %c1_35, %c0_36], %144 {strides = array<i32>} : memref<4x4x128xbf16, #tpu.memory_space<vmem>>, vector<4x1x128xbf16>,
    %145 = arith.truncf %140 : vector<4x128xf32> to vector<4x128xbf16>
    %c0_37 = arith.constant 0 : index
    %c2_38 = arith.constant 2 : index
    %c0_39 = arith.constant 0 : index
    %146 = vector.load %arg7[%c0_37, %c2_38, %c0_39] : memref<4x4x128xbf16, #tpu.memory_space<vmem>>, vector<4x1x128xbf16>
    %147 = vector.shape_cast %146 : vector<4x1x128xbf16> to vector<4x128xbf16>
    %148 = vector.shape_cast %145 : vector<4x128xbf16> to vector<4x1x128xbf16>
    tpu.vector_store %arg7[%c0_37, %c2_38, %c0_39], %148 {strides = array<i32>} : memref<4x4x128xbf16, #tpu.memory_space<vmem>>, vector<4x1x128xbf16>,
    %149 = tpu.concatenate %110, %140 in 1 : vector<4x128xf32>, vector<4x128xf32> -> vector<4x256xf32>
    %cst_40 = arith.constant dense<0.000000e+00> : vector<4x768xf32>
    %150 = tpu.matmul %149, %4, %cst_40 {dimension_numbers = #tpu.dot_dimension_numbers<[1], [0], [0], [1], [0, 0, 1, 1], [], []>} : vector<4x256xf32>, vector<256x768xf32>, vector<4x768xf32> -> vector<4x768xf32>
    %151 = vector.broadcast %5 : vector<1x768xf32> to vector<4x768xf32>
    %152 = arith.addf %150, %151 : vector<4x768xf32>
    %c0_41 = arith.constant 0 : index
    %c2_42 = arith.constant 2 : index
    %c0_43 = arith.constant 0 : index
    %153 = vector.load %arg2[%c0_41, %c2_42, %c0_43] : memref<4x4x384xf32, #tpu.memory_space<vmem>>, vector<4x1x384xf32>
    %154 = vector.shape_cast %153 : vector<4x1x384xf32> to vector<4x384xf32>
    %155 = vector.extract_strided_slice %152 {offsets = [0, 0], sizes = [4, 384], strides = [1, 1]} : vector<4x768xf32> to vector<4x384xf32>
    %156 = vector.extract_strided_slice %149 {offsets = [0, 0], sizes = [4, 128], strides = [1, 1]} : vector<4x256xf32> to vector<4x128xf32>
    %157 = vector.extract_strided_slice %154 {offsets = [0, 0], sizes = [4, 128], strides = [1, 1]} : vector<4x384xf32> to vector<4x128xf32>
    %158 = vector.extract_strided_slice %155 {offsets = [0, 0], sizes = [4, 128], strides = [1, 1]} : vector<4x384xf32> to vector<4x128xf32>
    %159 = arith.addf %157, %158 : vector<4x128xf32>
    %160 = arith.negf %159 : vector<4x128xf32>
    %161 = math.exp %160 : vector<4x128xf32>
    %cst_44 = arith.constant 1.000000e+00 : f32
    %162 = vector.broadcast %cst_44 : f32 to vector<4x128xf32>
    %163 = arith.addf %162, %161 : vector<4x128xf32>
    %164 = arith.divf %162, %163 : vector<4x128xf32>
    %165 = vector.extract_strided_slice %154 {offsets = [0, 128], sizes = [4, 128], strides = [1, 1]} : vector<4x384xf32> to vector<4x128xf32>
    %166 = vector.extract_strided_slice %155 {offsets = [0, 128], sizes = [4, 128], strides = [1, 1]} : vector<4x384xf32> to vector<4x128xf32>
    %167 = arith.addf %165, %166 : vector<4x128xf32>
    %168 = arith.negf %167 : vector<4x128xf32>
    %169 = math.exp %168 : vector<4x128xf32>
    %cst_45 = arith.constant 1.000000e+00 : f32
    %170 = vector.broadcast %cst_45 : f32 to vector<4x128xf32>
    %171 = arith.addf %170, %169 : vector<4x128xf32>
    %172 = arith.divf %170, %171 : vector<4x128xf32>
    %173 = vector.extract_strided_slice %154 {offsets = [0, 256], sizes = [4, 128], strides = [1, 1]} : vector<4x384xf32> to vector<4x128xf32>
    %174 = vector.extract_strided_slice %155 {offsets = [0, 256], sizes = [4, 128], strides = [1, 1]} : vector<4x384xf32> to vector<4x128xf32>
    %175 = arith.mulf %164, %174 : vector<4x128xf32>
    %176 = arith.addf %173, %175 : vector<4x128xf32>
    %177 = math.tanh %176 : vector<4x128xf32>
    %cst_46 = arith.constant 1.000000e+00 : f32
    %178 = vector.broadcast %cst_46 : f32 to vector<4x128xf32>
    %179 = arith.subf %178, %172 : vector<4x128xf32>
    %180 = arith.mulf %179, %177 : vector<4x128xf32>
    %181 = arith.mulf %172, %156 : vector<4x128xf32>
    %182 = arith.addf %180, %181 : vector<4x128xf32>
    %c0_47 = arith.constant 0 : index
    %c1_48 = arith.constant 1 : index
    %c0_49 = arith.constant 0 : index
    %183 = vector.load %arg3[%c0_47, %c1_48, %c0_49] : memref<4x4x384xf32, #tpu.memory_space<vmem>>, vector<4x1x384xf32>
    %184 = vector.shape_cast %183 : vector<4x1x384xf32> to vector<4x384xf32>
    %185 = vector.extract_strided_slice %152 {offsets = [0, 384], sizes = [4, 384], strides = [1, 1]} : vector<4x768xf32> to vector<4x384xf32>
    %186 = vector.extract_strided_slice %149 {offsets = [0, 128], sizes = [4, 128], strides = [1, 1]} : vector<4x256xf32> to vector<4x128xf32>
    %187 = vector.extract_strided_slice %184 {offsets = [0, 0], sizes = [4, 128], strides = [1, 1]} : vector<4x384xf32> to vector<4x128xf32>
    %188 = vector.extract_strided_slice %185 {offsets = [0, 0], sizes = [4, 128], strides = [1, 1]} : vector<4x384xf32> to vector<4x128xf32>
    %189 = arith.addf %187, %188 : vector<4x128xf32>
    %190 = arith.negf %189 : vector<4x128xf32>
    %191 = math.exp %190 : vector<4x128xf32>
    %cst_50 = arith.constant 1.000000e+00 : f32
    %192 = vector.broadcast %cst_50 : f32 to vector<4x128xf32>
    %193 = arith.addf %192, %191 : vector<4x128xf32>
    %194 = arith.divf %192, %193 : vector<4x128xf32>
    %195 = vector.extract_strided_slice %184 {offsets = [0, 128], sizes = [4, 128], strides = [1, 1]} : vector<4x384xf32> to vector<4x128xf32>
    %196 = vector.extract_strided_slice %185 {offsets = [0, 128], sizes = [4, 128], strides = [1, 1]} : vector<4x384xf32> to vector<4x128xf32>
    %197 = arith.addf %195, %196 : vector<4x128xf32>
    %198 = arith.negf %197 : vector<4x128xf32>
    %199 = math.exp %198 : vector<4x128xf32>
    %cst_51 = arith.constant 1.000000e+00 : f32
    %200 = vector.broadcast %cst_51 : f32 to vector<4x128xf32>
    %201 = arith.addf %200, %199 : vector<4x128xf32>
    %202 = arith.divf %200, %201 : vector<4x128xf32>
    %203 = vector.extract_strided_slice %184 {offsets = [0, 256], sizes = [4, 128], strides = [1, 1]} : vector<4x384xf32> to vector<4x128xf32>
    %204 = vector.extract_strided_slice %185 {offsets = [0, 256], sizes = [4, 128], strides = [1, 1]} : vector<4x384xf32> to vector<4x128xf32>
    %205 = arith.mulf %194, %204 : vector<4x128xf32>
    %206 = arith.addf %203, %205 : vector<4x128xf32>
    %207 = math.tanh %206 : vector<4x128xf32>
    %cst_52 = arith.constant 1.000000e+00 : f32
    %208 = vector.broadcast %cst_52 : f32 to vector<4x128xf32>
    %209 = arith.subf %208, %202 : vector<4x128xf32>
    %210 = arith.mulf %209, %207 : vector<4x128xf32>
    %211 = arith.mulf %202, %186 : vector<4x128xf32>
    %212 = arith.addf %210, %211 : vector<4x128xf32>
    %213 = arith.truncf %182 : vector<4x128xf32> to vector<4x128xbf16>
    %c0_53 = arith.constant 0 : index
    %c2_54 = arith.constant 2 : index
    %c0_55 = arith.constant 0 : index
    %214 = vector.load %arg6[%c0_53, %c2_54, %c0_55] : memref<4x4x128xbf16, #tpu.memory_space<vmem>>, vector<4x1x128xbf16>
    %215 = vector.shape_cast %214 : vector<4x1x128xbf16> to vector<4x128xbf16>
    %216 = vector.shape_cast %213 : vector<4x128xbf16> to vector<4x1x128xbf16>
    tpu.vector_store %arg6[%c0_53, %c2_54, %c0_55], %216 {strides = array<i32>} : memref<4x4x128xbf16, #tpu.memory_space<vmem>>, vector<4x1x128xbf16>,
    %217 = arith.truncf %212 : vector<4x128xf32> to vector<4x128xbf16>
    %c0_56 = arith.constant 0 : index
    %c1_57 = arith.constant 1 : index
    %c0_58 = arith.constant 0 : index
    %218 = vector.load %arg7[%c0_56, %c1_57, %c0_58] : memref<4x4x128xbf16, #tpu.memory_space<vmem>>, vector<4x1x128xbf16>
    %219 = vector.shape_cast %218 : vector<4x1x128xbf16> to vector<4x128xbf16>
    %220 = vector.shape_cast %217 : vector<4x128xbf16> to vector<4x1x128xbf16>
    tpu.vector_store %arg7[%c0_56, %c1_57, %c0_58], %220 {strides = array<i32>} : memref<4x4x128xbf16, #tpu.memory_space<vmem>>, vector<4x1x128xbf16>,
    %221 = tpu.concatenate %182, %212 in 1 : vector<4x128xf32>, vector<4x128xf32> -> vector<4x256xf32>
    %cst_59 = arith.constant dense<0.000000e+00> : vector<4x768xf32>
    %222 = tpu.matmul %221, %4, %cst_59 {dimension_numbers = #tpu.dot_dimension_numbers<[1], [0], [0], [1], [0, 0, 1, 1], [], []>} : vector<4x256xf32>, vector<256x768xf32>, vector<4x768xf32> -> vector<4x768xf32>
    %223 = vector.broadcast %5 : vector<1x768xf32> to vector<4x768xf32>
    %224 = arith.addf %222, %223 : vector<4x768xf32>
    %c0_60 = arith.constant 0 : index
    %c3_61 = arith.constant 3 : index
    %c0_62 = arith.constant 0 : index
    %225 = vector.load %arg2[%c0_60, %c3_61, %c0_62] : memref<4x4x384xf32, #tpu.memory_space<vmem>>, vector<4x1x384xf32>
    %226 = vector.shape_cast %225 : vector<4x1x384xf32> to vector<4x384xf32>
    %227 = vector.extract_strided_slice %224 {offsets = [0, 0], sizes = [4, 384], strides = [1, 1]} : vector<4x768xf32> to vector<4x384xf32>
    %228 = vector.extract_strided_slice %221 {offsets = [0, 0], sizes = [4, 128], strides = [1, 1]} : vector<4x256xf32> to vector<4x128xf32>
    %229 = vector.extract_strided_slice %226 {offsets = [0, 0], sizes = [4, 128], strides = [1, 1]} : vector<4x384xf32> to vector<4x128xf32>
    %230 = vector.extract_strided_slice %227 {offsets = [0, 0], sizes = [4, 128], strides = [1, 1]} : vector<4x384xf32> to vector<4x128xf32>
    %231 = arith.addf %229, %230 : vector<4x128xf32>
    %232 = arith.negf %231 : vector<4x128xf32>
    %233 = math.exp %232 : vector<4x128xf32>
    %cst_63 = arith.constant 1.000000e+00 : f32
    %234 = vector.broadcast %cst_63 : f32 to vector<4x128xf32>
    %235 = arith.addf %234, %233 : vector<4x128xf32>
    %236 = arith.divf %234, %235 : vector<4x128xf32>
    %237 = vector.extract_strided_slice %226 {offsets = [0, 128], sizes = [4, 128], strides = [1, 1]} : vector<4x384xf32> to vector<4x128xf32>
    %238 = vector.extract_strided_slice %227 {offsets = [0, 128], sizes = [4, 128], strides = [1, 1]} : vector<4x384xf32> to vector<4x128xf32>
    %239 = arith.addf %237, %238 : vector<4x128xf32>
    %240 = arith.negf %239 : vector<4x128xf32>
    %241 = math.exp %240 : vector<4x128xf32>
    %cst_64 = arith.constant 1.000000e+00 : f32
    %242 = vector.broadcast %cst_64 : f32 to vector<4x128xf32>
    %243 = arith.addf %242, %241 : vector<4x128xf32>
    %244 = arith.divf %242, %243 : vector<4x128xf32>
    %245 = vector.extract_strided_slice %226 {offsets = [0, 256], sizes = [4, 128], strides = [1, 1]} : vector<4x384xf32> to vector<4x128xf32>
    %246 = vector.extract_strided_slice %227 {offsets = [0, 256], sizes = [4, 128], strides = [1, 1]} : vector<4x384xf32> to vector<4x128xf32>
    %247 = arith.mulf %236, %246 : vector<4x128xf32>
    %248 = arith.addf %245, %247 : vector<4x128xf32>
    %249 = math.tanh %248 : vector<4x128xf32>
    %cst_65 = arith.constant 1.000000e+00 : f32
    %250 = vector.broadcast %cst_65 : f32 to vector<4x128xf32>
    %251 = arith.subf %250, %244 : vector<4x128xf32>
    %252 = arith.mulf %251, %249 : vector<4x128xf32>
    %253 = arith.mulf %244, %228 : vector<4x128xf32>
    %254 = arith.addf %252, %253 : vector<4x128xf32>
    %c0_66 = arith.constant 0 : index
    %c0_67 = arith.constant 0 : index
    %c0_68 = arith.constant 0 : index
    %255 = vector.load %arg3[%c0_66, %c0_67, %c0_68] : memref<4x4x384xf32, #tpu.memory_space<vmem>>, vector<4x1x384xf32>
    %256 = vector.shape_cast %255 : vector<4x1x384xf32> to vector<4x384xf32>
    %257 = vector.extract_strided_slice %224 {offsets = [0, 384], sizes = [4, 384], strides = [1, 1]} : vector<4x768xf32> to vector<4x384xf32>
    %258 = vector.extract_strided_slice %221 {offsets = [0, 128], sizes = [4, 128], strides = [1, 1]} : vector<4x256xf32> to vector<4x128xf32>
    %259 = vector.extract_strided_slice %256 {offsets = [0, 0], sizes = [4, 128], strides = [1, 1]} : vector<4x384xf32> to vector<4x128xf32>
    %260 = vector.extract_strided_slice %257 {offsets = [0, 0], sizes = [4, 128], strides = [1, 1]} : vector<4x384xf32> to vector<4x128xf32>
    %261 = arith.addf %259, %260 : vector<4x128xf32>
    %262 = arith.negf %261 : vector<4x128xf32>
    %263 = math.exp %262 : vector<4x128xf32>
    %cst_69 = arith.constant 1.000000e+00 : f32
    %264 = vector.broadcast %cst_69 : f32 to vector<4x128xf32>
    %265 = arith.addf %264, %263 : vector<4x128xf32>
    %266 = arith.divf %264, %265 : vector<4x128xf32>
    %267 = vector.extract_strided_slice %256 {offsets = [0, 128], sizes = [4, 128], strides = [1, 1]} : vector<4x384xf32> to vector<4x128xf32>
    %268 = vector.extract_strided_slice %257 {offsets = [0, 128], sizes = [4, 128], strides = [1, 1]} : vector<4x384xf32> to vector<4x128xf32>
    %269 = arith.addf %267, %268 : vector<4x128xf32>
    %270 = arith.negf %269 : vector<4x128xf32>
    %271 = math.exp %270 : vector<4x128xf32>
    %cst_70 = arith.constant 1.000000e+00 : f32
    %272 = vector.broadcast %cst_70 : f32 to vector<4x128xf32>
    %273 = arith.addf %272, %271 : vector<4x128xf32>
    %274 = arith.divf %272, %273 : vector<4x128xf32>
    %275 = vector.extract_strided_slice %256 {offsets = [0, 256], sizes = [4, 128], strides = [1, 1]} : vector<4x384xf32> to vector<4x128xf32>
    %276 = vector.extract_strided_slice %257 {offsets = [0, 256], sizes = [4, 128], strides = [1, 1]} : vector<4x384xf32> to vector<4x128xf32>
    %277 = arith.mulf %266, %276 : vector<4x128xf32>
    %278 = arith.addf %275, %277 : vector<4x128xf32>
    %279 = math.tanh %278 : vector<4x128xf32>
    %cst_71 = arith.constant 1.000000e+00 : f32
    %280 = vector.broadcast %cst_71 : f32 to vector<4x128xf32>
    %281 = arith.subf %280, %274 : vector<4x128xf32>
    %282 = arith.mulf %281, %279 : vector<4x128xf32>
    %283 = arith.mulf %274, %258 : vector<4x128xf32>
    %284 = arith.addf %282, %283 : vector<4x128xf32>
    %285 = arith.truncf %254 : vector<4x128xf32> to vector<4x128xbf16>
    %c0_72 = arith.constant 0 : index
    %c3_73 = arith.constant 3 : index
    %c0_74 = arith.constant 0 : index
    %286 = vector.load %arg6[%c0_72, %c3_73, %c0_74] : memref<4x4x128xbf16, #tpu.memory_space<vmem>>, vector<4x1x128xbf16>
    %287 = vector.shape_cast %286 : vector<4x1x128xbf16> to vector<4x128xbf16>
    %288 = vector.shape_cast %285 : vector<4x128xbf16> to vector<4x1x128xbf16>
    tpu.vector_store %arg6[%c0_72, %c3_73, %c0_74], %288 {strides = array<i32>} : memref<4x4x128xbf16, #tpu.memory_space<vmem>>, vector<4x1x128xbf16>,
    %289 = arith.truncf %284 : vector<4x128xf32> to vector<4x128xbf16>
    %c0_75 = arith.constant 0 : index
    %c0_76 = arith.constant 0 : index
    %c0_77 = arith.constant 0 : index
    %290 = vector.load %arg7[%c0_75, %c0_76, %c0_77] : memref<4x4x128xbf16, #tpu.memory_space<vmem>>, vector<4x1x128xbf16>
    %291 = vector.shape_cast %290 : vector<4x1x128xbf16> to vector<4x128xbf16>
    %292 = vector.shape_cast %289 : vector<4x128xbf16> to vector<4x1x128xbf16>
    tpu.vector_store %arg7[%c0_75, %c0_76, %c0_77], %292 {strides = array<i32>} : memref<4x4x128xbf16, #tpu.memory_space<vmem>>, vector<4x1x128xbf16>,
    %293 = tpu.concatenate %254, %284 in 1 : vector<4x128xf32>, vector<4x128xf32> -> vector<4x256xf32>
    %c0_78 = arith.constant 0 : index
    %c0_79 = arith.constant 0 : index
    %294 = vector.load %arg8[%c0_78, %c0_79] : memref<4x256xf32, #tpu.memory_space<vmem>>, vector<4x256xf32>
    tpu.vector_store %arg8[%c0_78, %c0_79], %293 {strides = array<i32>} : memref<4x256xf32, #tpu.memory_space<vmem>>, vector<4x256xf32>,
    return
  }
  func.func @transform_0(%arg0: i32, %arg1: i32) -> (i32, i32, i32) {
    %c0_i32 = arith.constant 0 : i32
    %c0_i32_0 = arith.constant 0 : i32
    return %arg0, %arg1, %c0_i32 : i32, i32, i32
  }
  func.func @transform_1(%arg0: i32, %arg1: i32) -> (i32, i32, i32) {
    %c0_i32 = arith.constant 0 : i32
    %0 = arith.subi %c0_i32, %arg1 : i32
    %c1_i32 = arith.constant 1 : i32
    %c0_i32_0 = arith.constant 0 : i32
    return %arg0, %0, %c1_i32 : i32, i32, i32
  }
  func.func @transform_2(%arg0: i32, %arg1: i32) -> (i32, i32) {
    %c0_i32 = arith.constant 0 : i32
    %c0_i32_0 = arith.constant 0 : i32
    %c0_i32_1 = arith.constant 0 : i32
    return %c0_i32, %c0_i32_0 : i32, i32
  }
  func.func @transform_3(%arg0: i32, %arg1: i32) -> (i32, i32) {
    %c0_i32 = arith.constant 0 : i32
    %c0_i32_0 = arith.constant 0 : i32
    %c0_i32_1 = arith.constant 0 : i32
    return %c0_i32, %c0_i32_0 : i32, i32
  }
  func.func @transform_4(%arg0: i32, %arg1: i32) -> (i32, i32, i32) {
    %c0_i32 = arith.constant 0 : i32
    %c0_i32_0 = arith.constant 0 : i32
    return %arg0, %arg1, %c0_i32 : i32, i32, i32
  }
  func.func @transform_5(%arg0: i32, %arg1: i32) -> (i32, i32, i32) {
    %c0_i32 = arith.constant 0 : i32
    %0 = arith.subi %c0_i32, %arg1 : i32
    %c0_i32_0 = arith.constant 0 : i32
    %c0_i32_1 = arith.constant 0 : i32
    return %arg0, %0, %c0_i32_0 : i32, i32, i32
  }
}

module attributes {stable_mosaic.version = 11 : i64} {
  func.func @_heads_kernel(%arg0: i32, %arg1: memref<32x128xbf16, #tpu.memory_space<vmem>>, %arg2: memref<32x128xbf16, #tpu.memory_space<vmem>>, %arg3: memref<128x512xbf16, #tpu.memory_space<vmem>>, %arg4: memref<128x512xbf16, #tpu.memory_space<vmem>>, %arg5: memref<1x512xf32, #tpu.memory_space<vmem>>, %arg6: memref<512x128xbf16, #tpu.memory_space<vmem>>, %arg7: memref<1x128xf32, #tpu.memory_space<vmem>>, %arg8: memref<32x128xf32, #tpu.memory_space<vmem>>) attributes {dimension_semantics = [#tpu.dimension_semantics<parallel>], iteration_bounds = array<i64: 1>, scalar_prefetch = 0 : i64, scratch_operands = 0 : i64, tpu.core_type = #tpu.core_type<tc>, window_params = [{transform_indices = @transform_0, window_bounds = array<i64: 32, 128>}, {transform_indices = @transform_1, window_bounds = array<i64: 32, 128>}, {pipeline_mode = #tpu.pipeline_mode<synchronous>, transform_indices = @transform_2, window_bounds = array<i64: 128, 512>}, {pipeline_mode = #tpu.pipeline_mode<synchronous>, transform_indices = @transform_3, window_bounds = array<i64: 128, 512>}, {pipeline_mode = #tpu.pipeline_mode<synchronous>, transform_indices = @transform_4, window_bounds = array<i64: 1, 512>}, {pipeline_mode = #tpu.pipeline_mode<synchronous>, transform_indices = @transform_5, window_bounds = array<i64: 512, 128>}, {pipeline_mode = #tpu.pipeline_mode<synchronous>, transform_indices = @transform_6, window_bounds = array<i64: 1, 128>}, {transform_indices = @transform_7, window_bounds = array<i64: 32, 128>}]} {
    %c0 = arith.constant 0 : index
    %c0_0 = arith.constant 0 : index
    %0 = vector.load %arg1[%c0, %c0_0] : memref<32x128xbf16, #tpu.memory_space<vmem>>, vector<32x128xbf16>
    %c0_1 = arith.constant 0 : index
    %c0_2 = arith.constant 0 : index
    %1 = vector.load %arg3[%c0_1, %c0_2] : memref<128x512xbf16, #tpu.memory_space<vmem>>, vector<128x512xbf16>
    %cst = arith.constant dense<0.000000e+00> : vector<32x512xf32>
    %2 = tpu.matmul %0, %1, %cst {dimension_numbers = #tpu.dot_dimension_numbers<[1], [0], [0], [1], [0, 0, 1, 1], [], []>} : vector<32x128xbf16>, vector<128x512xbf16>, vector<32x512xf32> -> vector<32x512xf32>
    %c0_3 = arith.constant 0 : index
    %c0_4 = arith.constant 0 : index
    %3 = vector.load %arg2[%c0_3, %c0_4] : memref<32x128xbf16, #tpu.memory_space<vmem>>, vector<32x128xbf16>
    %c0_5 = arith.constant 0 : index
    %c0_6 = arith.constant 0 : index
    %4 = vector.load %arg4[%c0_5, %c0_6] : memref<128x512xbf16, #tpu.memory_space<vmem>>, vector<128x512xbf16>
    %cst_7 = arith.constant dense<0.000000e+00> : vector<32x512xf32>
    %5 = tpu.matmul %3, %4, %cst_7 {dimension_numbers = #tpu.dot_dimension_numbers<[1], [0], [0], [1], [0, 0, 1, 1], [], []>} : vector<32x128xbf16>, vector<128x512xbf16>, vector<32x512xf32> -> vector<32x512xf32>
    %6 = arith.addf %2, %5 : vector<32x512xf32>
    %c0_8 = arith.constant 0 : index
    %c0_9 = arith.constant 0 : index
    %7 = vector.load %arg5[%c0_8, %c0_9] : memref<1x512xf32, #tpu.memory_space<vmem>>, vector<1x512xf32>
    %8 = vector.broadcast %7 : vector<1x512xf32> to vector<32x512xf32>
    %9 = arith.addf %6, %8 : vector<32x512xf32>
    %cst_10 = arith.constant 0.000000e+00 : f32
    %10 = vector.broadcast %cst_10 : f32 to vector<32x512xf32>
    %11 = arith.cmpf ogt, %9, %10 : vector<32x512xf32>
    %cst_11 = arith.constant 1.500000e-01 : f32
    %12 = vector.broadcast %cst_11 : f32 to vector<32x512xf32>
    %13 = arith.mulf %12, %9 : vector<32x512xf32>
    %14 = arith.select %11, %9, %13 : vector<32x512xi1>, vector<32x512xf32>
    %15 = arith.truncf %14 : vector<32x512xf32> to vector<32x512xbf16>
    %c0_12 = arith.constant 0 : index
    %c0_13 = arith.constant 0 : index
    %16 = vector.load %arg6[%c0_12, %c0_13] : memref<512x128xbf16, #tpu.memory_space<vmem>>, vector<512x128xbf16>
    %cst_14 = arith.constant dense<0.000000e+00> : vector<32x128xf32>
    %17 = tpu.matmul %15, %16, %cst_14 {dimension_numbers = #tpu.dot_dimension_numbers<[1], [0], [0], [1], [0, 0, 1, 1], [], []>} : vector<32x512xbf16>, vector<512x128xbf16>, vector<32x128xf32> -> vector<32x128xf32>
    %c0_15 = arith.constant 0 : index
    %c0_16 = arith.constant 0 : index
    %18 = vector.load %arg7[%c0_15, %c0_16] : memref<1x128xf32, #tpu.memory_space<vmem>>, vector<1x128xf32>
    %19 = vector.broadcast %18 : vector<1x128xf32> to vector<32x128xf32>
    %20 = arith.addf %17, %19 : vector<32x128xf32>
    %c0_17 = arith.constant 0 : index
    %c0_18 = arith.constant 0 : index
    %21 = vector.load %arg8[%c0_17, %c0_18] : memref<32x128xf32, #tpu.memory_space<vmem>>, vector<32x128xf32>
    tpu.vector_store %arg8[%c0_17, %c0_18], %20 {strides = array<i32>} : memref<32x128xf32, #tpu.memory_space<vmem>>, vector<32x128xf32>,
    return
  }
  func.func @transform_0(%arg0: i32) -> (i32, i32) {
    %c0_i32 = arith.constant 0 : i32
    %c0_i32_0 = arith.constant 0 : i32
    return %arg0, %c0_i32 : i32, i32
  }
  func.func @transform_1(%arg0: i32) -> (i32, i32) {
    %c0_i32 = arith.constant 0 : i32
    %c0_i32_0 = arith.constant 0 : i32
    return %arg0, %c0_i32 : i32, i32
  }
  func.func @transform_2(%arg0: i32) -> (i32, i32) {
    %c0_i32 = arith.constant 0 : i32
    %c0_i32_0 = arith.constant 0 : i32
    %c0_i32_1 = arith.constant 0 : i32
    return %c0_i32, %c0_i32_0 : i32, i32
  }
  func.func @transform_3(%arg0: i32) -> (i32, i32) {
    %c0_i32 = arith.constant 0 : i32
    %c0_i32_0 = arith.constant 0 : i32
    %c0_i32_1 = arith.constant 0 : i32
    return %c0_i32, %c0_i32_0 : i32, i32
  }
  func.func @transform_4(%arg0: i32) -> (i32, i32) {
    %c0_i32 = arith.constant 0 : i32
    %c0_i32_0 = arith.constant 0 : i32
    %c0_i32_1 = arith.constant 0 : i32
    return %c0_i32, %c0_i32_0 : i32, i32
  }
  func.func @transform_5(%arg0: i32) -> (i32, i32) {
    %c0_i32 = arith.constant 0 : i32
    %c0_i32_0 = arith.constant 0 : i32
    %c0_i32_1 = arith.constant 0 : i32
    return %c0_i32, %c0_i32_0 : i32, i32
  }
  func.func @transform_6(%arg0: i32) -> (i32, i32) {
    %c0_i32 = arith.constant 0 : i32
    %c0_i32_0 = arith.constant 0 : i32
    %c0_i32_1 = arith.constant 0 : i32
    return %c0_i32, %c0_i32_0 : i32, i32
  }
  func.func @transform_7(%arg0: i32) -> (i32, i32) {
    %c0_i32 = arith.constant 0 : i32
    %c0_i32_0 = arith.constant 0 : i32
    return %arg0, %c0_i32 : i32, i32
  }
}

</mosaic_0001>

<bundles_post_ra>
// kernel: ctpn_forward.4
= control target key start
LH: loop header
LB: loop body
LE: loop exit
PB: predicated region body
PF: predicated region fallthrough
CT: control target
= control target key end

     0   :  { %8 = vsyncpa [#allocation3], 0  ;;  %s1237_s12 = smov [#allocation2]   ;;  %s1606_s0 = inlined_call_operand.vmem [shape: bf16[32,768], index: 0, kind: input, shape index: {}]   ;;  %s1607_s1 = inlined_call_operand.vmem [shape: bf16[768,256], index: 1, kind: input, shape index: {}]   ;;  %s1608_s2 = inlined_call_operand.hbm [shape: f32[1,256], index: 2, kind: input, shape index: {}]   ;;  %s1609_s3 = inlined_call_operand.vmem [shape: bf16[32,256], index: 3, kind: output, shape index: {}]  }
   0x1   :  { %s19_s13 = sshll.u32 %s1237_s12, 4  ;;  %s1213_s16 = scalar_lea.hbm %s1608_s2, 32  ;;  %s20_s13 = int_to_ptr.vmem [resolvable:$true] %s19_s13 }
   0x2   :  { %p1214_p0 = scmp.ne.s32.totalorder %s1608_s2, %s1213_s16  ;;  %p1217_p1 = scmp.lt.u32.totalorder %s1213_s16, %s1608_s2 }
   0x4   :  { %p1219_p2 = pnand %p1217_p1, %p1214_p0 }
   0x6   :  { %1222 = shalt.err (!%p1219_p2)
}
   0x7   :  { %s1223_s21 = scalar_lea.vmem %s20_s13, 32  ;;  %p1228_p4 = scmp.lt.s32.totalorder %s20_s13, %s20_s13 }
   0x8   :  { %p1224_p3 = scmp.ne.s32.totalorder %s20_s13, %s1223_s21  ;;  %p1229_p5 = scmp.lt.s32.totalorder %s1223_s21, %s1223_s21 }
   0xa   :  { %p1230_p6 = por %p1229_p5, %p1228_p4 }
   0xc   :  { %p1231_p7 = pnand %p1230_p6, %p1224_p3 }
   0xe   :  { %1234 = shalt.err (!%p1231_p7)
}
   0xf   :  { %22 = dma.hbm_to_vmem [thread:$0]  %s1608_s2, 32, %s20_s13, [#allocation3]  }
  0x10   :  { %1235 = dma.done.wait [#allocation3], 32  }
  0x11   :  { %1236 = vsyncadd [#allocation3], 4294967264  ;;  %v1051_v0 = vld [vmem:[%s1607_s1 + $0x4] ss:$8 sps:$4 sm:$0xff]   ;;  %v1055_v2 = vld [vmem:[%s1607_s1] ss:$8 sps:$4 sm:$0xff]  }
  0x12   :  { %v1053_v1 = vld [vmem:[%s1607_s1 + $0x104] ss:$8 sps:$4 sm:$0xff]   ;;  %686 = vmatprep.subr.bf16.mxu1 %v1051_v0  ;;  %v1056_v3 = vld [vmem:[%s1607_s1 + $0x100] ss:$8 sps:$4 sm:$0xff]   ;;  %v1057_v4 = vld [vmem:[%s1607_s1 + $0x14] ss:$8 sps:$4 sm:$0xff]  }
  0x13   :  { %739 = vmatprep.subr.bf16.mxu0 %v1053_v1  ;;  %687 = vmatpush1.bf16.msra.mxu1 %v1055_v2  ;;  %v1059_v5 = vld [vmem:[%s1607_s1 + $0x114] ss:$8 sps:$4 sm:$0xff]   ;;  %v1061_v6 = vld [vmem:[%s1607_s1 + $0x10] ss:$8 sps:$4 sm:$0xff]   ;;  %v1063_v8 = vld [vmem:[%s1607_s1 + $0x24] ss:$8 sps:$4 sm:$0xff]  }
  0x14   :  { %740 = vmatpush1.bf16.msra.mxu0 %v1056_v3  ;;  %688 = vmatprep.subr.bf16.mxu1 %v1057_v4  ;;  %v1062_v7 = vld [vmem:[%s1607_s1 + $0x110] ss:$8 sps:$4 sm:$0xff]   ;;  %v1065_v9 = vld [vmem:[%s1607_s1 + $0x124] ss:$8 sps:$4 sm:$0xff]   ;;  %v1067_v10 = vld [vmem:[%s1607_s1 + $0x20] ss:$8 sps:$4 sm:$0xff]  }
  0x15   :  { %741 = vmatprep.subr.bf16.mxu0 %v1059_v5  ;;  %v1068_v11 = vld [vmem:[%s1607_s1 + $0x120] ss:$8 sps:$4 sm:$0xff]   ;;  %v1069_v12 = vld [vmem:[%s1607_s1 + $0x34] ss:$8 sps:$4 sm:$0xff]   ;;  %v1073_v14 = vld [vmem:[%s1607_s1 + $0x30] ss:$8 sps:$4 sm:$0xff]  }
  0x16   :  { %v1071_v13 = vld [vmem:[%s1607_s1 + $0x134] ss:$8 sps:$4 sm:$0xff]   ;;  %v1074_v15 = vld [vmem:[%s1607_s1 + $0x130] ss:$8 sps:$4 sm:$0xff]   ;;  %v1075_v16 = vld [vmem:[%s1607_s1 + $0x44] ss:$8 sps:$4 sm:$0xff]  }
  0x17   :  { %689 = vmatpush1.bf16.msra.mxu1 %v1061_v6  ;;  %v1077_v17 = vld [vmem:[%s1607_s1 + $0x144] ss:$8 sps:$4 sm:$0xff]   ;;  %v1079_v18 = vld [vmem:[%s1607_s1 + $0x40] ss:$8 sps:$4 sm:$0xff]   ;;  %v1081_v20 = vld [vmem:[%s1607_s1 + $0x54] ss:$8 sps:$4 sm:$0xff]  }
  0x18   :  { %742 = vmatpush1.bf16.msra.mxu0 %v1062_v7  ;;  %690 = vmatprep.subr.bf16.mxu1 %v1063_v8  ;;  %v1080_v19 = vld [vmem:[%s1607_s1 + $0x140] ss:$8 sps:$4 sm:$0xff]   ;;  %v1083_v21 = vld [vmem:[%s1607_s1 + $0x154] ss:$8 sps:$4 sm:$0xff]   ;;  %v1085_v22 = vld [vmem:[%s1607_s1 + $0x50] ss:$8 sps:$4 sm:$0xff]  }
  0x19   :  { %743 = vmatprep.subr.bf16.mxu0 %v1065_v9  ;;  %v1086_v23 = vld [vmem:[%s1607_s1 + $0x150] ss:$8 sps:$4 sm:$0xff]   ;;  %v1087_v24 = vld [vmem:[%s1607_s1 + $0x64] ss:$8 sps:$4 sm:$0xff]   ;;  %v1091_v26 = vld [vmem:[%s1607_s1 + $0x60] ss:$8 sps:$4 sm:$0xff]  }
  0x1a   :  { %v1089_v25 = vld [vmem:[%s1607_s1 + $0x164] ss:$8 sps:$4 sm:$0xff]   ;;  %v1092_v27 = vld [vmem:[%s1607_s1 + $0x160] ss:$8 sps:$4 sm:$0xff]   ;;  %v1093_v28 = vld [vmem:[%s1607_s1 + $0x74] ss:$8 sps:$4 sm:$0xff]  }
  0x1b   :  { %691 = vmatpush1.bf16.msra.mxu1 %v1067_v10  ;;  %v1095_v29 = vld [vmem:[%s1607_s1 + $0x174] ss:$8 sps:$4 sm:$0xff]   ;;  %v1097_v30 = vld [vmem:[%s1607_s1 + $0x70] ss:$8 sps:$4 sm:$0xff]   ;;  %v1099_v32 = vld [vmem:[%s1607_s1 + $0x84] ss:$8 sps:$4 sm:$0xff]  }
  0x1c   :  { %744 = vmatpush1.bf16.msra.mxu0 %v1068_v11  ;;  %692 = vmatprep.subr.bf16.mxu1 %v1069_v12  ;;  %v1098_v31 = vld [vmem:[%s1607_s1 + $0x170] ss:$8 sps:$4 sm:$0xff]   ;;  %v1101_v33 = vld [vmem:[%s1607_s1 + $0x184] ss:$8 sps:$4 sm:$0xff]   ;;  %v1103_v34 = vld [vmem:[%s1607_s1 + $0x80] ss:$8 sps:$4 sm:$0xff]  }
  0x1d   :  { %745 = vmatprep.subr.bf16.mxu0 %v1071_v13  ;;  %v1104_v35 = vld [vmem:[%s1607_s1 + $0x180] ss:$8 sps:$4 sm:$0xff]   ;;  %v1105_v36 = vld [vmem:[%s1607_s1 + $0x94] ss:$8 sps:$4 sm:$0xff]   ;;  %v1109_v38 = vld [vmem:[%s1607_s1 + $0x90] ss:$8 sps:$4 sm:$0xff]  }
  0x1e   :  { %v1107_v37 = vld [vmem:[%s1607_s1 + $0x194] ss:$8 sps:$4 sm:$0xff]   ;;  %v1110_v39 = vld [vmem:[%s1607_s1 + $0x190] ss:$8 sps:$4 sm:$0xff]   ;;  %v1111_v40 = vld [vmem:[%s1607_s1 + $0xa4] ss:$8 sps:$4 sm:$0xff]  }
  0x1f   :  { %693 = vmatpush1.bf16.msra.mxu1 %v1073_v14  ;;  %v1113_v41 = vld [vmem:[%s1607_s1 + $0x1a4] ss:$8 sps:$4 sm:$0xff]   ;;  %v1115_v42 = vld [vmem:[%s1607_s1 + $0xa0] ss:$8 sps:$4 sm:$0xff]   ;;  %v1117_v44 = vld [vmem:[%s1607_s1 + $0xb4] ss:$8 sps:$4 sm:$0xff]  }
  0x20   :  { %746 = vmatpush1.bf16.msra.mxu0 %v1074_v15  ;;  %694 = vmatprep.subr.bf16.mxu1 %v1075_v16  ;;  %v1116_v43 = vld [vmem:[%s1607_s1 + $0x1a0] ss:$8 sps:$4 sm:$0xff]   ;;  %v1119_v45 = vld [vmem:[%s1607_s1 + $0x1b4] ss:$8 sps:$4 sm:$0xff]   ;;  %v1121_v46 = vld [vmem:[%s1607_s1 + $0xb0] ss:$8 sps:$4 sm:$0xff]  }
  0x21   :  { %747 = vmatprep.subr.bf16.mxu0 %v1077_v17  ;;  %v1122_v47 = vld [vmem:[%s1607_s1 + $0x1b0] ss:$8 sps:$4 sm:$0xff]   ;;  %v1123_v48 = vld [vmem:[%s1607_s1 + $0xc4] ss:$8 sps:$4 sm:$0xff]   ;;  %v1127_v52 = vld [vmem:[%s1607_s1 + $0xc0] ss:$8 sps:$4 sm:$0xff]  }
  0x22   :  { %v1149_v49 = vld [vmem:[%s1606_s0 + $0x4] ss:$24 sps:$4 sm:$0xff]   ;;  %v1128_v53 = vld [vmem:[%s1607_s1 + $0x1c0] ss:$8 sps:$4 sm:$0xff]   ;;  %v1133_v56 = vld [vmem:[%s1607_s1 + $0xd0] ss:$8 sps:$4 sm:$0xff]  }
  0x23   :  { %695 = vmatpush1.bf16.msra.mxu1 %v1079_v18  ;;  %v1125_v50 = vld [vmem:[%s1607_s1 + $0x1c4] ss:$8 sps:$4 sm:$0xff]   ;;  %718 = vmatprep.mubr.bf16.mxu1 %v1149_v49  ;;  %v1129_v54 = vld [vmem:[%s1607_s1 + $0xd4] ss:$8 sps:$4 sm:$0xff]   ;;  %v1134_v57 = vld [vmem:[%s1607_s1 + $0x1d0] ss:$8 sps:$4 sm:$0xff]  }
  0x24   :  { %748 = vmatpush1.bf16.msra.mxu0 %v1080_v19  ;;  %696 = vmatprep.subr.bf16.mxu1 %v1081_v20  ;;  %v1152_v51 = vld [vmem:[%s1606_s0 + $0xc] ss:$24 sps:$4 sm:$0xff]   ;;  %v1131_v55 = vld [vmem:[%s1607_s1 + $0x1d4] ss:$8 sps:$4 sm:$0xff]   ;;  %v1139_v60 = vld [vmem:[%s1607_s1 + $0xe0] ss:$8 sps:$4 sm:$0xff]  }
  0x25   :  { %749 = vmatprep.subr.bf16.mxu0 %v1083_v21  ;;  %771 = vmatprep.mubr.bf16.mxu0 %v1152_v51  ;;  %v1135_v58 = vld [vmem:[%s1607_s1 + $0xe4] ss:$8 sps:$4 sm:$0xff]   ;;  %v1140_v61 = vld [vmem:[%s1607_s1 + $0x1e0] ss:$8 sps:$4 sm:$0xff]   ;;  %v1141_v62 = vld [vmem:[%s1607_s1 + $0xf4] ss:$8 sps:$4 sm:$0xff]  }
  0x26   :  { %v1137_v59 = vld [vmem:[%s1607_s1 + $0x1e4] ss:$8 sps:$4 sm:$0xff]   ;;  %v1143_v63 = vld [vmem:[%s1607_s1 + $0x1f4] ss:$8 sps:$4 sm:$0xff]   ;;  %v1145_v0 = vld [vmem:[%s1607_s1 + $0xf0] ss:$8 sps:$4 sm:$0xff]  }
  0x27   :  { %697 = vmatpush1.bf16.msra.mxu1 %v1085_v22  ;;  %v1146_v1 = vld [vmem:[%s1607_s1 + $0x1f0] ss:$8 sps:$4 sm:$0xff]   ;;  %v1155_v2 = vld [vmem:[%s1607_s1 + $0x204] ss:$8 sps:$4 sm:$0xff]   ;;  %v1150_v4 = vld [vmem:[%s1606_s0 + $0x8] ss:$24 sps:$4 sm:$0xff]  }
  0x28   :  { %750 = vmatpush1.bf16.msra.mxu0 %v1086_v23  ;;  %698 = vmatprep.subr.bf16.mxu1 %v1087_v24  ;;  %v1147_v3 = vld [vmem:[%s1606_s0] ss:$24 sps:$4 sm:$0xff]   ;;  %v1158_v6 = vld [vmem:[%s1607_s1 + $0x214] ss:$8 sps:$4 sm:$0xff]   ;;  %v1161_v10 = vld [vmem:[%s1607_s1 + $0x224] ss:$8 sps:$4 sm:$0xff]  }
  0x29   :  { %751 = vmatprep.subr.bf16.mxu0 %v1089_v25  ;;  %v1153_v5 = vld [vmem:[%s1607_s1 + $0x200] ss:$8 sps:$4 sm:$0xff]   ;;  %v1192_v7 = vld [vmem:[%s1606_s0 + $0x34] ss:$24 sps:$4 sm:$0xff]   ;;  %v1156_v9 = vld [vmem:[%s1607_s1 + $0x210] ss:$8 sps:$4 sm:$0xff]  }
  0x2a   :  { %v1195_v8 = vld [vmem:[%s1606_s0 + $0x3c] ss:$24 sps:$4 sm:$0xff]   ;;  %v1194_v11 = vld [vmem:[%s1606_s0 + $0x30] ss:$24 sps:$4 sm:$0xff]   ;;  %v1167_v18 = vld [vmem:[%s1607_s1 + $0x244] ss:$8 sps:$4 sm:$0xff]  }
  0x2b   :  { %699 = vmatpush1.bf16.msra.mxu1 %v1091_v26  ;;  %v1200_v12 = vld [vmem:[%s1606_s0 + $0x38] ss:$24 sps:$4 sm:$0xff]   ;;  %v1159_v13 = vld [vmem:[%s1607_s1 + $0x220] ss:$8 sps:$4 sm:$0xff]   ;;  %v1164_v14 = vld [vmem:[%s1607_s1 + $0x234] ss:$8 sps:$4 sm:$0xff]  }
  0x2c   :  { %752 = vmatpush1.bf16.msra.mxu0 %v1092_v27  ;;  %700 = vmatprep.subr.bf16.mxu1 %v1093_v28  ;;  %v1209_v15 = vld [vmem:[%s1606_s0 + $0x14] ss:$24 sps:$4 sm:$0xff]   ;;  %v1212_v16 = vld [vmem:[%s1606_s0 + $0x44] ss:$24 sps:$4 sm:$0xff]   ;;  %v1162_v17 = vld [vmem:[%s1607_s1 + $0x230] ss:$8 sps:$4 sm:$0xff]  }
  0x2d   :  { %753 = vmatprep.subr.bf16.mxu0 %v1095_v29  ;;  %v1165_v19 = vld [vmem:[%s1607_s1 + $0x240] ss:$8 sps:$4 sm:$0xff]   ;;  %v1170_v20 = vld [vmem:[%s1607_s1 + $0x254] ss:$8 sps:$4 sm:$0xff]   ;;  %v1168_v21 = vld [vmem:[%s1607_s1 + $0x250] ss:$8 sps:$4 sm:$0xff]  }
  0x2e   :  { %v1173_v22 = vld [vmem:[%s1607_s1 + $0x264] ss:$8 sps:$4 sm:$0xff]   ;;  %v1171_v23 = vld [vmem:[%s1607_s1 + $0x260] ss:$8 sps:$4 sm:$0xff]   ;;  %v1176_v24 = vld [vmem:[%s1607_s1 + $0x274] ss:$8 sps:$4 sm:$0xff]  }
  0x2f   :  { %701 = vmatpush1.bf16.msra.mxu1 %v1097_v30  ;;  %v1174_v25 = vld [vmem:[%s1607_s1 + $0x270] ss:$8 sps:$4 sm:$0xff]   ;;  %v1179_v26 = vld [vmem:[%s1607_s1 + $0x284] ss:$8 sps:$4 sm:$0xff]   ;;  %v1177_v27 = vld [vmem:[%s1607_s1 + $0x280] ss:$8 sps:$4 sm:$0xff]  }
  0x30   :  { %754 = vmatpush1.bf16.msra.mxu0 %v1098_v31  ;;  %702 = vmatprep.subr.bf16.mxu1 %v1099_v32  ;;  %v1182_v28 = vld [vmem:[%s1607_s1 + $0x294] ss:$8 sps:$4 sm:$0xff]   ;;  %v1180_v29 = vld [vmem:[%s1607_s1 + $0x290] ss:$8 sps:$4 sm:$0xff]   ;;  %v1185_v30 = vld [vmem:[%s1607_s1 + $0x2a4] ss:$8 sps:$4 sm:$0xff]  }
  0x31   :  { %755 = vmatprep.subr.bf16.mxu0 %v1101_v33  ;;  %v1183_v31 = vld [vmem:[%s1607_s1 + $0x2a0] ss:$8 sps:$4 sm:$0xff]   ;;  %v1188_v32 = vld [vmem:[%s1607_s1 + $0x2b4] ss:$8 sps:$4 sm:$0xff]   ;;  %v1186_v33 = vld [vmem:[%s1607_s1 + $0x2b0] ss:$8 sps:$4 sm:$0xff]  }
  0x32   :  { %v134_v51 = vld [vmem:[#allocation2] sm:$0x3] }
  0x33   :  { %703 = vmatpush1.bf16.msra.mxu1 %v1103_v34  ;;  %v1191_v34 = vld [vmem:[%s1607_s1 + $0x2c4] ss:$8 sps:$4 sm:$0xff]  }
  0x34   :  { %756 = vmatpush1.bf16.msra.mxu0 %v1104_v35  ;;  %704 = vmatprep.subr.bf16.mxu1 %v1105_v36  ;;  %v1189_v35 = vld [vmem:[%s1607_s1 + $0x2c0] ss:$8 sps:$4 sm:$0xff]   ;;  %v1199_v36 = vld [vmem:[%s1607_s1 + $0x2d4] ss:$8 sps:$4 sm:$0xff]  }
  0x35   :  { %757 = vmatprep.subr.bf16.mxu0 %v1107_v37  ;;  %v1197_v37 = vld [vmem:[%s1607_s1 + $0x2d0] ss:$8 sps:$4 sm:$0xff]  }
  0x37   :  { %705 = vmatpush1.bf16.msra.mxu1 %v1109_v38  ;;  %v1203_v38 = vld [vmem:[%s1607_s1 + $0x2e4] ss:$8 sps:$4 sm:$0xff]  }
  0x38   :  { %758 = vmatpush1.bf16.msra.mxu0 %v1110_v39  ;;  %706 = vmatprep.subr.bf16.mxu1 %v1111_v40  ;;  %v1201_v39 = vld [vmem:[%s1607_s1 + $0x2e0] ss:$8 sps:$4 sm:$0xff]   ;;  %v1206_v40 = vld [vmem:[%s1607_s1 + $0x2f4] ss:$8 sps:$4 sm:$0xff]  }
  0x39   :  { %759 = vmatprep.subr.bf16.mxu0 %v1113_v41  ;;  %v1204_v41 = vld [vmem:[%s1607_s1 + $0x2f0] ss:$8 sps:$4 sm:$0xff]  }
  0x3b   :  { %707 = vmatpush1.bf16.msra.mxu1 %v1115_v42  ;;  %v1207_v42 = vld [vmem:[%s1606_s0 + $0x10] ss:$24 sps:$4 sm:$0xff]  }
  0x3c   :  { %760 = vmatpush1.bf16.msra.mxu0 %v1116_v43  ;;  %708 = vmatprep.subr.bf16.mxu1 %v1117_v44  ;;  %v1210_v43 = vld [vmem:[%s1606_s0 + $0x40] ss:$24 sps:$4 sm:$0xff]   ;;  %v136_v44 = vlaneseq }
  0x3d   :  { %761 = vmatprep.subr.bf16.mxu0 %v1119_v45 }
  0x3e   :  { %v137_v45 = vshrl.u32 %v136_v44, 7 }
  0x3f   :  { %709 = vmatpush1.bf16.msra.mxu1 %v1121_v46 }
  0x40   :  { %762 = vmatpush1.bf16.msra.mxu0 %v1122_v47  ;;  %710 = vmatprep.subr.bf16.mxu1 %v1123_v48  ;;  %v138_v49 = vsub.s32 0, %v137_v45 }
  0x41   :  { %763 = vmatprep.subr.bf16.mxu0 %v1125_v50 }
  0x43   :  { %711 = vmatpush1.bf16.msra.mxu1 %v1127_v52  ;;  %v142_v52 = vsub.s32 1, %v137_v45 }
  0x44   :  { %764 = vmatpush1.bf16.msra.mxu0 %v1128_v53  ;;  %712 = vmatprep.subr.bf16.mxu1 %v1129_v54  ;;  %v139_v53 = vrot.slane %v134_v51, %v138_v49 }
  0x45   :  { %765 = vmatprep.subr.bf16.mxu0 %v1131_v55  ;;  %v143_v54 = vrot.slane %v134_v51, %v142_v52 }
  0x47   :  { %713 = vmatpush1.bf16.msra.mxu1 %v1133_v56 }
  0x48   :  { %766 = vmatpush1.bf16.msra.mxu0 %v1134_v57  ;;  %714 = vmatprep.subr.bf16.mxu1 %v1135_v58 }
  0x49   :  { %767 = vmatprep.subr.bf16.mxu0 %v1137_v59 }
  0x4b   :  { %715 = vmatpush1.bf16.msra.mxu1 %v1139_v60 }
  0x4c   :  { %768 = vmatpush1.bf16.msra.mxu0 %v1140_v61  ;;  %716 = vmatprep.subr.bf16.mxu1 %v1141_v62 }
  0x4d   :  { %769 = vmatprep.subr.bf16.mxu0 %v1143_v63 }
  0x4f   :  { %717 = vmatpush1.bf16.msra.mxu1 %v1145_v0 }
  0x50   :  { %770 = vmatpush1.bf16.msra.mxu0 %v1146_v1  ;;  %994 = vmatprep.subr.bf16.mxu1 %v1155_v2 }
  0x51   :  { %792 = vmatprep.subr.bf16.mxu0 %v1155_v2 }
  0x52   :  { %719 = vmatmul.mubr.bf16.vlgmr.msra.gmra.mrb[0].mxu1 %v1147_v3 }
  0x53   :  { %772 = vmatmul.mubr.bf16.vlgmr.msra.gmra.mrb[0].mxu0 %v1150_v4  ;;  %1010 = vmatpush1.bf16.msra.mxu1 %v1153_v5 }
  0x54   :  { %793 = vmatpush1.bf16.msra.mxu0 %v1153_v5  ;;  %995 = vmatprep.subr.bf16.mxu1 %v1158_v6 }
  0x55   :  { %794 = vmatprep.subr.bf16.mxu0 %v1158_v6  ;;  %728 = vmatprep.mubr.bf16.mxu1 %v1192_v7 }
  0x56   :  { %781 = vmatprep.mubr.bf16.mxu0 %v1195_v8 }
  0x57   :  { %1011 = vmatpush1.bf16.msra.mxu1 %v1156_v9 }
  0x58   :  { %795 = vmatpush1.bf16.msra.mxu0 %v1156_v9  ;;  %996 = vmatprep.subr.bf16.mxu1 %v1161_v10 }
  0x59   :  { %796 = vmatprep.subr.bf16.mxu0 %v1161_v10 }
  0x5a   :  { %729 = vmatmul.mubr.bf16.gmra.mrb[4].mxu1 %v1194_v11 }
  0x5b   :  { %782 = vmatmul.mubr.bf16.gmra.mrb[4].mxu0 %v1200_v12  ;;  %1012 = vmatpush1.bf16.msra.mxu1 %v1159_v13 }
  0x5c   :  { %797 = vmatpush1.bf16.msra.mxu0 %v1159_v13  ;;  %997 = vmatprep.subr.bf16.mxu1 %v1164_v14 }
  0x5d   :  { %798 = vmatprep.subr.bf16.mxu0 %v1164_v14  ;;  %824 = vmatprep.mubr.bf16.mxu0 %v1209_v15 }
  0x5e   :  { %834 = vmatprep.mubr.bf16.mxu1 %v1212_v16 }
  0x5f   :  { %1013 = vmatpush1.bf16.msra.mxu1 %v1162_v17 }
  0x60   :  { %799 = vmatpush1.bf16.msra.mxu0 %v1162_v17  ;;  %998 = vmatprep.subr.bf16.mxu1 %v1167_v18 }
  0x61   :  { %800 = vmatprep.subr.bf16.mxu0 %v1167_v18 }
  0x63   :  { %1014 = vmatpush1.bf16.msra.mxu1 %v1165_v19 }
  0x64   :  { %801 = vmatpush1.bf16.msra.mxu0 %v1165_v19  ;;  %999 = vmatprep.subr.bf16.mxu1 %v1170_v20 }
  0x65   :  { %802 = vmatprep.subr.bf16.mxu0 %v1170_v20 }
  0x67   :  { %1015 = vmatpush1.bf16.msra.mxu1 %v1168_v21 }
  0x68   :  { %803 = vmatpush1.bf16.msra.mxu0 %v1168_v21  ;;  %1000 = vmatprep.subr.bf16.mxu1 %v1173_v22 }
  0x69   :  { %804 = vmatprep.subr.bf16.mxu0 %v1173_v22 }
  0x6b   :  { %1016 = vmatpush1.bf16.msra.mxu1 %v1171_v23 }
  0x6c   :  { %805 = vmatpush1.bf16.msra.mxu0 %v1171_v23  ;;  %1001 = vmatprep.subr.bf16.mxu1 %v1176_v24 }
  0x6d   :  { %806 = vmatprep.subr.bf16.mxu0 %v1176_v24 }
  0x6f   :  { %1017 = vmatpush1.bf16.msra.mxu1 %v1174_v25 }
  0x70   :  { %807 = vmatpush1.bf16.msra.mxu0 %v1174_v25  ;;  %1002 = vmatprep.subr.bf16.mxu1 %v1179_v26 }
  0x71   :  { %808 = vmatprep.subr.bf16.mxu0 %v1179_v26 }
  0x73   :  { %1018 = vmatpush1.bf16.msra.mxu1 %v1177_v27 }
  0x74   :  { %809 = vmatpush1.bf16.msra.mxu0 %v1177_v27  ;;  %1003 = vmatprep.subr.bf16.mxu1 %v1182_v28 }
  0x75   :  { %810 = vmatprep.subr.bf16.mxu0 %v1182_v28 }
  0x77   :  { %1019 = vmatpush1.bf16.msra.mxu1 %v1180_v29 }
  0x78   :  { %811 = vmatpush1.bf16.msra.mxu0 %v1180_v29  ;;  %1004 = vmatprep.subr.bf16.mxu1 %v1185_v30 }
  0x79   :  { %812 = vmatprep.subr.bf16.mxu0 %v1185_v30 }
  0x7b   :  { %1020 = vmatpush1.bf16.msra.mxu1 %v1183_v31 }
  0x7c   :  { %813 = vmatpush1.bf16.msra.mxu0 %v1183_v31  ;;  %1005 = vmatprep.subr.bf16.mxu1 %v1188_v32 }
  0x7d   :  { %814 = vmatprep.subr.bf16.mxu0 %v1188_v32 }
  0x7f   :  { %1021 = vmatpush1.bf16.msra.mxu1 %v1186_v33 }
  0x80   :  { %815 = vmatpush1.bf16.msra.mxu0 %v1186_v33  ;;  %1006 = vmatprep.subr.bf16.mxu1 %v1191_v34 }
  0x81   :  { %816 = vmatprep.subr.bf16.mxu0 %v1191_v34 }
  0x83   :  { %1022 = vmatpush1.bf16.msra.mxu1 %v1189_v35 }
  0x84   :  { %817 = vmatpush1.bf16.msra.mxu0 %v1189_v35  ;;  %1007 = vmatprep.subr.bf16.mxu1 %v1199_v36 }
  0x85   :  { %818 = vmatprep.subr.bf16.mxu0 %v1199_v36 }
  0x87   :  { %1023 = vmatpush1.bf16.msra.mxu1 %v1197_v37 }
  0x88   :  { %819 = vmatpush1.bf16.msra.mxu0 %v1197_v37  ;;  %1008 = vmatprep.subr.bf16.mxu1 %v1203_v38 }
  0x89   :  { %820 = vmatprep.subr.bf16.mxu0 %v1203_v38 }
  0x8b   :  { %1024 = vmatpush1.bf16.msra.mxu1 %v1201_v39 }
  0x8c   :  { %821 = vmatpush1.bf16.msra.mxu0 %v1201_v39  ;;  %1009 = vmatprep.subr.bf16.mxu1 %v1206_v40 }
  0x8d   :  { %822 = vmatprep.subr.bf16.mxu0 %v1206_v40 }
  0x8f   :  { %1025 = vmatpush1.bf16.msra.mxu1 %v1204_v41 }
  0x90   :  { %823 = vmatpush1.bf16.msra.mxu0 %v1204_v41 }
  0x92   :  { %835 = vmatmul.mubr.bf16.vlgmr.msra.gmra.mrb[8].mxu1 %v1210_v43 }
  0x93   :  { %825 = vmatmul.mubr.bf16.vlgmr.msra.gmra.mrb[0].mxu0 %v1207_v42 }
 0x125   :  { %v720_v46 = vpop.f32.mrb[0].mxu1 }
 0x126   :  { %v722_v47 = vpop.f32.mrb[1].mxu1  ;;  %v721_v7 = vadd.f32 %v720_v46, %v139_v53 }
 0x127   :  { %v724_v48 = vpop.f32.mrb[2].mxu1  ;;  %v723_v8 = vadd.f32 %v722_v47, %v143_v54 }
 0x128   :  { %v726_v50 = vpop.f32.mrb[3].mxu1  ;;  %v725_v11 = vadd.f32 %v724_v48, %v139_v53 }
 0x129   :  { %v727_v16 = vadd.f32 %v726_v50, %v143_v54 }
 0x12d   :  { %v730_v55 = vpop.f32.mrb[4].mxu1 }
 0x12e   :  { %v783_v56 = vpop.f32.mrb[4].mxu0  ;;  %v731_v57 = vadd.f32 %v730_v55, %v139_v53  ;;  %v732_v58 = vpop.f32.mrb[5].mxu1 }
 0x12f   :  { %v785_v59 = vpop.f32.mrb[5].mxu0  ;;  %v733_v60 = vadd.f32 %v732_v58, %v143_v54  ;;  %v734_v61 = vpop.f32.mrb[6].mxu1 }
 0x130   :  { %v787_v62 = vpop.f32.mrb[6].mxu0  ;;  %v735_v63 = vadd.f32 %v734_v61, %v139_v53  ;;  %v784_v0 = vadd.f32 %v783_v56, %v731_v57  ;;  %v736_v1 = vpop.f32.mrb[7].mxu1 }
 0x131   :  { %v789_v2 = vpop.f32.mrb[7].mxu0  ;;  %v737_v3 = vadd.f32 %v736_v1, %v143_v54  ;;  %v786_v4 = vadd.f32 %v785_v59, %v733_v60 }
 0x132   :  { %v788_v5 = vadd.f32 %v787_v62, %v735_v63 }
 0x133   :  { %v790_v6 = vadd.f32 %v789_v2, %v737_v3 }
 0x165   :  { %v836_v10 = vpop.f32.mrb[8].mxu1 }
 0x166   :  { %v826_v9 = vpop.f32.mrb[0].mxu0  ;;  %v837_v13 = vadd.f32 %v836_v10, %v784_v0  ;;  %v838_v15 = vpop.f32.mrb[9].mxu1 }
 0x167   :  { %v1027_v12 = vadd.f32 %v826_v9, %v721_v7  ;;  %v828_v14 = vpop.f32.mrb[1].mxu0  ;;  %v839_v18 = vadd.f32 %v838_v15, %v786_v4  ;;  %v840_v20 = vpop.f32.mrb[10].mxu1 }
 0x168   :  { %v1029_v17 = vadd.f32 %v828_v14, %v723_v8  ;;  %v830_v19 = vpop.f32.mrb[2].mxu0  ;;  %v841_v22 = vadd.f32 %v840_v20, %v788_v5  ;;  %v842_v24 = vpop.f32.mrb[11].mxu1 }
 0x169   :  { %v1031_v21 = vadd.f32 %v830_v19, %v725_v11  ;;  %v832_v23 = vpop.f32.mrb[3].mxu0  ;;  %v992_v26 = vpack.c.bf16 %v839_v18, %v837_v13  ;;  %v843_v28 = vadd.f32 %v842_v24, %v790_v6 }
 0x16a   :  { %v990_v25 = vpack.c.bf16 %v1029_v17, %v1027_v12  ;;  %v1033_v27 = vadd.f32 %v832_v23, %v727_v16 }
 0x16b   :  { %871 = vst [vmem:[%s1609_s3 + $0x10] sm:$0xff] %v992_v26  ;;  %v993_v30 = vpack.c.bf16 %v843_v28, %v841_v22 }
 0x16c   :  { %869 = vst [vmem:[%s1609_s3] sm:$0xff] %v990_v25  ;;  %v991_v29 = vpack.c.bf16 %v1033_v27, %v1031_v21 }
 0x16d   :  { %872 = vst [vmem:[%s1609_s3 + $0x18] sm:$0xff] %v993_v30 }
 0x16e   :  { %870 = vst [vmem:[%s1609_s3 + $0x8] sm:$0xff] %v991_v29 }
 0x16f   :  { %877 = vsyncpa [#allocation3], 1 }

// kernel: ctpn_forward.5
= control target key start
LH: loop header
LB: loop body
LE: loop exit
PB: predicated region body
PF: predicated region fallthrough
CT: control target
= control target key end

     0   :  { %s12518_s1 = inlined_call_operand.vmem [shape: bf16[2304,768], index: 1, kind: input, shape index: {}]   ;;  %s12519_s0 = inlined_call_operand.vmem [shape: bf16[32,2304], index: 0, kind: input, shape index: {}]   ;;  %s12520_s2 = inlined_call_operand.vmem [shape: f32[1,768], index: 2, kind: input, shape index: {}]   ;;  %s12521_s3 = inlined_call_operand.vmem [shape: f32[32,768], index: 3, kind: output, shape index: {}]  }
   0x1   :  { %v8053_v0 = vld [vmem:[%s12518_s1 + $0x4] ss:$24 sps:$4 sm:$0xff]   ;;  %v8057_v2 = vld [vmem:[%s12518_s1] ss:$24 sps:$4 sm:$0xff]   ;;  %v8059_v4 = vld [vmem:[%s12518_s1 + $0x34] ss:$24 sps:$4 sm:$0xff]  }
   0x2   :  { %v8055_v1 = vld [vmem:[%s12518_s1 + $0xc04] ss:$24 sps:$4 sm:$0xff]   ;;  %5446 = vmatprep.subr.bf16.mxu1 %v8053_v0  ;;  %v8058_v3 = vld [vmem:[%s12518_s1 + $0xc00] ss:$24 sps:$4 sm:$0xff]   ;;  %v8061_v5 = vld [vmem:[%s12518_s1 + $0xc34] ss:$24 sps:$4 sm:$0xff]  }
   0x3   :  { %5658 = vmatprep.subr.bf16.mxu0 %v8055_v1  ;;  %5447 = vmatpush1.bf16.msra.mxu1 %v8057_v2  ;;  %v8063_v6 = vld [vmem:[%s12518_s1 + $0x30] ss:$24 sps:$4 sm:$0xff]   ;;  %v8065_v8 = vld [vmem:[%s12518_s1 + $0x64] ss:$24 sps:$4 sm:$0xff]   ;;  %v8069_v10 = vld [vmem:[%s12518_s1 + $0x60] ss:$24 sps:$4 sm:$0xff]  }
   0x4   :  { %5659 = vmatpush1.bf16.msra.mxu0 %v8058_v3  ;;  %5448 = vmatprep.subr.bf16.mxu1 %v8059_v4  ;;  %v8064_v7 = vld [vmem:[%s12518_s1 + $0xc30] ss:$24 sps:$4 sm:$0xff]   ;;  %v8067_v9 = vld [vmem:[%s12518_s1 + $0xc64] ss:$24 sps:$4 sm:$0xff]   ;;  %v8070_v11 = vld [vmem:[%s12518_s1 + $0xc60] ss:$24 sps:$4 sm:$0xff]  }
   0x5   :  { %5660 = vmatprep.subr.bf16.mxu0 %v8061_v5  ;;  %v8071_v12 = vld [vmem:[%s12518_s1 + $0x94] ss:$24 sps:$4 sm:$0xff]   ;;  %v8075_v14 = vld [vmem:[%s12518_s1 + $0x90] ss:$24 sps:$4 sm:$0xff]   ;;  %v8077_v16 = vld [vmem:[%s12518_s1 + $0xc4] ss:$24 sps:$4 sm:$0xff]  }
   0x6   :  { %v8073_v13 = vld [vmem:[%s12518_s1 + $0xc94] ss:$24 sps:$4 sm:$0xff]   ;;  %v8076_v15 = vld [vmem:[%s12518_s1 + $0xc90] ss:$24 sps:$4 sm:$0xff]   ;;  %v8079_v17 = vld [vmem:[%s12518_s1 + $0xcc4] ss:$24 sps:$4 sm:$0xff]  }
   0x7   :  { %5449 = vmatpush1.bf16.msra.mxu1 %v8063_v6  ;;  %v8081_v18 = vld [vmem:[%s12518_s1 + $0xc0] ss:$24 sps:$4 sm:$0xff]   ;;  %v8083_v20 = vld [vmem:[%s12518_s1 + $0xf4] ss:$24 sps:$4 sm:$0xff]   ;;  %v8087_v22 = vld [vmem:[%s12518_s1 + $0xf0] ss:$24 sps:$4 sm:$0xff]  }
   0x8   :  { %5661 = vmatpush1.bf16.msra.mxu0 %v8064_v7  ;;  %5450 = vmatprep.subr.bf16.mxu1 %v8065_v8  ;;  %v8082_v19 = vld [vmem:[%s12518_s1 + $0xcc0] ss:$24 sps:$4 sm:$0xff]   ;;  %v8085_v21 = vld [vmem:[%s12518_s1 + $0xcf4] ss:$24 sps:$4 sm:$0xff]   ;;  %v8088_v23 = vld [vmem:[%s12518_s1 + $0xcf0] ss:$24 sps:$4 sm:$0xff]  }
   0x9   :  { %5662 = vmatprep.subr.bf16.mxu0 %v8067_v9  ;;  %v8089_v24 = vld [vmem:[%s12518_s1 + $0x124] ss:$24 sps:$4 sm:$0xff]   ;;  %v8093_v26 = vld [vmem:[%s12518_s1 + $0x120] ss:$24 sps:$4 sm:$0xff]   ;;  %v8095_v28 = vld [vmem:[%s12518_s1 + $0x154] ss:$24 sps:$4 sm:$0xff]  }
   0xa   :  { %v8091_v25 = vld [vmem:[%s12518_s1 + $0xd24] ss:$24 sps:$4 sm:$0xff]   ;;  %v8094_v27 = vld [vmem:[%s12518_s1 + $0xd20] ss:$24 sps:$4 sm:$0xff]   ;;  %v8097_v29 = vld [vmem:[%s12518_s1 + $0xd54] ss:$24 sps:$4 sm:$0xff]  }
   0xb   :  { %5451 = vmatpush1.bf16.msra.mxu1 %v8069_v10  ;;  %v8099_v30 = vld [vmem:[%s12518_s1 + $0x150] ss:$24 sps:$4 sm:$0xff]   ;;  %v8101_v32 = vld [vmem:[%s12518_s1 + $0x184] ss:$24 sps:$4 sm:$0xff]   ;;  %v8105_v34 = vld [vmem:[%s12518_s1 + $0x180] ss:$24 sps:$4 sm:$0xff]  }
   0xc   :  { %5663 = vmatpush1.bf16.msra.mxu0 %v8070_v11  ;;  %5452 = vmatprep.subr.bf16.mxu1 %v8071_v12  ;;  %v8100_v31 = vld [vmem:[%s12518_s1 + $0xd50] ss:$24 sps:$4 sm:$0xff]   ;;  %v8103_v33 = vld [vmem:[%s12518_s1 + $0xd84] ss:$24 sps:$4 sm:$0xff]   ;;  %v8106_v35 = vld [vmem:[%s12518_s1 + $0xd80] ss:$24 sps:$4 sm:$0xff]  }
   0xd   :  { %5664 = vmatprep.subr.bf16.mxu0 %v8073_v13  ;;  %v8107_v36 = vld [vmem:[%s12518_s1 + $0x1b4] ss:$24 sps:$4 sm:$0xff]   ;;  %v8111_v38 = vld [vmem:[%s12518_s1 + $0x1b0] ss:$24 sps:$4 sm:$0xff]   ;;  %v8113_v40 = vld [vmem:[%s12518_s1 + $0x1e4] ss:$24 sps:$4 sm:$0xff]  }
   0xe   :  { %v8109_v37 = vld [vmem:[%s12518_s1 + $0xdb4] ss:$24 sps:$4 sm:$0xff]   ;;  %v8112_v39 = vld [vmem:[%s12518_s1 + $0xdb0] ss:$24 sps:$4 sm:$0xff]   ;;  %v8115_v41 = vld [vmem:[%s12518_s1 + $0xde4] ss:$24 sps:$4 sm:$0xff]  }
   0xf   :  { %5453 = vmatpush1.bf16.msra.mxu1 %v8075_v14  ;;  %v8117_v42 = vld [vmem:[%s12518_s1 + $0x1e0] ss:$24 sps:$4 sm:$0xff]   ;;  %v8119_v44 = vld [vmem:[%s12518_s1 + $0x214] ss:$24 sps:$4 sm:$0xff]   ;;  %v8123_v46 = vld [vmem:[%s12518_s1 + $0x210] ss:$24 sps:$4 sm:$0xff]  }
  0x10   :  { %5665 = vmatpush1.bf16.msra.mxu0 %v8076_v15  ;;  %5454 = vmatprep.subr.bf16.mxu1 %v8077_v16  ;;  %v8118_v43 = vld [vmem:[%s12518_s1 + $0xde0] ss:$24 sps:$4 sm:$0xff]   ;;  %v8121_v45 = vld [vmem:[%s12518_s1 + $0xe14] ss:$24 sps:$4 sm:$0xff]   ;;  %v8124_v47 = vld [vmem:[%s12518_s1 + $0xe10] ss:$24 sps:$4 sm:$0xff]  }
  0x11   :  { %5666 = vmatprep.subr.bf16.mxu0 %v8079_v17  ;;  %v8149_v48 = vld [vmem:[%s12519_s0 + $0x4] ss:$72 sps:$4 sm:$0xff]   ;;  %v8129_v52 = vld [vmem:[%s12518_s1 + $0x240] ss:$24 sps:$4 sm:$0xff]   ;;  %v8135_v56 = vld [vmem:[%s12518_s1 + $0x270] ss:$24 sps:$4 sm:$0xff]  }
  0x12   :  { %v8125_v49 = vld [vmem:[%s12518_s1 + $0x244] ss:$24 sps:$4 sm:$0xff]   ;;  %5478 = vmatprep.mubr.bf16.mxu1 %v8149_v48  ;;  %v8130_v53 = vld [vmem:[%s12518_s1 + $0xe40] ss:$24 sps:$4 sm:$0xff]   ;;  %v8131_v54 = vld [vmem:[%s12518_s1 + $0x274] ss:$24 sps:$4 sm:$0xff]  }
  0x13   :  { %5455 = vmatpush1.bf16.msra.mxu1 %v8081_v18  ;;  %v8127_v50 = vld [vmem:[%s12518_s1 + $0xe44] ss:$24 sps:$4 sm:$0xff]   ;;  %v8133_v55 = vld [vmem:[%s12518_s1 + $0xe74] ss:$24 sps:$4 sm:$0xff]   ;;  %v8136_v57 = vld [vmem:[%s12518_s1 + $0xe70] ss:$24 sps:$4 sm:$0xff]  }
  0x14   :  { %5667 = vmatpush1.bf16.msra.mxu0 %v8082_v19  ;;  %5456 = vmatprep.subr.bf16.mxu1 %v8083_v20  ;;  %v8154_v51 = vld [vmem:[%s12519_s0 + $0x24] ss:$72 sps:$4 sm:$0xff]   ;;  %v8141_v60 = vld [vmem:[%s12518_s1 + $0x2a0] ss:$24 sps:$4 sm:$0xff]   ;;  %v8147_v0 = vld [vmem:[%s12518_s1 + $0x2d0] ss:$24 sps:$4 sm:$0xff]  }
  0x15   :  { %5668 = vmatprep.subr.bf16.mxu0 %v8085_v21  ;;  %5690 = vmatprep.mubr.bf16.mxu0 %v8154_v51  ;;  %v8137_v58 = vld [vmem:[%s12518_s1 + $0x2a4] ss:$24 sps:$4 sm:$0xff]   ;;  %v8142_v61 = vld [vmem:[%s12518_s1 + $0xea0] ss:$24 sps:$4 sm:$0xff]   ;;  %v8143_v62 = vld [vmem:[%s12518_s1 + $0x2d4] ss:$24 sps:$4 sm:$0xff]  }
  0x16   :  { %v8139_v59 = vld [vmem:[%s12518_s1 + $0xea4] ss:$24 sps:$4 sm:$0xff]   ;;  %v8145_v63 = vld [vmem:[%s12518_s1 + $0xed4] ss:$24 sps:$4 sm:$0xff]   ;;  %v8148_v1 = vld [vmem:[%s12518_s1 + $0xed0] ss:$24 sps:$4 sm:$0xff]  }
  0x17   :  { %5457 = vmatpush1.bf16.msra.mxu1 %v8087_v22  ;;  %v8153_v2 = vld [vmem:[%s12518_s1 + $0x304] ss:$24 sps:$4 sm:$0xff]   ;;  %v8151_v4 = vld [vmem:[%s12518_s1 + $0x300] ss:$24 sps:$4 sm:$0xff]   ;;  %v8163_v8 = vld [vmem:[%s12518_s1 + $0x334] ss:$24 sps:$4 sm:$0xff]  }
  0x18   :  { %5669 = vmatpush1.bf16.msra.mxu0 %v8088_v23  ;;  %5458 = vmatprep.subr.bf16.mxu1 %v8089_v24  ;;  %v8158_v3 = vld [vmem:[%s12518_s1 + $0xf04] ss:$24 sps:$4 sm:$0xff]   ;;  %v8156_v5 = vld [vmem:[%s12518_s1 + $0xf00] ss:$24 sps:$4 sm:$0xff]   ;;  %v8166_v9 = vld [vmem:[%s12518_s1 + $0xf34] ss:$24 sps:$4 sm:$0xff]  }
  0x19   :  { %5670 = vmatprep.subr.bf16.mxu0 %v8091_v25  ;;  %v8159_v6 = vld [vmem:[%s12519_s0] ss:$72 sps:$4 sm:$0xff]   ;;  %v8169_v12 = vld [vmem:[%s12518_s1 + $0x364] ss:$24 sps:$4 sm:$0xff]   ;;  %v8175_v16 = vld [vmem:[%s12518_s1 + $0x394] ss:$24 sps:$4 sm:$0xff]  }
  0x1a   :  { %v8160_v7 = vld [vmem:[%s12519_s0 + $0x20] ss:$72 sps:$4 sm:$0xff]   ;;  %v8172_v13 = vld [vmem:[%s12518_s1 + $0xf64] ss:$24 sps:$4 sm:$0xff]   ;;  %v8178_v17 = vld [vmem:[%s12518_s1 + $0xf94] ss:$24 sps:$4 sm:$0xff]  }
  0x1b   :  { %5459 = vmatpush1.bf16.msra.mxu1 %v8093_v26  ;;  %v8161_v10 = vld [vmem:[%s12518_s1 + $0x330] ss:$24 sps:$4 sm:$0xff]   ;;  %v8167_v14 = vld [vmem:[%s12518_s1 + $0x360] ss:$24 sps:$4 sm:$0xff]   ;;  %v8181_v20 = vld [vmem:[%s12518_s1 + $0x3c4] ss:$24 sps:$4 sm:$0xff]  }
  0x1c   :  { %5671 = vmatpush1.bf16.msra.mxu0 %v8094_v27  ;;  %5460 = vmatprep.subr.bf16.mxu1 %v8095_v28  ;;  %v8164_v11 = vld [vmem:[%s12518_s1 + $0xf30] ss:$24 sps:$4 sm:$0xff]   ;;  %v8170_v15 = vld [vmem:[%s12518_s1 + $0xf60] ss:$24 sps:$4 sm:$0xff]   ;;  %v8184_v21 = vld [vmem:[%s12518_s1 + $0xfc4] ss:$24 sps:$4 sm:$0xff]  }
  0x1d   :  { %5672 = vmatprep.subr.bf16.mxu0 %v8097_v29  ;;  %v8173_v18 = vld [vmem:[%s12518_s1 + $0x390] ss:$24 sps:$4 sm:$0xff]   ;;  %v8179_v22 = vld [vmem:[%s12518_s1 + $0x3c0] ss:$24 sps:$4 sm:$0xff]   ;;  %v8187_v24 = vld [vmem:[%s12518_s1 + $0x3f4] ss:$24 sps:$4 sm:$0xff]  }
  0x1e   :  { %v8176_v19 = vld [vmem:[%s12518_s1 + $0xf90] ss:$24 sps:$4 sm:$0xff]   ;;  %v8182_v23 = vld [vmem:[%s12518_s1 + $0xfc0] ss:$24 sps:$4 sm:$0xff]   ;;  %v8190_v25 = vld [vmem:[%s12518_s1 + $0xff4] ss:$24 sps:$4 sm:$0xff]  }
  0x1f   :  { %5461 = vmatpush1.bf16.msra.mxu1 %v8099_v30  ;;  %v8185_v26 = vld [vmem:[%s12518_s1 + $0x3f0] ss:$24 sps:$4 sm:$0xff]   ;;  %v8239_v28 = vld [vmem:[%s12519_s0 + $0x94] ss:$72 sps:$4 sm:$0xff]  }
  0x20   :  { %5673 = vmatpush1.bf16.msra.mxu0 %v8100_v31  ;;  %5462 = vmatprep.subr.bf16.mxu1 %v8101_v32  ;;  %v8188_v27 = vld [vmem:[%s12518_s1 + $0xff0] ss:$24 sps:$4 sm:$0xff]   ;;  %v8193_v29 = vld [vmem:[%s12518_s1 + $0x424] ss:$24 sps:$4 sm:$0xff]   ;;  %v8191_v32 = vld [vmem:[%s12518_s1 + $0x420] ss:$24 sps:$4 sm:$0xff]  }
  0x21   :  { %5674 = vmatprep.subr.bf16.mxu0 %v8103_v33  ;;  %v8196_v30 = vld [vmem:[%s12518_s1 + $0x1024] ss:$24 sps:$4 sm:$0xff]   ;;  %v8194_v33 = vld [vmem:[%s12518_s1 + $0x1020] ss:$24 sps:$4 sm:$0xff]   ;;  %v8209_v48 = vld [vmem:[%s12518_s1 + $0x4b0] ss:$24 sps:$4 sm:$0xff]  }
  0x22   :  { %v8244_v31 = vld [vmem:[%s12519_s0 + $0xb4] ss:$72 sps:$4 sm:$0xff]  }
  0x23   :  { %5463 = vmatpush1.bf16.msra.mxu1 %v8105_v34  ;;  %v8249_v34 = vld [vmem:[%s12519_s0 + $0x90] ss:$72 sps:$4 sm:$0xff]   ;;  %v8220_v51 = vld [vmem:[%s12518_s1 + $0x10e4] ss:$24 sps:$4 sm:$0xff]  }
  0x24   :  { %5675 = vmatpush1.bf16.msra.mxu0 %v8106_v35  ;;  %5464 = vmatprep.subr.bf16.mxu1 %v8107_v36  ;;  %v8250_v35 = vld [vmem:[%s12519_s0 + $0xb0] ss:$72 sps:$4 sm:$0xff]   ;;  %v8199_v36 = vld [vmem:[%s12518_s1 + $0x454] ss:$24 sps:$4 sm:$0xff]  }
  0x25   :  { %5676 = vmatprep.subr.bf16.mxu0 %v8109_v37  ;;  %v8202_v37 = vld [vmem:[%s12518_s1 + $0x1054] ss:$24 sps:$4 sm:$0xff]  }
  0x27   :  { %5465 = vmatpush1.bf16.msra.mxu1 %v8111_v38  ;;  %v8197_v38 = vld [vmem:[%s12518_s1 + $0x450] ss:$24 sps:$4 sm:$0xff]  }
  0x28   :  { %5677 = vmatpush1.bf16.msra.mxu0 %v8112_v39  ;;  %5466 = vmatprep.subr.bf16.mxu1 %v8113_v40  ;;  %v8200_v39 = vld [vmem:[%s12518_s1 + $0x1050] ss:$24 sps:$4 sm:$0xff]   ;;  %v8259_v40 = vld [vmem:[%s12519_s0 + $0xc] ss:$72 sps:$4 sm:$0xff]  }
  0x29   :  { %5678 = vmatprep.subr.bf16.mxu0 %v8115_v41  ;;  %v8205_v41 = vld [vmem:[%s12518_s1 + $0x484] ss:$24 sps:$4 sm:$0xff]  }
  0x2b   :  { %5467 = vmatpush1.bf16.msra.mxu1 %v8117_v42  ;;  %v8208_v42 = vld [vmem:[%s12518_s1 + $0x1084] ss:$24 sps:$4 sm:$0xff]  }
  0x2c   :  { %5679 = vmatpush1.bf16.msra.mxu0 %v8118_v43  ;;  %5468 = vmatprep.subr.bf16.mxu1 %v8119_v44  ;;  %v8265_v43 = vld [vmem:[%s12519_s0 + $0x2c] ss:$72 sps:$4 sm:$0xff]   ;;  %v8203_v44 = vld [vmem:[%s12518_s1 + $0x480] ss:$24 sps:$4 sm:$0xff]  }
  0x2d   :  { %5680 = vmatprep.subr.bf16.mxu0 %v8121_v45  ;;  %v8206_v45 = vld [vmem:[%s12518_s1 + $0x1080] ss:$24 sps:$4 sm:$0xff]  }
  0x2f   :  { %5469 = vmatpush1.bf16.msra.mxu1 %v8123_v46  ;;  %v8211_v46 = vld [vmem:[%s12518_s1 + $0x4b4] ss:$24 sps:$4 sm:$0xff]  }
  0x30   :  { %5681 = vmatpush1.bf16.msra.mxu0 %v8124_v47  ;;  %5470 = vmatprep.subr.bf16.mxu1 %v8125_v49  ;;  %v8214_v47 = vld [vmem:[%s12518_s1 + $0x10b4] ss:$24 sps:$4 sm:$0xff]   ;;  %v8212_v49 = vld [vmem:[%s12518_s1 + $0x10b0] ss:$24 sps:$4 sm:$0xff]  }
  0x31   :  { %5682 = vmatprep.subr.bf16.mxu0 %v8127_v50  ;;  %v8217_v50 = vld [vmem:[%s12518_s1 + $0x4e4] ss:$24 sps:$4 sm:$0xff]  }
  0x33   :  { %5471 = vmatpush1.bf16.msra.mxu1 %v8129_v52  ;;  %v8215_v52 = vld [vmem:[%s12518_s1 + $0x4e0] ss:$24 sps:$4 sm:$0xff]  }
  0x34   :  { %5683 = vmatpush1.bf16.msra.mxu0 %v8130_v53  ;;  %5472 = vmatprep.subr.bf16.mxu1 %v8131_v54  ;;  %v8218_v53 = vld [vmem:[%s12518_s1 + $0x10e0] ss:$24 sps:$4 sm:$0xff]   ;;  %v8223_v54 = vld [vmem:[%s12518_s1 + $0x514] ss:$24 sps:$4 sm:$0xff]  }
  0x35   :  { %5684 = vmatprep.subr.bf16.mxu0 %v8133_v55  ;;  %v8226_v55 = vld [vmem:[%s12518_s1 + $0x1114] ss:$24 sps:$4 sm:$0xff]  }
  0x37   :  { %5473 = vmatpush1.bf16.msra.mxu1 %v8135_v56  ;;  %v8221_v56 = vld [vmem:[%s12518_s1 + $0x510] ss:$24 sps:$4 sm:$0xff]  }
  0x38   :  { %5685 = vmatpush1.bf16.msra.mxu0 %v8136_v57  ;;  %5474 = vmatprep.subr.bf16.mxu1 %v8137_v58  ;;  %v8224_v57 = vld [vmem:[%s12518_s1 + $0x1110] ss:$24 sps:$4 sm:$0xff]   ;;  %v8229_v58 = vld [vmem:[%s12518_s1 + $0x544] ss:$24 sps:$4 sm:$0xff]  }
  0x39   :  { %5686 = vmatprep.subr.bf16.mxu0 %v8139_v59  ;;  %v8232_v59 = vld [vmem:[%s12518_s1 + $0x1144] ss:$24 sps:$4 sm:$0xff]  }
  0x3b   :  { %5475 = vmatpush1.bf16.msra.mxu1 %v8141_v60  ;;  %v8227_v60 = vld [vmem:[%s12518_s1 + $0x540] ss:$24 sps:$4 sm:$0xff]  }
  0x3c   :  { %5687 = vmatpush1.bf16.msra.mxu0 %v8142_v61  ;;  %5476 = vmatprep.subr.bf16.mxu1 %v8143_v62  ;;  %v8230_v61 = vld [vmem:[%s12518_s1 + $0x1140] ss:$24 sps:$4 sm:$0xff]   ;;  %v8235_v62 = vld [vmem:[%s12518_s1 + $0x574] ss:$24 sps:$4 sm:$0xff]  }
  0x3d   :  { %5688 = vmatprep.subr.bf16.mxu0 %v8145_v63  ;;  %v8238_v63 = vld [vmem:[%s12518_s1 + $0x1174] ss:$24 sps:$4 sm:$0xff]  }
  0x3f   :  { %5477 = vmatpush1.bf16.msra.mxu1 %v8147_v0  ;;  %v8233_v0 = vld [vmem:[%s12518_s1 + $0x570] ss:$24 sps:$4 sm:$0xff]  }
  0x40   :  { %5689 = vmatpush1.bf16.msra.mxu0 %v8148_v1  ;;  %5499 = vmatprep.subr.bf16.mxu1 %v8153_v2  ;;  %v8236_v1 = vld [vmem:[%s12518_s1 + $0x1170] ss:$24 sps:$4 sm:$0xff]   ;;  %v8243_v2 = vld [vmem:[%s12518_s1 + $0x5a4] ss:$24 sps:$4 sm:$0xff]  }
  0x41   :  { %5711 = vmatprep.subr.bf16.mxu0 %v8158_v3  ;;  %v8248_v3 = vld [vmem:[%s12518_s1 + $0x11a4] ss:$24 sps:$4 sm:$0xff]  }
  0x42   :  { %5479 = vmatmul.mubr.bf16.vlgmr.msra.gmra.mrb[0].mxu1 %v8159_v6  ;;  %v8253_v6 = vld [vmem:[%s12518_s1 + $0x5d4] ss:$24 sps:$4 sm:$0xff]  }
  0x43   :  { %5691 = vmatmul.mubr.bf16.vlgmr.msra.gmra.mrb[0].mxu0 %v8160_v7  ;;  %5500 = vmatpush1.bf16.msra.mxu1 %v8151_v4  ;;  %v8241_v4 = vld [vmem:[%s12518_s1 + $0x5a0] ss:$24 sps:$4 sm:$0xff]   ;;  %v8256_v7 = vld [vmem:[%s12518_s1 + $0x11d4] ss:$24 sps:$4 sm:$0xff]  }
  0x44   :  { %5712 = vmatpush1.bf16.msra.mxu0 %v8156_v5  ;;  %5501 = vmatprep.subr.bf16.mxu1 %v8163_v8  ;;  %v8246_v5 = vld [vmem:[%s12518_s1 + $0x11a0] ss:$24 sps:$4 sm:$0xff]   ;;  %v8251_v8 = vld [vmem:[%s12518_s1 + $0x5d0] ss:$24 sps:$4 sm:$0xff]  }
  0x45   :  { %5713 = vmatprep.subr.bf16.mxu0 %v8166_v9  ;;  %5488 = vmatprep.mubr.bf16.mxu1 %v8239_v28  ;;  %v8254_v9 = vld [vmem:[%s12518_s1 + $0x11d0] ss:$24 sps:$4 sm:$0xff]   ;;  %v8283_v28 = vld [vmem:[%s12518_s1 + $0x694] ss:$24 sps:$4 sm:$0xff]  }
  0x46   :  { %5700 = vmatprep.mubr.bf16.mxu0 %v8244_v31  ;;  %v8284_v31 = vld [vmem:[%s12518_s1 + $0x1290] ss:$24 sps:$4 sm:$0xff]  }
  0x47   :  { %5502 = vmatpush1.bf16.msra.mxu1 %v8161_v10  ;;  %v8262_v10 = vld [vmem:[%s12518_s1 + $0x604] ss:$24 sps:$4 sm:$0xff]  }
  0x48   :  { %5714 = vmatpush1.bf16.msra.mxu0 %v8164_v11  ;;  %5503 = vmatprep.subr.bf16.mxu1 %v8169_v12  ;;  %v8268_v11 = vld [vmem:[%s12518_s1 + $0x1204] ss:$24 sps:$4 sm:$0xff]   ;;  %v8257_v12 = vld [vmem:[%s12519_s0 + $0x8] ss:$72 sps:$4 sm:$0xff]  }
  0x49   :  { %5715 = vmatprep.subr.bf16.mxu0 %v8172_v13  ;;  %v8260_v13 = vld [vmem:[%s12518_s1 + $0x600] ss:$24 sps:$4 sm:$0xff]  }
  0x4a   :  { %5489 = vmatmul.mubr.bf16.gmra.mrb[4].mxu1 %v8249_v34  ;;  %v8292_v34 = vld [vmem:[%s12518_s1 + $0x12c4] ss:$24 sps:$4 sm:$0xff]  }
  0x4b   :  { %5504 = vmatpush1.bf16.msra.mxu1 %v8167_v14  ;;  %5701 = vmatmul.mubr.bf16.gmra.mrb[4].mxu0 %v8250_v35  ;;  %v8263_v14 = vld [vmem:[%s12519_s0 + $0x28] ss:$72 sps:$4 sm:$0xff]   ;;  %v8373_v35 = vld [vmem:[%s12519_s0 + $0x34] ss:$72 sps:$4 sm:$0xff]  }
  0x4c   :  { %5716 = vmatpush1.bf16.msra.mxu0 %v8170_v15  ;;  %5505 = vmatprep.subr.bf16.mxu1 %v8175_v16  ;;  %v8266_v15 = vld [vmem:[%s12518_s1 + $0x1200] ss:$24 sps:$4 sm:$0xff]   ;;  %v8271_v16 = vld [vmem:[%s12518_s1 + $0x634] ss:$24 sps:$4 sm:$0xff]  }
  0x4d   :  { %5717 = vmatprep.subr.bf16.mxu0 %v8178_v17  ;;  %5531 = vmatprep.mubr.bf16.mxu1 %v8259_v40  ;;  %v8274_v17 = vld [vmem:[%s12518_s1 + $0x1234] ss:$24 sps:$4 sm:$0xff]   ;;  %v8293_v40 = vld [vmem:[%s12518_s1 + $0x6f0] ss:$24 sps:$4 sm:$0xff]  }
  0x4e   :  { %5743 = vmatprep.mubr.bf16.mxu0 %v8265_v43  ;;  %v8304_v43 = vld [vmem:[%s12518_s1 + $0x1324] ss:$24 sps:$4 sm:$0xff]  }
  0x4f   :  { %5506 = vmatpush1.bf16.msra.mxu1 %v8173_v18  ;;  %v8269_v18 = vld [vmem:[%s12518_s1 + $0x630] ss:$24 sps:$4 sm:$0xff]  }
  0x50   :  { %5718 = vmatpush1.bf16.msra.mxu0 %v8176_v19  ;;  %5507 = vmatprep.subr.bf16.mxu1 %v8181_v20  ;;  %v8272_v19 = vld [vmem:[%s12518_s1 + $0x1230] ss:$24 sps:$4 sm:$0xff]   ;;  %v8347_v20 = vld [vmem:[%s12519_s0 + $0x9c] ss:$72 sps:$4 sm:$0xff]  }
  0x51   :  { %5719 = vmatprep.subr.bf16.mxu0 %v8184_v21  ;;  %v8277_v21 = vld [vmem:[%s12518_s1 + $0x664] ss:$24 sps:$4 sm:$0xff]  }
  0x53   :  { %5508 = vmatpush1.bf16.msra.mxu1 %v8179_v22  ;;  %v8280_v22 = vld [vmem:[%s12518_s1 + $0x1264] ss:$24 sps:$4 sm:$0xff]  }
  0x54   :  { %5720 = vmatpush1.bf16.msra.mxu0 %v8182_v23  ;;  %5509 = vmatprep.subr.bf16.mxu1 %v8187_v24  ;;  %v8352_v23 = vld [vmem:[%s12519_s0 + $0xbc] ss:$72 sps:$4 sm:$0xff]   ;;  %v8275_v24 = vld [vmem:[%s12518_s1 + $0x660] ss:$24 sps:$4 sm:$0xff]  }
  0x55   :  { %5721 = vmatprep.subr.bf16.mxu0 %v8190_v25  ;;  %v8278_v25 = vld [vmem:[%s12518_s1 + $0x1260] ss:$24 sps:$4 sm:$0xff]  }
  0x57   :  { %5510 = vmatpush1.bf16.msra.mxu1 %v8185_v26  ;;  %v8357_v26 = vld [vmem:[%s12519_s0 + $0x98] ss:$72 sps:$4 sm:$0xff]  }
  0x58   :  { %5722 = vmatpush1.bf16.msra.mxu0 %v8188_v27  ;;  %5511 = vmatprep.subr.bf16.mxu1 %v8193_v29  ;;  %v8358_v27 = vld [vmem:[%s12519_s0 + $0xb8] ss:$72 sps:$4 sm:$0xff]   ;;  %v8286_v29 = vld [vmem:[%s12518_s1 + $0x1294] ss:$24 sps:$4 sm:$0xff]  }
  0x59   :  { %5723 = vmatprep.subr.bf16.mxu0 %v8196_v30  ;;  %v8281_v30 = vld [vmem:[%s12518_s1 + $0x690] ss:$24 sps:$4 sm:$0xff]  }
  0x5b   :  { %5512 = vmatpush1.bf16.msra.mxu1 %v8191_v32  ;;  %v8367_v32 = vld [vmem:[%s12519_s0 + $0x14] ss:$72 sps:$4 sm:$0xff]  }
  0x5c   :  { %5724 = vmatpush1.bf16.msra.mxu0 %v8194_v33  ;;  %5513 = vmatprep.subr.bf16.mxu1 %v8199_v36  ;;  %v8289_v33 = vld [vmem:[%s12518_s1 + $0x6c4] ss:$24 sps:$4 sm:$0xff]   ;;  %v8287_v36 = vld [vmem:[%s12518_s1 + $0x6c0] ss:$24 sps:$4 sm:$0xff]  }
  0x5d   :  { %5725 = vmatprep.subr.bf16.mxu0 %v8202_v37  ;;  %v8290_v37 = vld [vmem:[%s12518_s1 + $0x12c0] ss:$24 sps:$4 sm:$0xff]  }
  0x5f   :  { %5514 = vmatpush1.bf16.msra.mxu1 %v8197_v38  ;;  %v8295_v38 = vld [vmem:[%s12518_s1 + $0x6f4] ss:$24 sps:$4 sm:$0xff]  }
  0x60   :  { %5726 = vmatpush1.bf16.msra.mxu0 %v8200_v39  ;;  %5515 = vmatprep.subr.bf16.mxu1 %v8205_v41  ;;  %v8298_v39 = vld [vmem:[%s12518_s1 + $0x12f4] ss:$24 sps:$4 sm:$0xff]   ;;  %v8296_v41 = vld [vmem:[%s12518_s1 + $0x12f0] ss:$24 sps:$4 sm:$0xff]  }
  0x61   :  { %5727 = vmatprep.subr.bf16.mxu0 %v8208_v42  ;;  %v8301_v42 = vld [vmem:[%s12518_s1 + $0x724] ss:$24 sps:$4 sm:$0xff]  }
  0x63   :  { %5516 = vmatpush1.bf16.msra.mxu1 %v8203_v44  ;;  %v8299_v44 = vld [vmem:[%s12518_s1 + $0x720] ss:$24 sps:$4 sm:$0xff]  }
  0x64   :  { %5728 = vmatpush1.bf16.msra.mxu0 %v8206_v45  ;;  %5517 = vmatprep.subr.bf16.mxu1 %v8211_v46  ;;  %v8302_v45 = vld [vmem:[%s12518_s1 + $0x1320] ss:$24 sps:$4 sm:$0xff]   ;;  %v8307_v46 = vld [vmem:[%s12518_s1 + $0x754] ss:$24 sps:$4 sm:$0xff]  }
  0x65   :  { %5729 = vmatprep.subr.bf16.mxu0 %v8214_v47  ;;  %v8310_v47 = vld [vmem:[%s12518_s1 + $0x1354] ss:$24 sps:$4 sm:$0xff]  }
  0x67   :  { %5518 = vmatpush1.bf16.msra.mxu1 %v8209_v48  ;;  %v8305_v48 = vld [vmem:[%s12518_s1 + $0x750] ss:$24 sps:$4 sm:$0xff]  }
  0x68   :  { %5730 = vmatpush1.bf16.msra.mxu0 %v8212_v49  ;;  %5519 = vmatprep.subr.bf16.mxu1 %v8217_v50  ;;  %v8308_v49 = vld [vmem:[%s12518_s1 + $0x1350] ss:$24 sps:$4 sm:$0xff]   ;;  %v8313_v50 = vld [vmem:[%s12518_s1 + $0x784] ss:$24 sps:$4 sm:$0xff]  }
  0x69   :  { %5731 = vmatprep.subr.bf16.mxu0 %v8220_v51  ;;  %v8316_v51 = vld [vmem:[%s12518_s1 + $0x1384] ss:$24 sps:$4 sm:$0xff]  }
  0x6b   :  { %5520 = vmatpush1.bf16.msra.mxu1 %v8215_v52  ;;  %v8311_v52 = vld [vmem:[%s12518_s1 + $0x780] ss:$24 sps:$4 sm:$0xff]  }
  0x6c   :  { %5732 = vmatpush1.bf16.msra.mxu0 %v8218_v53  ;;  %5521 = vmatprep.subr.bf16.mxu1 %v8223_v54  ;;  %v8314_v53 = vld [vmem:[%s12518_s1 + $0x1380] ss:$24 sps:$4 sm:$0xff]   ;;  %v8319_v54 = vld [vmem:[%s12518_s1 + $0x7b4] ss:$24 sps:$4 sm:$0xff]  }
  0x6d   :  { %5733 = vmatprep.subr.bf16.mxu0 %v8226_v55  ;;  %v8322_v55 = vld [vmem:[%s12518_s1 + $0x13b4] ss:$24 sps:$4 sm:$0xff]  }
  0x6f   :  { %5522 = vmatpush1.bf16.msra.mxu1 %v8221_v56  ;;  %v8317_v56 = vld [vmem:[%s12518_s1 + $0x7b0] ss:$24 sps:$4 sm:$0xff]  }
  0x70   :  { %5734 = vmatpush1.bf16.msra.mxu0 %v8224_v57  ;;  %5523 = vmatprep.subr.bf16.mxu1 %v8229_v58  ;;  %v8320_v57 = vld [vmem:[%s12518_s1 + $0x13b0] ss:$24 sps:$4 sm:$0xff]   ;;  %v8325_v58 = vld [vmem:[%s12518_s1 + $0x7e4] ss:$24 sps:$4 sm:$0xff]  }
  0x71   :  { %5735 = vmatprep.subr.bf16.mxu0 %v8232_v59  ;;  %v8328_v59 = vld [vmem:[%s12518_s1 + $0x13e4] ss:$24 sps:$4 sm:$0xff]  }
  0x73   :  { %5524 = vmatpush1.bf16.msra.mxu1 %v8227_v60  ;;  %v8323_v60 = vld [vmem:[%s12518_s1 + $0x7e0] ss:$24 sps:$4 sm:$0xff]  }
  0x74   :  { %5736 = vmatpush1.bf16.msra.mxu0 %v8230_v61  ;;  %5525 = vmatprep.subr.bf16.mxu1 %v8235_v62  ;;  %v8326_v61 = vld [vmem:[%s12518_s1 + $0x13e0] ss:$24 sps:$4 sm:$0xff]   ;;  %v8331_v62 = vld [vmem:[%s12518_s1 + $0x814] ss:$24 sps:$4 sm:$0xff]  }
  0x75   :  { %5737 = vmatprep.subr.bf16.mxu0 %v8238_v63  ;;  %v8334_v63 = vld [vmem:[%s12518_s1 + $0x1414] ss:$24 sps:$4 sm:$0xff]  }
  0x77   :  { %5526 = vmatpush1.bf16.msra.mxu1 %v8233_v0  ;;  %v8329_v0 = vld [vmem:[%s12518_s1 + $0x810] ss:$24 sps:$4 sm:$0xff]  }
  0x78   :  { %5738 = vmatpush1.bf16.msra.mxu0 %v8236_v1  ;;  %5527 = vmatprep.subr.bf16.mxu1 %v8243_v2  ;;  %v8332_v1 = vld [vmem:[%s12518_s1 + $0x1410] ss:$24 sps:$4 sm:$0xff]   ;;  %v8337_v2 = vld [vmem:[%s12518_s1 + $0x844] ss:$24 sps:$4 sm:$0xff]  }
  0x79   :  { %5739 = vmatprep.subr.bf16.mxu0 %v8248_v3  ;;  %v8340_v3 = vld [vmem:[%s12518_s1 + $0x1444] ss:$24 sps:$4 sm:$0xff]  }
  0x7b   :  { %5528 = vmatpush1.bf16.msra.mxu1 %v8241_v4  ;;  %v8335_v4 = vld [vmem:[%s12518_s1 + $0x840] ss:$24 sps:$4 sm:$0xff]  }
  0x7c   :  { %5740 = vmatpush1.bf16.msra.mxu0 %v8246_v5  ;;  %5529 = vmatprep.subr.bf16.mxu1 %v8253_v6  ;;  %v8338_v5 = vld [vmem:[%s12518_s1 + $0x1440] ss:$24 sps:$4 sm:$0xff]   ;;  %v8343_v6 = vld [vmem:[%s12518_s1 + $0x874] ss:$24 sps:$4 sm:$0xff]  }
  0x7d   :  { %5741 = vmatprep.subr.bf16.mxu0 %v8256_v7  ;;  %v8346_v7 = vld [vmem:[%s12518_s1 + $0x1474] ss:$24 sps:$4 sm:$0xff]  }
  0x7f   :  { %5530 = vmatpush1.bf16.msra.mxu1 %v8251_v8  ;;  %v8341_v8 = vld [vmem:[%s12518_s1 + $0x870] ss:$24 sps:$4 sm:$0xff]  }
  0x80   :  { %5742 = vmatpush1.bf16.msra.mxu0 %v8254_v9  ;;  %5552 = vmatprep.subr.bf16.mxu1 %v8262_v10  ;;  %v8344_v9 = vld [vmem:[%s12518_s1 + $0x1470] ss:$24 sps:$4 sm:$0xff]   ;;  %v8351_v10 = vld [vmem:[%s12518_s1 + $0x8a4] ss:$24 sps:$4 sm:$0xff]  }
  0x81   :  { %5764 = vmatprep.subr.bf16.mxu0 %v8268_v11  ;;  %v8356_v11 = vld [vmem:[%s12518_s1 + $0x14a4] ss:$24 sps:$4 sm:$0xff]  }
  0x82   :  { %5532 = vmatmul.mubr.bf16.vlgmr.msra.gmra.mrb[0].mxu1 %v8257_v12  ;;  %v8349_v12 = vld [vmem:[%s12518_s1 + $0x8a0] ss:$24 sps:$4 sm:$0xff]  }
  0x83   :  { %5744 = vmatmul.mubr.bf16.vlgmr.msra.gmra.mrb[0].mxu0 %v8263_v14  ;;  %5553 = vmatpush1.bf16.msra.mxu1 %v8260_v13  ;;  %v8354_v13 = vld [vmem:[%s12518_s1 + $0x14a0] ss:$24 sps:$4 sm:$0xff]   ;;  %v8361_v14 = vld [vmem:[%s12518_s1 + $0x8d4] ss:$24 sps:$4 sm:$0xff]  }
  0x84   :  { %5765 = vmatpush1.bf16.msra.mxu0 %v8266_v15  ;;  %5554 = vmatprep.subr.bf16.mxu1 %v8271_v16  ;;  %v8364_v15 = vld [vmem:[%s12518_s1 + $0x14d4] ss:$24 sps:$4 sm:$0xff]   ;;  %v8359_v16 = vld [vmem:[%s12518_s1 + $0x8d0] ss:$24 sps:$4 sm:$0xff]  }
  0x85   :  { %5766 = vmatprep.subr.bf16.mxu0 %v8274_v17  ;;  %5541 = vmatprep.mubr.bf16.mxu1 %v8347_v20  ;;  %v8362_v17 = vld [vmem:[%s12518_s1 + $0x14d0] ss:$24 sps:$4 sm:$0xff]  }
  0x86   :  { %5753 = vmatprep.mubr.bf16.mxu0 %v8352_v23  ;;  %v8365_v20 = vld [vmem:[%s12519_s0 + $0x10] ss:$72 sps:$4 sm:$0xff]  }
  0x87   :  { %5555 = vmatpush1.bf16.msra.mxu1 %v8269_v18  ;;  %v8370_v18 = vld [vmem:[%s12518_s1 + $0x904] ss:$24 sps:$4 sm:$0xff]   ;;  %v8374_v23 = vld [vmem:[%s12518_s1 + $0x1500] ss:$24 sps:$4 sm:$0xff]  }
  0x88   :  { %5767 = vmatpush1.bf16.msra.mxu0 %v8272_v19  ;;  %5556 = vmatprep.subr.bf16.mxu1 %v8277_v21  ;;  %v8376_v19 = vld [vmem:[%s12518_s1 + $0x1504] ss:$24 sps:$4 sm:$0xff]   ;;  %v8368_v21 = vld [vmem:[%s12518_s1 + $0x900] ss:$24 sps:$4 sm:$0xff]  }
  0x89   :  { %5768 = vmatprep.subr.bf16.mxu0 %v8280_v22  ;;  %v8371_v22 = vld [vmem:[%s12519_s0 + $0x30] ss:$72 sps:$4 sm:$0xff]  }
  0x8a   :  { %5542 = vmatmul.mubr.bf16.gmra.mrb[4].mxu1 %v8357_v26  ;;  %v8455_v26 = vld [vmem:[%s12519_s0 + $0xa4] ss:$72 sps:$4 sm:$0xff]  }
  0x8b   :  { %5754 = vmatmul.mubr.bf16.gmra.mrb[4].mxu0 %v8358_v27  ;;  %5557 = vmatpush1.bf16.msra.mxu1 %v8275_v24  ;;  %v8379_v24 = vld [vmem:[%s12518_s1 + $0x934] ss:$24 sps:$4 sm:$0xff]  }
  0x8c   :  { %5769 = vmatpush1.bf16.msra.mxu0 %v8278_v25  ;;  %5558 = vmatprep.subr.bf16.mxu1 %v8283_v28  ;;  %v8382_v25 = vld [vmem:[%s12518_s1 + $0x1534] ss:$24 sps:$4 sm:$0xff]   ;;  %v8377_v28 = vld [vmem:[%s12518_s1 + $0x930] ss:$24 sps:$4 sm:$0xff]  }
  0x8d   :  { %5770 = vmatprep.subr.bf16.mxu0 %v8286_v29  ;;  %5584 = vmatprep.mubr.bf16.mxu1 %v8367_v32  ;;  %v8461_v27 = vld [vmem:[%s12519_s0 + $0xc4] ss:$72 sps:$4 sm:$0xff]   ;;  %v8380_v29 = vld [vmem:[%s12518_s1 + $0x1530] ss:$24 sps:$4 sm:$0xff]   ;;  %v8383_v32 = vld [vmem:[%s12518_s1 + $0x960] ss:$24 sps:$4 sm:$0xff]  }
  0x8e   :  { %5796 = vmatprep.mubr.bf16.mxu0 %v8373_v35  ;;  %v8466_v35 = vld [vmem:[%s12519_s0 + $0xc0] ss:$72 sps:$4 sm:$0xff]  }
  0x8f   :  { %5559 = vmatpush1.bf16.msra.mxu1 %v8281_v30  ;;  %v8385_v30 = vld [vmem:[%s12518_s1 + $0x964] ss:$24 sps:$4 sm:$0xff]  }
  0x90   :  { %5771 = vmatpush1.bf16.msra.mxu0 %v8284_v31  ;;  %5560 = vmatprep.subr.bf16.mxu1 %v8289_v33  ;;  %v8388_v31 = vld [vmem:[%s12518_s1 + $0x1564] ss:$24 sps:$4 sm:$0xff]   ;;  %v8386_v33 = vld [vmem:[%s12518_s1 + $0x1560] ss:$24 sps:$4 sm:$0xff]  }
  0x91   :  { %5772 = vmatprep.subr.bf16.mxu0 %v8292_v34  ;;  %v8457_v34 = vld [vmem:[%s12519_s0 + $0xa0] ss:$72 sps:$4 sm:$0xff]  }
  0x93   :  { %5561 = vmatpush1.bf16.msra.mxu1 %v8287_v36  ;;  %v8391_v36 = vld [vmem:[%s12518_s1 + $0x994] ss:$24 sps:$4 sm:$0xff]  }
  0x94   :  { %5773 = vmatpush1.bf16.msra.mxu0 %v8290_v37  ;;  %5562 = vmatprep.subr.bf16.mxu1 %v8295_v38  ;;  %v8394_v37 = vld [vmem:[%s12518_s1 + $0x1594] ss:$24 sps:$4 sm:$0xff]   ;;  %v8475_v38 = vld [vmem:[%s12519_s0 + $0x1c] ss:$72 sps:$4 sm:$0xff]  }
  0x95   :  { %5774 = vmatprep.subr.bf16.mxu0 %v8298_v39  ;;  %v8478_v39 = vld [vmem:[%s12519_s0 + $0x3c] ss:$72 sps:$4 sm:$0xff]  }
  0x97   :  { %5563 = vmatpush1.bf16.msra.mxu1 %v8293_v40  ;;  %v8389_v40 = vld [vmem:[%s12518_s1 + $0x990] ss:$24 sps:$4 sm:$0xff]  }
  0x98   :  { %5775 = vmatpush1.bf16.msra.mxu0 %v8296_v41  ;;  %5564 = vmatprep.subr.bf16.mxu1 %v8301_v42  ;;  %v8392_v41 = vld [vmem:[%s12518_s1 + $0x1590] ss:$24 sps:$4 sm:$0xff]   ;;  %v8397_v42 = vld [vmem:[%s12518_s1 + $0x9c4] ss:$24 sps:$4 sm:$0xff]  }
  0x99   :  { %5776 = vmatprep.subr.bf16.mxu0 %v8304_v43  ;;  %v8400_v43 = vld [vmem:[%s12518_s1 + $0x15c4] ss:$24 sps:$4 sm:$0xff]  }
  0x9b   :  { %5565 = vmatpush1.bf16.msra.mxu1 %v8299_v44  ;;  %v8395_v44 = vld [vmem:[%s12518_s1 + $0x9c0] ss:$24 sps:$4 sm:$0xff]  }
  0x9c   :  { %5777 = vmatpush1.bf16.msra.mxu0 %v8302_v45  ;;  %5566 = vmatprep.subr.bf16.mxu1 %v8307_v46  ;;  %v8398_v45 = vld [vmem:[%s12518_s1 + $0x15c0] ss:$24 sps:$4 sm:$0xff]   ;;  %v8403_v46 = vld [vmem:[%s12518_s1 + $0x9f4] ss:$24 sps:$4 sm:$0xff]  }
  0x9d   :  { %5778 = vmatprep.subr.bf16.mxu0 %v8310_v47  ;;  %v8406_v47 = vld [vmem:[%s12518_s1 + $0x15f4] ss:$24 sps:$4 sm:$0xff]  }
  0x9f   :  { %5567 = vmatpush1.bf16.msra.mxu1 %v8305_v48  ;;  %v8401_v48 = vld [vmem:[%s12518_s1 + $0x9f0] ss:$24 sps:$4 sm:$0xff]  }
  0xa0   :  { %5779 = vmatpush1.bf16.msra.mxu0 %v8308_v49  ;;  %5568 = vmatprep.subr.bf16.mxu1 %v8313_v50  ;;  %v8404_v49 = vld [vmem:[%s12518_s1 + $0x15f0] ss:$24 sps:$4 sm:$0xff]   ;;  %v8409_v50 = vld [vmem:[%s12518_s1 + $0xa24] ss:$24 sps:$4 sm:$0xff]  }
  0xa1   :  { %5780 = vmatprep.subr.bf16.mxu0 %v8316_v51  ;;  %v8412_v51 = vld [vmem:[%s12518_s1 + $0x1624] ss:$24 sps:$4 sm:$0xff]  }
  0xa3   :  { %5569 = vmatpush1.bf16.msra.mxu1 %v8311_v52  ;;  %v8407_v52 = vld [vmem:[%s12518_s1 + $0xa20] ss:$24 sps:$4 sm:$0xff]  }
  0xa4   :  { %5781 = vmatpush1.bf16.msra.mxu0 %v8314_v53  ;;  %5570 = vmatprep.subr.bf16.mxu1 %v8319_v54  ;;  %v8410_v53 = vld [vmem:[%s12518_s1 + $0x1620] ss:$24 sps:$4 sm:$0xff]   ;;  %v8415_v54 = vld [vmem:[%s12518_s1 + $0xa54] ss:$24 sps:$4 sm:$0xff]  }
  0xa5   :  { %5782 = vmatprep.subr.bf16.mxu0 %v8322_v55  ;;  %v8418_v55 = vld [vmem:[%s12518_s1 + $0x1654] ss:$24 sps:$4 sm:$0xff]  }
  0xa7   :  { %5571 = vmatpush1.bf16.msra.mxu1 %v8317_v56  ;;  %v8413_v56 = vld [vmem:[%s12518_s1 + $0xa50] ss:$24 sps:$4 sm:$0xff]  }
  0xa8   :  { %5783 = vmatpush1.bf16.msra.mxu0 %v8320_v57  ;;  %5572 = vmatprep.subr.bf16.mxu1 %v8325_v58  ;;  %v8416_v57 = vld [vmem:[%s12518_s1 + $0x1650] ss:$24 sps:$4 sm:$0xff]   ;;  %v8421_v58 = vld [vmem:[%s12518_s1 + $0xa84] ss:$24 sps:$4 sm:$0xff]  }
  0xa9   :  { %5784 = vmatprep.subr.bf16.mxu0 %v8328_v59  ;;  %v8424_v59 = vld [vmem:[%s12518_s1 + $0x1684] ss:$24 sps:$4 sm:$0xff]  }
  0xab   :  { %5573 = vmatpush1.bf16.msra.mxu1 %v8323_v60  ;;  %v8419_v60 = vld [vmem:[%s12518_s1 + $0xa80] ss:$24 sps:$4 sm:$0xff]  }
  0xac   :  { %5785 = vmatpush1.bf16.msra.mxu0 %v8326_v61  ;;  %5574 = vmatprep.subr.bf16.mxu1 %v8331_v62  ;;  %v8422_v61 = vld [vmem:[%s12518_s1 + $0x1680] ss:$24 sps:$4 sm:$0xff]   ;;  %v8427_v62 = vld [vmem:[%s12518_s1 + $0xab4] ss:$24 sps:$4 sm:$0xff]  }
  0xad   :  { %5786 = vmatprep.subr.bf16.mxu0 %v8334_v63  ;;  %v8430_v63 = vld [vmem:[%s12518_s1 + $0x16b4] ss:$24 sps:$4 sm:$0xff]  }
  0xaf   :  { %5575 = vmatpush1.bf16.msra.mxu1 %v8329_v0  ;;  %v8425_v0 = vld [vmem:[%s12518_s1 + $0xab0] ss:$24 sps:$4 sm:$0xff]  }
  0xb0   :  { %5787 = vmatpush1.bf16.msra.mxu0 %v8332_v1  ;;  %5576 = vmatprep.subr.bf16.mxu1 %v8337_v2  ;;  %v8428_v1 = vld [vmem:[%s12518_s1 + $0x16b0] ss:$24 sps:$4 sm:$0xff]   ;;  %v8433_v2 = vld [vmem:[%s12518_s1 + $0xae4] ss:$24 sps:$4 sm:$0xff]  }
  0xb1   :  { %5788 = vmatprep.subr.bf16.mxu0 %v8340_v3  ;;  %v8436_v3 = vld [vmem:[%s12518_s1 + $0x16e4] ss:$24 sps:$4 sm:$0xff]  }
  0xb3   :  { %5577 = vmatpush1.bf16.msra.mxu1 %v8335_v4  ;;  %v8431_v4 = vld [vmem:[%s12518_s1 + $0xae0] ss:$24 sps:$4 sm:$0xff]  }
  0xb4   :  { %5789 = vmatpush1.bf16.msra.mxu0 %v8338_v5  ;;  %5578 = vmatprep.subr.bf16.mxu1 %v8343_v6  ;;  %v8434_v5 = vld [vmem:[%s12518_s1 + $0x16e0] ss:$24 sps:$4 sm:$0xff]   ;;  %v8439_v6 = vld [vmem:[%s12518_s1 + $0xb14] ss:$24 sps:$4 sm:$0xff]  }
  0xb5   :  { %5790 = vmatprep.subr.bf16.mxu0 %v8346_v7  ;;  %v8442_v7 = vld [vmem:[%s12518_s1 + $0x1714] ss:$24 sps:$4 sm:$0xff]  }
  0xb7   :  { %5579 = vmatpush1.bf16.msra.mxu1 %v8341_v8  ;;  %v8437_v8 = vld [vmem:[%s12518_s1 + $0xb10] ss:$24 sps:$4 sm:$0xff]  }
  0xb8   :  { %5791 = vmatpush1.bf16.msra.mxu0 %v8344_v9  ;;  %5580 = vmatprep.subr.bf16.mxu1 %v8351_v10  ;;  %v8440_v9 = vld [vmem:[%s12518_s1 + $0x1710] ss:$24 sps:$4 sm:$0xff]   ;;  %v8445_v10 = vld [vmem:[%s12518_s1 + $0xb44] ss:$24 sps:$4 sm:$0xff]  }
  0xb9   :  { %5792 = vmatprep.subr.bf16.mxu0 %v8356_v11  ;;  %v8448_v11 = vld [vmem:[%s12518_s1 + $0x1744] ss:$24 sps:$4 sm:$0xff]  }
  0xbb   :  { %5581 = vmatpush1.bf16.msra.mxu1 %v8349_v12  ;;  %v8443_v12 = vld [vmem:[%s12518_s1 + $0xb40] ss:$24 sps:$4 sm:$0xff]  }
  0xbc   :  { %5793 = vmatpush1.bf16.msra.mxu0 %v8354_v13  ;;  %5582 = vmatprep.subr.bf16.mxu1 %v8361_v14  ;;  %v8446_v13 = vld [vmem:[%s12518_s1 + $0x1740] ss:$24 sps:$4 sm:$0xff]   ;;  %v8451_v14 = vld [vmem:[%s12518_s1 + $0xb74] ss:$24 sps:$4 sm:$0xff]  }
  0xbd   :  { %5794 = vmatprep.subr.bf16.mxu0 %v8364_v15  ;;  %v8454_v15 = vld [vmem:[%s12518_s1 + $0x1774] ss:$24 sps:$4 sm:$0xff]  }
  0xbf   :  { %5583 = vmatpush1.bf16.msra.mxu1 %v8359_v16  ;;  %v8449_v16 = vld [vmem:[%s12518_s1 + $0xb70] ss:$24 sps:$4 sm:$0xff]  }
  0xc0   :  { %5795 = vmatpush1.bf16.msra.mxu0 %v8362_v17  ;;  %5605 = vmatprep.subr.bf16.mxu1 %v8370_v18  ;;  %v8452_v17 = vld [vmem:[%s12518_s1 + $0x1770] ss:$24 sps:$4 sm:$0xff]   ;;  %v8460_v18 = vld [vmem:[%s12518_s1 + $0xba4] ss:$24 sps:$4 sm:$0xff]  }
  0xc1   :  { %5817 = vmatprep.subr.bf16.mxu0 %v8376_v19  ;;  %v8465_v19 = vld [vmem:[%s12518_s1 + $0x17a4] ss:$24 sps:$4 sm:$0xff]  }
  0xc2   :  { %5585 = vmatmul.mubr.bf16.vlgmr.msra.gmra.mrb[0].mxu1 %v8365_v20  ;;  %v8458_v20 = vld [vmem:[%s12518_s1 + $0xba0] ss:$24 sps:$4 sm:$0xff]  }
  0xc3   :  { %5797 = vmatmul.mubr.bf16.vlgmr.msra.gmra.mrb[0].mxu0 %v8371_v22  ;;  %5606 = vmatpush1.bf16.msra.mxu1 %v8368_v21  ;;  %v8463_v21 = vld [vmem:[%s12518_s1 + $0x17a0] ss:$24 sps:$4 sm:$0xff]   ;;  %v8469_v22 = vld [vmem:[%s12518_s1 + $0xbd4] ss:$24 sps:$4 sm:$0xff]  }
  0xc4   :  { %5818 = vmatpush1.bf16.msra.mxu0 %v8374_v23  ;;  %5607 = vmatprep.subr.bf16.mxu1 %v8379_v24  ;;  %v8472_v23 = vld [vmem:[%s12518_s1 + $0x17d4] ss:$24 sps:$4 sm:$0xff]   ;;  %v8467_v24 = vld [vmem:[%s12518_s1 + $0xbd0] ss:$24 sps:$4 sm:$0xff]  }
  0xc5   :  { %5819 = vmatprep.subr.bf16.mxu0 %v8382_v25  ;;  %5594 = vmatprep.mubr.bf16.mxu1 %v8455_v26  ;;  %v8470_v25 = vld [vmem:[%s12518_s1 + $0x17d0] ss:$24 sps:$4 sm:$0xff]   ;;  %v8481_v26 = vld [vmem:[%s12518_s1 + $0x1804] ss:$24 sps:$4 sm:$0xff]  }
  0xc6   :  { %5806 = vmatprep.mubr.bf16.mxu0 %v8461_v27  ;;  %v8484_v27 = vld [vmem:[%s12518_s1 + $0xc] ss:$24 sps:$4 sm:$0xff]  }
  0xc7   :  { %5608 = vmatpush1.bf16.msra.mxu1 %v8377_v28  ;;  %v8473_v28 = vld [vmem:[%s12519_s0 + $0x18] ss:$72 sps:$4 sm:$0xff]  }
  0xc8   :  { %5820 = vmatpush1.bf16.msra.mxu0 %v8380_v29  ;;  %5609 = vmatprep.subr.bf16.mxu1 %v8385_v30  ;;  %v8476_v29 = vld [vmem:[%s12519_s0 + $0x38] ss:$72 sps:$4 sm:$0xff]  }
  0xc9   :  { %5821 = vmatprep.subr.bf16.mxu0 %v8388_v31  ;;  %v8479_v30 = vld [vmem:[%s12518_s1 + $0x1800] ss:$24 sps:$4 sm:$0xff]  }
  0xca   :  { %5595 = vmatmul.mubr.bf16.gmra.mrb[4].mxu1 %v8457_v34  ;;  %v8482_v31 = vld [vmem:[%s12518_s1 + $0x8] ss:$24 sps:$4 sm:$0xff]   ;;  %v8491_v34 = vld [vmem:[%s12519_s0 + $0xac] ss:$72 sps:$4 sm:$0xff]  }
  0xcb   :  { %5807 = vmatmul.mubr.bf16.gmra.mrb[4].mxu0 %v8466_v35  ;;  %5610 = vmatpush1.bf16.msra.mxu1 %v8383_v32  ;;  %v8487_v32 = vld [vmem:[%s12518_s1 + $0x1834] ss:$24 sps:$4 sm:$0xff]  }
  0xcc   :  { %5822 = vmatpush1.bf16.msra.mxu0 %v8386_v33  ;;  %5611 = vmatprep.subr.bf16.mxu1 %v8391_v36  ;;  %v8490_v33 = vld [vmem:[%s12518_s1 + $0x3c] ss:$24 sps:$4 sm:$0xff]   ;;  %v8485_v36 = vld [vmem:[%s12518_s1 + $0x1830] ss:$24 sps:$4 sm:$0xff]  }
  0xcd   :  { %5823 = vmatprep.subr.bf16.mxu0 %v8394_v37  ;;  %5637 = vmatprep.mubr.bf16.mxu1 %v8475_v38  ;;  %v8566_v35 = vld [vmem:[%s12519_s0 + $0xcc] ss:$72 sps:$4 sm:$0xff]   ;;  %v8488_v37 = vld [vmem:[%s12518_s1 + $0x38] ss:$24 sps:$4 sm:$0xff]   ;;  %v8496_v38 = vld [vmem:[%s12518_s1 + $0x1864] ss:$24 sps:$4 sm:$0xff]  }
  0xce   :  { %5849 = vmatprep.mubr.bf16.mxu0 %v8478_v39  ;;  %v8499_v39 = vld [vmem:[%s12518_s1 + $0x6c] ss:$24 sps:$4 sm:$0xff]  }
  0xcf   :  { %5612 = vmatpush1.bf16.msra.mxu1 %v8389_v40  ;;  %v8493_v40 = vld [vmem:[%s12519_s0 + $0xa8] ss:$72 sps:$4 sm:$0xff]  }
  0xd0   :  { %5824 = vmatpush1.bf16.msra.mxu0 %v8392_v41  ;;  %5613 = vmatprep.subr.bf16.mxu1 %v8397_v42  ;;  %v8494_v41 = vld [vmem:[%s12518_s1 + $0x1860] ss:$24 sps:$4 sm:$0xff]  }
  0xd1   :  { %5825 = vmatprep.subr.bf16.mxu0 %v8400_v43  ;;  %v8497_v42 = vld [vmem:[%s12518_s1 + $0x68] ss:$24 sps:$4 sm:$0xff]  }
  0xd2   :  { %v8568_v43 = vld [vmem:[%s12519_s0 + $0xc8] ss:$72 sps:$4 sm:$0xff]  }
  0xd3   :  { %5614 = vmatpush1.bf16.msra.mxu1 %v8395_v44  ;;  %v8502_v44 = vld [vmem:[%s12518_s1 + $0x1894] ss:$24 sps:$4 sm:$0xff]  }
  0xd4   :  { %5826 = vmatpush1.bf16.msra.mxu0 %v8398_v45  ;;  %5615 = vmatprep.subr.bf16.mxu1 %v8403_v46  ;;  %v8505_v45 = vld [vmem:[%s12518_s1 + $0x9c] ss:$24 sps:$4 sm:$0xff]   ;;  %v8583_v46 = vld [vmem:[%s12519_s0 + $0x44] ss:$72 sps:$4 sm:$0xff]  }
  0xd5   :  { %5827 = vmatprep.subr.bf16.mxu0 %v8406_v47  ;;  %v8500_v47 = vld [vmem:[%s12518_s1 + $0x1890] ss:$24 sps:$4 sm:$0xff]  }
  0xd7   :  { %5616 = vmatpush1.bf16.msra.mxu1 %v8401_v48  ;;  %v8503_v48 = vld [vmem:[%s12518_s1 + $0x98] ss:$24 sps:$4 sm:$0xff]  }
  0xd8   :  { %5828 = vmatpush1.bf16.msra.mxu0 %v8404_v49  ;;  %5617 = vmatprep.subr.bf16.mxu1 %v8409_v50  ;;  %v8508_v49 = vld [vmem:[%s12518_s1 + $0x18c4] ss:$24 sps:$4 sm:$0xff]  }
  0xd9   :  { %5829 = vmatprep.subr.bf16.mxu0 %v8412_v51  ;;  %v8511_v50 = vld [vmem:[%s12518_s1 + $0xcc] ss:$24 sps:$4 sm:$0xff]  }
  0xda   :  { %v10384_v51 = vld [vmem:[%s12519_s0 + $0x4] ss:$72 sps:$4 sm:$0xff]  }
  0xdb   :  { %5618 = vmatpush1.bf16.msra.mxu1 %v8407_v52  ;;  %v8506_v52 = vld [vmem:[%s12518_s1 + $0x18c0] ss:$24 sps:$4 sm:$0xff]  }
  0xdc   :  { %5830 = vmatpush1.bf16.msra.mxu0 %v8410_v53  ;;  %5619 = vmatprep.subr.bf16.mxu1 %v8415_v54  ;;  %v8509_v53 = vld [vmem:[%s12518_s1 + $0xc8] ss:$24 sps:$4 sm:$0xff]   ;;  %v8514_v54 = vld [vmem:[%s12518_s1 + $0x18f4] ss:$24 sps:$4 sm:$0xff]  }
  0xdd   :  { %5831 = vmatprep.subr.bf16.mxu0 %v8418_v55  ;;  %v8517_v55 = vld [vmem:[%s12518_s1 + $0xfc] ss:$24 sps:$4 sm:$0xff]  }
  0xdf   :  { %5620 = vmatpush1.bf16.msra.mxu1 %v8413_v56  ;;  %v8512_v56 = vld [vmem:[%s12518_s1 + $0x18f0] ss:$24 sps:$4 sm:$0xff]  }
  0xe0   :  { %5832 = vmatpush1.bf16.msra.mxu0 %v8416_v57  ;;  %5621 = vmatprep.subr.bf16.mxu1 %v8421_v58  ;;  %v8515_v57 = vld [vmem:[%s12518_s1 + $0xf8] ss:$24 sps:$4 sm:$0xff]   ;;  %v8520_v58 = vld [vmem:[%s12518_s1 + $0x1924] ss:$24 sps:$4 sm:$0xff]  }
  0xe1   :  { %5833 = vmatprep.subr.bf16.mxu0 %v8424_v59  ;;  %v8523_v59 = vld [vmem:[%s12518_s1 + $0x12c] ss:$24 sps:$4 sm:$0xff]  }
  0xe3   :  { %5622 = vmatpush1.bf16.msra.mxu1 %v8419_v60  ;;  %v8518_v60 = vld [vmem:[%s12518_s1 + $0x1920] ss:$24 sps:$4 sm:$0xff]  }
  0xe4   :  { %5834 = vmatpush1.bf16.msra.mxu0 %v8422_v61  ;;  %5623 = vmatprep.subr.bf16.mxu1 %v8427_v62  ;;  %v8521_v61 = vld [vmem:[%s12518_s1 + $0x128] ss:$24 sps:$4 sm:$0xff]   ;;  %v8526_v62 = vld [vmem:[%s12518_s1 + $0x1954] ss:$24 sps:$4 sm:$0xff]  }
  0xe5   :  { %5835 = vmatprep.subr.bf16.mxu0 %v8430_v63  ;;  %v8529_v63 = vld [vmem:[%s12518_s1 + $0x15c] ss:$24 sps:$4 sm:$0xff]  }
  0xe7   :  { %5624 = vmatpush1.bf16.msra.mxu1 %v8425_v0  ;;  %v8524_v0 = vld [vmem:[%s12518_s1 + $0x1950] ss:$24 sps:$4 sm:$0xff]  }
  0xe8   :  { %5836 = vmatpush1.bf16.msra.mxu0 %v8428_v1  ;;  %5625 = vmatprep.subr.bf16.mxu1 %v8433_v2  ;;  %v8527_v1 = vld [vmem:[%s12518_s1 + $0x158] ss:$24 sps:$4 sm:$0xff]   ;;  %v8532_v2 = vld [vmem:[%s12518_s1 + $0x1984] ss:$24 sps:$4 sm:$0xff]  }
  0xe9   :  { %5837 = vmatprep.subr.bf16.mxu0 %v8436_v3  ;;  %v8535_v3 = vld [vmem:[%s12518_s1 + $0x18c] ss:$24 sps:$4 sm:$0xff]  }
  0xeb   :  { %5626 = vmatpush1.bf16.msra.mxu1 %v8431_v4  ;;  %v8530_v4 = vld [vmem:[%s12518_s1 + $0x1980] ss:$24 sps:$4 sm:$0xff]  }
  0xec   :  { %5838 = vmatpush1.bf16.msra.mxu0 %v8434_v5  ;;  %5627 = vmatprep.subr.bf16.mxu1 %v8439_v6  ;;  %v8533_v5 = vld [vmem:[%s12518_s1 + $0x188] ss:$24 sps:$4 sm:$0xff]   ;;  %v8538_v6 = vld [vmem:[%s12518_s1 + $0x19b4] ss:$24 sps:$4 sm:$0xff]  }
  0xed   :  { %5839 = vmatprep.subr.bf16.mxu0 %v8442_v7  ;;  %v8541_v7 = vld [vmem:[%s12518_s1 + $0x1bc] ss:$24 sps:$4 sm:$0xff]  }
  0xef   :  { %5628 = vmatpush1.bf16.msra.mxu1 %v8437_v8  ;;  %v8536_v8 = vld [vmem:[%s12518_s1 + $0x19b0] ss:$24 sps:$4 sm:$0xff]  }
  0xf0   :  { %5840 = vmatpush1.bf16.msra.mxu0 %v8440_v9  ;;  %5629 = vmatprep.subr.bf16.mxu1 %v8445_v10  ;;  %v8539_v9 = vld [vmem:[%s12518_s1 + $0x1b8] ss:$24 sps:$4 sm:$0xff]   ;;  %v8544_v10 = vld [vmem:[%s12518_s1 + $0x19e4] ss:$24 sps:$4 sm:$0xff]  }
  0xf1   :  { %5841 = vmatprep.subr.bf16.mxu0 %v8448_v11  ;;  %v8547_v11 = vld [vmem:[%s12518_s1 + $0x1ec] ss:$24 sps:$4 sm:$0xff]  }
  0xf3   :  { %5630 = vmatpush1.bf16.msra.mxu1 %v8443_v12  ;;  %v8542_v12 = vld [vmem:[%s12518_s1 + $0x19e0] ss:$24 sps:$4 sm:$0xff]  }
  0xf4   :  { %5842 = vmatpush1.bf16.msra.mxu0 %v8446_v13  ;;  %5631 = vmatprep.subr.bf16.mxu1 %v8451_v14  ;;  %v8545_v13 = vld [vmem:[%s12518_s1 + $0x1e8] ss:$24 sps:$4 sm:$0xff]   ;;  %v8550_v14 = vld [vmem:[%s12518_s1 + $0x1a14] ss:$24 sps:$4 sm:$0xff]  }
  0xf5   :  { %5843 = vmatprep.subr.bf16.mxu0 %v8454_v15  ;;  %v8553_v15 = vld [vmem:[%s12518_s1 + $0x21c] ss:$24 sps:$4 sm:$0xff]  }
  0xf7   :  { %5632 = vmatpush1.bf16.msra.mxu1 %v8449_v16  ;;  %v8548_v16 = vld [vmem:[%s12518_s1 + $0x1a10] ss:$24 sps:$4 sm:$0xff]  }
  0xf8   :  { %5844 = vmatpush1.bf16.msra.mxu0 %v8452_v17  ;;  %5633 = vmatprep.subr.bf16.mxu1 %v8460_v18  ;;  %v8551_v17 = vld [vmem:[%s12518_s1 + $0x218] ss:$24 sps:$4 sm:$0xff]   ;;  %v8556_v18 = vld [vmem:[%s12518_s1 + $0x1a44] ss:$24 sps:$4 sm:$0xff]  }
  0xf9   :  { %5845 = vmatprep.subr.bf16.mxu0 %v8465_v19  ;;  %v8559_v19 = vld [vmem:[%s12518_s1 + $0x24c] ss:$24 sps:$4 sm:$0xff]  }
  0xfb   :  { %5634 = vmatpush1.bf16.msra.mxu1 %v8458_v20  ;;  %v8554_v20 = vld [vmem:[%s12518_s1 + $0x1a40] ss:$24 sps:$4 sm:$0xff]  }
  0xfc   :  { %5846 = vmatpush1.bf16.msra.mxu0 %v8463_v21  ;;  %5635 = vmatprep.subr.bf16.mxu1 %v8469_v22  ;;  %v8557_v21 = vld [vmem:[%s12518_s1 + $0x248] ss:$24 sps:$4 sm:$0xff]   ;;  %v8562_v22 = vld [vmem:[%s12518_s1 + $0x1a74] ss:$24 sps:$4 sm:$0xff]  }
  0xfd   :  { %5847 = vmatprep.subr.bf16.mxu0 %v8472_v23  ;;  %v8565_v23 = vld [vmem:[%s12518_s1 + $0x27c] ss:$24 sps:$4 sm:$0xff]  }
  0xff   :  { %5636 = vmatpush1.bf16.msra.mxu1 %v8467_v24  ;;  %v8560_v24 = vld [vmem:[%s12518_s1 + $0x1a70] ss:$24 sps:$4 sm:$0xff]  }
 0x100   :  { %5848 = vmatpush1.bf16.msra.mxu0 %v8470_v25  ;;  %5923 = vmatprep.subr.bf16.mxu1 %v8484_v27  ;;  %v8563_v25 = vld [vmem:[%s12518_s1 + $0x278] ss:$24 sps:$4 sm:$0xff]   ;;  %v8574_v27 = vld [vmem:[%s12518_s1 + $0x2ac] ss:$24 sps:$4 sm:$0xff]  }
 0x101   :  { %5870 = vmatprep.subr.bf16.mxu0 %v8481_v26  ;;  %v8571_v26 = vld [vmem:[%s12518_s1 + $0x1aa4] ss:$24 sps:$4 sm:$0xff]  }
 0x102   :  { %5638 = vmatmul.mubr.bf16.vlgmr.msra.gmra.mrb[0].mxu1 %v8473_v28  ;;  %v8569_v28 = vld [vmem:[%s12518_s1 + $0x1aa0] ss:$24 sps:$4 sm:$0xff]  }
 0x103   :  { %5850 = vmatmul.mubr.bf16.vlgmr.msra.gmra.mrb[0].mxu0 %v8476_v29  ;;  %5924 = vmatpush1.bf16.msra.mxu1 %v8482_v31  ;;  %v8572_v29 = vld [vmem:[%s12518_s1 + $0x2a8] ss:$24 sps:$4 sm:$0xff]   ;;  %v8580_v31 = vld [vmem:[%s12518_s1 + $0x2dc] ss:$24 sps:$4 sm:$0xff]  }
 0x104   :  { %5871 = vmatpush1.bf16.msra.mxu0 %v8479_v30  ;;  %5925 = vmatprep.subr.bf16.mxu1 %v8490_v33  ;;  %v8577_v30 = vld [vmem:[%s12518_s1 + $0x1ad4] ss:$24 sps:$4 sm:$0xff]   ;;  %v8578_v33 = vld [vmem:[%s12518_s1 + $0x2d8] ss:$24 sps:$4 sm:$0xff]  }
 0x105   :  { %5872 = vmatprep.subr.bf16.mxu0 %v8487_v32  ;;  %5647 = vmatprep.mubr.bf16.mxu1 %v8491_v34  ;;  %v8575_v32 = vld [vmem:[%s12518_s1 + $0x1ad0] ss:$24 sps:$4 sm:$0xff]   ;;  %v8586_v34 = vld [vmem:[%s12518_s1 + $0x30c] ss:$24 sps:$4 sm:$0xff]  }
 0x106   :  { %5859 = vmatprep.mubr.bf16.mxu0 %v8566_v35  ;;  %v8589_v35 = vld [vmem:[%s12518_s1 + $0x14] ss:$24 sps:$4 sm:$0xff]  }
 0x107   :  { %5926 = vmatpush1.bf16.msra.mxu1 %v8488_v37  ;;  %v8584_v37 = vld [vmem:[%s12518_s1 + $0x308] ss:$24 sps:$4 sm:$0xff]  }
 0x108   :  { %5873 = vmatpush1.bf16.msra.mxu0 %v8485_v36  ;;  %5927 = vmatprep.subr.bf16.mxu1 %v8499_v39  ;;  %v8581_v36 = vld [vmem:[%s12519_s0 + $0x40] ss:$72 sps:$4 sm:$0xff]   ;;  %v8592_v39 = vld [vmem:[%s12518_s1 + $0x33c] ss:$24 sps:$4 sm:$0xff]  }
 0x109   :  { %5874 = vmatprep.subr.bf16.mxu0 %v8496_v38  ;;  %v8587_v38 = vld [vmem:[%s12518_s1 + $0x10] ss:$24 sps:$4 sm:$0xff]  }
 0x10a   :  { %5648 = vmatmul.mubr.bf16.gmra.mrb[4].mxu1 %v8493_v40  ;;  %v8595_v40 = vld [vmem:[%s12518_s1 + $0x44] ss:$24 sps:$4 sm:$0xff]  }
 0x10b   :  { %5860 = vmatmul.mubr.bf16.gmra.mrb[4].mxu0 %v8568_v43  ;;  %5928 = vmatpush1.bf16.msra.mxu1 %v8497_v42  ;;  %v10552_v42 = vld [vmem:[%s12519_s0] ss:$72 sps:$4 sm:$0xff]   ;;  %v8590_v43 = vld [vmem:[%s12518_s1 + $0x338] ss:$24 sps:$4 sm:$0xff]  }
 0x10c   :  { %5875 = vmatpush1.bf16.msra.mxu0 %v8494_v41  ;;  %5929 = vmatprep.subr.bf16.mxu1 %v8505_v45  ;;  %v8596_v41 = vld [vmem:[%s12519_s0 + $0xd4] ss:$72 sps:$4 sm:$0xff]   ;;  %v8601_v45 = vld [vmem:[%s12518_s1 + $0x36c] ss:$24 sps:$4 sm:$0xff]  }
 0x10d   :  { %5876 = vmatprep.subr.bf16.mxu0 %v8502_v44  ;;  %5902 = vmatprep.mubr.bf16.mxu0 %v8583_v46  ;;  %v8593_v44 = vld [vmem:[%s12518_s1 + $0x40] ss:$24 sps:$4 sm:$0xff]   ;;  %v8604_v46 = vld [vmem:[%s12518_s1 + $0x74] ss:$24 sps:$4 sm:$0xff]  }
 0x10e   :  { %5955 = vmatprep.mubr.bf16.mxu1 %v10384_v51 }
 0x10f   :  { %5930 = vmatpush1.bf16.msra.mxu1 %v8503_v48  ;;  %v10573_v48 = vld [vmem:[%s12519_s0 + $0x94] ss:$72 sps:$4 sm:$0xff]  }
 0x110   :  { %5877 = vmatpush1.bf16.msra.mxu0 %v8500_v47  ;;  %5931 = vmatprep.subr.bf16.mxu1 %v8511_v50  ;;  %v8598_v47 = vld [vmem:[%s12519_s0 + $0xd0] ss:$72 sps:$4 sm:$0xff]  }
 0x111   :  { %5878 = vmatprep.subr.bf16.mxu0 %v8508_v49  ;;  %v8599_v49 = vld [vmem:[%s12518_s1 + $0x368] ss:$24 sps:$4 sm:$0xff]  }
 0x112   :  { %v8602_v50 = vld [vmem:[%s12518_s1 + $0x70] ss:$24 sps:$4 sm:$0xff]  }
 0x113   :  { %5932 = vmatpush1.bf16.msra.mxu1 %v8509_v53  ;;  %v8610_v53 = vld [vmem:[%s12518_s1 + $0xa4] ss:$24 sps:$4 sm:$0xff]  }
 0x114   :  { %5879 = vmatpush1.bf16.msra.mxu0 %v8506_v52  ;;  %5933 = vmatprep.subr.bf16.mxu1 %v8517_v55  ;;  %v8607_v52 = vld [vmem:[%s12518_s1 + $0x39c] ss:$24 sps:$4 sm:$0xff]   ;;  %v8605_v55 = vld [vmem:[%s12518_s1 + $0x398] ss:$24 sps:$4 sm:$0xff]  }
 0x115   :  { %5880 = vmatprep.subr.bf16.mxu0 %v8514_v54  ;;  %v10591_v54 = vld [vmem:[%s12519_s0 + $0x90] ss:$72 sps:$4 sm:$0xff]  }
 0x117   :  { %5934 = vmatpush1.bf16.msra.mxu1 %v8515_v57  ;;  %v8613_v57 = vld [vmem:[%s12518_s1 + $0x3cc] ss:$24 sps:$4 sm:$0xff]  }
 0x118   :  { %5881 = vmatpush1.bf16.msra.mxu0 %v8512_v56  ;;  %5935 = vmatprep.subr.bf16.mxu1 %v8523_v59  ;;  %v8608_v56 = vld [vmem:[%s12518_s1 + $0xa0] ss:$24 sps:$4 sm:$0xff]   ;;  %v10609_v59 = vld [vmem:[%s12519_s0 + $0xc] ss:$72 sps:$4 sm:$0xff]  }
 0x119   :  { %5882 = vmatprep.subr.bf16.mxu0 %v8520_v58  ;;  %v8616_v58 = vld [vmem:[%s12518_s1 + $0xd4] ss:$24 sps:$4 sm:$0xff]  }
 0x11b   :  { %5936 = vmatpush1.bf16.msra.mxu1 %v8521_v61  ;;  %v8614_v61 = vld [vmem:[%s12518_s1 + $0xd0] ss:$24 sps:$4 sm:$0xff]  }
 0x11c   :  { %5883 = vmatpush1.bf16.msra.mxu0 %v8518_v60  ;;  %5937 = vmatprep.subr.bf16.mxu1 %v8529_v63  ;;  %v8611_v60 = vld [vmem:[%s12518_s1 + $0x3c8] ss:$24 sps:$4 sm:$0xff]   ;;  %v8617_v63 = vld [vmem:[%s12518_s1 + $0x3f8] ss:$24 sps:$4 sm:$0xff]  }
 0x11d   :  { %5884 = vmatprep.subr.bf16.mxu0 %v8526_v62  ;;  %v8619_v62 = vld [vmem:[%s12518_s1 + $0x3fc] ss:$24 sps:$4 sm:$0xff]  }
 0x11f   :  { %5938 = vmatpush1.bf16.msra.mxu1 %v8527_v1  ;;  %v8625_v1 = vld [vmem:[%s12518_s1 + $0x42c] ss:$24 sps:$4 sm:$0xff]  }
 0x120   :  { %5885 = vmatpush1.bf16.msra.mxu0 %v8524_v0  ;;  %5939 = vmatprep.subr.bf16.mxu1 %v8535_v3  ;;  %v8620_v0 = vld [vmem:[%s12518_s1 + $0x100] ss:$24 sps:$4 sm:$0xff]  }
 0x121   :  { %5886 = vmatprep.subr.bf16.mxu0 %v8532_v2  ;;  %v8628_v2 = vld [vmem:[%s12518_s1 + $0x134] ss:$24 sps:$4 sm:$0xff]   ;;  %v8623_v3 = vld [vmem:[%s12518_s1 + $0x428] ss:$24 sps:$4 sm:$0xff]  }
 0x123   :  { %5940 = vmatpush1.bf16.msra.mxu1 %v8533_v5  ;;  %v8631_v5 = vld [vmem:[%s12518_s1 + $0x45c] ss:$24 sps:$4 sm:$0xff]  }
 0x124   :  { %5887 = vmatpush1.bf16.msra.mxu0 %v8530_v4  ;;  %5941 = vmatprep.subr.bf16.mxu1 %v8541_v7  ;;  %v8626_v4 = vld [vmem:[%s12518_s1 + $0x130] ss:$24 sps:$4 sm:$0xff]  }
 0x125   :  { %5888 = vmatprep.subr.bf16.mxu0 %v8538_v6  ;;  %v8634_v6 = vld [vmem:[%s12518_s1 + $0x164] ss:$24 sps:$4 sm:$0xff]   ;;  %v8629_v7 = vld [vmem:[%s12518_s1 + $0x458] ss:$24 sps:$4 sm:$0xff]  }
 0x127   :  { %5942 = vmatpush1.bf16.msra.mxu1 %v8539_v9  ;;  %v8637_v9 = vld [vmem:[%s12518_s1 + $0x48c] ss:$24 sps:$4 sm:$0xff]  }
 0x128   :  { %5889 = vmatpush1.bf16.msra.mxu0 %v8536_v8  ;;  %5943 = vmatprep.subr.bf16.mxu1 %v8547_v11  ;;  %v8632_v8 = vld [vmem:[%s12518_s1 + $0x160] ss:$24 sps:$4 sm:$0xff]  }
 0x129   :  { %5890 = vmatprep.subr.bf16.mxu0 %v8544_v10  ;;  %v8640_v10 = vld [vmem:[%s12518_s1 + $0x194] ss:$24 sps:$4 sm:$0xff]   ;;  %v8635_v11 = vld [vmem:[%s12518_s1 + $0x488] ss:$24 sps:$4 sm:$0xff]  }
 0x12b   :  { %5944 = vmatpush1.bf16.msra.mxu1 %v8545_v13  ;;  %v8643_v13 = vld [vmem:[%s12518_s1 + $0x4bc] ss:$24 sps:$4 sm:$0xff]  }
 0x12c   :  { %5891 = vmatpush1.bf16.msra.mxu0 %v8542_v12  ;;  %5945 = vmatprep.subr.bf16.mxu1 %v8553_v15  ;;  %v8638_v12 = vld [vmem:[%s12518_s1 + $0x190] ss:$24 sps:$4 sm:$0xff]  }
 0x12d   :  { %5892 = vmatprep.subr.bf16.mxu0 %v8550_v14  ;;  %v8646_v14 = vld [vmem:[%s12518_s1 + $0x1c4] ss:$24 sps:$4 sm:$0xff]   ;;  %v8641_v15 = vld [vmem:[%s12518_s1 + $0x4b8] ss:$24 sps:$4 sm:$0xff]  }
 0x12f   :  { %5946 = vmatpush1.bf16.msra.mxu1 %v8551_v17  ;;  %v8649_v17 = vld [vmem:[%s12518_s1 + $0x4ec] ss:$24 sps:$4 sm:$0xff]  }
 0x130   :  { %5893 = vmatpush1.bf16.msra.mxu0 %v8548_v16  ;;  %5947 = vmatprep.subr.bf16.mxu1 %v8559_v19  ;;  %v8644_v16 = vld [vmem:[%s12518_s1 + $0x1c0] ss:$24 sps:$4 sm:$0xff]  }
 0x131   :  { %5894 = vmatprep.subr.bf16.mxu0 %v8556_v18  ;;  %v8652_v18 = vld [vmem:[%s12518_s1 + $0x1f4] ss:$24 sps:$4 sm:$0xff]   ;;  %v8647_v19 = vld [vmem:[%s12518_s1 + $0x4e8] ss:$24 sps:$4 sm:$0xff]  }
 0x133   :  { %5948 = vmatpush1.bf16.msra.mxu1 %v8557_v21  ;;  %v8655_v21 = vld [vmem:[%s12518_s1 + $0x51c] ss:$24 sps:$4 sm:$0xff]  }
 0x134   :  { %5895 = vmatpush1.bf16.msra.mxu0 %v8554_v20  ;;  %5949 = vmatprep.subr.bf16.mxu1 %v8565_v23  ;;  %v8650_v20 = vld [vmem:[%s12518_s1 + $0x1f0] ss:$24 sps:$4 sm:$0xff]  }
 0x135   :  { %5896 = vmatprep.subr.bf16.mxu0 %v8562_v22  ;;  %v8658_v22 = vld [vmem:[%s12518_s1 + $0x224] ss:$24 sps:$4 sm:$0xff]   ;;  %v8653_v23 = vld [vmem:[%s12518_s1 + $0x518] ss:$24 sps:$4 sm:$0xff]  }
 0x137   :  { %5950 = vmatpush1.bf16.msra.mxu1 %v8563_v25  ;;  %v8661_v25 = vld [vmem:[%s12518_s1 + $0x54c] ss:$24 sps:$4 sm:$0xff]  }
 0x138   :  { %5897 = vmatpush1.bf16.msra.mxu0 %v8560_v24  ;;  %5951 = vmatprep.subr.bf16.mxu1 %v8574_v27  ;;  %v8656_v24 = vld [vmem:[%s12518_s1 + $0x220] ss:$24 sps:$4 sm:$0xff]  }
 0x139   :  { %5898 = vmatprep.subr.bf16.mxu0 %v8571_v26  ;;  %v8664_v26 = vld [vmem:[%s12518_s1 + $0x254] ss:$24 sps:$4 sm:$0xff]   ;;  %v8659_v27 = vld [vmem:[%s12518_s1 + $0x548] ss:$24 sps:$4 sm:$0xff]  }
 0x13b   :  { %5952 = vmatpush1.bf16.msra.mxu1 %v8572_v29  ;;  %v8667_v29 = vld [vmem:[%s12518_s1 + $0x57c] ss:$24 sps:$4 sm:$0xff]  }
 0x13c   :  { %5899 = vmatpush1.bf16.msra.mxu0 %v8569_v28  ;;  %5953 = vmatprep.subr.bf16.mxu1 %v8580_v31  ;;  %v8662_v28 = vld [vmem:[%s12518_s1 + $0x250] ss:$24 sps:$4 sm:$0xff]  }
 0x13d   :  { %5900 = vmatprep.subr.bf16.mxu0 %v8577_v30  ;;  %v8670_v30 = vld [vmem:[%s12518_s1 + $0x284] ss:$24 sps:$4 sm:$0xff]   ;;  %v8665_v31 = vld [vmem:[%s12518_s1 + $0x578] ss:$24 sps:$4 sm:$0xff]  }
 0x13f   :  { %5954 = vmatpush1.bf16.msra.mxu1 %v8578_v33  ;;  %v8673_v33 = vld [vmem:[%s12518_s1 + $0x5ac] ss:$24 sps:$4 sm:$0xff]  }
 0x140   :  { %5901 = vmatpush1.bf16.msra.mxu0 %v8575_v32  ;;  %5976 = vmatprep.subr.bf16.mxu1 %v8586_v34  ;;  %v8668_v32 = vld [vmem:[%s12518_s1 + $0x280] ss:$24 sps:$4 sm:$0xff]   ;;  %v8676_v34 = vld [vmem:[%s12518_s1 + $0x2b4] ss:$24 sps:$4 sm:$0xff]  }
 0x141   :  { %6400 = vmatprep.subr.bf16.mxu0 %v8589_v35  ;;  %v8671_v35 = vld [vmem:[%s12518_s1 + $0x5a8] ss:$24 sps:$4 sm:$0xff]  }
 0x142   :  { %5956 = vmatmul.mubr.bf16.vlgmr.msra.gmra.mrb[8].mxu1 %v10552_v42 }
 0x143   :  { %5903 = vmatmul.mubr.bf16.vlgmr.msra.gmra.mrb[0].mxu0 %v8581_v36  ;;  %5977 = vmatpush1.bf16.msra.mxu1 %v8584_v37  ;;  %v8674_v36 = vld [vmem:[%s12518_s1 + $0x2b0] ss:$24 sps:$4 sm:$0xff]   ;;  %v8679_v37 = vld [vmem:[%s12518_s1 + $0x5dc] ss:$24 sps:$4 sm:$0xff]  }
 0x144   :  { %6401 = vmatpush1.bf16.msra.mxu0 %v8587_v38  ;;  %5978 = vmatprep.subr.bf16.mxu1 %v8592_v39  ;;  %v8682_v38 = vld [vmem:[%s12518_s1 + $0x2e4] ss:$24 sps:$4 sm:$0xff]   ;;  %v8677_v39 = vld [vmem:[%s12518_s1 + $0x5d8] ss:$24 sps:$4 sm:$0xff]  }
 0x145   :  { %6402 = vmatprep.subr.bf16.mxu0 %v8595_v40  ;;  %5912 = vmatprep.mubr.bf16.mxu0 %v8596_v41  ;;  %v8680_v40 = vld [vmem:[%s12518_s1 + $0x2e0] ss:$24 sps:$4 sm:$0xff]   ;;  %v8685_v41 = vld [vmem:[%s12518_s1 + $0x60c] ss:$24 sps:$4 sm:$0xff]  }
 0x146   :  { %5965 = vmatprep.mubr.bf16.mxu1 %v10573_v48 }
 0x147   :  { %5979 = vmatpush1.bf16.msra.mxu1 %v8590_v43  ;;  %v8688_v43 = vld [vmem:[%s12518_s1 + $0x314] ss:$24 sps:$4 sm:$0xff]  }
 0x148   :  { %6403 = vmatpush1.bf16.msra.mxu0 %v8593_v44  ;;  %5980 = vmatprep.subr.bf16.mxu1 %v8601_v45  ;;  %v8683_v44 = vld [vmem:[%s12518_s1 + $0x608] ss:$24 sps:$4 sm:$0xff]  }
 0x149   :  { %6404 = vmatprep.subr.bf16.mxu0 %v8604_v46  ;;  %v8686_v45 = vld [vmem:[%s12518_s1 + $0x310] ss:$24 sps:$4 sm:$0xff]   ;;  %v8691_v46 = vld [vmem:[%s12518_s1 + $0x63c] ss:$24 sps:$4 sm:$0xff]  }
 0x14a   :  { %5966 = vmatmul.mubr.bf16.gmra.mrb[12].mxu1 %v10591_v54 }
 0x14b   :  { %5913 = vmatmul.mubr.bf16.gmra.mrb[4].mxu0 %v8598_v47  ;;  %5981 = vmatpush1.bf16.msra.mxu1 %v8599_v49  ;;  %v8694_v47 = vld [vmem:[%s12518_s1 + $0x344] ss:$24 sps:$4 sm:$0xff]   ;;  %v10772_v49 = vld [vmem:[%s12519_s0 + $0x8] ss:$72 sps:$4 sm:$0xff]  }
 0x14c   :  { %6405 = vmatpush1.bf16.msra.mxu0 %v8602_v50  ;;  %5982 = vmatprep.subr.bf16.mxu1 %v8607_v52  ;;  %v8689_v50 = vld [vmem:[%s12518_s1 + $0x638] ss:$24 sps:$4 sm:$0xff]  }
 0x14d   :  { %6406 = vmatprep.subr.bf16.mxu0 %v8610_v53  ;;  %6008 = vmatprep.mubr.bf16.mxu1 %v10609_v59  ;;  %v8692_v52 = vld [vmem:[%s12518_s1 + $0x340] ss:$24 sps:$4 sm:$0xff]   ;;  %v8697_v53 = vld [vmem:[%s12518_s1 + $0x66c] ss:$24 sps:$4 sm:$0xff]  }
 0x14e   :  { %6432 = vmatprep.mubr.bf16.mxu0 %v10384_v51  ;;  %v8622_v51 = vld [vmem:[%s12518_s1 + $0x104] ss:$24 sps:$4 sm:$0xff]  }
 0x14f   :  { %5983 = vmatpush1.bf16.msra.mxu1 %v8605_v55  ;;  %v10791_v55 = vld [vmem:[%s12519_s0 + $0x9c] ss:$72 sps:$4 sm:$0xff]  }
 0x150   :  { %6407 = vmatpush1.bf16.msra.mxu0 %v8608_v56  ;;  %5984 = vmatprep.subr.bf16.mxu1 %v8613_v57  ;;  %v8695_v56 = vld [vmem:[%s12518_s1 + $0x668] ss:$24 sps:$4 sm:$0xff]  }
 0x151   :  { %6408 = vmatprep.subr.bf16.mxu0 %v8616_v58  ;;  %v8698_v57 = vld [vmem:[%s12518_s1 + $0x370] ss:$24 sps:$4 sm:$0xff]   ;;  %v8703_v58 = vld [vmem:[%s12518_s1 + $0x69c] ss:$24 sps:$4 sm:$0xff]  }
 0x153   :  { %5985 = vmatpush1.bf16.msra.mxu1 %v8611_v60  ;;  %v10810_v60 = vld [vmem:[%s12519_s0 + $0x98] ss:$72 sps:$4 sm:$0xff]  }
 0x154   :  { %6409 = vmatpush1.bf16.msra.mxu0 %v8614_v61  ;;  %5986 = vmatprep.subr.bf16.mxu1 %v8619_v62  ;;  %v8701_v61 = vld [vmem:[%s12518_s1 + $0x698] ss:$24 sps:$4 sm:$0xff]  }
 0x155   :  { %6410 = vmatprep.subr.bf16.mxu0 %v8622_v51  ;;  %v8704_v62 = vld [vmem:[%s12518_s1 + $0x3a0] ss:$24 sps:$4 sm:$0xff]   ;;  %v8709_v51 = vld [vmem:[%s12518_s1 + $0x6cc] ss:$24 sps:$4 sm:$0xff]  }
 0x157   :  { %5987 = vmatpush1.bf16.msra.mxu1 %v8617_v63  ;;  %v10829_v63 = vld [vmem:[%s12519_s0 + $0x14] ss:$72 sps:$4 sm:$0xff]  }
 0x158   :  { %6411 = vmatpush1.bf16.msra.mxu0 %v8620_v0  ;;  %5988 = vmatprep.subr.bf16.mxu1 %v8625_v1  ;;  %v8707_v0 = vld [vmem:[%s12518_s1 + $0x6c8] ss:$24 sps:$4 sm:$0xff]  }
 0x159   :  { %6412 = vmatprep.subr.bf16.mxu0 %v8628_v2  ;;  %v8710_v1 = vld [vmem:[%s12518_s1 + $0x3d0] ss:$24 sps:$4 sm:$0xff]   ;;  %v8715_v2 = vld [vmem:[%s12518_s1 + $0x6fc] ss:$24 sps:$4 sm:$0xff]  }
 0x15b   :  { %5989 = vmatpush1.bf16.msra.mxu1 %v8623_v3  ;;  %v8713_v3 = vld [vmem:[%s12518_s1 + $0x6f8] ss:$24 sps:$4 sm:$0xff]  }
 0x15c   :  { %6413 = vmatpush1.bf16.msra.mxu0 %v8626_v4  ;;  %5990 = vmatprep.subr.bf16.mxu1 %v8631_v5  ;;  %v8716_v4 = vld [vmem:[%s12518_s1 + $0x400] ss:$24 sps:$4 sm:$0xff]   ;;  %v8721_v5 = vld [vmem:[%s12518_s1 + $0x72c] ss:$24 sps:$4 sm:$0xff]  }
 0x15d   :  { %6414 = vmatprep.subr.bf16.mxu0 %v8634_v6  ;;  %v8724_v6 = vld [vmem:[%s12518_s1 + $0x434] ss:$24 sps:$4 sm:$0xff]  }
 0x15f   :  { %5991 = vmatpush1.bf16.msra.mxu1 %v8629_v7  ;;  %v8719_v7 = vld [vmem:[%s12518_s1 + $0x728] ss:$24 sps:$4 sm:$0xff]  }
 0x160   :  { %6415 = vmatpush1.bf16.msra.mxu0 %v8632_v8  ;;  %5992 = vmatprep.subr.bf16.mxu1 %v8637_v9  ;;  %v8722_v8 = vld [vmem:[%s12518_s1 + $0x430] ss:$24 sps:$4 sm:$0xff]   ;;  %v8727_v9 = vld [vmem:[%s12518_s1 + $0x75c] ss:$24 sps:$4 sm:$0xff]  }
 0x161   :  { %6416 = vmatprep.subr.bf16.mxu0 %v8640_v10  ;;  %v8730_v10 = vld [vmem:[%s12518_s1 + $0x464] ss:$24 sps:$4 sm:$0xff]  }
 0x163   :  { %5993 = vmatpush1.bf16.msra.mxu1 %v8635_v11  ;;  %v8725_v11 = vld [vmem:[%s12518_s1 + $0x758] ss:$24 sps:$4 sm:$0xff]  }
 0x164   :  { %6417 = vmatpush1.bf16.msra.mxu0 %v8638_v12  ;;  %5994 = vmatprep.subr.bf16.mxu1 %v8643_v13  ;;  %v8728_v12 = vld [vmem:[%s12518_s1 + $0x460] ss:$24 sps:$4 sm:$0xff]   ;;  %v8733_v13 = vld [vmem:[%s12518_s1 + $0x78c] ss:$24 sps:$4 sm:$0xff]  }
 0x165   :  { %6418 = vmatprep.subr.bf16.mxu0 %v8646_v14  ;;  %v8736_v14 = vld [vmem:[%s12518_s1 + $0x494] ss:$24 sps:$4 sm:$0xff]  }
 0x167   :  { %5995 = vmatpush1.bf16.msra.mxu1 %v8641_v15  ;;  %v8731_v15 = vld [vmem:[%s12518_s1 + $0x788] ss:$24 sps:$4 sm:$0xff]  }
 0x168   :  { %6419 = vmatpush1.bf16.msra.mxu0 %v8644_v16  ;;  %5996 = vmatprep.subr.bf16.mxu1 %v8649_v17  ;;  %v8734_v16 = vld [vmem:[%s12518_s1 + $0x490] ss:$24 sps:$4 sm:$0xff]   ;;  %v8739_v17 = vld [vmem:[%s12518_s1 + $0x7bc] ss:$24 sps:$4 sm:$0xff]  }
 0x169   :  { %6420 = vmatprep.subr.bf16.mxu0 %v8652_v18  ;;  %v8742_v18 = vld [vmem:[%s12518_s1 + $0x4c4] ss:$24 sps:$4 sm:$0xff]  }
 0x16b   :  { %5997 = vmatpush1.bf16.msra.mxu1 %v8647_v19  ;;  %v8737_v19 = vld [vmem:[%s12518_s1 + $0x7b8] ss:$24 sps:$4 sm:$0xff]  }
 0x16c   :  { %6421 = vmatpush1.bf16.msra.mxu0 %v8650_v20  ;;  %5998 = vmatprep.subr.bf16.mxu1 %v8655_v21  ;;  %v8740_v20 = vld [vmem:[%s12518_s1 + $0x4c0] ss:$24 sps:$4 sm:$0xff]   ;;  %v8745_v21 = vld [vmem:[%s12518_s1 + $0x7ec] ss:$24 sps:$4 sm:$0xff]  }
 0x16d   :  { %6422 = vmatprep.subr.bf16.mxu0 %v8658_v22  ;;  %v8748_v22 = vld [vmem:[%s12518_s1 + $0x4f4] ss:$24 sps:$4 sm:$0xff]  }
 0x16f   :  { %5999 = vmatpush1.bf16.msra.mxu1 %v8653_v23  ;;  %v8743_v23 = vld [vmem:[%s12518_s1 + $0x7e8] ss:$24 sps:$4 sm:$0xff]  }
 0x170   :  { %6423 = vmatpush1.bf16.msra.mxu0 %v8656_v24  ;;  %6000 = vmatprep.subr.bf16.mxu1 %v8661_v25  ;;  %v8746_v24 = vld [vmem:[%s12518_s1 + $0x4f0] ss:$24 sps:$4 sm:$0xff]   ;;  %v8751_v25 = vld [vmem:[%s12518_s1 + $0x81c] ss:$24 sps:$4 sm:$0xff]  }
 0x171   :  { %6424 = vmatprep.subr.bf16.mxu0 %v8664_v26  ;;  %v8754_v26 = vld [vmem:[%s12518_s1 + $0x524] ss:$24 sps:$4 sm:$0xff]  }
 0x173   :  { %6001 = vmatpush1.bf16.msra.mxu1 %v8659_v27  ;;  %v8749_v27 = vld [vmem:[%s12518_s1 + $0x818] ss:$24 sps:$4 sm:$0xff]  }
 0x174   :  { %6425 = vmatpush1.bf16.msra.mxu0 %v8662_v28  ;;  %6002 = vmatprep.subr.bf16.mxu1 %v8667_v29  ;;  %v8752_v28 = vld [vmem:[%s12518_s1 + $0x520] ss:$24 sps:$4 sm:$0xff]   ;;  %v8757_v29 = vld [vmem:[%s12518_s1 + $0x84c] ss:$24 sps:$4 sm:$0xff]  }
 0x175   :  { %6426 = vmatprep.subr.bf16.mxu0 %v8670_v30  ;;  %v8760_v30 = vld [vmem:[%s12518_s1 + $0x554] ss:$24 sps:$4 sm:$0xff]  }
 0x177   :  { %6003 = vmatpush1.bf16.msra.mxu1 %v8665_v31  ;;  %v8755_v31 = vld [vmem:[%s12518_s1 + $0x848] ss:$24 sps:$4 sm:$0xff]  }
 0x178   :  { %6427 = vmatpush1.bf16.msra.mxu0 %v8668_v32  ;;  %6004 = vmatprep.subr.bf16.mxu1 %v8673_v33  ;;  %v8758_v32 = vld [vmem:[%s12518_s1 + $0x550] ss:$24 sps:$4 sm:$0xff]   ;;  %v8763_v33 = vld [vmem:[%s12518_s1 + $0x87c] ss:$24 sps:$4 sm:$0xff]  }
 0x179   :  { %6428 = vmatprep.subr.bf16.mxu0 %v8676_v34  ;;  %v8766_v34 = vld [vmem:[%s12518_s1 + $0x584] ss:$24 sps:$4 sm:$0xff]  }
 0x17b   :  { %6005 = vmatpush1.bf16.msra.mxu1 %v8671_v35  ;;  %v8761_v35 = vld [vmem:[%s12518_s1 + $0x878] ss:$24 sps:$4 sm:$0xff]  }
 0x17c   :  { %6429 = vmatpush1.bf16.msra.mxu0 %v8674_v36  ;;  %6006 = vmatprep.subr.bf16.mxu1 %v8679_v37  ;;  %v8764_v36 = vld [vmem:[%s12518_s1 + $0x580] ss:$24 sps:$4 sm:$0xff]   ;;  %v8769_v37 = vld [vmem:[%s12518_s1 + $0x8ac] ss:$24 sps:$4 sm:$0xff]  }
 0x17d   :  { %6430 = vmatprep.subr.bf16.mxu0 %v8682_v38  ;;  %v8772_v38 = vld [vmem:[%s12518_s1 + $0x5b4] ss:$24 sps:$4 sm:$0xff]  }
 0x17f   :  { %6007 = vmatpush1.bf16.msra.mxu1 %v8677_v39  ;;  %v8767_v39 = vld [vmem:[%s12518_s1 + $0x8a8] ss:$24 sps:$4 sm:$0xff]  }
 0x180   :  { %6431 = vmatpush1.bf16.msra.mxu0 %v8680_v40  ;;  %6029 = vmatprep.subr.bf16.mxu1 %v8685_v41  ;;  %v8770_v40 = vld [vmem:[%s12518_s1 + $0x5b0] ss:$24 sps:$4 sm:$0xff]   ;;  %v8775_v41 = vld [vmem:[%s12518_s1 + $0x8dc] ss:$24 sps:$4 sm:$0xff]  }
 0x181   :  { %6453 = vmatprep.subr.bf16.mxu0 %v8688_v43  ;;  %v8778_v43 = vld [vmem:[%s12518_s1 + $0x5e4] ss:$24 sps:$4 sm:$0xff]  }
 0x182   :  { %6009 = vmatmul.mubr.bf16.vlgmr.msra.gmra.mrb[8].mxu1 %v10772_v49 }
 0x183   :  { %6433 = vmatmul.mubr.bf16.vlgmr.msra.gmra.mrb[8].mxu0 %v10552_v42  ;;  %6030 = vmatpush1.bf16.msra.mxu1 %v8683_v44  ;;  %v8700_v42 = vld [vmem:[%s12518_s1 + $0x374] ss:$24 sps:$4 sm:$0xff]   ;;  %v8773_v44 = vld [vmem:[%s12518_s1 + $0x8d8] ss:$24 sps:$4 sm:$0xff]  }
 0x184   :  { %6454 = vmatpush1.bf16.msra.mxu0 %v8686_v45  ;;  %6031 = vmatprep.subr.bf16.mxu1 %v8691_v46  ;;  %v8776_v45 = vld [vmem:[%s12518_s1 + $0x5e0] ss:$24 sps:$4 sm:$0xff]   ;;  %v8781_v46 = vld [vmem:[%s12518_s1 + $0x90c] ss:$24 sps:$4 sm:$0xff]  }
 0x185   :  { %6455 = vmatprep.subr.bf16.mxu0 %v8694_v47  ;;  %6018 = vmatprep.mubr.bf16.mxu1 %v10791_v55  ;;  %v8784_v47 = vld [vmem:[%s12518_s1 + $0x614] ss:$24 sps:$4 sm:$0xff]  }
 0x186   :  { %6442 = vmatprep.mubr.bf16.mxu0 %v10573_v48  ;;  %v8706_v48 = vld [vmem:[%s12518_s1 + $0x3a4] ss:$24 sps:$4 sm:$0xff]  }
 0x187   :  { %6032 = vmatpush1.bf16.msra.mxu1 %v8689_v50  ;;  %v8779_v50 = vld [vmem:[%s12518_s1 + $0x908] ss:$24 sps:$4 sm:$0xff]  }
 0x188   :  { %6456 = vmatpush1.bf16.msra.mxu0 %v8692_v52  ;;  %6033 = vmatprep.subr.bf16.mxu1 %v8697_v53  ;;  %v8782_v52 = vld [vmem:[%s12518_s1 + $0x610] ss:$24 sps:$4 sm:$0xff]   ;;  %v8787_v53 = vld [vmem:[%s12518_s1 + $0x93c] ss:$24 sps:$4 sm:$0xff]  }
 0x189   :  { %6457 = vmatprep.subr.bf16.mxu0 %v8700_v42  ;;  %v8790_v42 = vld [vmem:[%s12518_s1 + $0x644] ss:$24 sps:$4 sm:$0xff]  }
 0x18a   :  { %6019 = vmatmul.mubr.bf16.gmra.mrb[12].mxu1 %v10810_v60 }
 0x18b   :  { %6443 = vmatmul.mubr.bf16.gmra.mrb[12].mxu0 %v10591_v54  ;;  %6034 = vmatpush1.bf16.msra.mxu1 %v8695_v56  ;;  %v8712_v54 = vld [vmem:[%s12518_s1 + $0x3d4] ss:$24 sps:$4 sm:$0xff]   ;;  %v10992_v56 = vld [vmem:[%s12519_s0 + $0x10] ss:$72 sps:$4 sm:$0xff]  }
 0x18c   :  { %6458 = vmatpush1.bf16.msra.mxu0 %v8698_v57  ;;  %6035 = vmatprep.subr.bf16.mxu1 %v8703_v58  ;;  %v8785_v57 = vld [vmem:[%s12518_s1 + $0x938] ss:$24 sps:$4 sm:$0xff]  }
 0x18d   :  { %6459 = vmatprep.subr.bf16.mxu0 %v8706_v48  ;;  %6061 = vmatprep.mubr.bf16.mxu1 %v10829_v63  ;;  %v8788_v58 = vld [vmem:[%s12518_s1 + $0x640] ss:$24 sps:$4 sm:$0xff]   ;;  %v8793_v48 = vld [vmem:[%s12518_s1 + $0x96c] ss:$24 sps:$4 sm:$0xff]  }
 0x18e   :  { %6485 = vmatprep.mubr.bf16.mxu0 %v10609_v59  ;;  %v8718_v59 = vld [vmem:[%s12518_s1 + $0x404] ss:$24 sps:$4 sm:$0xff]  }
 0x18f   :  { %6036 = vmatpush1.bf16.msra.mxu1 %v8701_v61  ;;  %v11011_v61 = vld [vmem:[%s12519_s0 + $0xa4] ss:$72 sps:$4 sm:$0xff]  }
 0x190   :  { %6460 = vmatpush1.bf16.msra.mxu0 %v8704_v62  ;;  %6037 = vmatprep.subr.bf16.mxu1 %v8709_v51  ;;  %v8791_v62 = vld [vmem:[%s12518_s1 + $0x968] ss:$24 sps:$4 sm:$0xff]  }
 0x191   :  { %6461 = vmatprep.subr.bf16.mxu0 %v8712_v54  ;;  %v8794_v51 = vld [vmem:[%s12518_s1 + $0x670] ss:$24 sps:$4 sm:$0xff]   ;;  %v8799_v54 = vld [vmem:[%s12518_s1 + $0x99c] ss:$24 sps:$4 sm:$0xff]  }
 0x193   :  { %6038 = vmatpush1.bf16.msra.mxu1 %v8707_v0  ;;  %v11030_v0 = vld [vmem:[%s12519_s0 + $0xa0] ss:$72 sps:$4 sm:$0xff]  }
 0x194   :  { %6462 = vmatpush1.bf16.msra.mxu0 %v8710_v1  ;;  %6039 = vmatprep.subr.bf16.mxu1 %v8715_v2  ;;  %v8797_v1 = vld [vmem:[%s12518_s1 + $0x998] ss:$24 sps:$4 sm:$0xff]  }
 0x195   :  { %6463 = vmatprep.subr.bf16.mxu0 %v8718_v59  ;;  %v8800_v2 = vld [vmem:[%s12518_s1 + $0x6a0] ss:$24 sps:$4 sm:$0xff]   ;;  %v8805_v59 = vld [vmem:[%s12518_s1 + $0x9cc] ss:$24 sps:$4 sm:$0xff]  }
 0x197   :  { %6040 = vmatpush1.bf16.msra.mxu1 %v8713_v3  ;;  %v11049_v3 = vld [vmem:[%s12519_s0 + $0x1c] ss:$72 sps:$4 sm:$0xff]  }
 0x198   :  { %6464 = vmatpush1.bf16.msra.mxu0 %v8716_v4  ;;  %6041 = vmatprep.subr.bf16.mxu1 %v8721_v5  ;;  %v8803_v4 = vld [vmem:[%s12518_s1 + $0x9c8] ss:$24 sps:$4 sm:$0xff]  }
 0x199   :  { %6465 = vmatprep.subr.bf16.mxu0 %v8724_v6  ;;  %v8806_v5 = vld [vmem:[%s12518_s1 + $0x6d0] ss:$24 sps:$4 sm:$0xff]   ;;  %v8811_v6 = vld [vmem:[%s12518_s1 + $0x9fc] ss:$24 sps:$4 sm:$0xff]  }
 0x19b   :  { %6042 = vmatpush1.bf16.msra.mxu1 %v8719_v7  ;;  %v8809_v7 = vld [vmem:[%s12518_s1 + $0x9f8] ss:$24 sps:$4 sm:$0xff]  }
 0x19c   :  { %6466 = vmatpush1.bf16.msra.mxu0 %v8722_v8  ;;  %6043 = vmatprep.subr.bf16.mxu1 %v8727_v9  ;;  %v8812_v8 = vld [vmem:[%s12518_s1 + $0x700] ss:$24 sps:$4 sm:$0xff]   ;;  %v8817_v9 = vld [vmem:[%s12518_s1 + $0xa2c] ss:$24 sps:$4 sm:$0xff]  }
 0x19d   :  { %6467 = vmatprep.subr.bf16.mxu0 %v8730_v10  ;;  %v8820_v10 = vld [vmem:[%s12518_s1 + $0x734] ss:$24 sps:$4 sm:$0xff]  }
 0x19f   :  { %6044 = vmatpush1.bf16.msra.mxu1 %v8725_v11 }
 0x1a0   :  { %6468 = vmatpush1.bf16.msra.mxu0 %v8728_v12  ;;  %6045 = vmatprep.subr.bf16.mxu1 %v8733_v13 }
 0x1a1   :  { %6469 = vmatprep.subr.bf16.mxu0 %v8736_v14  ;;  %v8815_v14 = vld [vmem:[%s12518_s1 + $0xa28] ss:$24 sps:$4 sm:$0xff]  }
 0x1a3   :  { %6046 = vmatpush1.bf16.msra.mxu1 %v8731_v15  ;;  %v8818_v15 = vld [vmem:[%s12518_s1 + $0x730] ss:$24 sps:$4 sm:$0xff]  }
 0x1a4   :  { %6470 = vmatpush1.bf16.msra.mxu0 %v8734_v16  ;;  %6047 = vmatprep.subr.bf16.mxu1 %v8739_v17  ;;  %v8823_v17 = vld [vmem:[%s12518_s1 + $0xa5c] ss:$24 sps:$4 sm:$0xff]  }
 0x1a5   :  { %6471 = vmatprep.subr.bf16.mxu0 %v8742_v18  ;;  %v8826_v18 = vld [vmem:[%s12518_s1 + $0x764] ss:$24 sps:$4 sm:$0xff]  }
 0x1a7   :  { %6048 = vmatpush1.bf16.msra.mxu1 %v8737_v19  ;;  %v8821_v19 = vld [vmem:[%s12518_s1 + $0xa58] ss:$24 sps:$4 sm:$0xff]  }
 0x1a8   :  { %6472 = vmatpush1.bf16.msra.mxu0 %v8740_v20  ;;  %6049 = vmatprep.subr.bf16.mxu1 %v8745_v21  ;;  %v8824_v20 = vld [vmem:[%s12518_s1 + $0x760] ss:$24 sps:$4 sm:$0xff]   ;;  %v8829_v21 = vld [vmem:[%s12518_s1 + $0xa8c] ss:$24 sps:$4 sm:$0xff]  }
 0x1a9   :  { %6473 = vmatprep.subr.bf16.mxu0 %v8748_v22  ;;  %v8832_v22 = vld [vmem:[%s12518_s1 + $0x794] ss:$24 sps:$4 sm:$0xff]  }
 0x1ab   :  { %6050 = vmatpush1.bf16.msra.mxu1 %v8743_v23 }
 0x1ac   :  { %6474 = vmatpush1.bf16.msra.mxu0 %v8746_v24  ;;  %6051 = vmatprep.subr.bf16.mxu1 %v8751_v25 }
 0x1ad   :  { %6475 = vmatprep.subr.bf16.mxu0 %v8754_v26  ;;  %v8827_v26 = vld [vmem:[%s12518_s1 + $0xa88] ss:$24 sps:$4 sm:$0xff]  }
 0x1af   :  { %6052 = vmatpush1.bf16.msra.mxu1 %v8749_v27  ;;  %v8830_v27 = vld [vmem:[%s12518_s1 + $0x790] ss:$24 sps:$4 sm:$0xff]  }
 0x1b0   :  { %6476 = vmatpush1.bf16.msra.mxu0 %v8752_v28  ;;  %6053 = vmatprep.subr.bf16.mxu1 %v8757_v29  ;;  %v8835_v29 = vld [vmem:[%s12518_s1 + $0xabc] ss:$24 sps:$4 sm:$0xff]  }
 0x1b1   :  { %6477 = vmatprep.subr.bf16.mxu0 %v8760_v30  ;;  %v8838_v30 = vld [vmem:[%s12518_s1 + $0x7c4] ss:$24 sps:$4 sm:$0xff]  }
 0x1b3   :  { %6054 = vmatpush1.bf16.msra.mxu1 %v8755_v31  ;;  %v8833_v31 = vld [vmem:[%s12518_s1 + $0xab8] ss:$24 sps:$4 sm:$0xff]  }
 0x1b4   :  { %6478 = vmatpush1.bf16.msra.mxu0 %v8758_v32  ;;  %6055 = vmatprep.subr.bf16.mxu1 %v8763_v33  ;;  %v8836_v32 = vld [vmem:[%s12518_s1 + $0x7c0] ss:$24 sps:$4 sm:$0xff]   ;;  %v8841_v33 = vld [vmem:[%s12518_s1 + $0xaec] ss:$24 sps:$4 sm:$0xff]  }
 0x1b5   :  { %6479 = vmatprep.subr.bf16.mxu0 %v8766_v34  ;;  %v8844_v34 = vld [vmem:[%s12518_s1 + $0x7f4] ss:$24 sps:$4 sm:$0xff]  }
 0x1b7   :  { %6056 = vmatpush1.bf16.msra.mxu1 %v8761_v35  ;;  %v8839_v35 = vld [vmem:[%s12518_s1 + $0xae8] ss:$24 sps:$4 sm:$0xff]  }
 0x1b8   :  { %6480 = vmatpush1.bf16.msra.mxu0 %v8764_v36  ;;  %6057 = vmatprep.subr.bf16.mxu1 %v8769_v37  ;;  %v8842_v36 = vld [vmem:[%s12518_s1 + $0x7f0] ss:$24 sps:$4 sm:$0xff]   ;;  %v8847_v37 = vld [vmem:[%s12518_s1 + $0xb1c] ss:$24 sps:$4 sm:$0xff]  }
 0x1b9   :  { %6481 = vmatprep.subr.bf16.mxu0 %v8772_v38  ;;  %v8850_v38 = vld [vmem:[%s12518_s1 + $0x824] ss:$24 sps:$4 sm:$0xff]  }
 0x1bb   :  { %6058 = vmatpush1.bf16.msra.mxu1 %v8767_v39  ;;  %v8845_v39 = vld [vmem:[%s12518_s1 + $0xb18] ss:$24 sps:$4 sm:$0xff]  }
 0x1bc   :  { %6482 = vmatpush1.bf16.msra.mxu0 %v8770_v40  ;;  %6059 = vmatprep.subr.bf16.mxu1 %v8775_v41  ;;  %v8848_v40 = vld [vmem:[%s12518_s1 + $0x820] ss:$24 sps:$4 sm:$0xff]   ;;  %v8853_v41 = vld [vmem:[%s12518_s1 + $0xb4c] ss:$24 sps:$4 sm:$0xff]  }
 0x1bd   :  { %6483 = vmatprep.subr.bf16.mxu0 %v8778_v43  ;;  %v8856_v43 = vld [vmem:[%s12518_s1 + $0x854] ss:$24 sps:$4 sm:$0xff]  }
 0x1bf   :  { %6060 = vmatpush1.bf16.msra.mxu1 %v8773_v44  ;;  %v8851_v44 = vld [vmem:[%s12518_s1 + $0xb48] ss:$24 sps:$4 sm:$0xff]  }
 0x1c0   :  { %6484 = vmatpush1.bf16.msra.mxu0 %v8776_v45  ;;  %6082 = vmatprep.subr.bf16.mxu1 %v8781_v46  ;;  %v8854_v45 = vld [vmem:[%s12518_s1 + $0x850] ss:$24 sps:$4 sm:$0xff]   ;;  %v8859_v46 = vld [vmem:[%s12518_s1 + $0xb7c] ss:$24 sps:$4 sm:$0xff]  }
 0x1c1   :  { %6506 = vmatprep.subr.bf16.mxu0 %v8784_v47  ;;  %v8862_v47 = vld [vmem:[%s12518_s1 + $0x884] ss:$24 sps:$4 sm:$0xff]  }
 0x1c2   :  { %6062 = vmatmul.mubr.bf16.vlgmr.msra.gmra.mrb[8].mxu1 %v10992_v56 }
 0x1c3   :  { %6486 = vmatmul.mubr.bf16.vlgmr.msra.gmra.mrb[8].mxu0 %v10772_v49  ;;  %6083 = vmatpush1.bf16.msra.mxu1 %v8779_v50  ;;  %v8796_v49 = vld [vmem:[%s12518_s1 + $0x674] ss:$24 sps:$4 sm:$0xff]   ;;  %v8857_v50 = vld [vmem:[%s12518_s1 + $0xb78] ss:$24 sps:$4 sm:$0xff]  }
 0x1c4   :  { %6507 = vmatpush1.bf16.msra.mxu0 %v8782_v52  ;;  %6084 = vmatprep.subr.bf16.mxu1 %v8787_v53  ;;  %v8860_v52 = vld [vmem:[%s12518_s1 + $0x880] ss:$24 sps:$4 sm:$0xff]   ;;  %v8865_v53 = vld [vmem:[%s12518_s1 + $0xbac] ss:$24 sps:$4 sm:$0xff]  }
 0x1c5   :  { %6508 = vmatprep.subr.bf16.mxu0 %v8790_v42  ;;  %6071 = vmatprep.mubr.bf16.mxu1 %v11011_v61  ;;  %v8868_v42 = vld [vmem:[%s12518_s1 + $0x8b4] ss:$24 sps:$4 sm:$0xff]  }
 0x1c6   :  { %6495 = vmatprep.mubr.bf16.mxu0 %v10791_v55  ;;  %v8802_v55 = vld [vmem:[%s12518_s1 + $0x6a4] ss:$24 sps:$4 sm:$0xff]  }
 0x1c7   :  { %6085 = vmatpush1.bf16.msra.mxu1 %v8785_v57  ;;  %v8863_v57 = vld [vmem:[%s12518_s1 + $0xba8] ss:$24 sps:$4 sm:$0xff]  }
 0x1c8   :  { %6509 = vmatpush1.bf16.msra.mxu0 %v8788_v58  ;;  %6086 = vmatprep.subr.bf16.mxu1 %v8793_v48  ;;  %v8866_v58 = vld [vmem:[%s12518_s1 + $0x8b0] ss:$24 sps:$4 sm:$0xff]   ;;  %v8871_v48 = vld [vmem:[%s12518_s1 + $0xbdc] ss:$24 sps:$4 sm:$0xff]  }
 0x1c9   :  { %6510 = vmatprep.subr.bf16.mxu0 %v8796_v49  ;;  %v8874_v49 = vld [vmem:[%s12518_s1 + $0x8e4] ss:$24 sps:$4 sm:$0xff]  }
 0x1ca   :  { %6072 = vmatmul.mubr.bf16.gmra.mrb[12].mxu1 %v11030_v0 }
 0x1cb   :  { %6496 = vmatmul.mubr.bf16.gmra.mrb[12].mxu0 %v10810_v60  ;;  %6087 = vmatpush1.bf16.msra.mxu1 %v8791_v62  ;;  %v8808_v60 = vld [vmem:[%s12518_s1 + $0x6d4] ss:$24 sps:$4 sm:$0xff]   ;;  %v8869_v62 = vld [vmem:[%s12518_s1 + $0xbd8] ss:$24 sps:$4 sm:$0xff]  }
 0x1cc   :  { %6511 = vmatpush1.bf16.msra.mxu0 %v8794_v51  ;;  %6088 = vmatprep.subr.bf16.mxu1 %v8799_v54  ;;  %v8872_v51 = vld [vmem:[%s12518_s1 + $0x8e0] ss:$24 sps:$4 sm:$0xff]   ;;  %v8877_v54 = vld [vmem:[%s12518_s1 + $0xc0c] ss:$24 sps:$4 sm:$0xff]  }
 0x1cd   :  { %6512 = vmatprep.subr.bf16.mxu0 %v8802_v55  ;;  %6114 = vmatprep.mubr.bf16.mxu1 %v11049_v3  ;;  %v8880_v55 = vld [vmem:[%s12518_s1 + $0x914] ss:$24 sps:$4 sm:$0xff]  }
 0x1ce   :  { %6538 = vmatprep.mubr.bf16.mxu0 %v10829_v63  ;;  %v8814_v63 = vld [vmem:[%s12518_s1 + $0x704] ss:$24 sps:$4 sm:$0xff]  }
 0x1cf   :  { %6089 = vmatpush1.bf16.msra.mxu1 %v8797_v1  ;;  %v8875_v1 = vld [vmem:[%s12518_s1 + $0xc08] ss:$24 sps:$4 sm:$0xff]  }
 0x1d0   :  { %6513 = vmatpush1.bf16.msra.mxu0 %v8800_v2  ;;  %6090 = vmatprep.subr.bf16.mxu1 %v8805_v59  ;;  %v8878_v2 = vld [vmem:[%s12518_s1 + $0x910] ss:$24 sps:$4 sm:$0xff]   ;;  %v8883_v59 = vld [vmem:[%s12518_s1 + $0xc3c] ss:$24 sps:$4 sm:$0xff]  }
 0x1d1   :  { %6514 = vmatprep.subr.bf16.mxu0 %v8808_v60  ;;  %v8886_v60 = vld [vmem:[%s12518_s1 + $0x944] ss:$24 sps:$4 sm:$0xff]  }
 0x1d3   :  { %6091 = vmatpush1.bf16.msra.mxu1 %v8803_v4  ;;  %v11228_v4 = vld [vmem:[%s12519_s0 + $0x18] ss:$72 sps:$4 sm:$0xff]  }
 0x1d4   :  { %6515 = vmatpush1.bf16.msra.mxu0 %v8806_v5  ;;  %6092 = vmatprep.subr.bf16.mxu1 %v8811_v6  ;;  %v8881_v5 = vld [vmem:[%s12518_s1 + $0xc38] ss:$24 sps:$4 sm:$0xff]  }
 0x1d5   :  { %6516 = vmatprep.subr.bf16.mxu0 %v8814_v63  ;;  %v11077_v11 = vpop.f32.mrb[0].mxu1  ;;  %v8884_v6 = vld [vmem:[%s12518_s1 + $0x940] ss:$24 sps:$4 sm:$0xff]   ;;  %v916_v63 = vlaneseq }
 0x1d6   :  { %v11079_v12 = vpop.f32.mrb[1].mxu1 }
 0x1d7   :  { %v11081_v13 = vpop.f32.mrb[2].mxu1  ;;  %6093 = vmatpush1.bf16.msra.mxu1 %v8809_v7  ;;  %v8889_v7 = vld [vmem:[%s12518_s1 + $0xc6c] ss:$24 sps:$4 sm:$0xff]  }
 0x1d8   :  { %6517 = vmatpush1.bf16.msra.mxu0 %v8812_v8  ;;  %v11089_v16 = vpop.f32.mrb[3].mxu1  ;;  %6094 = vmatprep.subr.bf16.mxu1 %v8817_v9  ;;  %v11247_v8 = vld [vmem:[%s12519_s0 + $0xac] ss:$72 sps:$4 sm:$0xff]   ;;  %v8887_v9 = vld [vmem:[%s12518_s1 + $0xc68] ss:$24 sps:$4 sm:$0xff]  }
 0x1d9   :  { %6518 = vmatprep.subr.bf16.mxu0 %v8820_v10  ;;  %v8890_v10 = vld [vmem:[%s12518_s1 + $0x970] ss:$24 sps:$4 sm:$0xff]  }
 0x1db   :  { %6095 = vmatpush1.bf16.msra.mxu1 %v8815_v14  ;;  %v11257_v14 = vshrl.u32 %v916_v63, 7 }
 0x1dc   :  { %6519 = vmatpush1.bf16.msra.mxu0 %v8818_v15  ;;  %6096 = vmatprep.subr.bf16.mxu1 %v8823_v17  ;;  %v8895_v15 = vld [vmem:[%s12518_s1 + $0xc9c] ss:$24 sps:$4 sm:$0xff]   ;;  %v11268_v17 = vld [vmem:[%s12519_s0 + $0xa8] ss:$72 sps:$4 sm:$0xff]  }
 0x1dd   :  { %6520 = vmatprep.subr.bf16.mxu0 %v8826_v18  ;;  %v11109_v23 = vpop.f32.mrb[4].mxu1  ;;  %v914_v18 = vld [vmem:[%s12520_s2] sm:$0x3f] }
 0x1de   :  { %v11111_v24 = vpop.f32.mrb[5].mxu1 }
 0x1df   :  { %v11113_v25 = vpop.f32.mrb[6].mxu1  ;;  %6097 = vmatpush1.bf16.msra.mxu1 %v8821_v19  ;;  %v8893_v19 = vld [vmem:[%s12518_s1 + $0xc98] ss:$24 sps:$4 sm:$0xff]  }
 0x1e0   :  { %6521 = vmatpush1.bf16.msra.mxu0 %v8824_v20  ;;  %v11121_v28 = vpop.f32.mrb[7].mxu1  ;;  %6098 = vmatprep.subr.bf16.mxu1 %v8829_v21  ;;  %v8896_v20 = vld [vmem:[%s12518_s1 + $0x9a0] ss:$24 sps:$4 sm:$0xff]   ;;  %v918_v21 = vsub.s32 0, %v11257_v14 }
 0x1e1   :  { %6522 = vmatprep.subr.bf16.mxu0 %v8832_v22  ;;  %v8904_v22 = vld [vmem:[%s12518_s1 + $0x9d4] ss:$24 sps:$4 sm:$0xff]  }
 0x1e3   :  { %6099 = vmatpush1.bf16.msra.mxu1 %v8827_v26  ;;  %v922_v26 = vsub.s32 1, %v11257_v14 }
 0x1e4   :  { %6523 = vmatpush1.bf16.msra.mxu0 %v8830_v27  ;;  %6100 = vmatprep.subr.bf16.mxu1 %v8835_v29  ;;  %v11292_v27 = vld [vmem:[%s12519_s0 + $0x24] ss:$72 sps:$4 sm:$0xff]   ;;  %v8899_v29 = vld [vmem:[%s12518_s1 + $0xcc8] ss:$24 sps:$4 sm:$0xff]  }
 0x1e5   :  { %6524 = vmatprep.subr.bf16.mxu0 %v8838_v30  ;;  %v8902_v30 = vld [vmem:[%s12518_s1 + $0x9d0] ss:$24 sps:$4 sm:$0xff]  }
 0x1e7   :  { %6101 = vmatpush1.bf16.msra.mxu1 %v8833_v31  ;;  %v919_v31 = vrot.slane %v914_v18, %v918_v21  ;;  %v8944_v21 = vld [vmem:[%s12518_s1 + $0xb20] ss:$24 sps:$4 sm:$0xff]  }
 0x1e8   :  { %6525 = vmatpush1.bf16.msra.mxu0 %v8836_v32  ;;  %6102 = vmatprep.subr.bf16.mxu1 %v8841_v33  ;;  %v8907_v32 = vld [vmem:[%s12518_s1 + $0xcfc] ss:$24 sps:$4 sm:$0xff]   ;;  %v923_v33 = vrot.slane %v914_v18, %v922_v26  ;;  %v8947_v26 = vld [vmem:[%s12518_s1 + $0xe48] ss:$24 sps:$4 sm:$0xff]  }
 0x1e9   :  { %6526 = vmatprep.subr.bf16.mxu0 %v8844_v34  ;;  %v8905_v34 = vld [vmem:[%s12518_s1 + $0xcf8] ss:$24 sps:$4 sm:$0xff]   ;;  %v8943_v18 = vld [vmem:[%s12518_s1 + $0xe1c] ss:$24 sps:$4 sm:$0xff]  }
 0x1eb   :  { %6103 = vmatpush1.bf16.msra.mxu1 %v8839_v35  ;;  %v8908_v35 = vld [vmem:[%s12518_s1 + $0xa00] ss:$24 sps:$4 sm:$0xff]  }
 0x1ec   :  { %6527 = vmatpush1.bf16.msra.mxu0 %v8842_v36  ;;  %6104 = vmatprep.subr.bf16.mxu1 %v8847_v37  ;;  %v7837_v36 = vadd.f32 %v11077_v11, %v919_v31  ;;  %v8913_v37 = vld [vmem:[%s12518_s1 + $0xd2c] ss:$24 sps:$4 sm:$0xff]  }
 0x1ed   :  { %6528 = vmatprep.subr.bf16.mxu0 %v8850_v38  ;;  %v8916_v38 = vld [vmem:[%s12518_s1 + $0xa34] ss:$24 sps:$4 sm:$0xff]  }
 0x1ef   :  { %6105 = vmatpush1.bf16.msra.mxu1 %v8845_v39  ;;  %v7839_v39 = vadd.f32 %v11079_v12, %v923_v33 }
 0x1f0   :  { %6529 = vmatpush1.bf16.msra.mxu0 %v8848_v40  ;;  %6106 = vmatprep.subr.bf16.mxu1 %v8853_v41  ;;  %v7841_v41 = vadd.f32 %v11081_v13, %v919_v31 }
 0x1f1   :  { %6530 = vmatprep.subr.bf16.mxu0 %v8856_v43 }
 0x1f3   :  { %6107 = vmatpush1.bf16.msra.mxu1 %v8851_v44 }
 0x1f4   :  { %6531 = vmatpush1.bf16.msra.mxu0 %v8854_v45  ;;  %6108 = vmatprep.subr.bf16.mxu1 %v8859_v46  ;;  %v7843_v45 = vadd.f32 %v11089_v16, %v923_v33  ;;  %v8919_v16 = vld [vmem:[%s12518_s1 + $0xd5c] ss:$24 sps:$4 sm:$0xff]  }
 0x1f5   :  { %6532 = vmatprep.subr.bf16.mxu0 %v8862_v47  ;;  %v8911_v47 = vld [vmem:[%s12518_s1 + $0xd28] ss:$24 sps:$4 sm:$0xff]  }
 0x1f7   :  { %6109 = vmatpush1.bf16.msra.mxu1 %v8857_v50  ;;  %v8914_v50 = vld [vmem:[%s12518_s1 + $0xa30] ss:$24 sps:$4 sm:$0xff]  }
 0x1f8   :  { %6533 = vmatpush1.bf16.msra.mxu0 %v8860_v52  ;;  %6110 = vmatprep.subr.bf16.mxu1 %v8865_v53  ;;  %v8922_v52 = vld [vmem:[%s12518_s1 + $0xa64] ss:$24 sps:$4 sm:$0xff]  }
 0x1f9   :  { %6534 = vmatprep.subr.bf16.mxu0 %v8868_v42  ;;  %v8917_v42 = vld [vmem:[%s12518_s1 + $0xd58] ss:$24 sps:$4 sm:$0xff]  }
 0x1fb   :  { %6111 = vmatpush1.bf16.msra.mxu1 %v8863_v57  ;;  %v8920_v57 = vld [vmem:[%s12518_s1 + $0xa60] ss:$24 sps:$4 sm:$0xff]  }
 0x1fc   :  { %6535 = vmatpush1.bf16.msra.mxu0 %v8866_v58  ;;  %6112 = vmatprep.subr.bf16.mxu1 %v8871_v48  ;;  %v7845_v58 = vadd.f32 %v11109_v23, %v919_v31  ;;  %v8925_v48 = vld [vmem:[%s12518_s1 + $0xd8c] ss:$24 sps:$4 sm:$0xff]  }
 0x1fd   :  { %6536 = vmatprep.subr.bf16.mxu0 %v8874_v49  ;;  %v8928_v49 = vld [vmem:[%s12518_s1 + $0xa94] ss:$24 sps:$4 sm:$0xff]  }
 0x1ff   :  { %6113 = vmatpush1.bf16.msra.mxu1 %v8869_v62  ;;  %v7847_v62 = vadd.f32 %v11111_v24, %v923_v33 }
 0x200   :  { %6537 = vmatpush1.bf16.msra.mxu0 %v8872_v51  ;;  %6135 = vmatprep.subr.bf16.mxu1 %v8877_v54  ;;  %v7849_v54 = vadd.f32 %v11113_v25, %v919_v31  ;;  %v8958_v31 = vld [vmem:[%s12518_s1 + $0xb84] ss:$24 sps:$4 sm:$0xff]  }
 0x201   :  { %6559 = vmatprep.subr.bf16.mxu0 %v8880_v55 }
 0x202   :  { %6115 = vmatmul.mubr.bf16.vlgmr.msra.gmra.mrb[8].mxu1 %v11228_v4 }
 0x203   :  { %6539 = vmatmul.mubr.bf16.vlgmr.msra.gmra.mrb[8].mxu0 %v10992_v56  ;;  %6136 = vmatpush1.bf16.msra.mxu1 %v8875_v1  ;;  %v8892_v56 = vld [vmem:[%s12518_s1 + $0x974] ss:$24 sps:$4 sm:$0xff]  }
 0x204   :  { %6560 = vmatpush1.bf16.msra.mxu0 %v8878_v2  ;;  %6137 = vmatprep.subr.bf16.mxu1 %v8883_v59  ;;  %v7851_v2 = vadd.f32 %v11121_v28, %v923_v33  ;;  %v8931_v28 = vld [vmem:[%s12518_s1 + $0xdbc] ss:$24 sps:$4 sm:$0xff]   ;;  %v8961_v33 = vld [vmem:[%s12518_s1 + $0xeac] ss:$24 sps:$4 sm:$0xff]  }
 0x205   :  { %6561 = vmatprep.subr.bf16.mxu0 %v8886_v60  ;;  %6124 = vmatprep.mubr.bf16.mxu1 %v11247_v8  ;;  %v8923_v60 = vld [vmem:[%s12518_s1 + $0xd88] ss:$24 sps:$4 sm:$0xff]  }
 0x206   :  { %6548 = vmatprep.mubr.bf16.mxu0 %v11011_v61  ;;  %v8898_v61 = vld [vmem:[%s12518_s1 + $0x9a4] ss:$24 sps:$4 sm:$0xff]  }
 0x207   :  { %6138 = vmatpush1.bf16.msra.mxu1 %v8881_v5  ;;  %v8926_v5 = vld [vmem:[%s12518_s1 + $0xa90] ss:$24 sps:$4 sm:$0xff]  }
 0x208   :  { %6562 = vmatpush1.bf16.msra.mxu0 %v8884_v6  ;;  %6139 = vmatprep.subr.bf16.mxu1 %v8889_v7  ;;  %v8934_v6 = vld [vmem:[%s12518_s1 + $0xac4] ss:$24 sps:$4 sm:$0xff]   ;;  %v8929_v7 = vld [vmem:[%s12518_s1 + $0xdb8] ss:$24 sps:$4 sm:$0xff]  }
 0x209   :  { %6563 = vmatprep.subr.bf16.mxu0 %v8892_v56  ;;  %v8932_v56 = vld [vmem:[%s12518_s1 + $0xac0] ss:$24 sps:$4 sm:$0xff]  }
 0x20a   :  { %6125 = vmatmul.mubr.bf16.gmra.mrb[12].mxu1 %v11268_v17 }
 0x20b   :  { %6549 = vmatmul.mubr.bf16.gmra.mrb[12].mxu0 %v11030_v0  ;;  %6140 = vmatpush1.bf16.msra.mxu1 %v8887_v9  ;;  %v8901_v0 = vld [vmem:[%s12518_s1 + $0xccc] ss:$24 sps:$4 sm:$0xff]  }
 0x20c   :  { %6564 = vmatpush1.bf16.msra.mxu0 %v8890_v10  ;;  %6141 = vmatprep.subr.bf16.mxu1 %v8895_v15  ;;  %v8937_v9 = vld [vmem:[%s12518_s1 + $0xdec] ss:$24 sps:$4 sm:$0xff]   ;;  %v8935_v15 = vld [vmem:[%s12518_s1 + $0xde8] ss:$24 sps:$4 sm:$0xff]  }
 0x20d   :  { %6565 = vmatprep.subr.bf16.mxu0 %v8898_v61  ;;  %6167 = vmatprep.mubr.bf16.mxu1 %v11292_v27  ;;  %v8940_v10 = vld [vmem:[%s12518_s1 + $0xaf4] ss:$24 sps:$4 sm:$0xff]   ;;  %v8938_v61 = vld [vmem:[%s12518_s1 + $0xaf0] ss:$24 sps:$4 sm:$0xff]  }
 0x20e   :  { %6591 = vmatprep.mubr.bf16.mxu0 %v11049_v3  ;;  %v8910_v3 = vld [vmem:[%s12518_s1 + $0xa04] ss:$24 sps:$4 sm:$0xff]  }
 0x20f   :  { %6142 = vmatpush1.bf16.msra.mxu1 %v8893_v19  ;;  %v8946_v19 = vld [vmem:[%s12518_s1 + $0xb24] ss:$24 sps:$4 sm:$0xff]  }
 0x210   :  { %6566 = vmatpush1.bf16.msra.mxu0 %v8896_v20  ;;  %6143 = vmatprep.subr.bf16.mxu1 %v8901_v0  ;;  %v8941_v20 = vld [vmem:[%s12518_s1 + $0xe18] ss:$24 sps:$4 sm:$0xff]   ;;  %v8949_v0 = vld [vmem:[%s12518_s1 + $0xe4c] ss:$24 sps:$4 sm:$0xff]  }
 0x211   :  { %6567 = vmatprep.subr.bf16.mxu0 %v8904_v22  ;;  %v8952_v22 = vld [vmem:[%s12518_s1 + $0xb54] ss:$24 sps:$4 sm:$0xff]  }
 0x213   :  { %6144 = vmatpush1.bf16.msra.mxu1 %v8899_v29  ;;  %v8950_v29 = vld [vmem:[%s12518_s1 + $0xb50] ss:$24 sps:$4 sm:$0xff]  }
 0x214   :  { %6568 = vmatpush1.bf16.msra.mxu0 %v8902_v30  ;;  %6145 = vmatprep.subr.bf16.mxu1 %v8907_v32  ;;  %v8955_v30 = vld [vmem:[%s12518_s1 + $0xe7c] ss:$24 sps:$4 sm:$0xff]   ;;  %v8953_v32 = vld [vmem:[%s12518_s1 + $0xe78] ss:$24 sps:$4 sm:$0xff]  }
 0x215   :  { %6569 = vmatprep.subr.bf16.mxu0 %v8910_v3  ;;  %v8956_v3 = vld [vmem:[%s12518_s1 + $0xb80] ss:$24 sps:$4 sm:$0xff]  }
 0x216   :  { %v5904_v40 = vpop.f32.mrb[0].mxu0 }
 0x217   :  { %v7838_v43 = vadd.f32 %v7837_v36, %v5904_v40  ;;  %v5906_v44 = vpop.f32.mrb[1].mxu0  ;;  %6146 = vmatpush1.bf16.msra.mxu1 %v8905_v34  ;;  %v8964_v34 = vld [vmem:[%s12518_s1 + $0xbb4] ss:$24 sps:$4 sm:$0xff]   ;;  %v8962_v36 = vld [vmem:[%s12518_s1 + $0xbb0] ss:$24 sps:$4 sm:$0xff]  }
 0x218   :  { %v7840_v11 = vadd.f32 %v7839_v39, %v5906_v44  ;;  %v5908_v46 = vpop.f32.mrb[2].mxu0  ;;  %6570 = vmatpush1.bf16.msra.mxu0 %v8908_v35  ;;  %6147 = vmatprep.subr.bf16.mxu1 %v8913_v37  ;;  %v8959_v35 = vld [vmem:[%s12518_s1 + $0xea8] ss:$24 sps:$4 sm:$0xff]   ;;  %v8967_v37 = vld [vmem:[%s12518_s1 + $0xedc] ss:$24 sps:$4 sm:$0xff]  }
 0x219   :  { %6877 = vst [vmem:[%s12521_s3] sm:$0xff] %v7838_v43  ;;  %v7842_v12 = vadd.f32 %v7841_v41, %v5908_v46  ;;  %v5910_v13 = vpop.f32.mrb[3].mxu0  ;;  %6571 = vmatprep.subr.bf16.mxu0 %v8916_v38  ;;  %v8970_v38 = vld [vmem:[%s12518_s1 + $0xbe4] ss:$24 sps:$4 sm:$0xff]   ;;  %v8965_v39 = vld [vmem:[%s12518_s1 + $0xed8] ss:$24 sps:$4 sm:$0xff]  }
 0x21a   :  { %6878 = vst [vmem:[%s12521_s3 + $0x8] sm:$0xff] %v7840_v11  ;;  %v7844_v53 = vadd.f32 %v7843_v45, %v5910_v13  ;;  %v8968_v40 = vld [vmem:[%s12518_s1 + $0xbe0] ss:$24 sps:$4 sm:$0xff]   ;;  %v8973_v41 = vld [vmem:[%s12518_s1 + $0xf0c] ss:$24 sps:$4 sm:$0xff]  }
 0x21b   :  { %6883 = vst [vmem:[%s12521_s3 + $0x30] sm:$0xff] %v7842_v12  ;;  %6148 = vmatpush1.bf16.msra.mxu1 %v8911_v47  ;;  %v8976_v43 = vld [vmem:[%s12518_s1 + $0xc14] ss:$24 sps:$4 sm:$0xff]   ;;  %v8971_v44 = vld [vmem:[%s12518_s1 + $0xf08] ss:$24 sps:$4 sm:$0xff]  }
 0x21c   :  { %6884 = vst [vmem:[%s12521_s3 + $0x38] sm:$0xff] %v7844_v53  ;;  %6572 = vmatpush1.bf16.msra.mxu0 %v8914_v50  ;;  %6149 = vmatprep.subr.bf16.mxu1 %v8919_v16  ;;  %v8974_v45 = vld [vmem:[%s12518_s1 + $0xc10] ss:$24 sps:$4 sm:$0xff]   ;;  %v8979_v11 = vld [vmem:[%s12518_s1 + $0xf3c] ss:$24 sps:$4 sm:$0xff]  }
 0x21d   :  { %6573 = vmatprep.subr.bf16.mxu0 %v8922_v52  ;;  %v8982_v46 = vld [vmem:[%s12518_s1 + $0xc44] ss:$24 sps:$4 sm:$0xff]   ;;  %v11487_v47 = vld [vmem:[%s12519_s0 + $0x20] ss:$72 sps:$4 sm:$0xff]   ;;  %v8977_v50 = vld [vmem:[%s12518_s1 + $0xf38] ss:$24 sps:$4 sm:$0xff]  }
 0x21e   :  { %v5914_v51 = vpop.f32.mrb[4].mxu0  ;;  %v8980_v12 = vld [vmem:[%s12518_s1 + $0xc40] ss:$24 sps:$4 sm:$0xff]   ;;  %v8985_v13 = vld [vmem:[%s12518_s1 + $0xf6c] ss:$24 sps:$4 sm:$0xff]  }
 0x21f   :  { %v7846_v55 = vadd.f32 %v7845_v58, %v5914_v51  ;;  %v5916_v1 = vpop.f32.mrb[5].mxu0  ;;  %6150 = vmatpush1.bf16.msra.mxu1 %v8917_v42  ;;  %v11506_v16 = vld [vmem:[%s12519_s0 + $0xb4] ss:$72 sps:$4 sm:$0xff]   ;;  %v8983_v52 = vld [vmem:[%s12518_s1 + $0xf68] ss:$24 sps:$4 sm:$0xff]  }
 0x220   :  { %v7848_v23 = vadd.f32 %v7847_v62, %v5916_v1  ;;  %v5918_v59 = vpop.f32.mrb[6].mxu0  ;;  %6574 = vmatpush1.bf16.msra.mxu0 %v8920_v57  ;;  %6151 = vmatprep.subr.bf16.mxu1 %v8925_v48  ;;  %v8986_v53 = vld [vmem:[%s12518_s1 + $0xc70] ss:$24 sps:$4 sm:$0xff]   ;;  %v8991_v42 = vld [vmem:[%s12518_s1 + $0xf9c] ss:$24 sps:$4 sm:$0xff]  }
 0x221   :  { %6889 = vst [vmem:[%s12521_s3 + $0x60] sm:$0xff] %v7846_v55  ;;  %v7850_v24 = vadd.f32 %v7849_v54, %v5918_v59  ;;  %v5920_v25 = vpop.f32.mrb[7].mxu0  ;;  %6575 = vmatprep.subr.bf16.mxu0 %v8928_v49  ;;  %v11525_v57 = vld [vmem:[%s12519_s0 + $0xb0] ss:$72 sps:$4 sm:$0xff]   ;;  %v8997_v49 = vld [vmem:[%s12518_s1 + $0xfcc] ss:$24 sps:$4 sm:$0xff]  }
 0x222   :  { %6890 = vst [vmem:[%s12521_s3 + $0x68] sm:$0xff] %v7848_v23  ;;  %v7852_v63 = vadd.f32 %v7851_v2, %v5920_v25  ;;  %v8989_v58 = vld [vmem:[%s12518_s1 + $0xf98] ss:$24 sps:$4 sm:$0xff]   ;;  %v11544_v62 = vld [vmem:[%s12519_s0 + $0x2c] ss:$72 sps:$4 sm:$0xff]  }
 0x223   :  { %6895 = vst [vmem:[%s12521_s3 + $0x90] sm:$0xff] %v7850_v24  ;;  %6152 = vmatpush1.bf16.msra.mxu1 %v8923_v60  ;;  %v8992_v48 = vld [vmem:[%s12518_s1 + $0xca0] ss:$24 sps:$4 sm:$0xff]   ;;  %v8998_v54 = vld [vmem:[%s12518_s1 + $0xcd0] ss:$24 sps:$4 sm:$0xff]  }
 0x224   :  { %6896 = vst [vmem:[%s12521_s3 + $0x98] sm:$0xff] %v7852_v63  ;;  %6576 = vmatpush1.bf16.msra.mxu0 %v8926_v5  ;;  %6153 = vmatprep.subr.bf16.mxu1 %v8931_v28  ;;  %v8995_v51 = vld [vmem:[%s12518_s1 + $0xfc8] ss:$24 sps:$4 sm:$0xff]   ;;  %v9003_v55 = vld [vmem:[%s12518_s1 + $0xffc] ss:$24 sps:$4 sm:$0xff]  }
 0x225   :  { %6577 = vmatprep.subr.bf16.mxu0 %v8934_v6  ;;  %v9001_v1 = vld [vmem:[%s12518_s1 + $0xff8] ss:$24 sps:$4 sm:$0xff]   ;;  %v9009_v23 = vld [vmem:[%s12518_s1 + $0x102c] ss:$24 sps:$4 sm:$0xff]   ;;  %v9007_v60 = vld [vmem:[%s12518_s1 + $0x1028] ss:$24 sps:$4 sm:$0xff]  }
 0x226   :  { %v9004_v2 = vld [vmem:[%s12518_s1 + $0xd00] ss:$24 sps:$4 sm:$0xff]   ;;  %v9012_v59 = vld [vmem:[%s12518_s1 + $0xd34] ss:$24 sps:$4 sm:$0xff]   ;;  %v9010_v5 = vld [vmem:[%s12518_s1 + $0xd30] ss:$24 sps:$4 sm:$0xff]  }
 0x227   :  { %6154 = vmatpush1.bf16.msra.mxu1 %v8929_v7  ;;  %v9015_v24 = vld [vmem:[%s12518_s1 + $0x105c] ss:$24 sps:$4 sm:$0xff]   ;;  %v9013_v28 = vld [vmem:[%s12518_s1 + $0x1058] ss:$24 sps:$4 sm:$0xff]   ;;  %v9021_v63 = vld [vmem:[%s12518_s1 + $0x108c] ss:$24 sps:$4 sm:$0xff]  }
 0x228   :  { %6578 = vmatpush1.bf16.msra.mxu0 %v8932_v56  ;;  %6155 = vmatprep.subr.bf16.mxu1 %v8937_v9  ;;  %v9018_v25 = vld [vmem:[%s12518_s1 + $0xd64] ss:$24 sps:$4 sm:$0xff]   ;;  %v9016_v6 = vld [vmem:[%s12518_s1 + $0xd60] ss:$24 sps:$4 sm:$0xff]   ;;  %v9024_v7 = vld [vmem:[%s12518_s1 + $0xd94] ss:$24 sps:$4 sm:$0xff]  }
 0x229   :  { %6579 = vmatprep.subr.bf16.mxu0 %v8940_v10  ;;  %v9019_v56 = vld [vmem:[%s12518_s1 + $0x1088] ss:$24 sps:$4 sm:$0xff]   ;;  %v9027_v10 = vld [vmem:[%s12518_s1 + $0x10bc] ss:$24 sps:$4 sm:$0xff]  }
 0x22a   :  { %v9022_v9 = vld [vmem:[%s12518_s1 + $0xd90] ss:$24 sps:$4 sm:$0xff]  }
 0x22b   :  { %6156 = vmatpush1.bf16.msra.mxu1 %v8935_v15  ;;  %v9030_v15 = vld [vmem:[%s12518_s1 + $0xdc4] ss:$24 sps:$4 sm:$0xff]  }
 0x22c   :  { %6580 = vmatpush1.bf16.msra.mxu0 %v8938_v61  ;;  %6157 = vmatprep.subr.bf16.mxu1 %v8943_v18  ;;  %v9025_v61 = vld [vmem:[%s12518_s1 + $0x10b8] ss:$24 sps:$4 sm:$0xff]  }
 0x22d   :  { %6581 = vmatprep.subr.bf16.mxu0 %v8946_v19  ;;  %v9028_v18 = vld [vmem:[%s12518_s1 + $0xdc0] ss:$24 sps:$4 sm:$0xff]   ;;  %v9033_v19 = vld [vmem:[%s12518_s1 + $0x10ec] ss:$24 sps:$4 sm:$0xff]  }
 0x22f   :  { %6158 = vmatpush1.bf16.msra.mxu1 %v8941_v20  ;;  %v9036_v20 = vld [vmem:[%s12518_s1 + $0xdf4] ss:$24 sps:$4 sm:$0xff]  }
 0x230   :  { %6582 = vmatpush1.bf16.msra.mxu0 %v8944_v21  ;;  %6159 = vmatprep.subr.bf16.mxu1 %v8949_v0  ;;  %v9031_v21 = vld [vmem:[%s12518_s1 + $0x10e8] ss:$24 sps:$4 sm:$0xff]  }
 0x231   :  { %6583 = vmatprep.subr.bf16.mxu0 %v8952_v22  ;;  %v9034_v0 = vld [vmem:[%s12518_s1 + $0xdf0] ss:$24 sps:$4 sm:$0xff]   ;;  %v9039_v22 = vld [vmem:[%s12518_s1 + $0x111c] ss:$24 sps:$4 sm:$0xff]  }
 0x233   :  { %6160 = vmatpush1.bf16.msra.mxu1 %v8947_v26  ;;  %v9042_v26 = vld [vmem:[%s12518_s1 + $0xe24] ss:$24 sps:$4 sm:$0xff]  }
 0x234   :  { %6584 = vmatpush1.bf16.msra.mxu0 %v8950_v29  ;;  %6161 = vmatprep.subr.bf16.mxu1 %v8955_v30  ;;  %v9037_v29 = vld [vmem:[%s12518_s1 + $0x1118] ss:$24 sps:$4 sm:$0xff]  }
 0x235   :  { %6585 = vmatprep.subr.bf16.mxu0 %v8958_v31  ;;  %v9040_v30 = vld [vmem:[%s12518_s1 + $0xe20] ss:$24 sps:$4 sm:$0xff]   ;;  %v9045_v31 = vld [vmem:[%s12518_s1 + $0x114c] ss:$24 sps:$4 sm:$0xff]  }
 0x237   :  { %6162 = vmatpush1.bf16.msra.mxu1 %v8953_v32  ;;  %v9048_v32 = vld [vmem:[%s12518_s1 + $0xe54] ss:$24 sps:$4 sm:$0xff]  }
 0x238   :  { %6586 = vmatpush1.bf16.msra.mxu0 %v8956_v3  ;;  %6163 = vmatprep.subr.bf16.mxu1 %v8961_v33  ;;  %v9043_v3 = vld [vmem:[%s12518_s1 + $0x1148] ss:$24 sps:$4 sm:$0xff]  }
 0x239   :  { %6587 = vmatprep.subr.bf16.mxu0 %v8964_v34  ;;  %v9046_v33 = vld [vmem:[%s12518_s1 + $0xe50] ss:$24 sps:$4 sm:$0xff]   ;;  %v9051_v34 = vld [vmem:[%s12518_s1 + $0x117c] ss:$24 sps:$4 sm:$0xff]  }
 0x23b   :  { %6164 = vmatpush1.bf16.msra.mxu1 %v8959_v35  ;;  %v9054_v35 = vld [vmem:[%s12518_s1 + $0xe84] ss:$24 sps:$4 sm:$0xff]  }
 0x23c   :  { %6588 = vmatpush1.bf16.msra.mxu0 %v8962_v36  ;;  %6165 = vmatprep.subr.bf16.mxu1 %v8967_v37  ;;  %v9049_v36 = vld [vmem:[%s12518_s1 + $0x1178] ss:$24 sps:$4 sm:$0xff]  }
 0x23d   :  { %6589 = vmatprep.subr.bf16.mxu0 %v8970_v38  ;;  %v9052_v37 = vld [vmem:[%s12518_s1 + $0xe80] ss:$24 sps:$4 sm:$0xff]   ;;  %v9057_v38 = vld [vmem:[%s12518_s1 + $0x11ac] ss:$24 sps:$4 sm:$0xff]  }
 0x23f   :  { %6166 = vmatpush1.bf16.msra.mxu1 %v8965_v39  ;;  %v9060_v39 = vld [vmem:[%s12518_s1 + $0xeb4] ss:$24 sps:$4 sm:$0xff]  }
 0x240   :  { %6590 = vmatpush1.bf16.msra.mxu0 %v8968_v40  ;;  %6188 = vmatprep.subr.bf16.mxu1 %v8973_v41  ;;  %v9055_v40 = vld [vmem:[%s12518_s1 + $0x11a8] ss:$24 sps:$4 sm:$0xff]  }
 0x241   :  { %6612 = vmatprep.subr.bf16.mxu0 %v8976_v43  ;;  %v9058_v41 = vld [vmem:[%s12518_s1 + $0xeb0] ss:$24 sps:$4 sm:$0xff]   ;;  %v9063_v43 = vld [vmem:[%s12518_s1 + $0x11dc] ss:$24 sps:$4 sm:$0xff]  }
 0x242   :  { %6168 = vmatmul.mubr.bf16.vlgmr.msra.gmra.mrb[8].mxu1 %v11487_v47 }
 0x243   :  { %6592 = vmatmul.mubr.bf16.vlgmr.msra.gmra.mrb[8].mxu0 %v11228_v4  ;;  %6189 = vmatpush1.bf16.msra.mxu1 %v8971_v44  ;;  %v8988_v4 = vld [vmem:[%s12518_s1 + $0xc74] ss:$24 sps:$4 sm:$0xff]   ;;  %v9066_v44 = vld [vmem:[%s12518_s1 + $0xee4] ss:$24 sps:$4 sm:$0xff]  }
 0x244   :  { %6613 = vmatpush1.bf16.msra.mxu0 %v8974_v45  ;;  %6190 = vmatprep.subr.bf16.mxu1 %v8979_v11  ;;  %v9061_v45 = vld [vmem:[%s12518_s1 + $0x11d8] ss:$24 sps:$4 sm:$0xff]  }
 0x245   :  { %6614 = vmatprep.subr.bf16.mxu0 %v8982_v46  ;;  %6177 = vmatprep.mubr.bf16.mxu1 %v11506_v16  ;;  %v9064_v11 = vld [vmem:[%s12518_s1 + $0xee0] ss:$24 sps:$4 sm:$0xff]   ;;  %v9069_v46 = vld [vmem:[%s12518_s1 + $0x120c] ss:$24 sps:$4 sm:$0xff]  }
 0x246   :  { %6601 = vmatprep.mubr.bf16.mxu0 %v11247_v8  ;;  %v8994_v8 = vld [vmem:[%s12518_s1 + $0xca4] ss:$24 sps:$4 sm:$0xff]  }
 0x247   :  { %6191 = vmatpush1.bf16.msra.mxu1 %v8977_v50  ;;  %v9072_v50 = vld [vmem:[%s12518_s1 + $0xf14] ss:$24 sps:$4 sm:$0xff]  }
 0x248   :  { %6615 = vmatpush1.bf16.msra.mxu0 %v8980_v12  ;;  %6192 = vmatprep.subr.bf16.mxu1 %v8985_v13  ;;  %v9067_v12 = vld [vmem:[%s12518_s1 + $0x1208] ss:$24 sps:$4 sm:$0xff]  }
 0x249   :  { %6616 = vmatprep.subr.bf16.mxu0 %v8988_v4  ;;  %v9070_v13 = vld [vmem:[%s12518_s1 + $0xf10] ss:$24 sps:$4 sm:$0xff]   ;;  %v9075_v4 = vld [vmem:[%s12518_s1 + $0x123c] ss:$24 sps:$4 sm:$0xff]  }
 0x24a   :  { %6178 = vmatmul.mubr.bf16.gmra.mrb[12].mxu1 %v11525_v57 }
 0x24b   :  { %6602 = vmatmul.mubr.bf16.gmra.mrb[12].mxu0 %v11268_v17  ;;  %6193 = vmatpush1.bf16.msra.mxu1 %v8983_v52  ;;  %v9000_v17 = vld [vmem:[%s12518_s1 + $0xcd4] ss:$24 sps:$4 sm:$0xff]   ;;  %v9078_v52 = vld [vmem:[%s12518_s1 + $0xf44] ss:$24 sps:$4 sm:$0xff]  }
 0x24c   :  { %6617 = vmatpush1.bf16.msra.mxu0 %v8986_v53  ;;  %6194 = vmatprep.subr.bf16.mxu1 %v8991_v42  ;;  %v11707_v53 = vld [vmem:[%s12519_s0 + $0x28] ss:$72 sps:$4 sm:$0xff]  }
 0x24d   :  { %6618 = vmatprep.subr.bf16.mxu0 %v8994_v8  ;;  %6220 = vmatprep.mubr.bf16.mxu1 %v11544_v62  ;;  %v9073_v42 = vld [vmem:[%s12518_s1 + $0x1238] ss:$24 sps:$4 sm:$0xff]  }
 0x24e   :  { %6644 = vmatprep.mubr.bf16.mxu0 %v11292_v27  ;;  %v9006_v27 = vld [vmem:[%s12518_s1 + $0xd04] ss:$24 sps:$4 sm:$0xff]   ;;  %v9076_v8 = vld [vmem:[%s12518_s1 + $0xf40] ss:$24 sps:$4 sm:$0xff]  }
 0x24f   :  { %6195 = vmatpush1.bf16.msra.mxu1 %v8989_v58  ;;  %v9081_v58 = vld [vmem:[%s12518_s1 + $0x126c] ss:$24 sps:$4 sm:$0xff]  }
 0x250   :  { %6619 = vmatpush1.bf16.msra.mxu0 %v8992_v48  ;;  %6196 = vmatprep.subr.bf16.mxu1 %v8997_v49  ;;  %v11726_v48 = vld [vmem:[%s12519_s0 + $0xbc] ss:$72 sps:$4 sm:$0xff]   ;;  %v9079_v49 = vld [vmem:[%s12518_s1 + $0x1268] ss:$24 sps:$4 sm:$0xff]  }
 0x251   :  { %6620 = vmatprep.subr.bf16.mxu0 %v9000_v17  ;;  %v9082_v17 = vld [vmem:[%s12518_s1 + $0xf70] ss:$24 sps:$4 sm:$0xff]  }
 0x253   :  { %6197 = vmatpush1.bf16.msra.mxu1 %v8995_v51  ;;  %v9087_v51 = vld [vmem:[%s12518_s1 + $0x129c] ss:$24 sps:$4 sm:$0xff]  }
 0x254   :  { %6621 = vmatpush1.bf16.msra.mxu0 %v8998_v54  ;;  %6198 = vmatprep.subr.bf16.mxu1 %v9003_v55  ;;  %v11745_v54 = vld [vmem:[%s12519_s0 + $0xb8] ss:$72 sps:$4 sm:$0xff]  }
 0x255   :  { %6622 = vmatprep.subr.bf16.mxu0 %v9006_v27  ;;  %v9085_v55 = vld [vmem:[%s12518_s1 + $0x1298] ss:$24 sps:$4 sm:$0xff]  }
 0x256   :  { %v9088_v27 = vld [vmem:[%s12518_s1 + $0xfa0] ss:$24 sps:$4 sm:$0xff]  }
 0x257   :  { %6199 = vmatpush1.bf16.msra.mxu1 %v9001_v1  ;;  %v9093_v1 = vld [vmem:[%s12518_s1 + $0x12cc] ss:$24 sps:$4 sm:$0xff]  }
 0x258   :  { %6623 = vmatpush1.bf16.msra.mxu0 %v9004_v2  ;;  %6200 = vmatprep.subr.bf16.mxu1 %v9009_v23  ;;  %v11764_v2 = vld [vmem:[%s12519_s0 + $0x34] ss:$72 sps:$4 sm:$0xff]   ;;  %v9091_v23 = vld [vmem:[%s12518_s1 + $0x12c8] ss:$24 sps:$4 sm:$0xff]  }
 0x259   :  { %6624 = vmatprep.subr.bf16.mxu0 %v9012_v59  ;;  %v9094_v59 = vld [vmem:[%s12518_s1 + $0xfd0] ss:$24 sps:$4 sm:$0xff]  }
 0x25b   :  { %6201 = vmatpush1.bf16.msra.mxu1 %v9007_v60  ;;  %v9099_v60 = vld [vmem:[%s12518_s1 + $0x12fc] ss:$24 sps:$4 sm:$0xff]  }
 0x25c   :  { %6625 = vmatpush1.bf16.msra.mxu0 %v9010_v5  ;;  %6202 = vmatprep.subr.bf16.mxu1 %v9015_v24  ;;  %v9097_v5 = vld [vmem:[%s12518_s1 + $0x12f8] ss:$24 sps:$4 sm:$0xff]  }
 0x25d   :  { %6626 = vmatprep.subr.bf16.mxu0 %v9018_v25  ;;  %v9100_v24 = vld [vmem:[%s12518_s1 + $0x1000] ss:$24 sps:$4 sm:$0xff]   ;;  %v9105_v25 = vld [vmem:[%s12518_s1 + $0x132c] ss:$24 sps:$4 sm:$0xff]  }
 0x25f   :  { %6203 = vmatpush1.bf16.msra.mxu1 %v9013_v28  ;;  %v9108_v28 = vld [vmem:[%s12518_s1 + $0x1034] ss:$24 sps:$4 sm:$0xff]  }
 0x260   :  { %6627 = vmatpush1.bf16.msra.mxu0 %v9016_v6  ;;  %6204 = vmatprep.subr.bf16.mxu1 %v9021_v63  ;;  %v9103_v6 = vld [vmem:[%s12518_s1 + $0x1328] ss:$24 sps:$4 sm:$0xff]  }
 0x261   :  { %6628 = vmatprep.subr.bf16.mxu0 %v9024_v7  ;;  %v9106_v63 = vld [vmem:[%s12518_s1 + $0x1030] ss:$24 sps:$4 sm:$0xff]   ;;  %v9111_v7 = vld [vmem:[%s12518_s1 + $0x135c] ss:$24 sps:$4 sm:$0xff]  }
 0x263   :  { %6205 = vmatpush1.bf16.msra.mxu1 %v9019_v56  ;;  %v9114_v56 = vld [vmem:[%s12518_s1 + $0x1064] ss:$24 sps:$4 sm:$0xff]  }
 0x264   :  { %6629 = vmatpush1.bf16.msra.mxu0 %v9022_v9  ;;  %6206 = vmatprep.subr.bf16.mxu1 %v9027_v10  ;;  %v9109_v9 = vld [vmem:[%s12518_s1 + $0x1358] ss:$24 sps:$4 sm:$0xff]  }
 0x265   :  { %6630 = vmatprep.subr.bf16.mxu0 %v9030_v15  ;;  %v9112_v10 = vld [vmem:[%s12518_s1 + $0x1060] ss:$24 sps:$4 sm:$0xff]   ;;  %v9117_v15 = vld [vmem:[%s12518_s1 + $0x138c] ss:$24 sps:$4 sm:$0xff]  }
 0x267   :  { %6207 = vmatpush1.bf16.msra.mxu1 %v9025_v61  ;;  %v9120_v61 = vld [vmem:[%s12518_s1 + $0x1094] ss:$24 sps:$4 sm:$0xff]  }
 0x268   :  { %6631 = vmatpush1.bf16.msra.mxu0 %v9028_v18  ;;  %6208 = vmatprep.subr.bf16.mxu1 %v9033_v19  ;;  %v9115_v18 = vld [vmem:[%s12518_s1 + $0x1388] ss:$24 sps:$4 sm:$0xff]  }
 0x269   :  { %6632 = vmatprep.subr.bf16.mxu0 %v9036_v20  ;;  %v9118_v19 = vld [vmem:[%s12518_s1 + $0x1090] ss:$24 sps:$4 sm:$0xff]   ;;  %v9123_v20 = vld [vmem:[%s12518_s1 + $0x13bc] ss:$24 sps:$4 sm:$0xff]  }
 0x26b   :  { %6209 = vmatpush1.bf16.msra.mxu1 %v9031_v21  ;;  %v9126_v21 = vld [vmem:[%s12518_s1 + $0x10c4] ss:$24 sps:$4 sm:$0xff]  }
 0x26c   :  { %6633 = vmatpush1.bf16.msra.mxu0 %v9034_v0  ;;  %6210 = vmatprep.subr.bf16.mxu1 %v9039_v22  ;;  %v9121_v0 = vld [vmem:[%s12518_s1 + $0x13b8] ss:$24 sps:$4 sm:$0xff]  }
 0x26d   :  { %6634 = vmatprep.subr.bf16.mxu0 %v9042_v26  ;;  %v9124_v22 = vld [vmem:[%s12518_s1 + $0x10c0] ss:$24 sps:$4 sm:$0xff]   ;;  %v9129_v26 = vld [vmem:[%s12518_s1 + $0x13ec] ss:$24 sps:$4 sm:$0xff]  }
 0x26f   :  { %6211 = vmatpush1.bf16.msra.mxu1 %v9037_v29  ;;  %v9132_v29 = vld [vmem:[%s12518_s1 + $0x10f4] ss:$24 sps:$4 sm:$0xff]  }
 0x270   :  { %6635 = vmatpush1.bf16.msra.mxu0 %v9040_v30  ;;  %6212 = vmatprep.subr.bf16.mxu1 %v9045_v31  ;;  %v9127_v30 = vld [vmem:[%s12518_s1 + $0x13e8] ss:$24 sps:$4 sm:$0xff]  }
 0x271   :  { %6636 = vmatprep.subr.bf16.mxu0 %v9048_v32  ;;  %v9130_v31 = vld [vmem:[%s12518_s1 + $0x10f0] ss:$24 sps:$4 sm:$0xff]   ;;  %v9135_v32 = vld [vmem:[%s12518_s1 + $0x141c] ss:$24 sps:$4 sm:$0xff]  }
 0x273   :  { %6213 = vmatpush1.bf16.msra.mxu1 %v9043_v3  ;;  %v9138_v3 = vld [vmem:[%s12518_s1 + $0x1124] ss:$24 sps:$4 sm:$0xff]  }
 0x274   :  { %6637 = vmatpush1.bf16.msra.mxu0 %v9046_v33  ;;  %6214 = vmatprep.subr.bf16.mxu1 %v9051_v34  ;;  %v9133_v33 = vld [vmem:[%s12518_s1 + $0x1418] ss:$24 sps:$4 sm:$0xff]  }
 0x275   :  { %6638 = vmatprep.subr.bf16.mxu0 %v9054_v35  ;;  %v9136_v34 = vld [vmem:[%s12518_s1 + $0x1120] ss:$24 sps:$4 sm:$0xff]   ;;  %v9141_v35 = vld [vmem:[%s12518_s1 + $0x144c] ss:$24 sps:$4 sm:$0xff]  }
 0x277   :  { %6215 = vmatpush1.bf16.msra.mxu1 %v9049_v36  ;;  %v9144_v36 = vld [vmem:[%s12518_s1 + $0x1154] ss:$24 sps:$4 sm:$0xff]  }
 0x278   :  { %6639 = vmatpush1.bf16.msra.mxu0 %v9052_v37  ;;  %6216 = vmatprep.subr.bf16.mxu1 %v9057_v38  ;;  %v9139_v37 = vld [vmem:[%s12518_s1 + $0x1448] ss:$24 sps:$4 sm:$0xff]  }
 0x279   :  { %6640 = vmatprep.subr.bf16.mxu0 %v9060_v39  ;;  %v9142_v38 = vld [vmem:[%s12518_s1 + $0x1150] ss:$24 sps:$4 sm:$0xff]   ;;  %v9147_v39 = vld [vmem:[%s12518_s1 + $0x147c] ss:$24 sps:$4 sm:$0xff]  }
 0x27b   :  { %6217 = vmatpush1.bf16.msra.mxu1 %v9055_v40  ;;  %v9150_v40 = vld [vmem:[%s12518_s1 + $0x1184] ss:$24 sps:$4 sm:$0xff]  }
 0x27c   :  { %6641 = vmatpush1.bf16.msra.mxu0 %v9058_v41  ;;  %6218 = vmatprep.subr.bf16.mxu1 %v9063_v43  ;;  %v9145_v41 = vld [vmem:[%s12518_s1 + $0x1478] ss:$24 sps:$4 sm:$0xff]  }
 0x27d   :  { %6642 = vmatprep.subr.bf16.mxu0 %v9066_v44  ;;  %v9148_v43 = vld [vmem:[%s12518_s1 + $0x1180] ss:$24 sps:$4 sm:$0xff]   ;;  %v9153_v44 = vld [vmem:[%s12518_s1 + $0x14ac] ss:$24 sps:$4 sm:$0xff]  }
 0x27f   :  { %6219 = vmatpush1.bf16.msra.mxu1 %v9061_v45  ;;  %v9156_v45 = vld [vmem:[%s12518_s1 + $0x11b4] ss:$24 sps:$4 sm:$0xff]  }
 0x280   :  { %6643 = vmatpush1.bf16.msra.mxu0 %v9064_v11  ;;  %6241 = vmatprep.subr.bf16.mxu1 %v9069_v46  ;;  %v9151_v11 = vld [vmem:[%s12518_s1 + $0x14a8] ss:$24 sps:$4 sm:$0xff]  }
 0x281   :  { %6665 = vmatprep.subr.bf16.mxu0 %v9072_v50  ;;  %v9154_v46 = vld [vmem:[%s12518_s1 + $0x11b0] ss:$24 sps:$4 sm:$0xff]   ;;  %v9159_v50 = vld [vmem:[%s12518_s1 + $0x14dc] ss:$24 sps:$4 sm:$0xff]  }
 0x282   :  { %6221 = vmatmul.mubr.bf16.vlgmr.msra.gmra.mrb[8].mxu1 %v11707_v53 }
 0x283   :  { %6645 = vmatmul.mubr.bf16.vlgmr.msra.gmra.mrb[8].mxu0 %v11487_v47  ;;  %6242 = vmatpush1.bf16.msra.mxu1 %v9067_v12  ;;  %v9084_v47 = vld [vmem:[%s12518_s1 + $0xf74] ss:$24 sps:$4 sm:$0xff]   ;;  %v9162_v12 = vld [vmem:[%s12518_s1 + $0x11e4] ss:$24 sps:$4 sm:$0xff]  }
 0x284   :  { %6666 = vmatpush1.bf16.msra.mxu0 %v9070_v13  ;;  %6243 = vmatprep.subr.bf16.mxu1 %v9075_v4  ;;  %v9157_v13 = vld [vmem:[%s12518_s1 + $0x14d8] ss:$24 sps:$4 sm:$0xff]  }
 0x285   :  { %6667 = vmatprep.subr.bf16.mxu0 %v9078_v52  ;;  %6230 = vmatprep.mubr.bf16.mxu1 %v11726_v48  ;;  %v9160_v4 = vld [vmem:[%s12518_s1 + $0x11e0] ss:$24 sps:$4 sm:$0xff]   ;;  %v9165_v52 = vld [vmem:[%s12518_s1 + $0x150c] ss:$24 sps:$4 sm:$0xff]  }
 0x286   :  { %6654 = vmatprep.mubr.bf16.mxu0 %v11506_v16  ;;  %v9090_v16 = vld [vmem:[%s12518_s1 + $0xfa4] ss:$24 sps:$4 sm:$0xff]  }
 0x287   :  { %6244 = vmatpush1.bf16.msra.mxu1 %v9073_v42  ;;  %v9168_v42 = vld [vmem:[%s12518_s1 + $0x1214] ss:$24 sps:$4 sm:$0xff]  }
 0x288   :  { %6668 = vmatpush1.bf16.msra.mxu0 %v9076_v8  ;;  %6245 = vmatprep.subr.bf16.mxu1 %v9081_v58  ;;  %v9163_v8 = vld [vmem:[%s12518_s1 + $0x1508] ss:$24 sps:$4 sm:$0xff]  }
 0x289   :  { %6669 = vmatprep.subr.bf16.mxu0 %v9084_v47  ;;  %v9166_v58 = vld [vmem:[%s12518_s1 + $0x1210] ss:$24 sps:$4 sm:$0xff]   ;;  %v9171_v47 = vld [vmem:[%s12518_s1 + $0x153c] ss:$24 sps:$4 sm:$0xff]  }
 0x28a   :  { %6231 = vmatmul.mubr.bf16.gmra.mrb[12].mxu1 %v11745_v54 }
 0x28b   :  { %6655 = vmatmul.mubr.bf16.gmra.mrb[12].mxu0 %v11525_v57  ;;  %6246 = vmatpush1.bf16.msra.mxu1 %v9079_v49  ;;  %v9096_v57 = vld [vmem:[%s12518_s1 + $0xfd4] ss:$24 sps:$4 sm:$0xff]   ;;  %v9174_v49 = vld [vmem:[%s12518_s1 + $0x1244] ss:$24 sps:$4 sm:$0xff]  }
 0x28c   :  { %6670 = vmatpush1.bf16.msra.mxu0 %v9082_v17  ;;  %6247 = vmatprep.subr.bf16.mxu1 %v9087_v51  ;;  %v11927_v17 = vld [vmem:[%s12519_s0 + $0x30] ss:$72 sps:$4 sm:$0xff]  }
 0x28d   :  { %6671 = vmatprep.subr.bf16.mxu0 %v9090_v16  ;;  %6273 = vmatprep.mubr.bf16.mxu1 %v11764_v2  ;;  %v9169_v51 = vld [vmem:[%s12518_s1 + $0x1538] ss:$24 sps:$4 sm:$0xff]  }
 0x28e   :  { %6697 = vmatprep.mubr.bf16.mxu0 %v11544_v62  ;;  %v9102_v62 = vld [vmem:[%s12518_s1 + $0x1004] ss:$24 sps:$4 sm:$0xff]   ;;  %v9172_v16 = vld [vmem:[%s12518_s1 + $0x1240] ss:$24 sps:$4 sm:$0xff]  }
 0x28f   :  { %6248 = vmatpush1.bf16.msra.mxu1 %v9085_v55  ;;  %v9177_v55 = vld [vmem:[%s12518_s1 + $0x156c] ss:$24 sps:$4 sm:$0xff]  }
 0x290   :  { %6672 = vmatpush1.bf16.msra.mxu0 %v9088_v27  ;;  %6249 = vmatprep.subr.bf16.mxu1 %v9093_v1  ;;  %v11946_v27 = vld [vmem:[%s12519_s0 + $0xc4] ss:$72 sps:$4 sm:$0xff]   ;;  %v9175_v1 = vld [vmem:[%s12518_s1 + $0x1568] ss:$24 sps:$4 sm:$0xff]  }
 0x291   :  { %6673 = vmatprep.subr.bf16.mxu0 %v9096_v57  ;;  %v9178_v57 = vld [vmem:[%s12518_s1 + $0x1270] ss:$24 sps:$4 sm:$0xff]  }
 0x293   :  { %6250 = vmatpush1.bf16.msra.mxu1 %v9091_v23  ;;  %v9183_v23 = vld [vmem:[%s12518_s1 + $0x159c] ss:$24 sps:$4 sm:$0xff]  }
 0x294   :  { %6674 = vmatpush1.bf16.msra.mxu0 %v9094_v59  ;;  %6251 = vmatprep.subr.bf16.mxu1 %v9099_v60  ;;  %v11965_v59 = vld [vmem:[%s12519_s0 + $0xc0] ss:$72 sps:$4 sm:$0xff]   ;;  %v9181_v60 = vld [vmem:[%s12518_s1 + $0x1598] ss:$24 sps:$4 sm:$0xff]  }
 0x295   :  { %6675 = vmatprep.subr.bf16.mxu0 %v9102_v62  ;;  %v9184_v62 = vld [vmem:[%s12518_s1 + $0x12a0] ss:$24 sps:$4 sm:$0xff]  }
 0x297   :  { %6252 = vmatpush1.bf16.msra.mxu1 %v9097_v5  ;;  %v9189_v5 = vld [vmem:[%s12518_s1 + $0x15cc] ss:$24 sps:$4 sm:$0xff]  }
 0x298   :  { %6676 = vmatpush1.bf16.msra.mxu0 %v9100_v24  ;;  %6253 = vmatprep.subr.bf16.mxu1 %v9105_v25  ;;  %v11984_v24 = vld [vmem:[%s12519_s0 + $0x3c] ss:$72 sps:$4 sm:$0xff]   ;;  %v9187_v25 = vld [vmem:[%s12518_s1 + $0x15c8] ss:$24 sps:$4 sm:$0xff]  }
 0x299   :  { %6677 = vmatprep.subr.bf16.mxu0 %v9108_v28  ;;  %v9190_v28 = vld [vmem:[%s12518_s1 + $0x12d0] ss:$24 sps:$4 sm:$0xff]  }
 0x29b   :  { %6254 = vmatpush1.bf16.msra.mxu1 %v9103_v6  ;;  %v9195_v6 = vld [vmem:[%s12518_s1 + $0x15fc] ss:$24 sps:$4 sm:$0xff]  }
 0x29c   :  { %6678 = vmatpush1.bf16.msra.mxu0 %v9106_v63  ;;  %6255 = vmatprep.subr.bf16.mxu1 %v9111_v7  ;;  %v9193_v63 = vld [vmem:[%s12518_s1 + $0x15f8] ss:$24 sps:$4 sm:$0xff]  }
 0x29d   :  { %6679 = vmatprep.subr.bf16.mxu0 %v9114_v56  ;;  %v9196_v7 = vld [vmem:[%s12518_s1 + $0x1300] ss:$24 sps:$4 sm:$0xff]   ;;  %v9201_v56 = vld [vmem:[%s12518_s1 + $0x162c] ss:$24 sps:$4 sm:$0xff]  }
 0x29f   :  { %6256 = vmatpush1.bf16.msra.mxu1 %v9109_v9  ;;  %v9204_v9 = vld [vmem:[%s12518_s1 + $0x1334] ss:$24 sps:$4 sm:$0xff]  }
 0x2a0   :  { %6680 = vmatpush1.bf16.msra.mxu0 %v9112_v10  ;;  %6257 = vmatprep.subr.bf16.mxu1 %v9117_v15  ;;  %v9199_v10 = vld [vmem:[%s12518_s1 + $0x1628] ss:$24 sps:$4 sm:$0xff]  }
 0x2a1   :  { %6681 = vmatprep.subr.bf16.mxu0 %v9120_v61  ;;  %v9202_v15 = vld [vmem:[%s12518_s1 + $0x1330] ss:$24 sps:$4 sm:$0xff]   ;;  %v9207_v61 = vld [vmem:[%s12518_s1 + $0x165c] ss:$24 sps:$4 sm:$0xff]  }
 0x2a3   :  { %6258 = vmatpush1.bf16.msra.mxu1 %v9115_v18  ;;  %v9210_v18 = vld [vmem:[%s12518_s1 + $0x1364] ss:$24 sps:$4 sm:$0xff]  }
 0x2a4   :  { %6682 = vmatpush1.bf16.msra.mxu0 %v9118_v19  ;;  %6259 = vmatprep.subr.bf16.mxu1 %v9123_v20  ;;  %v9205_v19 = vld [vmem:[%s12518_s1 + $0x1658] ss:$24 sps:$4 sm:$0xff]  }
 0x2a5   :  { %6683 = vmatprep.subr.bf16.mxu0 %v9126_v21  ;;  %v9208_v20 = vld [vmem:[%s12518_s1 + $0x1360] ss:$24 sps:$4 sm:$0xff]   ;;  %v9213_v21 = vld [vmem:[%s12518_s1 + $0x168c] ss:$24 sps:$4 sm:$0xff]  }
 0x2a7   :  { %6260 = vmatpush1.bf16.msra.mxu1 %v9121_v0  ;;  %v9216_v0 = vld [vmem:[%s12518_s1 + $0x1394] ss:$24 sps:$4 sm:$0xff]  }
 0x2a8   :  { %6684 = vmatpush1.bf16.msra.mxu0 %v9124_v22  ;;  %6261 = vmatprep.subr.bf16.mxu1 %v9129_v26  ;;  %v9211_v22 = vld [vmem:[%s12518_s1 + $0x1688] ss:$24 sps:$4 sm:$0xff]  }
 0x2a9   :  { %6685 = vmatprep.subr.bf16.mxu0 %v9132_v29  ;;  %v9214_v26 = vld [vmem:[%s12518_s1 + $0x1390] ss:$24 sps:$4 sm:$0xff]   ;;  %v9219_v29 = vld [vmem:[%s12518_s1 + $0x16bc] ss:$24 sps:$4 sm:$0xff]  }
 0x2ab   :  { %6262 = vmatpush1.bf16.msra.mxu1 %v9127_v30  ;;  %v9222_v30 = vld [vmem:[%s12518_s1 + $0x13c4] ss:$24 sps:$4 sm:$0xff]  }
 0x2ac   :  { %6686 = vmatpush1.bf16.msra.mxu0 %v9130_v31  ;;  %6263 = vmatprep.subr.bf16.mxu1 %v9135_v32  ;;  %v9217_v31 = vld [vmem:[%s12518_s1 + $0x16b8] ss:$24 sps:$4 sm:$0xff]  }
 0x2ad   :  { %6687 = vmatprep.subr.bf16.mxu0 %v9138_v3  ;;  %v9220_v32 = vld [vmem:[%s12518_s1 + $0x13c0] ss:$24 sps:$4 sm:$0xff]   ;;  %v9225_v3 = vld [vmem:[%s12518_s1 + $0x16ec] ss:$24 sps:$4 sm:$0xff]  }
 0x2af   :  { %6264 = vmatpush1.bf16.msra.mxu1 %v9133_v33  ;;  %v9228_v33 = vld [vmem:[%s12518_s1 + $0x13f4] ss:$24 sps:$4 sm:$0xff]  }
 0x2b0   :  { %6688 = vmatpush1.bf16.msra.mxu0 %v9136_v34  ;;  %6265 = vmatprep.subr.bf16.mxu1 %v9141_v35  ;;  %v9223_v34 = vld [vmem:[%s12518_s1 + $0x16e8] ss:$24 sps:$4 sm:$0xff]  }
 0x2b1   :  { %6689 = vmatprep.subr.bf16.mxu0 %v9144_v36  ;;  %v9226_v35 = vld [vmem:[%s12518_s1 + $0x13f0] ss:$24 sps:$4 sm:$0xff]   ;;  %v9231_v36 = vld [vmem:[%s12518_s1 + $0x171c] ss:$24 sps:$4 sm:$0xff]  }
 0x2b3   :  { %6266 = vmatpush1.bf16.msra.mxu1 %v9139_v37  ;;  %v9234_v37 = vld [vmem:[%s12518_s1 + $0x1424] ss:$24 sps:$4 sm:$0xff]  }
 0x2b4   :  { %6690 = vmatpush1.bf16.msra.mxu0 %v9142_v38  ;;  %6267 = vmatprep.subr.bf16.mxu1 %v9147_v39  ;;  %v9229_v38 = vld [vmem:[%s12518_s1 + $0x1718] ss:$24 sps:$4 sm:$0xff]  }
 0x2b5   :  { %6691 = vmatprep.subr.bf16.mxu0 %v9150_v40  ;;  %v9232_v39 = vld [vmem:[%s12518_s1 + $0x1420] ss:$24 sps:$4 sm:$0xff]   ;;  %v9237_v40 = vld [vmem:[%s12518_s1 + $0x174c] ss:$24 sps:$4 sm:$0xff]  }
 0x2b7   :  { %6268 = vmatpush1.bf16.msra.mxu1 %v9145_v41  ;;  %v9240_v41 = vld [vmem:[%s12518_s1 + $0x1454] ss:$24 sps:$4 sm:$0xff]  }
 0x2b8   :  { %6692 = vmatpush1.bf16.msra.mxu0 %v9148_v43  ;;  %6269 = vmatprep.subr.bf16.mxu1 %v9153_v44  ;;  %v9235_v43 = vld [vmem:[%s12518_s1 + $0x1748] ss:$24 sps:$4 sm:$0xff]  }
 0x2b9   :  { %6693 = vmatprep.subr.bf16.mxu0 %v9156_v45  ;;  %v9238_v44 = vld [vmem:[%s12518_s1 + $0x1450] ss:$24 sps:$4 sm:$0xff]   ;;  %v9243_v45 = vld [vmem:[%s12518_s1 + $0x177c] ss:$24 sps:$4 sm:$0xff]  }
 0x2bb   :  { %6270 = vmatpush1.bf16.msra.mxu1 %v9151_v11  ;;  %v9246_v11 = vld [vmem:[%s12518_s1 + $0x1484] ss:$24 sps:$4 sm:$0xff]  }
 0x2bc   :  { %6694 = vmatpush1.bf16.msra.mxu0 %v9154_v46  ;;  %6271 = vmatprep.subr.bf16.mxu1 %v9159_v50  ;;  %v9241_v46 = vld [vmem:[%s12518_s1 + $0x1778] ss:$24 sps:$4 sm:$0xff]  }
 0x2bd   :  { %6695 = vmatprep.subr.bf16.mxu0 %v9162_v12  ;;  %v9244_v50 = vld [vmem:[%s12518_s1 + $0x1480] ss:$24 sps:$4 sm:$0xff]   ;;  %v9249_v12 = vld [vmem:[%s12518_s1 + $0x17ac] ss:$24 sps:$4 sm:$0xff]  }
 0x2bf   :  { %6272 = vmatpush1.bf16.msra.mxu1 %v9157_v13  ;;  %v9252_v13 = vld [vmem:[%s12518_s1 + $0x14b4] ss:$24 sps:$4 sm:$0xff]  }
 0x2c0   :  { %6696 = vmatpush1.bf16.msra.mxu0 %v9160_v4  ;;  %6294 = vmatprep.subr.bf16.mxu1 %v9165_v52  ;;  %v9247_v4 = vld [vmem:[%s12518_s1 + $0x17a8] ss:$24 sps:$4 sm:$0xff]  }
 0x2c1   :  { %6718 = vmatprep.subr.bf16.mxu0 %v9168_v42  ;;  %v9250_v52 = vld [vmem:[%s12518_s1 + $0x14b0] ss:$24 sps:$4 sm:$0xff]   ;;  %v9255_v42 = vld [vmem:[%s12518_s1 + $0x17dc] ss:$24 sps:$4 sm:$0xff]  }
 0x2c2   :  { %6274 = vmatmul.mubr.bf16.vlgmr.msra.gmra.mrb[8].mxu1 %v11927_v17 }
 0x2c3   :  { %6698 = vmatmul.mubr.bf16.vlgmr.msra.gmra.mrb[8].mxu0 %v11707_v53  ;;  %6295 = vmatpush1.bf16.msra.mxu1 %v9163_v8  ;;  %v9180_v53 = vld [vmem:[%s12518_s1 + $0x1274] ss:$24 sps:$4 sm:$0xff]   ;;  %v9258_v8 = vld [vmem:[%s12518_s1 + $0x14e4] ss:$24 sps:$4 sm:$0xff]  }
 0x2c4   :  { %6719 = vmatpush1.bf16.msra.mxu0 %v9166_v58  ;;  %6296 = vmatprep.subr.bf16.mxu1 %v9171_v47  ;;  %v9253_v58 = vld [vmem:[%s12518_s1 + $0x17d8] ss:$24 sps:$4 sm:$0xff]  }
 0x2c5   :  { %6720 = vmatprep.subr.bf16.mxu0 %v9174_v49  ;;  %6283 = vmatprep.mubr.bf16.mxu1 %v11946_v27  ;;  %v9256_v47 = vld [vmem:[%s12518_s1 + $0x14e0] ss:$24 sps:$4 sm:$0xff]   ;;  %v9261_v49 = vld [vmem:[%s12518_s1 + $0x180c] ss:$24 sps:$4 sm:$0xff]  }
 0x2c6   :  { %6707 = vmatprep.mubr.bf16.mxu0 %v11726_v48  ;;  %v9186_v48 = vld [vmem:[%s12518_s1 + $0x12a4] ss:$24 sps:$4 sm:$0xff]  }
 0x2c7   :  { %6297 = vmatpush1.bf16.msra.mxu1 %v9169_v51  ;;  %v9264_v51 = vld [vmem:[%s12518_s1 + $0x1514] ss:$24 sps:$4 sm:$0xff]  }
 0x2c8   :  { %6721 = vmatpush1.bf16.msra.mxu0 %v9172_v16  ;;  %6298 = vmatprep.subr.bf16.mxu1 %v9177_v55  ;;  %v9259_v16 = vld [vmem:[%s12518_s1 + $0x1808] ss:$24 sps:$4 sm:$0xff]  }
 0x2c9   :  { %6722 = vmatprep.subr.bf16.mxu0 %v9180_v53  ;;  %v9262_v55 = vld [vmem:[%s12518_s1 + $0x1510] ss:$24 sps:$4 sm:$0xff]   ;;  %v9267_v53 = vld [vmem:[%s12518_s1 + $0x183c] ss:$24 sps:$4 sm:$0xff]  }
 0x2ca   :  { %6284 = vmatmul.mubr.bf16.gmra.mrb[12].mxu1 %v11965_v59 }
 0x2cb   :  { %6708 = vmatmul.mubr.bf16.gmra.mrb[12].mxu0 %v11745_v54  ;;  %6299 = vmatpush1.bf16.msra.mxu1 %v9175_v1  ;;  %v9192_v54 = vld [vmem:[%s12518_s1 + $0x12d4] ss:$24 sps:$4 sm:$0xff]   ;;  %v9270_v1 = vld [vmem:[%s12518_s1 + $0x1544] ss:$24 sps:$4 sm:$0xff]  }
 0x2cc   :  { %6723 = vmatpush1.bf16.msra.mxu0 %v9178_v57  ;;  %6300 = vmatprep.subr.bf16.mxu1 %v9183_v23  ;;  %v12147_v57 = vld [vmem:[%s12519_s0 + $0x38] ss:$72 sps:$4 sm:$0xff]  }
 0x2cd   :  { %6724 = vmatprep.subr.bf16.mxu0 %v9186_v48  ;;  %6326 = vmatprep.mubr.bf16.mxu1 %v11984_v24  ;;  %v9265_v23 = vld [vmem:[%s12518_s1 + $0x1838] ss:$24 sps:$4 sm:$0xff]  }
 0x2ce   :  { %6750 = vmatprep.mubr.bf16.mxu0 %v11764_v2  ;;  %v9198_v2 = vld [vmem:[%s12518_s1 + $0x1304] ss:$24 sps:$4 sm:$0xff]   ;;  %v9268_v48 = vld [vmem:[%s12518_s1 + $0x1540] ss:$24 sps:$4 sm:$0xff]  }
 0x2cf   :  { %6301 = vmatpush1.bf16.msra.mxu1 %v9181_v60  ;;  %v9273_v60 = vld [vmem:[%s12518_s1 + $0x186c] ss:$24 sps:$4 sm:$0xff]  }
 0x2d0   :  { %6725 = vmatpush1.bf16.msra.mxu0 %v9184_v62  ;;  %6302 = vmatprep.subr.bf16.mxu1 %v9189_v5  ;;  %v12166_v62 = vld [vmem:[%s12519_s0 + $0xcc] ss:$72 sps:$4 sm:$0xff]   ;;  %v9271_v5 = vld [vmem:[%s12518_s1 + $0x1868] ss:$24 sps:$4 sm:$0xff]  }
 0x2d1   :  { %6726 = vmatprep.subr.bf16.mxu0 %v9192_v54  ;;  %v9274_v54 = vld [vmem:[%s12518_s1 + $0x1570] ss:$24 sps:$4 sm:$0xff]  }
 0x2d3   :  { %6303 = vmatpush1.bf16.msra.mxu1 %v9187_v25  ;;  %v9279_v25 = vld [vmem:[%s12518_s1 + $0x189c] ss:$24 sps:$4 sm:$0xff]  }
 0x2d4   :  { %6727 = vmatpush1.bf16.msra.mxu0 %v9190_v28  ;;  %6304 = vmatprep.subr.bf16.mxu1 %v9195_v6  ;;  %v12185_v28 = vld [vmem:[%s12519_s0 + $0xc8] ss:$72 sps:$4 sm:$0xff]  }
 0x2d5   :  { %6728 = vmatprep.subr.bf16.mxu0 %v9198_v2  ;;  %v9277_v6 = vld [vmem:[%s12518_s1 + $0x1898] ss:$24 sps:$4 sm:$0xff]  }
 0x2d6   :  { %v9280_v2 = vld [vmem:[%s12518_s1 + $0x15a0] ss:$24 sps:$4 sm:$0xff]  }
 0x2d7   :  { %6305 = vmatpush1.bf16.msra.mxu1 %v9193_v63  ;;  %v9285_v63 = vld [vmem:[%s12518_s1 + $0x18cc] ss:$24 sps:$4 sm:$0xff]  }
 0x2d8   :  { %6729 = vmatpush1.bf16.msra.mxu0 %v9196_v7  ;;  %6306 = vmatprep.subr.bf16.mxu1 %v9201_v56  ;;  %v12204_v7 = vld [vmem:[%s12519_s0 + $0x44] ss:$72 sps:$4 sm:$0xff]   ;;  %v9283_v56 = vld [vmem:[%s12518_s1 + $0x18c8] ss:$24 sps:$4 sm:$0xff]  }
 0x2d9   :  { %6730 = vmatprep.subr.bf16.mxu0 %v9204_v9  ;;  %v9286_v9 = vld [vmem:[%s12518_s1 + $0x15d0] ss:$24 sps:$4 sm:$0xff]  }
 0x2db   :  { %6307 = vmatpush1.bf16.msra.mxu1 %v9199_v10  ;;  %v9291_v10 = vld [vmem:[%s12518_s1 + $0x18fc] ss:$24 sps:$4 sm:$0xff]  }
 0x2dc   :  { %6731 = vmatpush1.bf16.msra.mxu0 %v9202_v15  ;;  %6308 = vmatprep.subr.bf16.mxu1 %v9207_v61  ;;  %v9289_v15 = vld [vmem:[%s12518_s1 + $0x18f8] ss:$24 sps:$4 sm:$0xff]  }
 0x2dd   :  { %6732 = vmatprep.subr.bf16.mxu0 %v9210_v18  ;;  %v9292_v61 = vld [vmem:[%s12518_s1 + $0x1600] ss:$24 sps:$4 sm:$0xff]   ;;  %v9297_v18 = vld [vmem:[%s12518_s1 + $0x192c] ss:$24 sps:$4 sm:$0xff]  }
 0x2df   :  { %6309 = vmatpush1.bf16.msra.mxu1 %v9205_v19  ;;  %v9300_v19 = vld [vmem:[%s12518_s1 + $0x1634] ss:$24 sps:$4 sm:$0xff]  }
 0x2e0   :  { %6733 = vmatpush1.bf16.msra.mxu0 %v9208_v20  ;;  %6310 = vmatprep.subr.bf16.mxu1 %v9213_v21  ;;  %v9295_v20 = vld [vmem:[%s12518_s1 + $0x1928] ss:$24 sps:$4 sm:$0xff]  }
 0x2e1   :  { %6734 = vmatprep.subr.bf16.mxu0 %v9216_v0  ;;  %v9298_v21 = vld [vmem:[%s12518_s1 + $0x1630] ss:$24 sps:$4 sm:$0xff]   ;;  %v9303_v0 = vld [vmem:[%s12518_s1 + $0x195c] ss:$24 sps:$4 sm:$0xff]  }
 0x2e3   :  { %6311 = vmatpush1.bf16.msra.mxu1 %v9211_v22  ;;  %v9306_v22 = vld [vmem:[%s12518_s1 + $0x1664] ss:$24 sps:$4 sm:$0xff]  }
 0x2e4   :  { %6735 = vmatpush1.bf16.msra.mxu0 %v9214_v26  ;;  %6312 = vmatprep.subr.bf16.mxu1 %v9219_v29  ;;  %v9301_v26 = vld [vmem:[%s12518_s1 + $0x1958] ss:$24 sps:$4 sm:$0xff]  }
 0x2e5   :  { %6736 = vmatprep.subr.bf16.mxu0 %v9222_v30  ;;  %v9304_v29 = vld [vmem:[%s12518_s1 + $0x1660] ss:$24 sps:$4 sm:$0xff]   ;;  %v9309_v30 = vld [vmem:[%s12518_s1 + $0x198c] ss:$24 sps:$4 sm:$0xff]  }
 0x2e7   :  { %6313 = vmatpush1.bf16.msra.mxu1 %v9217_v31  ;;  %v9312_v31 = vld [vmem:[%s12518_s1 + $0x1694] ss:$24 sps:$4 sm:$0xff]  }
 0x2e8   :  { %6737 = vmatpush1.bf16.msra.mxu0 %v9220_v32  ;;  %6314 = vmatprep.subr.bf16.mxu1 %v9225_v3  ;;  %v9307_v32 = vld [vmem:[%s12518_s1 + $0x1988] ss:$24 sps:$4 sm:$0xff]  }
 0x2e9   :  { %6738 = vmatprep.subr.bf16.mxu0 %v9228_v33  ;;  %v9310_v3 = vld [vmem:[%s12518_s1 + $0x1690] ss:$24 sps:$4 sm:$0xff]   ;;  %v9315_v33 = vld [vmem:[%s12518_s1 + $0x19bc] ss:$24 sps:$4 sm:$0xff]  }
 0x2eb   :  { %6315 = vmatpush1.bf16.msra.mxu1 %v9223_v34  ;;  %v9318_v34 = vld [vmem:[%s12518_s1 + $0x16c4] ss:$24 sps:$4 sm:$0xff]  }
 0x2ec   :  { %6739 = vmatpush1.bf16.msra.mxu0 %v9226_v35  ;;  %6316 = vmatprep.subr.bf16.mxu1 %v9231_v36  ;;  %v9313_v35 = vld [vmem:[%s12518_s1 + $0x19b8] ss:$24 sps:$4 sm:$0xff]  }
 0x2ed   :  { %6740 = vmatprep.subr.bf16.mxu0 %v9234_v37  ;;  %v9316_v36 = vld [vmem:[%s12518_s1 + $0x16c0] ss:$24 sps:$4 sm:$0xff]   ;;  %v9321_v37 = vld [vmem:[%s12518_s1 + $0x19ec] ss:$24 sps:$4 sm:$0xff]  }
 0x2ef   :  { %6317 = vmatpush1.bf16.msra.mxu1 %v9229_v38  ;;  %v9324_v38 = vld [vmem:[%s12518_s1 + $0x16f4] ss:$24 sps:$4 sm:$0xff]  }
 0x2f0   :  { %6741 = vmatpush1.bf16.msra.mxu0 %v9232_v39  ;;  %6318 = vmatprep.subr.bf16.mxu1 %v9237_v40  ;;  %v9319_v39 = vld [vmem:[%s12518_s1 + $0x19e8] ss:$24 sps:$4 sm:$0xff]  }
 0x2f1   :  { %6742 = vmatprep.subr.bf16.mxu0 %v9240_v41  ;;  %v9322_v40 = vld [vmem:[%s12518_s1 + $0x16f0] ss:$24 sps:$4 sm:$0xff]   ;;  %v9327_v41 = vld [vmem:[%s12518_s1 + $0x1a1c] ss:$24 sps:$4 sm:$0xff]  }
 0x2f3   :  { %6319 = vmatpush1.bf16.msra.mxu1 %v9235_v43  ;;  %v9330_v43 = vld [vmem:[%s12518_s1 + $0x1724] ss:$24 sps:$4 sm:$0xff]  }
 0x2f4   :  { %6743 = vmatpush1.bf16.msra.mxu0 %v9238_v44  ;;  %6320 = vmatprep.subr.bf16.mxu1 %v9243_v45  ;;  %v9325_v44 = vld [vmem:[%s12518_s1 + $0x1a18] ss:$24 sps:$4 sm:$0xff]  }
 0x2f5   :  { %6744 = vmatprep.subr.bf16.mxu0 %v9246_v11  ;;  %v9328_v45 = vld [vmem:[%s12518_s1 + $0x1720] ss:$24 sps:$4 sm:$0xff]   ;;  %v9333_v11 = vld [vmem:[%s12518_s1 + $0x1a4c] ss:$24 sps:$4 sm:$0xff]  }
 0x2f7   :  { %6321 = vmatpush1.bf16.msra.mxu1 %v9241_v46  ;;  %v9336_v46 = vld [vmem:[%s12518_s1 + $0x1754] ss:$24 sps:$4 sm:$0xff]  }
 0x2f8   :  { %6745 = vmatpush1.bf16.msra.mxu0 %v9244_v50  ;;  %6322 = vmatprep.subr.bf16.mxu1 %v9249_v12  ;;  %v9331_v50 = vld [vmem:[%s12518_s1 + $0x1a48] ss:$24 sps:$4 sm:$0xff]  }
 0x2f9   :  { %6746 = vmatprep.subr.bf16.mxu0 %v9252_v13  ;;  %v9334_v12 = vld [vmem:[%s12518_s1 + $0x1750] ss:$24 sps:$4 sm:$0xff]   ;;  %v9339_v13 = vld [vmem:[%s12518_s1 + $0x1a7c] ss:$24 sps:$4 sm:$0xff]  }
 0x2fb   :  { %6323 = vmatpush1.bf16.msra.mxu1 %v9247_v4  ;;  %v9342_v4 = vld [vmem:[%s12518_s1 + $0x1784] ss:$24 sps:$4 sm:$0xff]  }
 0x2fc   :  { %6747 = vmatpush1.bf16.msra.mxu0 %v9250_v52  ;;  %6324 = vmatprep.subr.bf16.mxu1 %v9255_v42  ;;  %v9337_v52 = vld [vmem:[%s12518_s1 + $0x1a78] ss:$24 sps:$4 sm:$0xff]  }
 0x2fd   :  { %6748 = vmatprep.subr.bf16.mxu0 %v9258_v8  ;;  %v9340_v42 = vld [vmem:[%s12518_s1 + $0x1780] ss:$24 sps:$4 sm:$0xff]   ;;  %v9345_v8 = vld [vmem:[%s12518_s1 + $0x1aac] ss:$24 sps:$4 sm:$0xff]  }
 0x2ff   :  { %6325 = vmatpush1.bf16.msra.mxu1 %v9253_v58  ;;  %v9348_v58 = vld [vmem:[%s12518_s1 + $0x17b4] ss:$24 sps:$4 sm:$0xff]  }
 0x300   :  { %6749 = vmatpush1.bf16.msra.mxu0 %v9256_v47  ;;  %6347 = vmatprep.subr.bf16.mxu1 %v9261_v49  ;;  %v9343_v47 = vld [vmem:[%s12518_s1 + $0x1aa8] ss:$24 sps:$4 sm:$0xff]  }
 0x301   :  { %6771 = vmatprep.subr.bf16.mxu0 %v9264_v51  ;;  %v9346_v49 = vld [vmem:[%s12518_s1 + $0x17b0] ss:$24 sps:$4 sm:$0xff]   ;;  %v9351_v51 = vld [vmem:[%s12518_s1 + $0x1adc] ss:$24 sps:$4 sm:$0xff]  }
 0x302   :  { %6327 = vmatmul.mubr.bf16.vlgmr.msra.gmra.mrb[8].mxu1 %v12147_v57 }
 0x303   :  { %6751 = vmatmul.mubr.bf16.vlgmr.msra.gmra.mrb[8].mxu0 %v11927_v17  ;;  %6348 = vmatpush1.bf16.msra.mxu1 %v9259_v16  ;;  %v9276_v17 = vld [vmem:[%s12518_s1 + $0x1574] ss:$24 sps:$4 sm:$0xff]   ;;  %v9354_v16 = vld [vmem:[%s12518_s1 + $0x17e4] ss:$24 sps:$4 sm:$0xff]  }
 0x304   :  { %6772 = vmatpush1.bf16.msra.mxu0 %v9262_v55  ;;  %6349 = vmatprep.subr.bf16.mxu1 %v9267_v53  ;;  %v9349_v55 = vld [vmem:[%s12518_s1 + $0x1ad8] ss:$24 sps:$4 sm:$0xff]  }
 0x305   :  { %6773 = vmatprep.subr.bf16.mxu0 %v9270_v1  ;;  %6336 = vmatprep.mubr.bf16.mxu1 %v12166_v62  ;;  %v9352_v53 = vld [vmem:[%s12518_s1 + $0x17e0] ss:$24 sps:$4 sm:$0xff]   ;;  %v9357_v1 = vld [vmem:[%s12518_s1 + $0x1814] ss:$24 sps:$4 sm:$0xff]  }
 0x306   :  { %6760 = vmatprep.mubr.bf16.mxu0 %v11946_v27  ;;  %v9282_v27 = vld [vmem:[%s12518_s1 + $0x15a4] ss:$24 sps:$4 sm:$0xff]  }
 0x307   :  { %6350 = vmatpush1.bf16.msra.mxu1 %v9265_v23  ;;  %v9355_v23 = vld [vmem:[%s12518_s1 + $0x1810] ss:$24 sps:$4 sm:$0xff]  }
 0x308   :  { %6774 = vmatpush1.bf16.msra.mxu0 %v9268_v48  ;;  %6351 = vmatprep.subr.bf16.mxu1 %v9273_v60  ;;  %v9360_v48 = vld [vmem:[%s12518_s1 + $0x1844] ss:$24 sps:$4 sm:$0xff]   ;;  %v12358_v60 = vld [vmem:[%s12519_s0 + $0x40] ss:$72 sps:$4 sm:$0xff]  }
 0x309   :  { %6775 = vmatprep.subr.bf16.mxu0 %v9276_v17  ;;  %v9358_v17 = vld [vmem:[%s12518_s1 + $0x1840] ss:$24 sps:$4 sm:$0xff]  }
 0x30a   :  { %6337 = vmatmul.mubr.bf16.gmra.mrb[12].mxu1 %v12185_v28 }
 0x30b   :  { %6761 = vmatmul.mubr.bf16.gmra.mrb[12].mxu0 %v11965_v59  ;;  %6352 = vmatpush1.bf16.msra.mxu1 %v9271_v5  ;;  %v9288_v59 = vld [vmem:[%s12518_s1 + $0x15d4] ss:$24 sps:$4 sm:$0xff]  }
 0x30c   :  { %6776 = vmatpush1.bf16.msra.mxu0 %v9274_v54  ;;  %6353 = vmatprep.subr.bf16.mxu1 %v9279_v25  ;;  %v9363_v5 = vld [vmem:[%s12518_s1 + $0x1874] ss:$24 sps:$4 sm:$0xff]   ;;  %v9366_v25 = vld [vmem:[%s12518_s1 + $0x18a4] ss:$24 sps:$4 sm:$0xff]  }
 0x30d   :  { %6777 = vmatprep.subr.bf16.mxu0 %v9282_v27  ;;  %6379 = vmatprep.mubr.bf16.mxu1 %v12204_v7  ;;  %v9437_v54 = vld [vmem:[%s12519_s0 + $0xd4] ss:$72 sps:$4 sm:$0xff]   ;;  %v12381_v27 = vld [vmem:[%s12519_s0 + $0xd0] ss:$72 sps:$4 sm:$0xff]  }
 0x30e   :  { %6803 = vmatprep.mubr.bf16.mxu0 %v11984_v24  ;;  %v9294_v24 = vld [vmem:[%s12518_s1 + $0x1604] ss:$24 sps:$4 sm:$0xff]  }
 0x30f   :  { %6354 = vmatpush1.bf16.msra.mxu1 %v9277_v6  ;;  %v9369_v6 = vld [vmem:[%s12518_s1 + $0x18d4] ss:$24 sps:$4 sm:$0xff]  }
 0x310   :  { %6778 = vmatpush1.bf16.msra.mxu0 %v9280_v2  ;;  %6355 = vmatprep.subr.bf16.mxu1 %v9285_v63  ;;  %v9372_v2 = vld [vmem:[%s12518_s1 + $0x1904] ss:$24 sps:$4 sm:$0xff]   ;;  %v9370_v63 = vld [vmem:[%s12518_s1 + $0x1900] ss:$24 sps:$4 sm:$0xff]  }
 0x311   :  { %6779 = vmatprep.subr.bf16.mxu0 %v9288_v59  ;;  %v9375_v59 = vld [vmem:[%s12518_s1 + $0x1934] ss:$24 sps:$4 sm:$0xff]  }
 0x313   :  { %6356 = vmatpush1.bf16.msra.mxu1 %v9283_v56  ;;  %v9378_v56 = vld [vmem:[%s12518_s1 + $0x1964] ss:$24 sps:$4 sm:$0xff]  }
 0x314   :  { %6780 = vmatpush1.bf16.msra.mxu0 %v9286_v9  ;;  %6357 = vmatprep.subr.bf16.mxu1 %v9291_v10  ;;  %v9376_v9 = vld [vmem:[%s12518_s1 + $0x1960] ss:$24 sps:$4 sm:$0xff]   ;;  %v9381_v10 = vld [vmem:[%s12518_s1 + $0x1994] ss:$24 sps:$4 sm:$0xff]  }
 0x315   :  { %6781 = vmatprep.subr.bf16.mxu0 %v9294_v24  ;;  %v9379_v24 = vld [vmem:[%s12518_s1 + $0x1990] ss:$24 sps:$4 sm:$0xff]  }
 0x317   :  { %6358 = vmatpush1.bf16.msra.mxu1 %v9289_v15  ;;  %v9384_v15 = vld [vmem:[%s12518_s1 + $0x19c4] ss:$24 sps:$4 sm:$0xff]  }
 0x318   :  { %6782 = vmatpush1.bf16.msra.mxu0 %v9292_v61  ;;  %6359 = vmatprep.subr.bf16.mxu1 %v9297_v18  ;;  %v9382_v61 = vld [vmem:[%s12518_s1 + $0x19c0] ss:$24 sps:$4 sm:$0xff]   ;;  %v9387_v18 = vld [vmem:[%s12518_s1 + $0x19f4] ss:$24 sps:$4 sm:$0xff]  }
 0x319   :  { %6783 = vmatprep.subr.bf16.mxu0 %v9300_v19  ;;  %v9385_v19 = vld [vmem:[%s12518_s1 + $0x19f0] ss:$24 sps:$4 sm:$0xff]  }
 0x31b   :  { %6360 = vmatpush1.bf16.msra.mxu1 %v9295_v20  ;;  %v9390_v20 = vld [vmem:[%s12518_s1 + $0x1a24] ss:$24 sps:$4 sm:$0xff]  }
 0x31c   :  { %6784 = vmatpush1.bf16.msra.mxu0 %v9298_v21  ;;  %6361 = vmatprep.subr.bf16.mxu1 %v9303_v0  ;;  %v9388_v21 = vld [vmem:[%s12518_s1 + $0x1a20] ss:$24 sps:$4 sm:$0xff]   ;;  %v9393_v0 = vld [vmem:[%s12518_s1 + $0x1a54] ss:$24 sps:$4 sm:$0xff]  }
 0x31d   :  { %6785 = vmatprep.subr.bf16.mxu0 %v9306_v22  ;;  %v9391_v22 = vld [vmem:[%s12518_s1 + $0x1a50] ss:$24 sps:$4 sm:$0xff]  }
 0x31f   :  { %6362 = vmatpush1.bf16.msra.mxu1 %v9301_v26  ;;  %v9396_v26 = vld [vmem:[%s12518_s1 + $0x1a84] ss:$24 sps:$4 sm:$0xff]  }
 0x320   :  { %6786 = vmatpush1.bf16.msra.mxu0 %v9304_v29  ;;  %6363 = vmatprep.subr.bf16.mxu1 %v9309_v30  ;;  %v9394_v29 = vld [vmem:[%s12518_s1 + $0x1a80] ss:$24 sps:$4 sm:$0xff]   ;;  %v9399_v30 = vld [vmem:[%s12518_s1 + $0x1ab4] ss:$24 sps:$4 sm:$0xff]  }
 0x321   :  { %6787 = vmatprep.subr.bf16.mxu0 %v9312_v31  ;;  %v9397_v31 = vld [vmem:[%s12518_s1 + $0x1ab0] ss:$24 sps:$4 sm:$0xff]  }
 0x323   :  { %6364 = vmatpush1.bf16.msra.mxu1 %v9307_v32  ;;  %v9402_v32 = vld [vmem:[%s12518_s1 + $0x1ae4] ss:$24 sps:$4 sm:$0xff]  }
 0x324   :  { %6788 = vmatpush1.bf16.msra.mxu0 %v9310_v3  ;;  %6365 = vmatprep.subr.bf16.mxu1 %v9315_v33  ;;  %v9400_v3 = vld [vmem:[%s12518_s1 + $0x1ae0] ss:$24 sps:$4 sm:$0xff]   ;;  %v926_v33 = vsub.s32 2, %v11257_v14 }
 0x325   :  { %6789 = vmatprep.subr.bf16.mxu0 %v9318_v34  ;;  %v930_v34 = vsub.s32 3, %v11257_v14 }
 0x327   :  { %6366 = vmatpush1.bf16.msra.mxu1 %v9313_v35  ;;  %v9439_v35 = vld [vmem:[%s12520_s2] sm:$0x3f] }
 0x328   :  { %6790 = vmatpush1.bf16.msra.mxu0 %v9316_v36  ;;  %6367 = vmatprep.subr.bf16.mxu1 %v9321_v37  ;;  %v927_v36 = vrot.slane %v9439_v35, %v926_v33  ;;  %v931_v37 = vrot.slane %v9439_v35, %v930_v34 }
 0x329   :  { %6791 = vmatprep.subr.bf16.mxu0 %v9324_v38 }
 0x32b   :  { %6368 = vmatpush1.bf16.msra.mxu1 %v9319_v39 }
 0x32c   :  { %6792 = vmatpush1.bf16.msra.mxu0 %v9322_v40  ;;  %6369 = vmatprep.subr.bf16.mxu1 %v9327_v41 }
 0x32d   :  { %6793 = vmatprep.subr.bf16.mxu0 %v9330_v43 }
 0x32f   :  { %6370 = vmatpush1.bf16.msra.mxu1 %v9325_v44 }
 0x330   :  { %6794 = vmatpush1.bf16.msra.mxu0 %v9328_v45  ;;  %6371 = vmatprep.subr.bf16.mxu1 %v9333_v11 }
 0x331   :  { %6795 = vmatprep.subr.bf16.mxu0 %v9336_v46 }
 0x333   :  { %6372 = vmatpush1.bf16.msra.mxu1 %v9331_v50 }
 0x334   :  { %6796 = vmatpush1.bf16.msra.mxu0 %v9334_v12  ;;  %6373 = vmatprep.subr.bf16.mxu1 %v9339_v13 }
 0x335   :  { %6797 = vmatprep.subr.bf16.mxu0 %v9342_v4 }
 0x337   :  { %6374 = vmatpush1.bf16.msra.mxu1 %v9337_v52 }
 0x338   :  { %6798 = vmatpush1.bf16.msra.mxu0 %v9340_v42  ;;  %6375 = vmatprep.subr.bf16.mxu1 %v9345_v8 }
 0x339   :  { %6799 = vmatprep.subr.bf16.mxu0 %v9348_v58 }
 0x33b   :  { %6376 = vmatpush1.bf16.msra.mxu1 %v9343_v47 }
 0x33c   :  { %6800 = vmatpush1.bf16.msra.mxu0 %v9346_v49  ;;  %6377 = vmatprep.subr.bf16.mxu1 %v9351_v51 }
 0x33d   :  { %6801 = vmatprep.subr.bf16.mxu0 %v9354_v16  ;;  %v934_v16 = vsub.s32 4, %v11257_v14 }
 0x33f   :  { %6378 = vmatpush1.bf16.msra.mxu1 %v9349_v55  ;;  %v938_v55 = vsub.s32 5, %v11257_v14 }
 0x340   :  { %6802 = vmatpush1.bf16.msra.mxu0 %v9352_v53  ;;  %7805 = vmatprep.subr.bf16.mxu1 %v9357_v1  ;;  %v935_v53 = vrot.slane %v9439_v35, %v934_v16 }
 0x341   :  { %6824 = vmatprep.subr.bf16.mxu0 %v9357_v1  ;;  %v939_v1 = vrot.slane %v9439_v35, %v938_v55 }
 0x342   :  { %6380 = vmatmul.mubr.bf16.vlgmr.msra.gmra.mrb[8].mxu1 %v12358_v60 }
 0x343   :  { %6804 = vmatmul.mubr.bf16.vlgmr.msra.gmra.mrb[8].mxu0 %v12147_v57  ;;  %7821 = vmatpush1.bf16.msra.mxu1 %v9355_v23  ;;  %v9361_v57 = vld [vmem:[%s12518_s1 + $0x1870] ss:$24 sps:$4 sm:$0xff]  }
 0x344   :  { %6825 = vmatpush1.bf16.msra.mxu0 %v9355_v23  ;;  %7806 = vmatprep.subr.bf16.mxu1 %v9360_v48 }
 0x345   :  { %6826 = vmatprep.subr.bf16.mxu0 %v9360_v48  ;;  %6389 = vmatprep.mubr.bf16.mxu1 %v9437_v54 }
 0x346   :  { %6813 = vmatprep.mubr.bf16.mxu0 %v12166_v62  ;;  %v9364_v62 = vld [vmem:[%s12518_s1 + $0x18a0] ss:$24 sps:$4 sm:$0xff]  }
 0x347   :  { %7822 = vmatpush1.bf16.msra.mxu1 %v9358_v17 }
 0x348   :  { %6827 = vmatpush1.bf16.msra.mxu0 %v9358_v17  ;;  %7807 = vmatprep.subr.bf16.mxu1 %v9363_v5 }
 0x349   :  { %6828 = vmatprep.subr.bf16.mxu0 %v9363_v5 }
 0x34a   :  { %6390 = vmatmul.mubr.bf16.gmra.mrb[12].mxu1 %v12381_v27 }
 0x34b   :  { %6814 = vmatmul.mubr.bf16.gmra.mrb[12].mxu0 %v12185_v28  ;;  %7823 = vmatpush1.bf16.msra.mxu1 %v9361_v57  ;;  %v9367_v28 = vld [vmem:[%s12518_s1 + $0x18d0] ss:$24 sps:$4 sm:$0xff]  }
 0x34c   :  { %6829 = vmatpush1.bf16.msra.mxu0 %v9361_v57  ;;  %7808 = vmatprep.subr.bf16.mxu1 %v9366_v25 }
 0x34d   :  { %6830 = vmatprep.subr.bf16.mxu0 %v9366_v25  ;;  %6856 = vmatprep.mubr.bf16.mxu0 %v12204_v7  ;;  %v9373_v7 = vld [vmem:[%s12518_s1 + $0x1930] ss:$24 sps:$4 sm:$0xff]  }
 0x34e   :  { %6866 = vmatprep.mubr.bf16.mxu1 %v9437_v54 }
 0x34f   :  { %7824 = vmatpush1.bf16.msra.mxu1 %v9364_v62 }
 0x350   :  { %6831 = vmatpush1.bf16.msra.mxu0 %v9364_v62  ;;  %7809 = vmatprep.subr.bf16.mxu1 %v9369_v6 }
 0x351   :  { %6832 = vmatprep.subr.bf16.mxu0 %v9369_v6 }
 0x353   :  { %7825 = vmatpush1.bf16.msra.mxu1 %v9367_v28 }
 0x354   :  { %6833 = vmatpush1.bf16.msra.mxu0 %v9367_v28  ;;  %7810 = vmatprep.subr.bf16.mxu1 %v9372_v2 }
 0x355   :  { %6834 = vmatprep.subr.bf16.mxu0 %v9372_v2 }
 0x357   :  { %7826 = vmatpush1.bf16.msra.mxu1 %v9370_v63 }
 0x358   :  { %6835 = vmatpush1.bf16.msra.mxu0 %v9370_v63  ;;  %7811 = vmatprep.subr.bf16.mxu1 %v9375_v59 }
 0x359   :  { %6836 = vmatprep.subr.bf16.mxu0 %v9375_v59 }
 0x35b   :  { %7827 = vmatpush1.bf16.msra.mxu1 %v9373_v7 }
 0x35c   :  { %6837 = vmatpush1.bf16.msra.mxu0 %v9373_v7  ;;  %7812 = vmatprep.subr.bf16.mxu1 %v9378_v56 }
 0x35d   :  { %6838 = vmatprep.subr.bf16.mxu0 %v9378_v56 }
 0x35f   :  { %7828 = vmatpush1.bf16.msra.mxu1 %v9376_v9 }
 0x360   :  { %6839 = vmatpush1.bf16.msra.mxu0 %v9376_v9  ;;  %7813 = vmatprep.subr.bf16.mxu1 %v9381_v10 }
 0x361   :  { %6840 = vmatprep.subr.bf16.mxu0 %v9381_v10 }
 0x363   :  { %7829 = vmatpush1.bf16.msra.mxu1 %v9379_v24 }
 0x364   :  { %6841 = vmatpush1.bf16.msra.mxu0 %v9379_v24  ;;  %7814 = vmatprep.subr.bf16.mxu1 %v9384_v15 }
 0x365   :  { %6842 = vmatprep.subr.bf16.mxu0 %v9384_v15 }
 0x367   :  { %7830 = vmatpush1.bf16.msra.mxu1 %v9382_v61 }
 0x368   :  { %6843 = vmatpush1.bf16.msra.mxu0 %v9382_v61  ;;  %7815 = vmatprep.subr.bf16.mxu1 %v9387_v18 }
 0x369   :  { %6844 = vmatprep.subr.bf16.mxu0 %v9387_v18 }
 0x36b   :  { %7831 = vmatpush1.bf16.msra.mxu1 %v9385_v19 }
 0x36c   :  { %6845 = vmatpush1.bf16.msra.mxu0 %v9385_v19  ;;  %7816 = vmatprep.subr.bf16.mxu1 %v9390_v20 }
 0x36d   :  { %6846 = vmatprep.subr.bf16.mxu0 %v9390_v20 }
 0x36f   :  { %7832 = vmatpush1.bf16.msra.mxu1 %v9388_v21 }
 0x370   :  { %6847 = vmatpush1.bf16.msra.mxu0 %v9388_v21  ;;  %7817 = vmatprep.subr.bf16.mxu1 %v9393_v0 }
 0x371   :  { %6848 = vmatprep.subr.bf16.mxu0 %v9393_v0 }
 0x373   :  { %7833 = vmatpush1.bf16.msra.mxu1 %v9391_v22 }
 0x374   :  { %6849 = vmatpush1.bf16.msra.mxu0 %v9391_v22  ;;  %7818 = vmatprep.subr.bf16.mxu1 %v9396_v26 }
 0x375   :  { %6850 = vmatprep.subr.bf16.mxu0 %v9396_v26 }
 0x377   :  { %7834 = vmatpush1.bf16.msra.mxu1 %v9394_v29 }
 0x378   :  { %6851 = vmatpush1.bf16.msra.mxu0 %v9394_v29  ;;  %7819 = vmatprep.subr.bf16.mxu1 %v9399_v30 }
 0x379   :  { %6852 = vmatprep.subr.bf16.mxu0 %v9399_v30 }
 0x37b   :  { %7835 = vmatpush1.bf16.msra.mxu1 %v9397_v31 }
 0x37c   :  { %6853 = vmatpush1.bf16.msra.mxu0 %v9397_v31  ;;  %7820 = vmatprep.subr.bf16.mxu1 %v9402_v32 }
 0x37d   :  { %6854 = vmatprep.subr.bf16.mxu0 %v9402_v32 }
 0x37f   :  { %7836 = vmatpush1.bf16.msra.mxu1 %v9400_v3 }
 0x380   :  { %6855 = vmatpush1.bf16.msra.mxu0 %v9400_v3 }
 0x382   :  { %6867 = vmatmul.mubr.bf16.vlgmr.msra.gmra.mrb[16].mxu1 %v12381_v27 }
 0x383   :  { %6857 = vmatmul.mubr.bf16.vlgmr.msra.gmra.mrb[8].mxu0 %v12358_v60 }
 0x415   :  { %v6381_v38 = vpop.f32.mrb[8].mxu1 }
 0x416   :  { %v7853_v39 = vadd.f32 %v6381_v38, %v927_v36  ;;  %v6383_v40 = vpop.f32.mrb[9].mxu1 }
 0x417   :  { %v7854_v41 = vadd.f32 %v6383_v40, %v931_v37  ;;  %v6385_v43 = vpop.f32.mrb[10].mxu1 }
 0x418   :  { %6879 = vst [vmem:[%s12521_s3 + $0x10] sm:$0xff] %v7853_v39  ;;  %v7855_v44 = vadd.f32 %v6385_v43, %v927_v36  ;;  %v6387_v45 = vpop.f32.mrb[11].mxu1 }
 0x419   :  { %6880 = vst [vmem:[%s12521_s3 + $0x18] sm:$0xff] %v7854_v41  ;;  %v7856_v11 = vadd.f32 %v6387_v45, %v931_v37 }
 0x41a   :  { %6885 = vst [vmem:[%s12521_s3 + $0x40] sm:$0xff] %v7855_v44 }
 0x41b   :  { %6886 = vst [vmem:[%s12521_s3 + $0x48] sm:$0xff] %v7856_v11 }
 0x41d   :  { %v6391_v46 = vpop.f32.mrb[12].mxu1 }
 0x41e   :  { %v6815_v50 = vpop.f32.mrb[12].mxu0  ;;  %v7857_v12 = vadd.f32 %v6391_v46, %v927_v36  ;;  %v6393_v13 = vpop.f32.mrb[13].mxu1 }
 0x41f   :  { %v6817_v4 = vpop.f32.mrb[13].mxu0  ;;  %v7858_v52 = vadd.f32 %v6393_v13, %v931_v37  ;;  %v6395_v42 = vpop.f32.mrb[14].mxu1  ;;  %v7865_v23 = vadd.f32 %v6815_v50, %v935_v53 }
 0x420   :  { %v6819_v8 = vpop.f32.mrb[14].mxu0  ;;  %6891 = vst [vmem:[%s12521_s3 + $0x70] sm:$0xff] %v7857_v12  ;;  %v7859_v58 = vadd.f32 %v6395_v42, %v927_v36  ;;  %v6397_v47 = vpop.f32.mrb[15].mxu1  ;;  %v7867_v48 = vadd.f32 %v6817_v4, %v939_v1 }
 0x421   :  { %v6821_v49 = vpop.f32.mrb[15].mxu0  ;;  %6892 = vst [vmem:[%s12521_s3 + $0x78] sm:$0xff] %v7858_v52  ;;  %v7860_v51 = vadd.f32 %v6397_v47, %v931_v37  ;;  %v7869_v5 = vadd.f32 %v6819_v8, %v935_v53 }
 0x422   :  { %6897 = vst [vmem:[%s12521_s3 + $0xa0] sm:$0xff] %v7859_v58  ;;  %v7871_v62 = vadd.f32 %v6821_v49, %v939_v1 }
 0x423   :  { %6898 = vst [vmem:[%s12521_s3 + $0xa8] sm:$0xff] %v7860_v51 }
 0x455   :  { %v6868_v17 = vpop.f32.mrb[16].mxu1 }
 0x456   :  { %v6858_v60 = vpop.f32.mrb[8].mxu0  ;;  %v7866_v57 = vadd.f32 %v7865_v23, %v6868_v17  ;;  %v6870_v27 = vpop.f32.mrb[17].mxu1 }
 0x457   :  { %v7861_v54 = vadd.f32 %v6858_v60, %v935_v53  ;;  %v6860_v25 = vpop.f32.mrb[9].mxu0  ;;  %v7868_v28 = vadd.f32 %v7867_v48, %v6870_v27  ;;  %v6872_v63 = vpop.f32.mrb[18].mxu1 }
 0x458   :  { %v7862_v6 = vadd.f32 %v6860_v25, %v939_v1  ;;  %v6862_v2 = vpop.f32.mrb[10].mxu0  ;;  %6893 = vst [vmem:[%s12521_s3 + $0x80] sm:$0xff] %v7866_v57  ;;  %v7870_v59 = vadd.f32 %v7869_v5, %v6872_v63  ;;  %v6874_v56 = vpop.f32.mrb[19].mxu1 }
 0x459   :  { %6881 = vst [vmem:[%s12521_s3 + $0x20] sm:$0xff] %v7861_v54  ;;  %v7863_v14 = vadd.f32 %v6862_v2, %v935_v53  ;;  %v6864_v7 = vpop.f32.mrb[11].mxu0  ;;  %6894 = vst [vmem:[%s12521_s3 + $0x88] sm:$0xff] %v7868_v28  ;;  %v7872_v10 = vadd.f32 %v7871_v62, %v6874_v56 }
 0x45a   :  { %6882 = vst [vmem:[%s12521_s3 + $0x28] sm:$0xff] %v7862_v6  ;;  %v7864_v9 = vadd.f32 %v6864_v7, %v939_v1  ;;  %6899 = vst [vmem:[%s12521_s3 + $0xb0] sm:$0xff] %v7870_v59 }
 0x45b   :  { %6887 = vst [vmem:[%s12521_s3 + $0x50] sm:$0xff] %v7863_v14  ;;  %6900 = vst [vmem:[%s12521_s3 + $0xb8] sm:$0xff] %v7872_v10 }
 0x45c   :  { %6888 = vst [vmem:[%s12521_s3 + $0x58] sm:$0xff] %v7864_v9 }

// kernel: ctpn_forward.6
= control target key start
LH: loop header
LB: loop body
LE: loop exit
PB: predicated region body
PF: predicated region fallthrough
CT: control target
= control target key end

     0   :  { %s5425_s18 = smov 0   ;;  %s5427_s19 = smov 0   ;;  %s7331_s0 = inlined_call_operand.vmem [shape: f32[8,4,768], index: 0, kind: input, shape index: {}, may-alias: {0,1}]   ;;  %s7332_s1 = inlined_call_operand.vmem [shape: f32[8,4,768], index: 1, kind: input, shape index: {}, may-alias: {0,1}]   ;;  %s7333_s2 = inlined_call_operand.vmem [shape: f32[256,768], index: 2, kind: input, shape index: {}]   ;;  %s7334_s3 = inlined_call_operand.vmem [shape: f32[1,768], index: 3, kind: input, shape index: {}]   ;;  %s7335_s4 = inlined_call_operand.vmem [shape: bf16[8,4,128], index: 4, kind: output, shape index: {0}]   ;;  %s7336_s5 = inlined_call_operand.vmem [shape: bf16[8,4,128], index: 5, kind: output, shape index: {1}]  }
   0x1   :  { %s5429_s20 = smov 0   ;;  %s5431_s21 = smov 0  }
   0x2   :  { %s5433_s22 = smov 0  }
   0x3 LB: > { %s28_s23 = sadd.s32 1, %s5386_s21  ;;  %p44_p1 = scmp.ne.s32.totalorder %s5378_s19, %s5374_s18  ;;  %s5390_s22 = sphi %s5433_s22, %s16_s22   ;;  %s5386_s21 = sphi %s5431_s21, %s7802_s21   ;;  %s5382_s20 = sphi %s5429_s20, %s7801_s20   ;;  %s5378_s19 = sphi %s5427_s19, %s7800_s19   ;;  %s5374_s18 = sphi %s5425_s18, %s7799_s18  }
   0x4   : > { %p30_p0 = scmp.ge.s32.totalorder %s28_s23, 2  ;;  %p45_p2 = scmp.eq.s32.totalorder %s5390_s22, 0 }
   0x5   : > { %s37_s26 = sadd.s32 1, %s5378_s19  ;;  %p4091_p5 = scmp.ge.s32.totalorder %s5390_s22, 2 }
   0x6   : > { %s7804_s23 = smov (%p30_p0, %s28_s23), 0  ;;  %p5456_p3 = por %p45_p2, %p44_p1 }
   0x7   : > { %s32_s25 = ssub.s32 %s5386_s21, %s7804_s23  ;;  %206 = sbr.rel (%p4091_p5) target bundleno = 32 (0x20), region = 24 }
   0x8   : > { %p35_p4 = scmp.eq.s32.totalorder %s32_s25, 0 }
   0xa   : > { %s5464_s27 = scalar_select %p35_p4, %s5378_s19, %s37_s26  }
   0xe   : > { %209 = sbr.rel (!%p5456_p3) target bundleno = 23 (0x17), region = 28  ;;  %s211_s28 = sand.u32 (%p5456_p3), 1, %s5378_s19  }
   0xf   : > { %s4986_s29 = smul.u32 (%p5456_p3), 96, %s5386_s21 }
  0x10   : > { %s4985_s30 = smul.u32 (%p5456_p3), 48, %s211_s28 }
  0x11   : > { %s219_s8 = scalar_lea.vmem (%p5456_p3), %s7331_s0, %s4986_s29 }
  0x12   : > { %v234_v0 = vld [vmem:[%s219_s8] sm:$0xff] (%p5456_p3)  ;;  %v236_v1 = vld [vmem:[%s219_s8 + $0x18] sm:$0xff] (%p5456_p3)  ;;  %v238_v2 = vld [vmem:[%s219_s8 + $0x30] sm:$0xff] (%p5456_p3)  ;;  %s213_s9 = scalar_lea.vmem (%p5456_p3), [#allocation3], %s4985_s30 }
  0x13   : > { %235 = vst [vmem:[%s213_s9] sm:$0xff] (%p5456_p3), %v234_v0  ;;  %237 = vst [vmem:[%s213_s9 + $0xc] sm:$0xff] (%p5456_p3), %v236_v1  ;;  %v240_v3 = vld [vmem:[%s219_s8 + $0x48] sm:$0xff] (%p5456_p3)  ;;  %v4097_v5 = vld [vmem:[%s219_s8 + $0x20] sm:$0xf] (%p5456_p3) }
  0x14   : > { %239 = vst [vmem:[%s213_s9 + $0x18] sm:$0xff] (%p5456_p3), %v238_v2  ;;  %v4095_v4 = vld [vmem:[%s219_s8 + $0x8] sm:$0xf] (%p5456_p3)  ;;  %241 = vst [vmem:[%s213_s9 + $0x24] sm:$0xff] (%p5456_p3), %v240_v3  ;;  %v4099_v6 = vld [vmem:[%s219_s8 + $0x38] sm:$0xf] (%p5456_p3) }
  0x15   : > { %4096 = vst [vmem:[%s213_s9 + $0x8] sm:$0xf] %v4095_v4  ;;  %4098 = vst [vmem:[%s213_s9 + $0x14] sm:$0xf] %v4097_v5  ;;  %v4101_v7 = vld [vmem:[%s219_s8 + $0x50] sm:$0xf] }
  0x16   : > { %4100 = vst [vmem:[%s213_s9 + $0x20] sm:$0xf] %v4099_v6  ;;  %4102 = vst [vmem:[%s213_s9 + $0x2c] sm:$0xf] %v4101_v7 }
  0x17 PF: > { %262 = sbr.rel (!%p5456_p3) target bundleno = 32 (0x20), region = 54  ;;  %s264_s10 = sand.u32 (%p5456_p3), 1, %s5378_s19  }
  0x18   : > { %s4103_s11 = smul.u32 (%p5456_p3), 96, %s5386_s21 }
  0x19   : > { %s4987_s12 = smul.u32 (%p5456_p3), 48, %s264_s10 }
  0x1a   : > { %s3993_s15 = scalar_lea.vmem (%p5456_p3), %s7332_s1, %s4103_s11 }
  0x1b   : > { %v4104_v8 = vld [vmem:[%s3993_s15 + $0xc] sm:$0xff] (%p5456_p3)  ;;  %v4105_v9 = vld [vmem:[%s3993_s15 + $0x24] sm:$0xff] (%p5456_p3)  ;;  %v4106_v10 = vld [vmem:[%s3993_s15 + $0x3c] sm:$0xff] (%p5456_p3)  ;;  %s266_s16 = scalar_lea.vmem (%p5456_p3), [#allocation4], %s4987_s12 }
  0x1c   : > { %290 = vst [vmem:[%s266_s16] sm:$0xff] (%p5456_p3), %v4104_v8  ;;  %292 = vst [vmem:[%s266_s16 + $0xc] sm:$0xff] (%p5456_p3), %v4105_v9  ;;  %v4107_v11 = vld [vmem:[%s3993_s15 + $0x54] sm:$0xff] (%p5456_p3)  ;;  %v4110_v13 = vld [vmem:[%s3993_s15 + $0x2c] sm:$0xf] (%p5456_p3) }
  0x1d   : > { %294 = vst [vmem:[%s266_s16 + $0x18] sm:$0xff] (%p5456_p3), %v4106_v10  ;;  %v4108_v12 = vld [vmem:[%s3993_s15 + $0x14] sm:$0xf] (%p5456_p3)  ;;  %296 = vst [vmem:[%s266_s16 + $0x24] sm:$0xff] (%p5456_p3), %v4107_v11  ;;  %v4112_v14 = vld [vmem:[%s3993_s15 + $0x44] sm:$0xf] (%p5456_p3) }
  0x1e   : > { %4109 = vst [vmem:[%s266_s16 + $0x8] sm:$0xf] %v4108_v12  ;;  %4111 = vst [vmem:[%s266_s16 + $0x14] sm:$0xf] %v4110_v13  ;;  %v4114_v15 = vld [vmem:[%s3993_s15 + $0x5c] sm:$0xf] }
  0x1f   : > { %4113 = vst [vmem:[%s266_s16 + $0x20] sm:$0xf] %v4112_v14  ;;  %4115 = vst [vmem:[%s266_s16 + $0x2c] sm:$0xf] %v4114_v15 }
  0x20 PF: > { %p4116_p6 = scmp.ge.s32.totalorder %s5390_s22, 1  ;;  %p316_p7 = scmp.lt.s32.totalorder %s5390_s22, 3 }
  0x22   : > { %p317_p8 = pnand %p4116_p6, %p316_p7 }
  0x24   : > { %320 = sbr.rel (%p317_p8) target bundleno = 1421 (0x58d), region = 80 }
  0x2b   : > { %v403_v16 = vld [vmem:[%s7333_s2 + $0x8] sm:$0xff]  ;;  %v409_v17 = vld [vmem:[%s7333_s2 + $0x38] sm:$0xff]  ;;  %v402_v18 = vld [vmem:[%s7333_s2] sm:$0xff]  ;;  %v7337_v23 = vmov 0.0   ;;  %s323_s30 = sand.u32 1, %s5374_s18   ;;  %s4117_s10 = sshll.u32 %s5382_s20, 2 }
  0x2c   : > { %v5492_v19 = vpack.c.bf16 %v409_v17, %v403_v16  ;;  %v408_v20 = vld [vmem:[%s7333_s2 + $0x30] sm:$0xff]  ;;  %v415_v21 = vld [vmem:[%s7333_s2 + $0x68] sm:$0xff]  ;;  %v421_v22 = vld [vmem:[%s7333_s2 + $0x98] sm:$0xff]  ;;  %v5505_v24 = vcombine.high %v7337_v23, %v7337_v23  ;;  %s6427_s6 = smul.u32 48, %s323_s30  ;;  %p377_p9 = scmp.lt.s32.totalorder %s4117_s10, 7  ;;  %vm1279_vm0 = vcmask 1040384  }
  0x2d   : > { %v5507_v25 = vpack.c.bf16 %v408_v20, %v402_v18  ;;  %v5509_v26 = vpack.c.bf16 %v421_v22, %v415_v21  ;;  %v414_v27 = vld [vmem:[%s7333_s2 + $0x60] sm:$0xff]  ;;  %v420_v28 = vld [vmem:[%s7333_s2 + $0x90] sm:$0xff]  ;;  %v427_v29 = vld [vmem:[%s7333_s2 + $0xc8] sm:$0xff]  ;;  %vm1280_vm1 = vsmask.f32 256  ;;  %vm1350_vm3 = vcmask 1041409  }
  0x2e   : > { %7511 = vst [vmem:[#allocation5_spill] sm:$0xff] %v5492_v19  ;;  %4218 = vmatprep.subr.bf16.mxu0 %v5492_v19  ;;  %v433_v30 = vld [vmem:[%s7333_s2 + $0xf8] sm:$0xff]  ;;  %693 = vmatprep.mubr.f32.mxu0 %v5505_v24  ;;  %v5526_v31 = vpack.c.bf16 %v420_v28, %v414_v27  ;;  %v426_v33 = vld [vmem:[%s7333_s2 + $0xc0] sm:$0xff]  ;;  %v432_v34 = vld [vmem:[%s7333_s2 + $0xf0] sm:$0xff]  ;;  %s6446_s18 = scalar_lea.vmem [#allocation3], %s6427_s6  ;;  %s6489_s9 = scalar_lea.vmem [#allocation4], %s6427_s6 }
  0x2f   : > { %4220 = vmatpush1.bf16.msra.mxu0 %v5507_v25  ;;  %764 = vmatprep.mubr.f32.mxu1 %v5505_v24  ;;  %v5530_v32 = vpack.c.bf16 %v433_v30, %v427_v29  ;;  %v439_v35 = vld [vmem:[%s7333_s2 + $0x128] sm:$0xff]  ;;  %v445_v36 = vld [vmem:[%s7333_s2 + $0x158] sm:$0xff]  ;;  %v5545_v37 = vpack.c.bf16 %v432_v34, %v426_v33  ;;  %v438_v39 = vld [vmem:[%s7333_s2 + $0x120] sm:$0xff]  ;;  %s7806_s10 = smov (!%p377_p9, %s4117_s10), 7  ;;  %vm1351_vm4 = vsmask.f32 7942 }
  0x30   : > { %4222 = vmatprep.subr.bf16.mxu0 %v5509_v26  ;;  %v5548_v38 = vpack.c.bf16 %v445_v36, %v439_v35  ;;  %v444_v40 = vld [vmem:[%s7333_s2 + $0x150] sm:$0xff]  ;;  %v451_v41 = vld [vmem:[%s7333_s2 + $0x188] sm:$0xff]  ;;  %v457_v42 = vld [vmem:[%s7333_s2 + $0x1b8] sm:$0xff]  ;;  %s4118_s20 = sshll.u32 %s7806_s10, 1  ;;  %vm2142_vm6 = vsmask.f32 7938 }
  0x31   : > { %v405_v43 = vld [vmem:[%s7333_s2 + $0x18] sm:$0xff]  ;;  %v411_v44 = vld [vmem:[%s7333_s2 + $0x48] sm:$0xff]  ;;  %v404_v46 = vld [vmem:[%s7333_s2 + $0x10] sm:$0xff]  ;;  %v5577_v48 = vpack.c.bf16 %v444_v40, %v438_v39  ;;  %v5588_v52 = vpack.c.bf16 %v457_v42, %v451_v41  ;;  %s6539_s13 = scalar_lea.vmem %s7335_s4, %s4118_s20  ;;  %s6620_s16 = scalar_lea.vmem %s7336_s5, %s4118_s20  ;;  %vm2200_vm8 = vsmask.f32 1280 }
  0x32   : > { %v5568_v45 = vpack.c.bf16 %v411_v44, %v405_v43  ;;  %v410_v47 = vld [vmem:[%s7333_s2 + $0x40] sm:$0xff]  ;;  %v417_v51 = vld [vmem:[%s7333_s2 + $0x78] sm:$0xff]  ;;  %v456_v53 = vld [vmem:[%s7333_s2 + $0x1b0] sm:$0xff] }
  0x33   : > { %4224 = vmatpush1.bf16.msra.mxu0 %v5526_v31  ;;  %v450_v49 = vld [vmem:[%s7333_s2 + $0x180] sm:$0xff]  ;;  %v5582_v50 = vpack.c.bf16 %v410_v47, %v404_v46  ;;  %v463_v54 = vld [vmem:[%s7333_s2 + $0x1e8] sm:$0xff]  ;;  %v469_v56 = vld [vmem:[%s7333_s2 + $0x218] sm:$0xff] }
  0x34   : > { %4226 = vmatprep.subr.bf16.mxu0 %v5530_v32  ;;  %7512 = vst [vmem:[#allocation6_spill] sm:$0xff] %v5568_v45  ;;  %4282 = vmatprep.subr.bf16.mxu1 %v5568_v45  ;;  %v423_v55 = vld [vmem:[%s7333_s2 + $0xa8] sm:$0xff]  ;;  %v416_v58 = vld [vmem:[%s7333_s2 + $0x70] sm:$0xff]  ;;  %v422_v59 = vld [vmem:[%s7333_s2 + $0xa0] sm:$0xff]  ;;  %v5621_v63 = vpack.c.bf16 %v456_v53, %v450_v49  ;;  %v5633_v3 = vpack.c.bf16 %v469_v56, %v463_v54 }
  0x35   : > { %7513 = vst [vmem:[#allocation7_spill] sm:$0xff] %v5582_v50  ;;  %4284 = vmatpush1.bf16.msra.mxu1 %v5582_v50  ;;  %v5604_v57 = vpack.c.bf16 %v423_v55, %v417_v51  ;;  %v5612_v60 = vpack.c.bf16 %v422_v59, %v416_v58  ;;  %v429_v61 = vld [vmem:[%s7333_s2 + $0xd8] sm:$0xff]  ;;  %v435_v62 = vld [vmem:[%s7333_s2 + $0x108] sm:$0xff]  ;;  %v462_v0 = vld [vmem:[%s7333_s2 + $0x1e0] sm:$0xff] }
  0x36   : > { %v5627_v1 = vpack.c.bf16 %v435_v62, %v429_v61  ;;  %v428_v2 = vld [vmem:[%s7333_s2 + $0xd0] sm:$0xff]  ;;  %v475_v5 = vld [vmem:[%s7333_s2 + $0x248] sm:$0xff]  ;;  %v434_v6 = vld [vmem:[%s7333_s2 + $0x100] sm:$0xff] }
  0x37   : > { %4228 = vmatpush1.bf16.msra.mxu0 %v5545_v37  ;;  %7514 = vst [vmem:[#allocation8_spill] sm:$0xff] %v5604_v57  ;;  %7515 = vst [vmem:[#allocation9_spill] sm:$0xff] %v5612_v60  ;;  %4286 = vmatprep.subr.bf16.mxu1 %v5604_v57  ;;  %v468_v4 = vld [vmem:[%s7333_s2 + $0x210] sm:$0xff]  ;;  %v481_v7 = vld [vmem:[%s7333_s2 + $0x278] sm:$0xff]  ;;  %v5648_v8 = vpack.c.bf16 %v434_v6, %v428_v2 }
  0x38   : > { %4230 = vmatprep.subr.bf16.mxu0 %v5548_v38  ;;  %7516 = vst [vmem:[#allocation10_spill] sm:$0xff] %v5627_v1  ;;  %v441_v9 = vld [vmem:[%s7333_s2 + $0x138] sm:$0xff]  ;;  %v447_v10 = vld [vmem:[%s7333_s2 + $0x168] sm:$0xff]  ;;  %v440_v12 = vld [vmem:[%s7333_s2 + $0x130] sm:$0xff]  ;;  %v5666_v14 = vpack.c.bf16 %v468_v4, %v462_v0  ;;  %v5672_v16 = vpack.c.bf16 %v481_v7, %v475_v5 }
  0x39   : > { %4288 = vmatpush1.bf16.msra.mxu1 %v5612_v60  ;;  %7517 = vst [vmem:[#allocation11_spill] sm:$0xff] %v5648_v8  ;;  %v5657_v11 = vpack.c.bf16 %v447_v10, %v441_v9  ;;  %v446_v13 = vld [vmem:[%s7333_s2 + $0x160] sm:$0xff]  ;;  %v453_v15 = vld [vmem:[%s7333_s2 + $0x198] sm:$0xff]  ;;  %v480_v18 = vld [vmem:[%s7333_s2 + $0x270] sm:$0xff] }
  0x3a   : > { %4290 = vmatprep.subr.bf16.mxu1 %v5627_v1  ;;  %v474_v17 = vld [vmem:[%s7333_s2 + $0x240] sm:$0xff]  ;;  %v459_v20 = vld [vmem:[%s7333_s2 + $0x1c8] sm:$0xff]  ;;  %v493_v22 = vld [vmem:[%s7333_s2 + $0x2d8] sm:$0xff]  ;;  %v5690_v27 = vpack.c.bf16 %v446_v13, %v440_v12 }
  0x3b   : > { %4232 = vmatpush1.bf16.msra.mxu0 %v5577_v48  ;;  %7518 = vst [vmem:[#allocation12_spill] sm:$0xff] %v5657_v11  ;;  %v487_v21 = vld [vmem:[%s7333_s2 + $0x2a8] sm:$0xff]  ;;  %v5693_v28 = vpack.c.bf16 %v459_v20, %v453_v15  ;;  %v452_v29 = vld [vmem:[%s7333_s2 + $0x190] sm:$0xff]  ;;  %v458_v30 = vld [vmem:[%s7333_s2 + $0x1c0] sm:$0xff]  ;;  %v5702_v33 = vpack.c.bf16 %v480_v18, %v474_v17 }
  0x3c   : > { %4234 = vmatprep.subr.bf16.mxu0 %v5588_v52  ;;  %7519 = vst [vmem:[#allocation13_spill] sm:$0xff] %v5690_v27  ;;  %v465_v34 = vld [vmem:[%s7333_s2 + $0x1f8] sm:$0xff]  ;;  %v471_v35 = vld [vmem:[%s7333_s2 + $0x228] sm:$0xff]  ;;  %v5711_v36 = vpack.c.bf16 %v493_v22, %v487_v21  ;;  %v486_v39 = vld [vmem:[%s7333_s2 + $0x2a0] sm:$0xff]  ;;  %v5726_v43 = vpack.c.bf16 %v458_v30, %v452_v29 }
  0x3d   : > { %4292 = vmatpush1.bf16.msra.mxu1 %v5648_v8  ;;  %7520 = vst [vmem:[#allocation14_spill] sm:$0xff] %v5693_v28  ;;  %7521 = vst [vmem:[#allocation15_spill] sm:$0xff] %v5702_v33  ;;  %v492_v40 = vld [vmem:[%s7333_s2 + $0x2d0] sm:$0xff]  ;;  %v499_v41 = vld [vmem:[%s7333_s2 + $0x308] sm:$0xff]  ;;  %v5729_v44 = vpack.c.bf16 %v471_v35, %v465_v34 }
  0x3e   : > { %4294 = vmatprep.subr.bf16.mxu1 %v5657_v11  ;;  %7522 = vst [vmem:[#allocation16_spill] sm:$0xff] %v5711_v36  ;;  %v505_v42 = vld [vmem:[%s7333_s2 + $0x338] sm:$0xff]  ;;  %7523 = vst [vmem:[#allocation17_spill] sm:$0xff] %v5726_v43  ;;  %v464_v46 = vld [vmem:[%s7333_s2 + $0x1f0] sm:$0xff]  ;;  %v5738_v49 = vpack.c.bf16 %v492_v40, %v486_v39 }
  0x3f   : > { %4236 = vmatpush1.bf16.msra.mxu0 %v5621_v63  ;;  %7524 = vst [vmem:[#allocation18_spill] sm:$0xff] %v5729_v44  ;;  %v470_v47 = vld [vmem:[%s7333_s2 + $0x220] sm:$0xff]  ;;  %v477_v51 = vld [vmem:[%s7333_s2 + $0x258] sm:$0xff]  ;;  %v483_v53 = vld [vmem:[%s7333_s2 + $0x288] sm:$0xff]  ;;  %v5747_v54 = vpack.c.bf16 %v505_v42, %v499_v41 }
  0x40   : > { %4238 = vmatprep.subr.bf16.mxu0 %v5633_v3  ;;  %7525 = vst [vmem:[#allocation19_spill] sm:$0xff] %v5738_v49  ;;  %v498_v55 = vld [vmem:[%s7333_s2 + $0x300] sm:$0xff]  ;;  %v504_v56 = vld [vmem:[%s7333_s2 + $0x330] sm:$0xff]  ;;  %v511_v58 = vld [vmem:[%s7333_s2 + $0x368] sm:$0xff]  ;;  %v5762_v61 = vpack.c.bf16 %v470_v47, %v464_v46  ;;  %v5765_v62 = vpack.c.bf16 %v483_v53, %v477_v51 }
  0x41   : > { %4296 = vmatpush1.bf16.msra.mxu1 %v5690_v27  ;;  %7526 = vst [vmem:[#allocation20_spill] sm:$0xff] %v5747_v54  ;;  %v517_v59 = vld [vmem:[%s7333_s2 + $0x398] sm:$0xff]  ;;  %v476_v0 = vld [vmem:[%s7333_s2 + $0x250] sm:$0xff]  ;;  %v482_v2 = vld [vmem:[%s7333_s2 + $0x280] sm:$0xff]  ;;  %v5774_v4 = vpack.c.bf16 %v504_v56, %v498_v55 }
  0x42   : > { %4298 = vmatprep.subr.bf16.mxu1 %v5693_v28  ;;  %7527 = vst [vmem:[#allocation21_spill] sm:$0xff] %v5762_v61  ;;  %7528 = vst [vmem:[#allocation22_spill] sm:$0xff] %v5765_v62  ;;  %v489_v5 = vld [vmem:[%s7333_s2 + $0x2b8] sm:$0xff]  ;;  %v495_v6 = vld [vmem:[%s7333_s2 + $0x2e8] sm:$0xff]  ;;  %v5783_v7 = vpack.c.bf16 %v517_v59, %v511_v58  ;;  %v5798_v15 = vpack.c.bf16 %v482_v2, %v476_v0 }
  0x43   : > { %4240 = vmatpush1.bf16.msra.mxu0 %v5666_v14  ;;  %7529 = vst [vmem:[#allocation23_spill] sm:$0xff] %v5774_v4  ;;  %v510_v9 = vld [vmem:[%s7333_s2 + $0x360] sm:$0xff]  ;;  %v516_v10 = vld [vmem:[%s7333_s2 + $0x390] sm:$0xff]  ;;  %v523_v12 = vld [vmem:[%s7333_s2 + $0x3c8] sm:$0xff]  ;;  %v5801_v17 = vpack.c.bf16 %v495_v6, %v489_v5 }
  0x44   : > { %4242 = vmatprep.subr.bf16.mxu0 %v5672_v16  ;;  %7530 = vst [vmem:[#allocation24_spill] sm:$0xff] %v5783_v7  ;;  %v529_v13 = vld [vmem:[%s7333_s2 + $0x3f8] sm:$0xff]  ;;  %7531 = vst [vmem:[#allocation25_spill] sm:$0xff] %v5798_v15  ;;  %v488_v18 = vld [vmem:[%s7333_s2 + $0x2b0] sm:$0xff]  ;;  %v5810_v21 = vpack.c.bf16 %v516_v10, %v510_v9 }
  0x45   : > { %4300 = vmatpush1.bf16.msra.mxu1 %v5726_v43  ;;  %7532 = vst [vmem:[#allocation26_spill] sm:$0xff] %v5801_v17  ;;  %v494_v20 = vld [vmem:[%s7333_s2 + $0x2e0] sm:$0xff]  ;;  %v501_v22 = vld [vmem:[%s7333_s2 + $0x318] sm:$0xff]  ;;  %v507_v29 = vld [vmem:[%s7333_s2 + $0x348] sm:$0xff]  ;;  %v5819_v30 = vpack.c.bf16 %v529_v13, %v523_v12 }
  0x46   : > { %4302 = vmatprep.subr.bf16.mxu1 %v5729_v44  ;;  %7533 = vst [vmem:[#allocation27_spill] sm:$0xff] %v5810_v21  ;;  %v522_v34 = vld [vmem:[%s7333_s2 + $0x3c0] sm:$0xff]  ;;  %v528_v35 = vld [vmem:[%s7333_s2 + $0x3f0] sm:$0xff]  ;;  %v535_v39 = vld [vmem:[%s7333_s2 + $0x428] sm:$0xff]  ;;  %v5834_v41 = vpack.c.bf16 %v494_v20, %v488_v18  ;;  %v5837_v42 = vpack.c.bf16 %v507_v29, %v501_v22 }
  0x47   : > { %4244 = vmatpush1.bf16.msra.mxu0 %v5702_v33  ;;  %7534 = vst [vmem:[#allocation28_spill] sm:$0xff] %v5819_v30  ;;  %v541_v40 = vld [vmem:[%s7333_s2 + $0x458] sm:$0xff]  ;;  %v500_v46 = vld [vmem:[%s7333_s2 + $0x310] sm:$0xff]  ;;  %v506_v47 = vld [vmem:[%s7333_s2 + $0x340] sm:$0xff]  ;;  %v5846_v51 = vpack.c.bf16 %v528_v35, %v522_v34 }
  0x48   : > { %4246 = vmatprep.subr.bf16.mxu0 %v5711_v36  ;;  %7535 = vst [vmem:[#allocation29_spill] sm:$0xff] %v5834_v41  ;;  %7536 = vst [vmem:[#allocation30_spill] sm:$0xff] %v5837_v42  ;;  %v513_v53 = vld [vmem:[%s7333_s2 + $0x378] sm:$0xff]  ;;  %v519_v55 = vld [vmem:[%s7333_s2 + $0x3a8] sm:$0xff]  ;;  %v5855_v56 = vpack.c.bf16 %v541_v40, %v535_v39  ;;  %v5870_v5 = vpack.c.bf16 %v506_v47, %v500_v46 }
  0x49   : > { %4304 = vmatpush1.bf16.msra.mxu1 %v5762_v61  ;;  %7537 = vst [vmem:[#allocation31_spill] sm:$0xff] %v5846_v51  ;;  %v534_v58 = vld [vmem:[%s7333_s2 + $0x420] sm:$0xff]  ;;  %v540_v59 = vld [vmem:[%s7333_s2 + $0x450] sm:$0xff]  ;;  %v547_v0 = vld [vmem:[%s7333_s2 + $0x488] sm:$0xff]  ;;  %v5873_v6 = vpack.c.bf16 %v519_v55, %v513_v53 }
  0x4a   : > { %4306 = vmatprep.subr.bf16.mxu1 %v5765_v62  ;;  %7538 = vst [vmem:[#allocation32_spill] sm:$0xff] %v5855_v56  ;;  %v553_v2 = vld [vmem:[%s7333_s2 + $0x4b8] sm:$0xff]  ;;  %7539 = vst [vmem:[#allocation33_spill] sm:$0xff] %v5870_v5  ;;  %v512_v9 = vld [vmem:[%s7333_s2 + $0x370] sm:$0xff]  ;;  %v5882_v12 = vpack.c.bf16 %v540_v59, %v534_v58 }
  0x4b   : > { %4248 = vmatpush1.bf16.msra.mxu0 %v5738_v49  ;;  %7540 = vst [vmem:[#allocation34_spill] sm:$0xff] %v5873_v6  ;;  %v518_v10 = vld [vmem:[%s7333_s2 + $0x3a0] sm:$0xff]  ;;  %v525_v13 = vld [vmem:[%s7333_s2 + $0x3d8] sm:$0xff]  ;;  %v531_v18 = vld [vmem:[%s7333_s2 + $0x408] sm:$0xff]  ;;  %v5891_v20 = vpack.c.bf16 %v553_v2, %v547_v0 }
  0x4c   : > { %4250 = vmatprep.subr.bf16.mxu0 %v5747_v54  ;;  %7541 = vst [vmem:[#allocation35_spill] sm:$0xff] %v5882_v12  ;;  %v546_v22 = vld [vmem:[%s7333_s2 + $0x480] sm:$0xff]  ;;  %v552_v29 = vld [vmem:[%s7333_s2 + $0x4b0] sm:$0xff]  ;;  %v559_v34 = vld [vmem:[%s7333_s2 + $0x4e8] sm:$0xff]  ;;  %v5906_v39 = vpack.c.bf16 %v518_v10, %v512_v9  ;;  %v5909_v40 = vpack.c.bf16 %v531_v18, %v525_v13 }
  0x4d   : > { %4308 = vmatpush1.bf16.msra.mxu1 %v5798_v15  ;;  %7542 = vst [vmem:[#allocation36_spill] sm:$0xff] %v5891_v20  ;;  %v565_v35 = vld [vmem:[%s7333_s2 + $0x518] sm:$0xff]  ;;  %v524_v46 = vld [vmem:[%s7333_s2 + $0x3d0] sm:$0xff]  ;;  %v530_v47 = vld [vmem:[%s7333_s2 + $0x400] sm:$0xff]  ;;  %v5918_v53 = vpack.c.bf16 %v552_v29, %v546_v22 }
  0x4e   : > { %4310 = vmatprep.subr.bf16.mxu1 %v5801_v17  ;;  %7543 = vst [vmem:[#allocation37_spill] sm:$0xff] %v5906_v39  ;;  %7544 = vst [vmem:[#allocation38_spill] sm:$0xff] %v5909_v40  ;;  %v537_v55 = vld [vmem:[%s7333_s2 + $0x438] sm:$0xff]  ;;  %v543_v58 = vld [vmem:[%s7333_s2 + $0x468] sm:$0xff]  ;;  %v5927_v59 = vpack.c.bf16 %v565_v35, %v559_v34  ;;  %v5942_v13 = vpack.c.bf16 %v530_v47, %v524_v46 }
  0x4f   : > { %4252 = vmatpush1.bf16.msra.mxu0 %v5774_v4  ;;  %7545 = vst [vmem:[#allocation39_spill] sm:$0xff] %v5918_v53  ;;  %v558_v0 = vld [vmem:[%s7333_s2 + $0x4e0] sm:$0xff]  ;;  %v564_v2 = vld [vmem:[%s7333_s2 + $0x510] sm:$0xff]  ;;  %v571_v9 = vld [vmem:[%s7333_s2 + $0x548] sm:$0xff]  ;;  %v5945_v18 = vpack.c.bf16 %v543_v58, %v537_v55 }
  0x50   : > { %4254 = vmatprep.subr.bf16.mxu0 %v5783_v7  ;;  %7546 = vst [vmem:[#allocation40_spill] sm:$0xff] %v5927_v59  ;;  %v577_v10 = vld [vmem:[%s7333_s2 + $0x578] sm:$0xff]  ;;  %7547 = vst [vmem:[#allocation41_spill] sm:$0xff] %v5942_v13  ;;  %v536_v22 = vld [vmem:[%s7333_s2 + $0x430] sm:$0xff]  ;;  %v5954_v34 = vpack.c.bf16 %v564_v2, %v558_v0 }
  0x51   : > { %4312 = vmatpush1.bf16.msra.mxu1 %v5834_v41  ;;  %7548 = vst [vmem:[#allocation42_spill] sm:$0xff] %v5945_v18  ;;  %v542_v29 = vld [vmem:[%s7333_s2 + $0x460] sm:$0xff]  ;;  %v549_v35 = vld [vmem:[%s7333_s2 + $0x498] sm:$0xff]  ;;  %v555_v46 = vld [vmem:[%s7333_s2 + $0x4c8] sm:$0xff]  ;;  %v5963_v47 = vpack.c.bf16 %v577_v10, %v571_v9 }
  0x52   : > { %4314 = vmatprep.subr.bf16.mxu1 %v5837_v42  ;;  %7549 = vst [vmem:[#allocation43_spill] sm:$0xff] %v5954_v34  ;;  %v570_v55 = vld [vmem:[%s7333_s2 + $0x540] sm:$0xff]  ;;  %v576_v58 = vld [vmem:[%s7333_s2 + $0x570] sm:$0xff]  ;;  %v583_v0 = vld [vmem:[%s7333_s2 + $0x5a8] sm:$0xff]  ;;  %v5978_v9 = vpack.c.bf16 %v542_v29, %v536_v22  ;;  %v5981_v10 = vpack.c.bf16 %v555_v46, %v549_v35 }
  0x53   : > { %4256 = vmatpush1.bf16.msra.mxu0 %v5810_v21  ;;  %7550 = vst [vmem:[#allocation44_spill] sm:$0xff] %v5963_v47  ;;  %v589_v2 = vld [vmem:[%s7333_s2 + $0x5d8] sm:$0xff]  ;;  %v548_v23 = vld [vmem:[%s7333_s2 + $0x490] sm:$0xff]  ;;  %v567_v29 = vld [vmem:[%s7333_s2 + $0x528] sm:$0xff] }
  0x54   : > { %4258 = vmatprep.subr.bf16.mxu0 %v5819_v30  ;;  %7551 = vst [vmem:[#allocation45_spill] sm:$0xff] %v5978_v9  ;;  %7552 = vst [vmem:[#allocation46_spill] sm:$0xff] %v5981_v10  ;;  %v561_v22 = vld [vmem:[%s7333_s2 + $0x4f8] sm:$0xff]  ;;  %v5999_v35 = vpack.c.bf16 %v589_v2, %v583_v0  ;;  %v582_v46 = vld [vmem:[%s7333_s2 + $0x5a0] sm:$0xff] }
  0x55   : > { %4316 = vmatpush1.bf16.msra.mxu1 %v5870_v5  ;;  %v6017_v2 = vpack.c.bf16 %v567_v29, %v561_v22  ;;  %v406_v29 = vld [vmem:[%s7333_s2 + $0x20] sm:$0xff]  ;;  %v584_v17 = vld [vmem:[%s7333_s2 + $0x5b0] sm:$0xff]  ;;  %vm6545_vm2 = vmand %vm1279_vm0, %vm1280_vm1 }
  0x56   : > { %4318 = vmatprep.subr.bf16.mxu1 %v5873_v6  ;;  %7554 = vst [vmem:[#allocation48_spill] sm:$0xff] %v5999_v35  ;;  %v566_v6 = vld [vmem:[%s7333_s2 + $0x520] sm:$0xff]  ;;  %vm6624_vm5 = vmand %vm1350_vm3, %vm1351_vm4 }
  0x57   : > { %4260 = vmatpush1.bf16.msra.mxu0 %v5846_v51  ;;  %7556 = vst [vmem:[#allocation50_spill] sm:$0xff] %v6017_v2  ;;  %v578_v42 = vld [vmem:[%s7333_s2 + $0x580] sm:$0xff]  ;;  %vm6824_vm7 = vmand %vm1279_vm0, %vm2142_vm6 }
  0x58   : > { %4262 = vmatprep.subr.bf16.mxu0 %v5855_v56  ;;  %v590_v15 = vld [vmem:[%s7333_s2 + $0x5e0] sm:$0xff]  ;;  %vm6880_vm9 = vmand %vm1350_vm3, %vm2200_vm8 }
  0x59   : > { %4320 = vmatpush1.bf16.msra.mxu1 %v5906_v39  ;;  %v5990_v39 = vpack.c.bf16 %v576_v58, %v570_v55  ;;  %v588_v55 = vld [vmem:[%s7333_s2 + $0x5d0] sm:$0xff]  ;;  %v407_v58 = vld [vmem:[%s7333_s2 + $0x28] sm:$0xff] }
  0x5a   : > { %4322 = vmatprep.subr.bf16.mxu1 %v5909_v40  ;;  %v554_v40 = vld [vmem:[%s7333_s2 + $0x4c0] sm:$0xff]  ;;  %v6026_v5 = vpack.c.bf16 %v588_v55, %v582_v46  ;;  %v412_v46 = vld [vmem:[%s7333_s2 + $0x50] sm:$0xff]  ;;  %v419_v55 = vld [vmem:[%s7333_s2 + $0x88] sm:$0xff] }
  0x5b   : > { %4264 = vmatpush1.bf16.msra.mxu0 %v5882_v12  ;;  %7553 = vst [vmem:[#allocation47_spill] sm:$0xff] %v5990_v39  ;;  %v6014_v0 = vpack.c.bf16 %v554_v40, %v548_v23  ;;  %v573_v23 = vld [vmem:[%s7333_s2 + $0x558] sm:$0xff]  ;;  %v579_v40 = vld [vmem:[%s7333_s2 + $0x588] sm:$0xff]  ;;  %v6062_v41 = vpack.c.bf16 %v412_v46, %v406_v29  ;;  %v424_v29 = vld [vmem:[%s7333_s2 + $0xb0] sm:$0xff] }
  0x5c   : > { %4266 = vmatprep.subr.bf16.mxu0 %v5891_v20  ;;  %7557 = vst [vmem:[#allocation51_spill] sm:$0xff] %v6026_v5  ;;  %v431_v46 = vld [vmem:[%s7333_s2 + $0xe8] sm:$0xff] }
  0x5d   : > { %4324 = vmatpush1.bf16.msra.mxu1 %v5942_v13  ;;  %7555 = vst [vmem:[#allocation49_spill] sm:$0xff] %v6014_v0  ;;  %v560_v13 = vld [vmem:[%s7333_s2 + $0x4f0] sm:$0xff] }
  0x5e   : > { %4326 = vmatprep.subr.bf16.mxu1 %v5945_v18  ;;  %v413_v18 = vld [vmem:[%s7333_s2 + $0x58] sm:$0xff] }
  0x5f   : > { %4268 = vmatpush1.bf16.msra.mxu0 %v5918_v53  ;;  %v6035_v22 = vpack.c.bf16 %v413_v18, %v407_v58  ;;  %v6050_v18 = vpack.c.bf16 %v566_v6, %v560_v13  ;;  %v6053_v58 = vpack.c.bf16 %v579_v40, %v573_v23  ;;  %v585_v6 = vld [vmem:[%s7333_s2 + $0x5b8] sm:$0xff]  ;;  %v591_v13 = vld [vmem:[%s7333_s2 + $0x5e8] sm:$0xff]  ;;  %v418_v40 = vld [vmem:[%s7333_s2 + $0x80] sm:$0xff] }
  0x60   : > { %4270 = vmatprep.subr.bf16.mxu0 %v5927_v59  ;;  %v6099_v62 = vpack.c.bf16 %v424_v29, %v418_v40 }
  0x61   : > { %4328 = vmatpush1.bf16.msra.mxu1 %v5978_v9  ;;  %7558 = vst [vmem:[#allocation52_spill] sm:$0xff] %v6035_v22  ;;  %7559 = vst [vmem:[#allocation53_spill] sm:$0xff] %v6050_v18  ;;  %v572_v9 = vld [vmem:[%s7333_s2 + $0x550] sm:$0xff] }
  0x62   : > { %4330 = vmatprep.subr.bf16.mxu1 %v5981_v10  ;;  %v425_v10 = vld [vmem:[%s7333_s2 + $0xb8] sm:$0xff]  ;;  %7560 = vst [vmem:[#allocation54_spill] sm:$0xff] %v6053_v58 }
  0x63   : > { %4272 = vmatpush1.bf16.msra.mxu0 %v5954_v34  ;;  %v6071_v23 = vpack.c.bf16 %v425_v10, %v419_v55  ;;  %v6086_v10 = vpack.c.bf16 %v578_v42, %v572_v9  ;;  %v7563_v55 = vmov 0.0   ;;  %v430_v9 = vld [vmem:[%s7333_s2 + $0xe0] sm:$0xff] }
  0x64   : > { %4274 = vmatprep.subr.bf16.mxu0 %v5963_v47 }
  0x65   : > { %4332 = vmatpush1.bf16.msra.mxu1 %v6014_v0  ;;  %7561 = vst [vmem:[#allocation55_spill] sm:$0xff] %v6071_v23  ;;  %7562 = vst [vmem:[#allocation56_spill] sm:$0xff] %v6086_v10  ;;  %v6090_v0 = vpack.c.bf16 %v591_v13, %v585_v6  ;;  %v436_v6 = vld [vmem:[%s7333_s2 + $0x110] sm:$0xff]  ;;  %v443_v13 = vld [vmem:[%s7333_s2 + $0x148] sm:$0xff] }
  0x66   : > { %4334 = vmatprep.subr.bf16.mxu1 %v6017_v2  ;;  %v437_v2 = vld [vmem:[%s7333_s2 + $0x118] sm:$0xff]  ;;  %v6122_v40 = vpack.c.bf16 %v436_v6, %v430_v9 }
  0x67   : > { %4276 = vmatpush1.bf16.msra.mxu0 %v5990_v39  ;;  %7564 = vst [vmem:[#allocation57_spill] sm:$0xff] %v6090_v0  ;;  %v6103_v42 = vpack.c.bf16 %v437_v2, %v431_v46  ;;  %v6118_v2 = vpack.c.bf16 %v590_v15, %v584_v17  ;;  %v442_v46 = vld [vmem:[%s7333_s2 + $0x140] sm:$0xff]  ;;  %v455_v15 = vld [vmem:[%s7333_s2 + $0x1a8] sm:$0xff]  ;;  %v461_v17 = vld [vmem:[%s7333_s2 + $0x1d8] sm:$0xff] }
  0x68   : > { %4278 = vmatprep.subr.bf16.mxu0 %v5999_v35  ;;  %7567 = vst [vmem:[#allocation60_spill] sm:$0xff] %v6122_v40  ;;  %v6145_v6 = vpack.c.bf16 %v461_v17, %v455_v15  ;;  %v466_v17 = vld [vmem:[%s7333_s2 + $0x200] sm:$0xff] }
  0x69   : > { %4336 = vmatpush1.bf16.msra.mxu1 %v6050_v18  ;;  %7565 = vst [vmem:[#allocation58_spill] sm:$0xff] %v6103_v42  ;;  %7566 = vst [vmem:[#allocation59_spill] sm:$0xff] %v6118_v2 }
  0x6a   : > { %4338 = vmatprep.subr.bf16.mxu1 %v6053_v58  ;;  %7570 = vst [vmem:[#allocation63_spill] sm:$0xff] %v6145_v6 }
  0x6b   : > { %4280 = vmatpush1.bf16.msra.mxu0 %v6026_v5 }
  0x6c   : > { %4346 = vmatprep.subr.bf16.mxu0 %v6035_v22 }
  0x6d   : > { %4340 = vmatpush1.bf16.msra.mxu1 %v6086_v10 }
  0x6e   : > { %694 = vmatmul.mubr.f32.vlgmr.msra.gmra.mrb[0].mxu0 %v7563_v55  ;;  %4342 = vmatprep.subr.bf16.mxu1 %v6090_v0 }
  0x6f   : > { %4348 = vmatpush1.bf16.msra.mxu0 %v6062_v41  ;;  %835 = vmatprep.mubr.f32.mxu0 %v5505_v24  ;;  %v449_v24 = vld [vmem:[%s7333_s2 + $0x178] sm:$0xff] }
  0x70   : > { %4350 = vmatprep.subr.bf16.mxu0 %v6071_v23  ;;  %v6125_v29 = vpack.c.bf16 %v449_v24, %v443_v13  ;;  %v448_v23 = vld [vmem:[%s7333_s2 + $0x170] sm:$0xff]  ;;  %v454_v13 = vld [vmem:[%s7333_s2 + $0x1a0] sm:$0xff] }
  0x71   : > { %4344 = vmatpush1.bf16.msra.mxu1 %v6118_v2  ;;  %v6142_v9 = vpack.c.bf16 %v448_v23, %v442_v46  ;;  %v460_v24 = vld [vmem:[%s7333_s2 + $0x1d0] sm:$0xff]  ;;  %v473_v23 = vld [vmem:[%s7333_s2 + $0x238] sm:$0xff] }
  0x72   : > { %7568 = vst [vmem:[#allocation61_spill] sm:$0xff] %v6125_v29  ;;  %4410 = vmatprep.subr.bf16.mxu1 %v5492_v19  ;;  %v6163_v46 = vpack.c.bf16 %v460_v24, %v454_v13  ;;  %v485_v13 = vld [vmem:[%s7333_s2 + $0x298] sm:$0xff] }
  0x73   : > { %4352 = vmatpush1.bf16.msra.mxu0 %v6099_v62  ;;  %7569 = vst [vmem:[#allocation62_spill] sm:$0xff] %v6142_v9 }
  0x74   : > { %4354 = vmatprep.subr.bf16.mxu0 %v6103_v42  ;;  %765 = vmatmul.mubr.f32.vlgmr.msra.gmra.mrb[0].mxu1 %v7563_v55  ;;  %7571 = vst [vmem:[#allocation64_spill] sm:$0xff] %v6163_v46  ;;  %v479_v42 = vld [vmem:[%s7333_s2 + $0x268] sm:$0xff] }
  0x75   : > { %4412 = vmatpush1.bf16.msra.mxu1 %v5507_v25  ;;  %v6186_v24 = vpack.c.bf16 %v485_v13, %v479_v42  ;;  %v490_v13 = vld [vmem:[%s7333_s2 + $0x2c0] sm:$0xff] }
  0x76   : > { %4414 = vmatprep.subr.bf16.mxu1 %v5509_v26 }
  0x77   : > { %4356 = vmatpush1.bf16.msra.mxu0 %v6122_v40  ;;  %v467_v40 = vld [vmem:[%s7333_s2 + $0x208] sm:$0xff]  ;;  %7574 = vst [vmem:[#allocation67_spill] sm:$0xff] %v6186_v24 }
  0x78   : > { %4358 = vmatprep.subr.bf16.mxu0 %v6125_v29  ;;  %v6166_v15 = vpack.c.bf16 %v473_v23, %v467_v40  ;;  %v472_v29 = vld [vmem:[%s7333_s2 + $0x230] sm:$0xff]  ;;  %v478_v23 = vld [vmem:[%s7333_s2 + $0x260] sm:$0xff] }
  0x79   : > { %4416 = vmatpush1.bf16.msra.mxu1 %v5526_v31  ;;  %v6183_v40 = vpack.c.bf16 %v472_v29, %v466_v17  ;;  %v497_v29 = vld [vmem:[%s7333_s2 + $0x2f8] sm:$0xff] }
  0x7a   : > { %7572 = vst [vmem:[#allocation65_spill] sm:$0xff] %v6166_v15  ;;  %4418 = vmatprep.subr.bf16.mxu1 %v5530_v32 }
  0x7b   : > { %4360 = vmatpush1.bf16.msra.mxu0 %v6142_v9  ;;  %7573 = vst [vmem:[#allocation66_spill] sm:$0xff] %v6183_v40  ;;  %v491_v9 = vld [vmem:[%s7333_s2 + $0x2c8] sm:$0xff] }
  0x7c   : > { %4362 = vmatprep.subr.bf16.mxu0 %v6145_v6  ;;  %v484_v6 = vld [vmem:[%s7333_s2 + $0x290] sm:$0xff]  ;;  %v6206_v17 = vpack.c.bf16 %v497_v29, %v491_v9  ;;  %v502_v29 = vld [vmem:[%s7333_s2 + $0x320] sm:$0xff] }
  0x7d   : > { %4420 = vmatpush1.bf16.msra.mxu1 %v5545_v37  ;;  %v6203_v42 = vpack.c.bf16 %v484_v6, %v478_v23  ;;  %v509_v6 = vld [vmem:[%s7333_s2 + $0x358] sm:$0xff] }
  0x7e   : > { %4422 = vmatprep.subr.bf16.mxu1 %v5548_v38  ;;  %7576 = vst [vmem:[#allocation69_spill] sm:$0xff] %v6206_v17 }
  0x7f   : > { %4364 = vmatpush1.bf16.msra.mxu0 %v6163_v46  ;;  %7575 = vst [vmem:[#allocation68_spill] sm:$0xff] %v6203_v42  ;;  %v503_v46 = vld [vmem:[%s7333_s2 + $0x328] sm:$0xff] }
  0x80   : > { %4366 = vmatprep.subr.bf16.mxu0 %v6166_v15  ;;  %v496_v15 = vld [vmem:[%s7333_s2 + $0x2f0] sm:$0xff]  ;;  %v6226_v23 = vpack.c.bf16 %v509_v6, %v503_v46  ;;  %v514_v6 = vld [vmem:[%s7333_s2 + $0x380] sm:$0xff] }
  0x81   : > { %4424 = vmatpush1.bf16.msra.mxu1 %v5577_v48  ;;  %v6223_v9 = vpack.c.bf16 %v496_v15, %v490_v13  ;;  %v521_v15 = vld [vmem:[%s7333_s2 + $0x3b8] sm:$0xff] }
  0x82   : > { %4426 = vmatprep.subr.bf16.mxu1 %v5588_v52  ;;  %7578 = vst [vmem:[#allocation71_spill] sm:$0xff] %v6226_v23 }
  0x83   : > { %4368 = vmatpush1.bf16.msra.mxu0 %v6183_v40  ;;  %7577 = vst [vmem:[#allocation70_spill] sm:$0xff] %v6223_v9  ;;  %v515_v40 = vld [vmem:[%s7333_s2 + $0x388] sm:$0xff] }
  0x84   : > { %4370 = vmatprep.subr.bf16.mxu0 %v6186_v24  ;;  %v508_v24 = vld [vmem:[%s7333_s2 + $0x350] sm:$0xff]  ;;  %v6246_v13 = vpack.c.bf16 %v521_v15, %v515_v40  ;;  %v526_v15 = vld [vmem:[%s7333_s2 + $0x3e0] sm:$0xff] }
  0x85   : > { %4428 = vmatpush1.bf16.msra.mxu1 %v5621_v63  ;;  %v6243_v46 = vpack.c.bf16 %v508_v24, %v502_v29  ;;  %v533_v24 = vld [vmem:[%s7333_s2 + $0x418] sm:$0xff] }
  0x86   : > { %4430 = vmatprep.subr.bf16.mxu1 %v5633_v3  ;;  %7580 = vst [vmem:[#allocation73_spill] sm:$0xff] %v6246_v13 }
  0x87   : > { %4372 = vmatpush1.bf16.msra.mxu0 %v6203_v42  ;;  %7579 = vst [vmem:[#allocation72_spill] sm:$0xff] %v6243_v46  ;;  %v527_v42 = vld [vmem:[%s7333_s2 + $0x3e8] sm:$0xff] }
  0x88   : > { %4374 = vmatprep.subr.bf16.mxu0 %v6206_v17  ;;  %v520_v17 = vld [vmem:[%s7333_s2 + $0x3b0] sm:$0xff]  ;;  %v6266_v29 = vpack.c.bf16 %v533_v24, %v527_v42  ;;  %v538_v24 = vld [vmem:[%s7333_s2 + $0x440] sm:$0xff] }
  0x89   : > { %4432 = vmatpush1.bf16.msra.mxu1 %v5666_v14  ;;  %v6263_v40 = vpack.c.bf16 %v520_v17, %v514_v6  ;;  %v545_v17 = vld [vmem:[%s7333_s2 + $0x478] sm:$0xff] }
  0x8a   : > { %4434 = vmatprep.subr.bf16.mxu1 %v5672_v16  ;;  %7582 = vst [vmem:[#allocation75_spill] sm:$0xff] %v6266_v29 }
  0x8b   : > { %4376 = vmatpush1.bf16.msra.mxu0 %v6223_v9  ;;  %7581 = vst [vmem:[#allocation74_spill] sm:$0xff] %v6263_v40  ;;  %v539_v9 = vld [vmem:[%s7333_s2 + $0x448] sm:$0xff] }
  0x8c   : > { %4378 = vmatprep.subr.bf16.mxu0 %v6226_v23  ;;  %v532_v23 = vld [vmem:[%s7333_s2 + $0x410] sm:$0xff]  ;;  %v6286_v6 = vpack.c.bf16 %v545_v17, %v539_v9  ;;  %v550_v17 = vld [vmem:[%s7333_s2 + $0x4a0] sm:$0xff] }
  0x8d   : > { %4436 = vmatpush1.bf16.msra.mxu1 %v5702_v33  ;;  %v6283_v42 = vpack.c.bf16 %v532_v23, %v526_v15  ;;  %v557_v23 = vld [vmem:[%s7333_s2 + $0x4d8] sm:$0xff] }
  0x8e   : > { %4438 = vmatprep.subr.bf16.mxu1 %v5711_v36  ;;  %7584 = vst [vmem:[#allocation77_spill] sm:$0xff] %v6286_v6 }
  0x8f   : > { %4380 = vmatpush1.bf16.msra.mxu0 %v6243_v46  ;;  %7583 = vst [vmem:[#allocation76_spill] sm:$0xff] %v6283_v42  ;;  %v551_v46 = vld [vmem:[%s7333_s2 + $0x4a8] sm:$0xff] }
  0x90   : > { %4382 = vmatprep.subr.bf16.mxu0 %v6246_v13  ;;  %v544_v13 = vld [vmem:[%s7333_s2 + $0x470] sm:$0xff]  ;;  %v6306_v15 = vpack.c.bf16 %v557_v23, %v551_v46  ;;  %v562_v23 = vld [vmem:[%s7333_s2 + $0x500] sm:$0xff] }
  0x91   : > { %4440 = vmatpush1.bf16.msra.mxu1 %v5738_v49  ;;  %v6303_v9 = vpack.c.bf16 %v544_v13, %v538_v24  ;;  %v569_v13 = vld [vmem:[%s7333_s2 + $0x538] sm:$0xff] }
  0x92   : > { %4442 = vmatprep.subr.bf16.mxu1 %v5747_v54  ;;  %7586 = vst [vmem:[#allocation79_spill] sm:$0xff] %v6306_v15 }
  0x93   : > { %4384 = vmatpush1.bf16.msra.mxu0 %v6263_v40  ;;  %7585 = vst [vmem:[#allocation78_spill] sm:$0xff] %v6303_v9  ;;  %v563_v40 = vld [vmem:[%s7333_s2 + $0x508] sm:$0xff] }
  0x94   : > { %4386 = vmatprep.subr.bf16.mxu0 %v6266_v29  ;;  %v556_v29 = vld [vmem:[%s7333_s2 + $0x4d0] sm:$0xff]  ;;  %v6326_v24 = vpack.c.bf16 %v569_v13, %v563_v40  ;;  %v574_v13 = vld [vmem:[%s7333_s2 + $0x560] sm:$0xff] }
  0x95   : > { %4444 = vmatpush1.bf16.msra.mxu1 %v5774_v4  ;;  %v6323_v46 = vpack.c.bf16 %v556_v29, %v550_v17  ;;  %v581_v29 = vld [vmem:[%s7333_s2 + $0x598] sm:$0xff] }
  0x96   : > { %4446 = vmatprep.subr.bf16.mxu1 %v5783_v7  ;;  %7588 = vst [vmem:[#allocation81_spill] sm:$0xff] %v6326_v24 }
  0x97   : > { %4388 = vmatpush1.bf16.msra.mxu0 %v6283_v42  ;;  %7587 = vst [vmem:[#allocation80_spill] sm:$0xff] %v6323_v46  ;;  %v575_v42 = vld [vmem:[%s7333_s2 + $0x568] sm:$0xff] }
  0x98   : > { %4390 = vmatprep.subr.bf16.mxu0 %v6286_v6  ;;  %v568_v6 = vld [vmem:[%s7333_s2 + $0x530] sm:$0xff]  ;;  %v6346_v17 = vpack.c.bf16 %v581_v29, %v575_v42  ;;  %v586_v29 = vld [vmem:[%s7333_s2 + $0x5c0] sm:$0xff] }
  0x99   : > { %4448 = vmatpush1.bf16.msra.mxu1 %v5810_v21  ;;  %v6343_v40 = vpack.c.bf16 %v568_v6, %v562_v23  ;;  %v593_v6 = vld [vmem:[%s7333_s2 + $0x5f8] sm:$0xff] }
  0x9a   : > { %4450 = vmatprep.subr.bf16.mxu1 %v5819_v30  ;;  %7590 = vst [vmem:[#allocation83_spill] sm:$0xff] %v6346_v17 }
  0x9b   : > { %4392 = vmatpush1.bf16.msra.mxu0 %v6303_v9  ;;  %7589 = vst [vmem:[#allocation82_spill] sm:$0xff] %v6343_v40  ;;  %v587_v9 = vld [vmem:[%s7333_s2 + $0x5c8] sm:$0xff] }
  0x9c   : > { %4394 = vmatprep.subr.bf16.mxu0 %v6306_v15  ;;  %v580_v15 = vld [vmem:[%s7333_s2 + $0x590] sm:$0xff]  ;;  %v6366_v23 = vpack.c.bf16 %v593_v6, %v587_v9  ;;  %v7594_v9 = vld [vmem:[#allocation22_spill] sm:$0xff]  ;;  %v7597_v6 = vld [vmem:[#allocation29_spill] sm:$0xff] }
  0x9d   : > { %4452 = vmatpush1.bf16.msra.mxu1 %v5846_v51  ;;  %v6363_v42 = vpack.c.bf16 %v580_v15, %v574_v13  ;;  %v7596_v13 = vld [vmem:[#allocation26_spill] sm:$0xff]  ;;  %v1288_v51 = vld [vmem:[%s6539_s13 + $0x4] sm:$0x1] }
  0x9e   : > { %4454 = vmatprep.subr.bf16.mxu1 %v5855_v56  ;;  %7592 = vst [vmem:[#allocation85_spill] sm:$0xff] %v6366_v23 }
  0x9f   : > { %4396 = vmatpush1.bf16.msra.mxu0 %v6323_v46  ;;  %7591 = vst [vmem:[#allocation84_spill] sm:$0xff] %v6363_v42 }
  0xa0   : > { %4398 = vmatprep.subr.bf16.mxu0 %v6326_v24  ;;  %v592_v24 = vld [vmem:[%s7333_s2 + $0x5f0] sm:$0xff] }
  0xa1   : > { %4456 = vmatpush1.bf16.msra.mxu1 %v5882_v12  ;;  %v6377_v15 = vpack.c.bf16 %v592_v24, %v586_v29  ;;  %v7595_v24 = vld [vmem:[#allocation25_spill] sm:$0xff]  ;;  %v7598_v29 = vld [vmem:[#allocation30_spill] sm:$0xff] }
  0xa2   : > { %4458 = vmatprep.subr.bf16.mxu1 %v5891_v20 }
  0xa3   : > { %4400 = vmatpush1.bf16.msra.mxu0 %v6343_v40  ;;  %7593 = vst [vmem:[#allocation86_spill] sm:$0xff] %v6377_v15 }
  0xa4   : > { %4402 = vmatprep.subr.bf16.mxu0 %v6346_v17 }
  0xa5   : > { %4460 = vmatpush1.bf16.msra.mxu1 %v5918_v53 }
  0xa6   : > { %4462 = vmatprep.subr.bf16.mxu1 %v5927_v59 }
  0xa7   : > { %4404 = vmatpush1.bf16.msra.mxu0 %v6363_v42 }
  0xa8   : > { %4406 = vmatprep.subr.bf16.mxu0 %v6366_v23 }
  0xa9   : > { %4464 = vmatpush1.bf16.msra.mxu1 %v5954_v34 }
  0xaa   : > { %4466 = vmatprep.subr.bf16.mxu1 %v5963_v47 }
  0xab   : > { %4408 = vmatpush1.bf16.msra.mxu0 %v6377_v15 }
  0xac   : > { %4474 = vmatprep.subr.bf16.mxu0 %v5568_v45 }
  0xad   : > { %4468 = vmatpush1.bf16.msra.mxu1 %v5990_v39 }
  0xae   : > { %836 = vmatmul.mubr.f32.vlgmr.msra.gmra.mrb[2].mxu0 %v7563_v55  ;;  %4470 = vmatprep.subr.bf16.mxu1 %v5999_v35 }
  0xaf   : > { %4476 = vmatpush1.bf16.msra.mxu0 %v5582_v50 }
  0xb0   : > { %4478 = vmatprep.subr.bf16.mxu0 %v5604_v57 }
  0xb1   : > { %4472 = vmatpush1.bf16.msra.mxu1 %v6026_v5 }
  0xb2   : > { %4538 = vmatprep.subr.bf16.mxu1 %v6035_v22 }
  0xb3   : > { %4480 = vmatpush1.bf16.msra.mxu0 %v5612_v60 }
  0xb4   : > { %4482 = vmatprep.subr.bf16.mxu0 %v5627_v1 }
  0xb7   : > { %4484 = vmatpush1.bf16.msra.mxu0 %v5648_v8 }
  0xb8   : > { %4486 = vmatprep.subr.bf16.mxu0 %v5657_v11  ;;  %v7599_v11 = vld [vmem:[#allocation33_spill] sm:$0xff] }
  0xbb   : > { %4488 = vmatpush1.bf16.msra.mxu0 %v5690_v27  ;;  %v7600_v27 = vld [vmem:[#allocation34_spill] sm:$0xff] }
  0xbc   : > { %4490 = vmatprep.subr.bf16.mxu0 %v5693_v28  ;;  %v7601_v28 = vld [vmem:[#allocation37_spill] sm:$0xff] }
  0xbf   : > { %4492 = vmatpush1.bf16.msra.mxu0 %v5726_v43  ;;  %v7602_v43 = vld [vmem:[#allocation38_spill] sm:$0xff] }
  0xc0   : > { %4494 = vmatprep.subr.bf16.mxu0 %v5729_v44  ;;  %v7603_v44 = vld [vmem:[#allocation41_spill] sm:$0xff] }
  0xc3   : > { %4496 = vmatpush1.bf16.msra.mxu0 %v5762_v61  ;;  %v7604_v61 = vld [vmem:[#allocation42_spill] sm:$0xff] }
  0xc4   : > { %4498 = vmatprep.subr.bf16.mxu0 %v7594_v9 }
  0xc7   : > { %4500 = vmatpush1.bf16.msra.mxu0 %v7595_v24  ;;  %v7605_v24 = vld [vmem:[#allocation45_spill] sm:$0xff] }
  0xc8   : > { %4502 = vmatprep.subr.bf16.mxu0 %v7596_v13  ;;  %v7606_v13 = vld [vmem:[#allocation46_spill] sm:$0xff] }
  0xcb   : > { %4504 = vmatpush1.bf16.msra.mxu0 %v7597_v6  ;;  %v7607_v6 = vld [vmem:[#allocation49_spill] sm:$0xff] }
  0xcc   : > { %4506 = vmatprep.subr.bf16.mxu0 %v7598_v29  ;;  %v7608_v29 = vld [vmem:[#allocation50_spill] sm:$0xff] }
  0xcf   : > { %4508 = vmatpush1.bf16.msra.mxu0 %v7599_v11 }
  0xd0   : > { %4510 = vmatprep.subr.bf16.mxu0 %v7600_v27 }
  0xd3   : > { %4512 = vmatpush1.bf16.msra.mxu0 %v7601_v28  ;;  %v6460_v28 = vld [vmem:[%s6446_s18 + $0x24] ss:$4 sm:$0x7] }
  0xd4   : > { %4514 = vmatprep.subr.bf16.mxu0 %v7602_v43  ;;  %v6453_v43 = vld [vmem:[%s6446_s18 + $0xc] ss:$4 sm:$0x7]  ;;  %v913_v57 = vrot.slane %v6460_v28, 1 }
  0xd5   : > { %v911_v9 = vrot.slane %v6453_v43, 1 }
  0xd7   : > { %4516 = vmatpush1.bf16.msra.mxu0 %v7603_v44 }
  0xd8   : > { %4518 = vmatprep.subr.bf16.mxu0 %v7604_v61  ;;  %v596_v61 = vlaneseq }
  0xdb   : > { %4520 = vmatpush1.bf16.msra.mxu0 %v7605_v24  ;;  %v6423_v24 = vshrl.u32 %v596_v61, 7 }
  0xdc   : > { %4522 = vmatprep.subr.bf16.mxu0 %v7606_v13  ;;  %v5393_v13 = vmov 1966171168  }
  0xdd   : > { %v851_v44 = vunpack.c.l.s4 %v5393_v13  ;;  %v606_v23 = vsub.s32 2, %v6423_v24  ;;  %v614_v53 = vsub.s32 4, %v6423_v24 }
  0xdf   : > { %4524 = vmatpush1.bf16.msra.mxu0 %v7607_v6  ;;  %v6449_v6 = vld [vmem:[%s6446_s18] ss:$4 sm:$0x7] }
  0xe0   : > { %4526 = vmatprep.subr.bf16.mxu0 %v7608_v29  ;;  %v598_v29 = vsub.s32 0, %v6423_v24 }
  0xe3   : > { %4528 = vmatpush1.bf16.msra.mxu0 %v6050_v18 }
  0xe4   : > { %4530 = vmatprep.subr.bf16.mxu0 %v6053_v58 }
  0xe7   : > { %4532 = vmatpush1.bf16.msra.mxu0 %v6086_v10  ;;  %v6432_v10 = vld [vmem:[%s7334_s3] sm:$0x3f] }
  0xe8   : > { %4534 = vmatprep.subr.bf16.mxu0 %v6090_v0  ;;  %v852_v0 = vunpack.c.0.s8 %v851_v44 }
  0xea   : > { %v6442_v13 = vsub.s32 %v852_v0, %v6423_v24 }
  0xeb   : > { %4536 = vmatpush1.bf16.msra.mxu0 %v6118_v2  ;;  %v602_v2 = vsub.s32 1, %v6423_v24 }
  0xec   : > { %4602 = vmatprep.subr.bf16.mxu0 %v5492_v19  ;;  %v6436_v19 = vrot.slane %v6432_v10, %v598_v29 }
  0xed   : > { %v6439_v61 = vrot.slane %v6432_v10, %v602_v2  ;;  %v6456_v2 = vld [vmem:[%s6446_s18 + $0x18] ss:$4 sm:$0x7] }
  0xee   : > { %7609 = vst [vmem:[#allocation87_spill] sm:$0xff] %v6436_v19  ;;  %v912_v8 = vrot.slane %v6456_v2, 1 }
  0xef   : > { %7610 = vst [vmem:[#allocation88_spill] sm:$0xff] %v6439_v61 }
 0x141   : > { %v695_v58 = vpop.f32.mrb[0].mxu0 }
 0x142   : > { %v696_v18 = vadd.f32 %v695_v58, %v6436_v19  ;;  %v697_v44 = vpop.f32.mrb[1].mxu0  ;;  %v910_v58 = vrot.slane %v6449_v6, 1 }
 0x143   : > { %v698_v29 = vadd.f32 %v697_v44, %v6439_v61 }
 0x144   : > { %v856_v0 = vrot.slane %v696_v18, %v6442_v13 }
 0x145   : > { %v925_v19 = vrot.slane %v698_v29, %v6442_v13 }
 0x146   : > { %v857_v27 = vcombine.high %v856_v0, %v856_v0  ;;  %v864_v11 = vrot.slane %v856_v0, %v6442_v13  ;;  %v610_v0 = vsub.s32 3, %v6423_v24 }
 0x147   : > { %v926_v44 = vcombine.high %v925_v19, %v925_v19  ;;  %v933_v61 = vrot.slane %v925_v19, %v6442_v13 }
 0x148   : > { %v871_v1 = vrot.slane %v857_v27, %v6442_v13  ;;  %v872_v60 = vcombine.high %v864_v11, %v864_v11  ;;  %v878_v18 = vadd.f32 %v864_v11, %v6449_v6  ;;  %v766_v11 = vpop.f32.mrb[0].mxu1  ;;  %v6478_v34 = vrot.slane %v6432_v10, %v610_v0 }
 0x149   : > { %v940_v50 = vrot.slane %v926_v44, %v6442_v13  ;;  %v941_v29 = vcombine.high %v933_v61, %v933_v61  ;;  %v947_v22 = vadd.f32 %v933_v61, %v910_v58  ;;  %v768_v61 = vpop.f32.mrb[1].mxu1 }
 0x14a   : > { %v873_v5 = vcombine.high %v871_v1, %v871_v1  ;;  %v879_v45 = vadd.f32 %v6453_v43, %v871_v1  ;;  %v880_v15 = vadd.f32 %v6456_v2, %v872_v60  ;;  %v4124_v35 = vmul.f32 -1.442695, %v878_v18  ;;  %7611 = vst [vmem:[#allocation89_spill] sm:$0xff] %v6478_v34 }
 0x14b   : > { %v942_v19 = vcombine.high %v940_v50, %v940_v50  ;;  %v948_v39 = vadd.f32 %v940_v50, %v911_v9  ;;  %v949_v27 = vadd.f32 %v941_v29, %v912_v8  ;;  %v4128_v60 = vmul.f32 -1.442695, %v947_v22 }
 0x14c   : > { %v881_v42 = vadd.f32 %v6460_v28, %v873_v5  ;;  %5032 = vpow2.f32 %v4124_v35  ;;  %v4125_v44 = vmul.f32 -1.442695, %v879_v45  ;;  %v4126_v47 = vmul.f32 -1.442695, %v880_v15 }
 0x14d   : > { %v950_v58 = vadd.f32 %v942_v19, %v913_v57  ;;  %v4129_v18 = vmul.f32 -1.442695, %v948_v39  ;;  %v4130_v50 = vmul.f32 -1.442695, %v949_v27  ;;  %v6481_v8 = vrot.slane %v6432_v10, %v606_v23 }
 0x14e   : > { %5034 = vpow2.f32 %v4125_v44  ;;  %v4127_v1 = vmul.f32 -1.442695, %v881_v42  ;;  %v769_v5 = vadd.f32 %v768_v61, %v6478_v34  ;;  %v6492_v61 = vld [vmem:[%s6489_s9 + $0x3] ss:$4 sm:$0x7] }
 0x14f   : > { %5036 = vpow2.f32 %v4126_v47  ;;  %7612 = vst [vmem:[#allocation90_spill] sm:$0xff] %v6481_v8  ;;  %v4131_v9 = vmul.f32 -1.442695, %v950_v58  ;;  %v767_v45 = vadd.f32 %v766_v11, %v6481_v8  ;;  %v6510_v34 = vld [vmem:[%s6489_s9 + $0x27] ss:$4 sm:$0x7] }
 0x150   : > { %5038 = vpow2.f32 %v4127_v1  ;;  %v1083_v57 = vrot.slane %v769_v5, %v6442_v13 }
 0x151   : > { %5040 = vpow2.f32 %v4128_v60  ;;  %v982_v22 = vrot.slane %v767_v45, %v6442_v13 }
 0x152   : > { %5042 = vpow2.f32 %v4129_v18  ;;  %v1084_v15 = vcombine.high %v1083_v57, %v1083_v57  ;;  %v1091_v27 = vrot.slane %v1083_v57, %v6442_v13  ;;  %v6496_v18 = vld [vmem:[%s6489_s9 + $0xf] ss:$4 sm:$0x7] }
 0x153   : > { %5044 = vpow2.f32 %v4130_v50  ;;  %v983_v44 = vcombine.high %v982_v22, %v982_v22  ;;  %v990_v5 = vrot.slane %v982_v22, %v6442_v13 }
 0x154   : > { %5046 = vpow2.f32 %v4131_v9  ;;  %v1098_v1 = vrot.slane %v1084_v15, %v6442_v13  ;;  %v1105_v45 = vadd.f32 %v6492_v61, %v1091_v27 }
 0x156   : > { %v5033_v35 = vpop.eup %5032 }
 0x157   : > { %v894_v47 = vadd.f32 1.0, %v5033_v35  ;;  %v997_v35 = vrot.slane %v983_v44, %v6442_v13 }
 0x158   : > { %v5035_v39 = vpop.eup %5034 }
 0x159   : > { %v5037_v42 = vpop.eup %5036  ;;  %v895_v23 = vadd.f32 1.0, %v5035_v39  ;;  %5048 = vrcp.f32 %v894_v47  ;;  %v1099_v39 = vcombine.high %v1091_v27, %v1091_v27  ;;  %v999_v44 = vcombine.high %v997_v35, %v997_v35 }
 0x15a   : > { %v5039_v29 = vpop.eup %5038  ;;  %v896_v0 = vadd.f32 1.0, %v5037_v42  ;;  %v1106_v42 = vadd.f32 %v6496_v18, %v1098_v1  ;;  %v1009_v27 = vrot.slane %v6453_v43, 2 }
 0x15b   : > { %v897_v19 = vadd.f32 1.0, %v5039_v29  ;;  %5050 = vrcp.f32 %v895_v23  ;;  %v5041_v11 = vpop.eup %5040  ;;  %v1038_v23 = vrot.slane %v7563_v55, %v6442_v13  ;;  %v1008_v29 = vrot.slane %v6449_v6, 2 }
 0x15c   : > { %5052 = vrcp.f32 %v896_v0  ;;  %v5043_v58 = vpop.eup %5042  ;;  %v963_v9 = vadd.f32 1.0, %v5041_v11  ;;  %v6506_v0 = vld [vmem:[%s6489_s9 + $0x1b] ss:$4 sm:$0x7]  ;;  %v1100_v11 = vcombine.high %v1098_v1, %v1098_v1  ;;  %v1010_v55 = vrot.slane %v6456_v2, 2 }
 0x15d   : > { %5054 = vrcp.f32 %v897_v19  ;;  %v5045_v60 = vpop.eup %5044  ;;  %v964_v57 = vadd.f32 1.0, %v5043_v58  ;;  %v998_v19 = vcombine.high %v990_v5, %v990_v5  ;;  %v4136_v58 = vmul.f32 -1.442695, %v1105_v45 }
 0x15e   : > { %v5047_v50 = vpop.eup %5046  ;;  %v965_v47 = vadd.f32 1.0, %v5045_v60  ;;  %5056 = vrcp.f32 %v963_v9  ;;  %v1107_v6 = vadd.f32 %v6506_v0, %v1099_v39  ;;  %v1011_v1 = vrot.slane %v6460_v28, 2 }
 0x15f   : > { %v966_v15 = vadd.f32 1.0, %v5047_v50  ;;  %5058 = vrcp.f32 %v964_v57  ;;  %v4137_v50 = vmul.f32 -1.442695, %v1106_v42  ;;  %v1108_v43 = vadd.f32 %v6510_v34, %v1100_v11 }
 0x160   : > { %5060 = vrcp.f32 %v965_v47  ;;  %v4138_v47 = vmul.f32 -1.442695, %v1107_v6  ;;  %v1039_v39 = vcombine.high %v1038_v23, %v1038_v23 }
 0x161   : > { %5062 = vrcp.f32 %v966_v15 }
 0x162   : > { %5064 = vpow2.f32 %v4136_v58  ;;  %v6523_v15 = vrot.slane %v1039_v39, %v6442_v13  ;;  %v7613_v39 = vmov 0 }
 0x163   : > { %v5049_v22 = vpop.eup %5048  ;;  %v7614_v39 = vsel %vm6545_vm2, 4294967295, %v7613_v39 }
 0x164   : > { %v1004_v60 = vmul.f32 %v5049_v22, %v990_v5  ;;  %7615 = vst [vmem:[#allocation91_spill] sm:$0xff] %v7614_v39  ;;  %v7658_v39 = vld [vmem:[#allocation47_spill] sm:$0xff] }
 0x165   : > { %v5051_v8 = vpop.eup %5050 }
 0x166   : > { %v5053_v17 = vpop.eup %5052  ;;  %v1005_v9 = vmul.f32 %v5051_v8, %v997_v35  ;;  %v1016_v45 = vadd.f32 %v1008_v29, %v1004_v60  ;;  %v4139_v8 = vmul.f32 -1.442695, %v1108_v43  ;;  %v6520_v35 = vrot.slane %v1038_v23, %v6442_v13 }
 0x167   : > { %v5055_v57 = vpop.eup %5054  ;;  %v1006_v5 = vmul.f32 %v5053_v17, %v998_v19  ;;  %v6532_v60 = vcombine.high %v6523_v15, %v6523_v15 }
 0x168   : > { %v1007_v22 = vmul.f32 %v5055_v57, %v999_v44  ;;  %v1017_v40 = vadd.f32 %v1009_v27, %v1005_v9  ;;  %5066 = vtanh.f32 %v1016_v45  ;;  %v5057_v28 = vpop.eup %5056  ;;  %v6528_v44 = vcombine.high %v6520_v35, %v6520_v35 }
 0x169   : > { %v1018_v2 = vadd.f32 %v1010_v55, %v1006_v5  ;;  %5068 = vpow2.f32 %v4137_v50  ;;  %v5059_v17 = vpop.eup %5058  ;;  %v1024_v11 = vsub.f32 1.0, %v5057_v28  ;;  %v1060_v6 = vmul.f32 %v5057_v28, %v6520_v35 }
 0x16a   : > { %v1019_v42 = vadd.f32 %v1011_v1, %v1007_v22  ;;  %5070 = vtanh.f32 %v1017_v40  ;;  %v5061_v29 = vpop.eup %5060  ;;  %v1025_v27 = vsub.f32 1.0, %v5059_v17  ;;  %v1061_v5 = vmul.f32 %v5059_v17, %v6523_v15 }
 0x16b   : > { %5072 = vtanh.f32 %v1018_v2  ;;  %v5063_v19 = vpop.eup %5062  ;;  %v1026_v9 = vsub.f32 1.0, %v5061_v29 }
 0x16c   : > { %5074 = vtanh.f32 %v1019_v42  ;;  %v5065_v40 = vpop.eup %5064  ;;  %v1027_v45 = vsub.f32 1.0, %v5063_v19  ;;  %v1282_v42 = vld [vmem:[%s6539_s13] sm:$0x1] }
 0x16d   : > { %5076 = vpow2.f32 %v4138_v47  ;;  %v1062_v47 = vmul.f32 %v5061_v29, %v6528_v44 }
 0x16e   : > { %5078 = vpow2.f32 %v4139_v8 }
 0x172   : > { %v5067_v58 = vpop.eup %5066 }
 0x173   : > { %v5069_v23 = vpop.eup %5068  ;;  %v1028_v55 = vmul.f32 %v5067_v58, %v1024_v11  ;;  %v1063_v11 = vmul.f32 %v5063_v19, %v6532_v60  ;;  %v618_v19 = vsub.s32 5, %v6423_v24 }
 0x174   : > { %v5071_v50 = vpop.eup %5070 }
 0x175   : > { %v5073_v1 = vpop.eup %5072  ;;  %v1029_v57 = vmul.f32 %v5071_v50, %v1025_v27  ;;  %v1064_v43 = vadd.f32 %v1060_v6, %v1028_v55  ;;  %v1121_v50 = vadd.f32 1.0, %v5065_v40  ;;  %v1122_v6 = vadd.f32 1.0, %v5069_v23 }
 0x176   : > { %v5075_v22 = vpop.eup %5074  ;;  %v1030_v2 = vmul.f32 %v5073_v1, %v1026_v9 }
 0x177   : > { %v5077_v8 = vpop.eup %5076  ;;  %v1031_v28 = vmul.f32 %v5075_v22, %v1027_v45  ;;  %v1065_v58 = vadd.f32 %v1061_v5, %v1029_v57  ;;  %v1275_v27 = vpack.c.bf16 %v1064_v43, %v1064_v43  ;;  %5080 = vrcp.f32 %v1121_v50 }
 0x178   : > { %v6551_v17 = vadd.f32 %v1062_v47, %v1030_v2  ;;  %v5079_v55 = vpop.eup %5078  ;;  %v1123_v59 = vadd.f32 1.0, %v5077_v8  ;;  %5082 = vrcp.f32 %v1122_v6  ;;  %v6569_v5 = vrot.slane %v6432_v10, %v614_v53 }
 0x179   : > { %v6553_v9 = vadd.f32 %v1063_v11, %v1031_v28  ;;  %v1283_v29 = vsel %vm6545_vm2, %v1275_v27, %v1282_v42  ;;  %v1369_v1 = vcombine.low %v1064_v43, %v1065_v58  ;;  %v1124_v45 = vadd.f32 1.0, %v5079_v55  ;;  %v1285_v42 = vld [vmem:[%s6539_s13 + $0x2] sm:$0x1] }
 0x17a   : > { %1284 = vst [vmem:[%s6539_s13] sm:$0x1] %v1283_v29  ;;  %5084 = vrcp.f32 %v1123_v59  ;;  %7616 = vst [vmem:[#allocation92_spill] sm:$0xff] %v6569_v5  ;;  %v6572_v43 = vrot.slane %v6432_v10, %v618_v19  ;;  %v1276_v2 = vpack.c.bf16 %v1065_v58, %v1065_v58  ;;  %v1137_v53 = vrot.slane %v6492_v61, 1 }
 0x17b   : > { %v1370_v40 = vcombine.low %v6551_v17, %v6553_v9  ;;  %v6563_v23 = vrot.slane %v1369_v1, %v6442_v13  ;;  %5086 = vrcp.f32 %v1124_v45  ;;  %v1138_v58 = vrot.slane %v6496_v18, 1 }
 0x17c   : > { %7617 = vst [vmem:[#allocation93_spill] sm:$0xff] %v6572_v43  ;;  %v1286_v11 = vsel %vm6545_vm2, %v1276_v2, %v1285_v42  ;;  %v1139_v55 = vrot.slane %v6506_v0, 1  ;;  %v1140_v2 = vrot.slane %v6510_v34, 1  ;;  %v1277_v56 = vpack.c.bf16 %v6551_v17, %v6551_v17 }
 0x17d   : > { %v6566_v57 = vrot.slane %v1370_v40, %v6442_v13  ;;  %1287 = vst [vmem:[%s6539_s13 + $0x2] sm:$0x1] %v1286_v11  ;;  %v1236_v17 = vrot.slane %v6496_v18, 2 }
 0x181   : > { %v837_v47 = vpop.f32.mrb[2].mxu0  ;;  %v5081_v50 = vpop.eup %5080 }
 0x182   : > { %v838_v8 = vadd.f32 %v837_v47, %v6569_v5  ;;  %v839_v28 = vpop.f32.mrb[3].mxu0  ;;  %v5083_v1 = vpop.eup %5082 }
 0x183   : > { %v840_v59 = vadd.f32 %v839_v28, %v6572_v43 }
 0x184   : > { %v1152_v10 = vrot.slane %v838_v8, %v6442_v13  ;;  %v5085_v45 = vpop.eup %5084 }
 0x185   : > { %v1209_v27 = vrot.slane %v840_v59, %v6442_v13  ;;  %v5087_v22 = vpop.eup %5086 }
 0x186   : > { %v1153_v6 = vcombine.high %v1152_v10, %v1152_v10  ;;  %v1160_v29 = vrot.slane %v1152_v10, %v6442_v13 }
 0x187   : > { %v1210_v19 = vcombine.high %v1209_v27, %v1209_v27  ;;  %v1217_v40 = vrot.slane %v1209_v27, %v6442_v13 }
 0x188   : > { %v1167_v47 = vrot.slane %v1153_v6, %v6442_v13  ;;  %v1168_v42 = vcombine.high %v1160_v29, %v1160_v29  ;;  %v1174_v8 = vadd.f32 %v1160_v29, %v1137_v53 }
 0x189   : > { %v1224_v28 = vrot.slane %v1210_v19, %v6442_v13  ;;  %v1225_v11 = vcombine.high %v1217_v40, %v1217_v40  ;;  %v1231_v59 = vmul.f32 %v5081_v50, %v1217_v40 }
 0x18a   : > { %v1169_v43 = vcombine.high %v1167_v47, %v1167_v47  ;;  %v1175_v5 = vadd.f32 %v1167_v47, %v1138_v58  ;;  %v1176_v10 = vadd.f32 %v1168_v42, %v1139_v55  ;;  %v4140_v46 = vmul.f32 -1.442695, %v1174_v8 }
 0x18b   : > { %v1226_v20 = vcombine.high %v1224_v28, %v1224_v28  ;;  %v1232_v27 = vmul.f32 %v5083_v1, %v1224_v28  ;;  %v1233_v12 = vmul.f32 %v5085_v45, %v1225_v11  ;;  %v1289_v58 = vsel %vm6545_vm2, %v1277_v56, %v1288_v51 }
 0x18c   : > { %v1177_v6 = vadd.f32 %v1169_v43, %v1140_v2  ;;  %5088 = vpow2.f32 %v4140_v46  ;;  %v4141_v53 = vmul.f32 -1.442695, %v1175_v5  ;;  %v4142_v29 = vmul.f32 -1.442695, %v1176_v10  ;;  %1290 = vst [vmem:[%s6539_s13 + $0x4] sm:$0x1] %v1289_v58 }
 0x18d   : > { %v1234_v19 = vmul.f32 %v5087_v22, %v1226_v20  ;;  %v1235_v55 = vrot.slane %v6492_v61, 2  ;;  %v1278_v46 = vpack.c.bf16 %v6553_v9, %v6553_v9  ;;  %v1237_v20 = vrot.slane %v6506_v0, 2  ;;  %v1291_v22 = vld [vmem:[%s6539_s13 + $0x6] sm:$0x1] }
 0x18e   : > { %5090 = vpow2.f32 %v4141_v53  ;;  %v4143_v50 = vmul.f32 -1.442695, %v1177_v6  ;;  %v1244_v43 = vadd.f32 %v1236_v17, %v1232_v27  ;;  %v1238_v51 = vrot.slane %v6510_v34, 2 }
 0x18f   : > { %5092 = vpow2.f32 %v4142_v29  ;;  %v1243_v1 = vadd.f32 %v1235_v55, %v1231_v59  ;;  %v1292_v56 = vsel %vm6545_vm2, %v1278_v46, %v1291_v22  ;;  %v1245_v9 = vadd.f32 %v1237_v20, %v1233_v12 }
 0x190   : > { %5094 = vpow2.f32 %v4143_v50  ;;  %1293 = vst [vmem:[%s6539_s13 + $0x6] sm:$0x1] %v1292_v56  ;;  %v1246_v0 = vadd.f32 %v1238_v51, %v1234_v19  ;;  %v5394_v34 = vmov 1983009808   ;;  %v1259_v11 = vrot.slane %v6520_v35, 1 }
 0x191   : > { %5096 = vtanh.f32 %v1243_v1  ;;  %v1303_v8 = vunpack.c.l.s4 %v5394_v34  ;;  %v1260_v53 = vrot.slane %v6523_v15, 1  ;;  %v1261_v29 = vrot.slane %v6528_v44, 1 }
 0x192   : > { %v1262_v55 = vrot.slane %v6532_v60, 1  ;;  %v7618_v34 = vmov 0 }
 0x193   : > { %v1304_v10 = vunpack.c.0.s8 %v1303_v8  ;;  %v7619_v34 = vsel %vm6624_vm5, 4294967295, %v7618_v34  ;;  %v1353_v8 = vld [vmem:[%s6620_s16] sm:$0x2] }
 0x194   : > { %7620 = vst [vmem:[#allocation94_spill] sm:$0xff] %v7619_v34  ;;  %v7659_v34 = vld [vmem:[#allocation48_spill] sm:$0xff] }
 0x195   : > { %v6613_v46 = vsub.s32 %v1304_v10, %v6423_v24 }
 0x196   : > { %v5089_v5 = vpop.eup %5088 }
 0x197   : > { %v1190_v40 = vadd.f32 1.0, %v5089_v5 }
 0x198   : > { %v5091_v45 = vpop.eup %5090 }
 0x199   : > { %v5093_v61 = vpop.eup %5092  ;;  %v1191_v18 = vadd.f32 1.0, %v5091_v45  ;;  %5098 = vrcp.f32 %v1190_v40 }
 0x19a   : > { %v5095_v2 = vpop.eup %5094  ;;  %v1192_v47 = vadd.f32 1.0, %v5093_v61  ;;  %5100 = vtanh.f32 %v1244_v43 }
 0x19b   : > { %v1193_v42 = vadd.f32 1.0, %v5095_v2  ;;  %5102 = vrcp.f32 %v1191_v18  ;;  %v5097_v28 = vpop.eup %5096 }
 0x19c   : > { %5104 = vrcp.f32 %v1192_v47 }
 0x19d   : > { %5106 = vrcp.f32 %v1193_v42 }
 0x19e   : > { %5108 = vtanh.f32 %v1245_v9 }
 0x19f   : > { %5110 = vtanh.f32 %v1246_v0 }
 0x1a3   : > { %v5099_v59 = vpop.eup %5098 }
 0x1a4   : > { %v5101_v27 = vpop.eup %5100  ;;  %v1251_v6 = vsub.f32 1.0, %v5099_v59  ;;  %v1267_v17 = vmul.f32 %v5099_v59, %v1259_v11 }
 0x1a5   : > { %v5103_v12 = vpop.eup %5102 }
 0x1a6   : > { %v5105_v50 = vpop.eup %5104  ;;  %v1252_v19 = vsub.f32 1.0, %v5103_v12  ;;  %v1255_v58 = vmul.f32 %v5097_v28, %v1251_v6  ;;  %v1268_v22 = vmul.f32 %v5103_v12, %v1260_v53 }
 0x1a7   : > { %v5107_v1 = vpop.eup %5106  ;;  %v1253_v35 = vsub.f32 1.0, %v5105_v50  ;;  %v1269_v44 = vmul.f32 %v5105_v50, %v1261_v29  ;;  %v7621_v29 = vcombine.low %v6563_v23, %v6566_v57  ;;  %v1356_v57 = vld [vmem:[%s6620_s16 + $0x2] sm:$0x2] }
 0x1a8   : > { %v5109_v5 = vpop.eup %5108  ;;  %v1254_v20 = vsub.f32 1.0, %v5107_v1  ;;  %v1256_v43 = vmul.f32 %v5101_v27, %v1252_v19  ;;  %v1271_v15 = vadd.f32 %v1267_v17, %v1255_v58  ;;  %v1270_v45 = vmul.f32 %v5107_v1, %v1262_v55  ;;  %v7622_v55 = vld [vmem:[#allocation55_spill] sm:$0xff]  ;;  %v7623_v1 = vld [vmem:[#allocation58_spill] sm:$0xff] }
 0x1a9   : > { %v5111_v40 = vpop.eup %5110  ;;  %v1257_v51 = vmul.f32 %v5109_v5, %v1253_v35  ;;  %v6642_v50 = vrot.slane %v7621_v29, %v6442_v13  ;;  %v7642_v29 = vld [vmem:[#allocation31_spill] sm:$0xff] }
 0x1aa   : > { %v1258_v56 = vmul.f32 %v5111_v40, %v1254_v20  ;;  %v1272_v61 = vadd.f32 %v1268_v22, %v1256_v43  ;;  %v1294_v18 = vpack.c.bf16 %v1271_v15, %v1271_v15  ;;  %v7624_v20 = vld [vmem:[#allocation60_spill] sm:$0xff]  ;;  %v7625_v43 = vld [vmem:[#allocation61_spill] sm:$0xff] }
 0x1ab   : > { %v1273_v60 = vadd.f32 %v1269_v44, %v1257_v51  ;;  %v1359_v40 = vld [vmem:[%s6620_s16 + $0x4] sm:$0x2]  ;;  %v7626_v44 = vld [vmem:[#allocation62_spill] sm:$0xff] }
 0x1ac   : > { %v1274_v24 = vadd.f32 %v1270_v45, %v1258_v56  ;;  %v1308_v2 = vrot.slane %v1294_v18, %v6613_v46  ;;  %v1398_v47 = vcombine.low %v1271_v15, %v1272_v61  ;;  %v1295_v9 = vpack.c.bf16 %v1272_v61, %v1272_v61  ;;  %v7627_v56 = vld [vmem:[#allocation63_spill] sm:$0xff]  ;;  %v7628_v61 = vld [vmem:[#allocation64_spill] sm:$0xff]  ;;  %v7629_v18 = vld [vmem:[#allocation65_spill] sm:$0xff] }
 0x1ad   : > { %v1296_v19 = vpack.c.bf16 %v1273_v60, %v1273_v60 }
 0x1ae   : > { %v1331_v42 = vshll.u32 %v1308_v2, 16  ;;  %v1399_v0 = vcombine.low %v1273_v60, %v1274_v24  ;;  %v1406_v11 = vrot.slane %v1398_v47, %v6442_v13  ;;  %v1315_v10 = vrot.slane %v1295_v9, %v6613_v46  ;;  %v7630_v2 = vld [vmem:[#allocation66_spill] sm:$0xff]  ;;  %v7631_v9 = vld [vmem:[#allocation67_spill] sm:$0xff] }
 0x1af   : > { %v1322_v23 = vrot.slane %v1296_v19, %v6613_v46  ;;  %v1297_v5 = vpack.c.bf16 %v1274_v24, %v1274_v24  ;;  %v1362_v24 = vld [vmem:[%s6620_s16 + $0x6] sm:$0x2]  ;;  %v7643_v19 = vld [vmem:[#allocation32_spill] sm:$0xff] }
 0x1b0   : > { %v1333_v28 = vrot.slane %v1331_v42, 7  ;;  %v1413_v59 = vrot.slane %v1399_v0, %v6442_v13  ;;  %v1335_v12 = vshll.u32 %v1315_v10, 16  ;;  %v7632_v42 = vld [vmem:[#allocation68_spill] sm:$0xff]  ;;  %v7633_v0 = vld [vmem:[#allocation69_spill] sm:$0xff]  ;;  %v7638_v10 = vld [vmem:[#allocation74_spill] sm:$0xff] }
 0x1b1   : > { %v1339_v35 = vshll.u32 %v1322_v23, 16  ;;  %v1329_v15 = vrot.slane %v1297_v5, %v6613_v46  ;;  %v7645_v23 = vld [vmem:[#allocation79_spill] sm:$0xff]  ;;  %v7649_v5 = vld [vmem:[#allocation81_spill] sm:$0xff] }
 0x1b2   : > { %v1354_v27 = vsel %vm6624_vm5, %v1333_v28, %v1353_v8  ;;  %v1414_v6 = vcombine.low %v1406_v11, %v1413_v59  ;;  %v1337_v58 = vrot.slane %v1335_v12, 7  ;;  %v7634_v8 = vld [vmem:[#allocation70_spill] sm:$0xff]  ;;  %v7635_v28 = vld [vmem:[#allocation71_spill] sm:$0xff]  ;;  %v7636_v11 = vld [vmem:[#allocation72_spill] sm:$0xff] }
 0x1b3   : > { %1355 = vst [vmem:[%s6620_s16] sm:$0x2] %v1354_v27  ;;  %v1341_v22 = vrot.slane %v1339_v35, 7  ;;  %v1343_v45 = vshll.u32 %v1329_v15, 16  ;;  %v7637_v59 = vld [vmem:[#allocation73_spill] sm:$0xff]  ;;  %v7639_v27 = vld [vmem:[#allocation75_spill] sm:$0xff]  ;;  %v7648_v35 = vld [vmem:[#allocation80_spill] sm:$0xff] }
 0x1b4   : > { %v6636_v53 = vrot.slane %v1414_v6, %v6442_v13  ;;  %v1357_v17 = vsel %vm6624_vm5, %v1337_v58, %v1356_v57  ;;  %v7640_v6 = vld [vmem:[#allocation76_spill] sm:$0xff]  ;;  %v7641_v12 = vld [vmem:[#allocation77_spill] sm:$0xff]  ;;  %v7644_v58 = vld [vmem:[#allocation78_spill] sm:$0xff] }
 0x1b5   : > { %1358 = vst [vmem:[%s6620_s16 + $0x2] sm:$0x2] %v1357_v17  ;;  %v1360_v51 = vsel %vm6624_vm5, %v1341_v22, %v1359_v40  ;;  %v1345_v60 = vrot.slane %v1343_v45, 7  ;;  %v7646_v57 = vld [vmem:[#allocation35_spill] sm:$0xff]  ;;  %v7647_v17 = vld [vmem:[#allocation36_spill] sm:$0xff]  ;;  %v7652_v40 = vld [vmem:[#allocation82_spill] sm:$0xff] }
 0x1b6   : > { %1487 = vmatprep.mubr.f32.mxu1 %v6636_v53  ;;  %1558 = vmatprep.mubr.f32.mxu0 %v6636_v53  ;;  %1361 = vst [vmem:[%s6620_s16 + $0x4] sm:$0x2] %v1360_v51  ;;  %v7650_v22 = vld [vmem:[#allocation39_spill] sm:$0xff]  ;;  %v7651_v15 = vld [vmem:[#allocation40_spill] sm:$0xff] }
 0x1b7   : > { %1488 = vmatmul.mubr.f32.vlgmr.msra.gmra.mrb[2].mxu1 %v6642_v50  ;;  %1559 = vmatmul.mubr.f32.vlgmr.msra.gmra.mrb[4].mxu0 %v6642_v50  ;;  %v1363_v47 = vsel %vm6624_vm5, %v1345_v60, %v1362_v24  ;;  %v7653_v51 = vld [vmem:[#allocation83_spill] sm:$0xff]  ;;  %v7655_v60 = vld [vmem:[#allocation44_spill] sm:$0xff] }
 0x1b8   : > { %4540 = vmatpush1.bf16.msra.mxu1 %v6062_v41  ;;  %1629 = vmatprep.mubr.f32.mxu1 %v6636_v53  ;;  %1364 = vst [vmem:[%s6620_s16 + $0x6] sm:$0x2] %v1363_v47  ;;  %v7654_v45 = vld [vmem:[#allocation43_spill] sm:$0xff]  ;;  %v7656_v24 = vld [vmem:[#allocation84_spill] sm:$0xff]  ;;  %v7657_v47 = vld [vmem:[#allocation85_spill] sm:$0xff] }
 0x1b9   : > { %4542 = vmatprep.subr.bf16.mxu1 %v7622_v55  ;;  %4604 = vmatpush1.bf16.msra.mxu0 %v5507_v25 }
 0x1ba   : > { %4606 = vmatprep.subr.bf16.mxu0 %v5509_v26 }
 0x1bc   : > { %4544 = vmatpush1.bf16.msra.mxu1 %v6099_v62 }
 0x1bd   : > { %4546 = vmatprep.subr.bf16.mxu1 %v7623_v1  ;;  %4608 = vmatpush1.bf16.msra.mxu0 %v5526_v31 }
 0x1be   : > { %4610 = vmatprep.subr.bf16.mxu0 %v5530_v32 }
 0x1c0   : > { %4548 = vmatpush1.bf16.msra.mxu1 %v7624_v20 }
 0x1c1   : > { %4550 = vmatprep.subr.bf16.mxu1 %v7625_v43  ;;  %4612 = vmatpush1.bf16.msra.mxu0 %v5545_v37 }
 0x1c2   : > { %4614 = vmatprep.subr.bf16.mxu0 %v5548_v38 }
 0x1c4   : > { %4552 = vmatpush1.bf16.msra.mxu1 %v7626_v44 }
 0x1c5   : > { %4554 = vmatprep.subr.bf16.mxu1 %v7627_v56  ;;  %4616 = vmatpush1.bf16.msra.mxu0 %v5577_v48 }
 0x1c6   : > { %4618 = vmatprep.subr.bf16.mxu0 %v5588_v52 }
 0x1c8   : > { %4556 = vmatpush1.bf16.msra.mxu1 %v7628_v61 }
 0x1c9   : > { %4558 = vmatprep.subr.bf16.mxu1 %v7629_v18  ;;  %4620 = vmatpush1.bf16.msra.mxu0 %v5621_v63 }
 0x1ca   : > { %4622 = vmatprep.subr.bf16.mxu0 %v5633_v3 }
 0x1cc   : > { %4560 = vmatpush1.bf16.msra.mxu1 %v7630_v2 }
 0x1cd   : > { %4562 = vmatprep.subr.bf16.mxu1 %v7631_v9  ;;  %4624 = vmatpush1.bf16.msra.mxu0 %v5666_v14 }
 0x1ce   : > { %4626 = vmatprep.subr.bf16.mxu0 %v5672_v16 }
 0x1d0   : > { %4564 = vmatpush1.bf16.msra.mxu1 %v7632_v42 }
 0x1d1   : > { %4566 = vmatprep.subr.bf16.mxu1 %v7633_v0  ;;  %4628 = vmatpush1.bf16.msra.mxu0 %v5702_v33 }
 0x1d2   : > { %4630 = vmatprep.subr.bf16.mxu0 %v5711_v36 }
 0x1d4   : > { %4568 = vmatpush1.bf16.msra.mxu1 %v7634_v8 }
 0x1d5   : > { %4570 = vmatprep.subr.bf16.mxu1 %v7635_v28  ;;  %4632 = vmatpush1.bf16.msra.mxu0 %v5738_v49 }
 0x1d6   : > { %4634 = vmatprep.subr.bf16.mxu0 %v5747_v54 }
 0x1d8   : > { %4572 = vmatpush1.bf16.msra.mxu1 %v7636_v11 }
 0x1d9   : > { %4574 = vmatprep.subr.bf16.mxu1 %v7637_v59  ;;  %4636 = vmatpush1.bf16.msra.mxu0 %v5774_v4 }
 0x1da   : > { %4638 = vmatprep.subr.bf16.mxu0 %v5783_v7 }
 0x1dc   : > { %4576 = vmatpush1.bf16.msra.mxu1 %v7638_v10 }
 0x1dd   : > { %4578 = vmatprep.subr.bf16.mxu1 %v7639_v27  ;;  %4640 = vmatpush1.bf16.msra.mxu0 %v5810_v21 }
 0x1de   : > { %4642 = vmatprep.subr.bf16.mxu0 %v5819_v30 }
 0x1e0   : > { %4580 = vmatpush1.bf16.msra.mxu1 %v7640_v6 }
 0x1e1   : > { %4582 = vmatprep.subr.bf16.mxu1 %v7641_v12  ;;  %4644 = vmatpush1.bf16.msra.mxu0 %v7642_v29 }
 0x1e2   : > { %4646 = vmatprep.subr.bf16.mxu0 %v7643_v19 }
 0x1e4   : > { %4584 = vmatpush1.bf16.msra.mxu1 %v7644_v58 }
 0x1e5   : > { %4586 = vmatprep.subr.bf16.mxu1 %v7645_v23  ;;  %4648 = vmatpush1.bf16.msra.mxu0 %v7646_v57  ;;  %v6763_v57 = vld [vmem:[%s6446_s18 + $0x1] ss:$4 sm:$0x7] }
 0x1e6   : > { %4650 = vmatprep.subr.bf16.mxu0 %v7647_v17  ;;  %v7697_v17 = vld [vmem:[#allocation88_spill] sm:$0xff] }
 0x1e7   : > { %v6771_v23 = vld [vmem:[%s6446_s18 + $0x19] ss:$4 sm:$0x7] }
 0x1e8   : > { %4588 = vmatpush1.bf16.msra.mxu1 %v7648_v35 }
 0x1e9   : > { %4590 = vmatprep.subr.bf16.mxu1 %v7649_v5  ;;  %4652 = vmatpush1.bf16.msra.mxu0 %v7650_v22  ;;  %v7660_v5 = vld [vmem:[#allocation86_spill] sm:$0xff] }
 0x1ea   : > { %4654 = vmatprep.subr.bf16.mxu0 %v7651_v15  ;;  %v7661_v22 = vld [vmem:[#allocation6_spill] sm:$0xff]  ;;  %v7662_v15 = vld [vmem:[#allocation51_spill] sm:$0xff] }
 0x1ec   : > { %4592 = vmatpush1.bf16.msra.mxu1 %v7652_v40  ;;  %v7663_v40 = vld [vmem:[#allocation52_spill] sm:$0xff] }
 0x1ed   : > { %4594 = vmatprep.subr.bf16.mxu1 %v7653_v51  ;;  %4656 = vmatpush1.bf16.msra.mxu0 %v7654_v45  ;;  %v7664_v45 = vld [vmem:[#allocation7_spill] sm:$0xff]  ;;  %v7674_v51 = vld [vmem:[#allocation21_spill] sm:$0xff] }
 0x1ee   : > { %4658 = vmatprep.subr.bf16.mxu0 %v7655_v60  ;;  %v7665_v60 = vld [vmem:[#allocation8_spill] sm:$0xff] }
 0x1f0   : > { %4596 = vmatpush1.bf16.msra.mxu1 %v7656_v24  ;;  %v7666_v24 = vld [vmem:[#allocation9_spill] sm:$0xff] }
 0x1f1   : > { %4598 = vmatprep.subr.bf16.mxu1 %v7657_v47  ;;  %4660 = vmatpush1.bf16.msra.mxu0 %v7658_v39  ;;  %v7667_v47 = vld [vmem:[#allocation10_spill] sm:$0xff]  ;;  %v7668_v39 = vld [vmem:[#allocation11_spill] sm:$0xff] }
 0x1f2   : > { %4662 = vmatprep.subr.bf16.mxu0 %v7659_v34  ;;  %v7669_v34 = vld [vmem:[#allocation12_spill] sm:$0xff] }
 0x1f4   : > { %4600 = vmatpush1.bf16.msra.mxu1 %v7660_v5  ;;  %v7670_v5 = vld [vmem:[#allocation13_spill] sm:$0xff] }
 0x1f5   : > { %4666 = vmatprep.subr.bf16.mxu1 %v7661_v22  ;;  %4664 = vmatpush1.bf16.msra.mxu0 %v7662_v15  ;;  %v7671_v22 = vld [vmem:[#allocation14_spill] sm:$0xff]  ;;  %v7672_v15 = vld [vmem:[#allocation17_spill] sm:$0xff] }
 0x1f6   : > { %4730 = vmatprep.subr.bf16.mxu0 %v7663_v40  ;;  %v7673_v40 = vld [vmem:[#allocation18_spill] sm:$0xff] }
 0x1f7   : > { %1630 = vmatmul.mubr.f32.vlgmr.msra.gmra.mrb[4].mxu1 %v6642_v50 }
 0x1f8   : > { %4668 = vmatpush1.bf16.msra.mxu1 %v7664_v45  ;;  %v7675_v45 = vld [vmem:[#allocation22_spill] sm:$0xff] }
 0x1f9   : > { %4670 = vmatprep.subr.bf16.mxu1 %v7665_v60  ;;  %v7676_v60 = vld [vmem:[#allocation25_spill] sm:$0xff] }
 0x1fc   : > { %4672 = vmatpush1.bf16.msra.mxu1 %v7666_v24  ;;  %v7677_v24 = vld [vmem:[#allocation26_spill] sm:$0xff] }
 0x1fd   : > { %4674 = vmatprep.subr.bf16.mxu1 %v7667_v47  ;;  %v7678_v47 = vld [vmem:[#allocation29_spill] sm:$0xff] }
 0x200   : > { %4676 = vmatpush1.bf16.msra.mxu1 %v7668_v39  ;;  %v7679_v39 = vld [vmem:[#allocation30_spill] sm:$0xff] }
 0x201   : > { %4678 = vmatprep.subr.bf16.mxu1 %v7669_v34  ;;  %v7680_v34 = vld [vmem:[#allocation33_spill] sm:$0xff] }
 0x204   : > { %4680 = vmatpush1.bf16.msra.mxu1 %v7670_v5  ;;  %v7681_v5 = vld [vmem:[#allocation34_spill] sm:$0xff] }
 0x205   : > { %4682 = vmatprep.subr.bf16.mxu1 %v7671_v22  ;;  %v7682_v22 = vld [vmem:[#allocation37_spill] sm:$0xff] }
 0x208   : > { %4684 = vmatpush1.bf16.msra.mxu1 %v7672_v15  ;;  %v7683_v15 = vld [vmem:[#allocation38_spill] sm:$0xff] }
 0x209   : > { %4686 = vmatprep.subr.bf16.mxu1 %v7673_v40  ;;  %v7684_v40 = vld [vmem:[#allocation41_spill] sm:$0xff] }
 0x20c   : > { %4688 = vmatpush1.bf16.msra.mxu1 %v7674_v51  ;;  %v7685_v51 = vld [vmem:[#allocation42_spill] sm:$0xff] }
 0x20d   : > { %4690 = vmatprep.subr.bf16.mxu1 %v7675_v45  ;;  %v7686_v45 = vld [vmem:[#allocation45_spill] sm:$0xff] }
 0x210   : > { %4692 = vmatpush1.bf16.msra.mxu1 %v7676_v60  ;;  %v7687_v60 = vld [vmem:[#allocation46_spill] sm:$0xff] }
 0x211   : > { %4694 = vmatprep.subr.bf16.mxu1 %v7677_v24  ;;  %v7696_v24 = vld [vmem:[#allocation87_spill] sm:$0xff] }
 0x214   : > { %4696 = vmatpush1.bf16.msra.mxu1 %v7678_v47  ;;  %v7688_v47 = vld [vmem:[#allocation49_spill] sm:$0xff] }
 0x215   : > { %4698 = vmatprep.subr.bf16.mxu1 %v7679_v39  ;;  %v7689_v39 = vld [vmem:[#allocation50_spill] sm:$0xff] }
 0x218   : > { %4700 = vmatpush1.bf16.msra.mxu1 %v7680_v34  ;;  %v7690_v34 = vld [vmem:[#allocation53_spill] sm:$0xff] }
 0x219   : > { %4702 = vmatprep.subr.bf16.mxu1 %v7681_v5  ;;  %v7691_v5 = vld [vmem:[#allocation54_spill] sm:$0xff] }
 0x21c   : > { %4704 = vmatpush1.bf16.msra.mxu1 %v7682_v22 }
 0x21d   : > { %4706 = vmatprep.subr.bf16.mxu1 %v7683_v15  ;;  %v7692_v15 = vld [vmem:[#allocation56_spill] sm:$0xff] }
 0x220   : > { %4708 = vmatpush1.bf16.msra.mxu1 %v7684_v40  ;;  %v7693_v40 = vld [vmem:[#allocation57_spill] sm:$0xff] }
 0x221   : > { %4710 = vmatprep.subr.bf16.mxu1 %v7685_v51  ;;  %v7694_v51 = vld [vmem:[#allocation59_spill] sm:$0xff] }
 0x224   : > { %4712 = vmatpush1.bf16.msra.mxu1 %v7686_v45  ;;  %v7695_v45 = vld [vmem:[#allocation5_spill] sm:$0xff] }
 0x225   : > { %4714 = vmatprep.subr.bf16.mxu1 %v7687_v60 }
 0x228   : > { %4716 = vmatpush1.bf16.msra.mxu1 %v7688_v47 }
 0x229   : > { %4718 = vmatprep.subr.bf16.mxu1 %v7689_v39 }
 0x22c   : > { %4720 = vmatpush1.bf16.msra.mxu1 %v7690_v34 }
 0x22d   : > { %4722 = vmatprep.subr.bf16.mxu1 %v7691_v5  ;;  %v6766_v5 = vld [vmem:[%s6446_s18 + $0xd] ss:$4 sm:$0x7] }
 0x230   : > { %4724 = vmatpush1.bf16.msra.mxu1 %v7692_v15 }
 0x231   : > { %4726 = vmatprep.subr.bf16.mxu1 %v7693_v40 }
 0x234   : > { %4728 = vmatpush1.bf16.msra.mxu1 %v7694_v51  ;;  %v6774_v51 = vld [vmem:[%s6446_s18 + $0x25] ss:$4 sm:$0x7] }
 0x235   : > { %4794 = vmatprep.subr.bf16.mxu1 %v7695_v45  ;;  %v1708_v12 = vrot.slane %v6774_v51, 1 }
 0x28a   : > { %v1489_v60 = vpop.f32.mrb[2].mxu1  ;;  %v1560_v22 = vpop.f32.mrb[4].mxu0 }
 0x28b   : > { %v1490_v47 = vadd.f32 %v1489_v60, %v7696_v24  ;;  %v1491_v35 = vpop.f32.mrb[3].mxu1  ;;  %v1562_v39 = vpop.f32.mrb[5].mxu0  ;;  %v1705_v60 = vrot.slane %v6763_v57, 1  ;;  %v1706_v24 = vrot.slane %v6766_v5, 1 }
 0x28c   : > { %v1492_v34 = vadd.f32 %v1491_v35, %v7697_v17 }
 0x28d   : > { %v1651_v15 = vrot.slane %v1490_v47, %v6442_v13 }
 0x28e   : > { %v1720_v40 = vrot.slane %v1492_v34, %v6442_v13  ;;  %v1707_v34 = vrot.slane %v6771_v23, 1 }
 0x28f   : > { %v1652_v45 = vcombine.high %v1651_v15, %v1651_v15  ;;  %v1659_v58 = vrot.slane %v1651_v15, %v6442_v13 }
 0x290   : > { %v1721_v35 = vcombine.high %v1720_v40, %v1720_v40  ;;  %v1728_v17 = vrot.slane %v1720_v40, %v6442_v13 }
 0x291   : > { %v1666_v19 = vrot.slane %v1652_v45, %v6442_v13  ;;  %v1667_v29 = vcombine.high %v1659_v58, %v1659_v58  ;;  %v1673_v47 = vadd.f32 %v6763_v57, %v1659_v58 }
 0x292   : > { %v1735_v6 = vrot.slane %v1721_v35, %v6442_v13  ;;  %v1736_v30 = vcombine.high %v1728_v17, %v1728_v17  ;;  %v1742_v40 = vadd.f32 %v1728_v17, %v1705_v60 }
 0x293   : > { %v1668_v15 = vcombine.high %v1666_v19, %v1666_v19  ;;  %v1674_v21 = vadd.f32 %v6766_v5, %v1666_v19  ;;  %v1675_v27 = vadd.f32 %v6771_v23, %v1667_v29  ;;  %v4148_v10 = vmul.f32 -1.442695, %v1673_v47  ;;  %v7698_v29 = vld [vmem:[#allocation90_spill] sm:$0xff] }
 0x294   : > { %v1737_v7 = vcombine.high %v1735_v6, %v1735_v6  ;;  %v1743_v4 = vadd.f32 %v1735_v6, %v1706_v24  ;;  %v1744_v11 = vadd.f32 %v1736_v30, %v1707_v34  ;;  %v4152_v35 = vmul.f32 -1.442695, %v1742_v40  ;;  %v7699_v6 = vld [vmem:[#allocation89_spill] sm:$0xff] }
 0x295   : > { %v1676_v45 = vadd.f32 %v6774_v51, %v1668_v15  ;;  %5112 = vpow2.f32 %v4148_v10  ;;  %v4149_v58 = vmul.f32 -1.442695, %v1674_v21  ;;  %v4150_v59 = vmul.f32 -1.442695, %v1675_v27 }
 0x296   : > { %v1745_v49 = vadd.f32 %v1737_v7, %v1708_v12  ;;  %v4153_v28 = vmul.f32 -1.442695, %v1743_v4  ;;  %v4154_v19 = vmul.f32 -1.442695, %v1744_v11  ;;  %v1561_v17 = vadd.f32 %v1560_v22, %v7698_v29 }
 0x297   : > { %5114 = vpow2.f32 %v4149_v58  ;;  %v4151_v54 = vmul.f32 -1.442695, %v1676_v45  ;;  %v1563_v24 = vadd.f32 %v1562_v39, %v7699_v6 }
 0x298   : > { %5116 = vpow2.f32 %v4150_v59  ;;  %v4155_v8 = vmul.f32 -1.442695, %v1745_v49  ;;  %v1777_v7 = vrot.slane %v1561_v17, %v6442_v13  ;;  %v6798_v17 = vld [vmem:[%s6489_s9 + $0x2] ss:$4 sm:$0x7] }
 0x299   : > { %5118 = vpow2.f32 %v4151_v54  ;;  %v1878_v54 = vrot.slane %v1563_v24, %v6442_v13 }
 0x29a   : > { %5120 = vpow2.f32 %v4152_v35  ;;  %v1778_v39 = vcombine.high %v1777_v7, %v1777_v7  ;;  %v1785_v34 = vrot.slane %v1777_v7, %v6442_v13  ;;  %v1803_v35 = vrot.slane %v6763_v57, 2 }
 0x29b   : > { %5122 = vpow2.f32 %v4153_v28  ;;  %v1879_v59 = vcombine.high %v1878_v54, %v1878_v54  ;;  %v1886_v22 = vrot.slane %v1878_v54, %v6442_v13 }
 0x29c   : > { %5124 = vpow2.f32 %v4154_v19  ;;  %v1792_v40 = vrot.slane %v1778_v39, %v6442_v13  ;;  %v1793_v7 = vcombine.high %v1785_v34, %v1785_v34 }
 0x29d   : > { %5126 = vpow2.f32 %v4155_v8  ;;  %v1893_v58 = vrot.slane %v1879_v59, %v6442_v13 }
 0x29f   : > { %v5113_v10 = vpop.eup %5112 }
 0x2a0   : > { %v1689_v21 = vadd.f32 1.0, %v5113_v10  ;;  %v1804_v10 = vrot.slane %v6766_v5, 2  ;;  %v1900_v5 = vadd.f32 %v6798_v17, %v1886_v22 }
 0x2a1   : > { %v5115_v30 = vpop.eup %5114 }
 0x2a2   : > { %v5117_v27 = vpop.eup %5116  ;;  %v1690_v60 = vadd.f32 1.0, %v5115_v30  ;;  %5128 = vrcp.f32 %v1689_v21  ;;  %v1805_v21 = vrot.slane %v6771_v23, 2 }
 0x2a3   : > { %v5119_v4 = vpop.eup %5118  ;;  %v1691_v49 = vadd.f32 1.0, %v5117_v27  ;;  %v6803_v27 = vld [vmem:[%s6489_s9 + $0xe] ss:$4 sm:$0x7] }
 0x2a4   : > { %v1692_v11 = vadd.f32 1.0, %v5119_v4  ;;  %5130 = vrcp.f32 %v1690_v60  ;;  %v5121_v28 = vpop.eup %5120  ;;  %v1894_v60 = vcombine.high %v1886_v22, %v1886_v22  ;;  %v1806_v4 = vrot.slane %v6774_v51, 2 }
 0x2a5   : > { %5132 = vrcp.f32 %v1691_v49  ;;  %v5123_v8 = vpop.eup %5122  ;;  %v1758_v15 = vadd.f32 1.0, %v5121_v28  ;;  %v6807_v49 = vld [vmem:[%s6489_s9 + $0x1a] ss:$4 sm:$0x7]  ;;  %v1895_v28 = vcombine.high %v1893_v58, %v1893_v58 }
 0x2a6   : > { %5134 = vrcp.f32 %v1692_v11  ;;  %v5125_v12 = vpop.eup %5124  ;;  %v1759_v45 = vadd.f32 1.0, %v5123_v8  ;;  %v1794_v11 = vcombine.high %v1792_v40, %v1792_v40  ;;  %v6811_v8 = vld [vmem:[%s6489_s9 + $0x26] ss:$4 sm:$0x7]  ;;  %v1902_v51 = vadd.f32 %v6807_v49, %v1894_v60 }
 0x2a7   : > { %v5127_v47 = vpop.eup %5126  ;;  %v1760_v19 = vadd.f32 1.0, %v5125_v12  ;;  %5136 = vrcp.f32 %v1758_v15  ;;  %v1901_v12 = vadd.f32 %v6803_v27, %v1893_v58  ;;  %v1833_v15 = vrot.slane %v6642_v50, %v6442_v13 }
 0x2a8   : > { %v1761_v30 = vadd.f32 1.0, %v5127_v47  ;;  %5138 = vrcp.f32 %v1759_v45  ;;  %v4162_v58 = vmul.f32 -1.442695, %v1902_v51 }
 0x2a9   : > { %5140 = vrcp.f32 %v1760_v19 }
 0x2aa   : > { %5142 = vrcp.f32 %v1761_v30 }
 0x2ac   : > { %v5129_v24 = vpop.eup %5128 }
 0x2ad   : > { %v1799_v54 = vmul.f32 %v5129_v24, %v1785_v34 }
 0x2ae   : > { %v5131_v57 = vpop.eup %5130 }
 0x2af   : > { %v5133_v39 = vpop.eup %5132  ;;  %v1800_v23 = vmul.f32 %v5131_v57, %v1792_v40  ;;  %v1811_v59 = vadd.f32 %v1803_v35, %v1799_v54  ;;  %v1903_v40 = vadd.f32 %v6811_v8, %v1895_v28  ;;  %v4160_v35 = vmul.f32 -1.442695, %v1900_v5 }
 0x2b0   : > { %v5135_v47 = vpop.eup %5134  ;;  %v1801_v34 = vmul.f32 %v5133_v39, %v1793_v7  ;;  %v4161_v54 = vmul.f32 -1.442695, %v1901_v12  ;;  %v1834_v57 = vcombine.high %v1833_v15, %v1833_v15 }
 0x2b1   : > { %v1802_v45 = vmul.f32 %v5135_v47, %v1794_v11  ;;  %v1812_v24 = vadd.f32 %v1804_v10, %v1800_v23  ;;  %5144 = vtanh.f32 %v1811_v59  ;;  %v4163_v30 = vmul.f32 -1.442695, %v1903_v40  ;;  %v5137_v60 = vpop.eup %5136 }
 0x2b2   : > { %v1813_v22 = vadd.f32 %v1805_v21, %v1801_v34  ;;  %v5139_v7 = vpop.eup %5138  ;;  %v1841_v10 = vrot.slane %v1833_v15, %v6442_v13  ;;  %v1848_v21 = vrot.slane %v1834_v57, %v6442_v13 }
 0x2b3   : > { %v1814_v19 = vadd.f32 %v1806_v4, %v1802_v45  ;;  %5146 = vtanh.f32 %v1812_v24  ;;  %v5141_v50 = vpop.eup %5140  ;;  %v1819_v4 = vsub.f32 1.0, %v5137_v60  ;;  %v1820_v5 = vsub.f32 1.0, %v5139_v7 }
 0x2b4   : > { %5148 = vtanh.f32 %v1813_v22  ;;  %v5143_v11 = vpop.eup %5142  ;;  %v1855_v23 = vmul.f32 %v5137_v60, %v1841_v10  ;;  %v1821_v12 = vsub.f32 1.0, %v5141_v50  ;;  %v1849_v47 = vcombine.high %v1841_v10, %v1841_v10 }
 0x2b5   : > { %5150 = vtanh.f32 %v1814_v19  ;;  %v1850_v34 = vcombine.high %v1848_v21, %v1848_v21  ;;  %v1822_v45 = vsub.f32 1.0, %v5143_v11  ;;  %v1856_v22 = vmul.f32 %v5139_v7, %v1848_v21 }
 0x2b6   : > { %5152 = vpow2.f32 %v4160_v35  ;;  %v1857_v19 = vmul.f32 %v5141_v50, %v1849_v47  ;;  %v2144_v47 = vld [vmem:[%s6539_s13] sm:$0x1] }
 0x2b7   : > { %5154 = vpow2.f32 %v4161_v54  ;;  %v1858_v57 = vmul.f32 %v5143_v11, %v1850_v34 }
 0x2b8   : > { %5156 = vpow2.f32 %v4162_v58 }
 0x2b9   : > { %5158 = vpow2.f32 %v4163_v30 }
 0x2bb   : > { %v5145_v28 = vpop.eup %5144 }
 0x2bc   : > { %v1823_v39 = vmul.f32 %v5145_v28, %v1819_v4 }
 0x2bd   : > { %v5147_v59 = vpop.eup %5146 }
 0x2be   : > { %v5149_v51 = vpop.eup %5148  ;;  %v1824_v24 = vmul.f32 %v5147_v59, %v1820_v5  ;;  %v1859_v40 = vadd.f32 %v1855_v23, %v1823_v39 }
 0x2bf   : > { %v5151_v35 = vpop.eup %5150  ;;  %v1825_v15 = vmul.f32 %v5149_v51, %v1821_v12 }
 0x2c0   : > { %v5153_v54 = vpop.eup %5152  ;;  %v1826_v58 = vmul.f32 %v5151_v35, %v1822_v45  ;;  %v1860_v30 = vadd.f32 %v1856_v22, %v1824_v24  ;;  %v2090_v4 = vpack.c.bf16 %v1859_v40, %v1859_v40 }
 0x2c1   : > { %v5155_v60 = vpop.eup %5154  ;;  %v1861_v28 = vadd.f32 %v1857_v19, %v1825_v15  ;;  %v1916_v50 = vadd.f32 1.0, %v5153_v54  ;;  %v7703_v19 = vld [vmem:[#allocation93_spill] sm:$0xff] }
 0x2c2   : > { %v5157_v6 = vpop.eup %5156  ;;  %v6820_v10 = vadd.f32 %v1858_v57, %v1826_v58  ;;  %v2104_v29 = vrot.slane %v2090_v4, %v6613_v46  ;;  %v2218_v7 = vcombine.low %v1859_v40, %v1860_v30  ;;  %v1917_v11 = vadd.f32 1.0, %v5155_v60  ;;  %v7702_v40 = vld [vmem:[#allocation92_spill] sm:$0xff] }
 0x2c3   : > { %v5159_v5 = vpop.eup %5158  ;;  %v1918_v59 = vadd.f32 1.0, %v5157_v6  ;;  %v2091_v12 = vpack.c.bf16 %v1860_v30, %v1860_v30  ;;  %5160 = vrcp.f32 %v1916_v50  ;;  %v1932_v58 = vrot.slane %v6798_v17, 1  ;;  %v2147_v50 = vld [vmem:[%s6539_s13 + $0x2] sm:$0x1] }
 0x2c4   : > { %v2127_v39 = vshll.u32 %v2104_v29, 16  ;;  %v2219_v23 = vcombine.low %v1861_v28, %v6820_v10  ;;  %v6833_v51 = vrot.slane %v2218_v7, %v6442_v13  ;;  %v1919_v24 = vadd.f32 1.0, %v5159_v5 }
 0x2c5   : > { %5162 = vrcp.f32 %v1917_v11  ;;  %v2111_v6 = vrot.slane %v2091_v12, %v6613_v46  ;;  %v1933_v4 = vrot.slane %v6803_v27, 1  ;;  %v2092_v7 = vpack.c.bf16 %v1861_v28, %v1861_v28 }
 0x2c6   : > { %v2145_v34 = vsel %vm6824_vm7, %v2127_v39, %v2144_v47  ;;  %v6836_v45 = vrot.slane %v2219_v23, %v6442_v13  ;;  %5164 = vrcp.f32 %v1918_v59  ;;  %v1934_v5 = vrot.slane %v6807_v49, 1 }
 0x2c7   : > { %2146 = vst [vmem:[%s6539_s13] sm:$0x1] %v2145_v34  ;;  %5166 = vrcp.f32 %v1919_v24  ;;  %v2130_v30 = vshll.u32 %v2111_v6, 16  ;;  %v1935_v34 = vrot.slane %v6811_v8, 1 }
 0x2c9   : > { %v2148_v23 = vsel %vm6824_vm7, %v2130_v30, %v2147_v50 }
 0x2ca   : > { %v1631_v22 = vpop.f32.mrb[4].mxu1  ;;  %2149 = vst [vmem:[%s6539_s13 + $0x2] sm:$0x1] %v2148_v23 }
 0x2cb   : > { %v1632_v35 = vadd.f32 %v1631_v22, %v7702_v40  ;;  %v1633_v15 = vpop.f32.mrb[5].mxu1 }
 0x2cc   : > { %v1634_v54 = vadd.f32 %v1633_v15, %v7703_v19 }
 0x2cd   : > { %v1947_v57 = vrot.slane %v1632_v35, %v6442_v13  ;;  %v5161_v47 = vpop.eup %5160 }
 0x2ce   : > { %v2004_v60 = vrot.slane %v1634_v54, %v6442_v13 }
 0x2cf   : > { %v1948_v11 = vcombine.high %v1947_v57, %v1947_v57  ;;  %v1955_v39 = vrot.slane %v1947_v57, %v6442_v13  ;;  %v5163_v22 = vpop.eup %5162  ;;  %v2118_v57 = vrot.slane %v2092_v7, %v6613_v46  ;;  %v2093_v7 = vpack.c.bf16 %v6820_v10, %v6820_v10 }
 0x2d0   : > { %v2005_v59 = vcombine.high %v2004_v60, %v2004_v60  ;;  %v2012_v12 = vrot.slane %v2004_v60, %v6442_v13  ;;  %v5165_v29 = vpop.eup %5164 }
 0x2d1   : > { %v1962_v24 = vrot.slane %v1948_v11, %v6442_v13  ;;  %v1963_v6 = vcombine.high %v1955_v39, %v1955_v39  ;;  %v1969_v28 = vadd.f32 %v1955_v39, %v1932_v58  ;;  %v5167_v11 = vpop.eup %5166  ;;  %v2133_v0 = vshll.u32 %v2118_v57, 16 }
 0x2d2   : > { %v2019_v35 = vrot.slane %v2005_v59, %v6442_v13  ;;  %v2020_v15 = vcombine.high %v2012_v12, %v2012_v12  ;;  %v2026_v54 = vmul.f32 %v5161_v47, %v2012_v12  ;;  %v2031_v47 = vrot.slane %v6803_v27, 2 }
 0x2d3   : > { %v1964_v30 = vcombine.high %v1962_v24, %v1962_v24  ;;  %v1970_v50 = vadd.f32 %v1962_v24, %v1933_v4  ;;  %v1971_v60 = vadd.f32 %v1963_v6, %v1934_v5  ;;  %v4164_v23 = vmul.f32 -1.442695, %v1969_v28  ;;  %v2150_v4 = vld [vmem:[%s6539_s13 + $0x4] sm:$0x1] }
 0x2d4   : > { %v2021_v19 = vcombine.high %v2019_v35, %v2019_v35  ;;  %v2027_v40 = vmul.f32 %v5163_v22, %v2019_v35  ;;  %v2028_v36 = vmul.f32 %v5165_v29, %v2020_v15  ;;  %v2151_v5 = vsel %vm6824_vm7, %v2133_v0, %v2150_v4  ;;  %v2153_v35 = vld [vmem:[%s6539_s13 + $0x6] sm:$0x1] }
 0x2d5   : > { %v1972_v33 = vadd.f32 %v1964_v30, %v1935_v34  ;;  %5168 = vpow2.f32 %v4164_v23  ;;  %v4165_v58 = vmul.f32 -1.442695, %v1970_v50  ;;  %v4166_v39 = vmul.f32 -1.442695, %v1971_v60  ;;  %2152 = vst [vmem:[%s6539_s13 + $0x4] sm:$0x1] %v2151_v5 }
 0x2d6   : > { %v2029_v59 = vmul.f32 %v5167_v11, %v2021_v19  ;;  %v2030_v29 = vrot.slane %v6798_v17, 2  ;;  %v2125_v19 = vrot.slane %v2093_v7, %v6613_v46  ;;  %v2032_v24 = vrot.slane %v6807_v49, 2 }
 0x2d7   : > { %5170 = vpow2.f32 %v4165_v58  ;;  %v4167_v12 = vmul.f32 -1.442695, %v1972_v33  ;;  %v2039_v10 = vadd.f32 %v2031_v47, %v2027_v40  ;;  %v2033_v22 = vrot.slane %v6811_v8, 2 }
 0x2d8   : > { %5172 = vpow2.f32 %v4166_v39  ;;  %v2038_v34 = vadd.f32 %v2030_v29, %v2026_v54  ;;  %v2136_v6 = vshll.u32 %v2125_v19, 16  ;;  %v2060_v54 = vrot.slane %v6636_v53, %v6442_v13 }
 0x2d9   : > { %5174 = vpow2.f32 %v4167_v12  ;;  %v2040_v40 = vadd.f32 %v2032_v24, %v2028_v36  ;;  %v2041_v8 = vadd.f32 %v2033_v22, %v2029_v59 }
 0x2da   : > { %5176 = vtanh.f32 %v2038_v34  ;;  %v2154_v17 = vsel %vm6824_vm7, %v2136_v6, %v2153_v35  ;;  %v2061_v50 = vcombine.high %v2060_v54, %v2060_v54  ;;  %v2068_v60 = vrot.slane %v2060_v54, %v6442_v13 }
 0x2db   : > { %2155 = vst [vmem:[%s6539_s13 + $0x6] sm:$0x1] %v2154_v17 }
 0x2dc   : > { %v2075_v11 = vrot.slane %v2061_v50, %v6442_v13  ;;  %v2076_v36 = vcombine.high %v2068_v60, %v2068_v60 }
 0x2de   : > { %v2077_v59 = vcombine.high %v2075_v11, %v2075_v11 }
 0x2df   : > { %v5169_v33 = vpop.eup %5168 }
 0x2e0   : > { %v1985_v28 = vadd.f32 1.0, %v5169_v33 }
 0x2e1   : > { %v5171_v0 = vpop.eup %5170 }
 0x2e2   : > { %v5173_v15 = vpop.eup %5172  ;;  %v1986_v27 = vadd.f32 1.0, %v5171_v0  ;;  %5178 = vrcp.f32 %v1985_v28 }
 0x2e3   : > { %v5175_v57 = vpop.eup %5174  ;;  %v1987_v49 = vadd.f32 1.0, %v5173_v15  ;;  %5180 = vtanh.f32 %v2039_v10 }
 0x2e4   : > { %v1988_v30 = vadd.f32 1.0, %v5175_v57  ;;  %5182 = vrcp.f32 %v1986_v27  ;;  %v5177_v23 = vpop.eup %5176 }
 0x2e5   : > { %5184 = vrcp.f32 %v1987_v49 }
 0x2e6   : > { %5186 = vrcp.f32 %v1988_v30 }
 0x2e7   : > { %5188 = vtanh.f32 %v2040_v40 }
 0x2e8   : > { %5190 = vtanh.f32 %v2041_v8 }
 0x2ec   : > { %v5179_v58 = vpop.eup %5178 }
 0x2ed   : > { %v5181_v39 = vpop.eup %5180  ;;  %v2046_v12 = vsub.f32 1.0, %v5179_v58  ;;  %v2082_v53 = vmul.f32 %v5179_v58, %v2068_v60 }
 0x2ee   : > { %v5183_v7 = vpop.eup %5182 }
 0x2ef   : > { %v5185_v4 = vpop.eup %5184  ;;  %v2047_v5 = vsub.f32 1.0, %v5183_v7  ;;  %v2050_v29 = vmul.f32 %v5177_v23, %v2046_v12  ;;  %v2083_v47 = vmul.f32 %v5183_v7, %v2075_v11  ;;  %v2202_v23 = vld [vmem:[%s6620_s16] sm:$0x2] }
 0x2f0   : > { %v5187_v19 = vpop.eup %5186  ;;  %v2048_v34 = vsub.f32 1.0, %v5185_v4  ;;  %v2084_v33 = vmul.f32 %v5185_v4, %v2076_v36  ;;  %v7706_v36 = vcombine.low %v6833_v51, %v6836_v45 }
 0x2f1   : > { %v5189_v24 = vpop.eup %5188  ;;  %v2049_v10 = vsub.f32 1.0, %v5187_v19  ;;  %v2051_v6 = vmul.f32 %v5181_v39, %v2047_v5  ;;  %v2085_v28 = vmul.f32 %v5187_v19, %v2077_v59  ;;  %v2086_v22 = vadd.f32 %v2082_v53, %v2050_v29  ;;  %v2205_v59 = vld [vmem:[%s6620_s16 + $0x2] sm:$0x2] }
 0x2f2   : > { %v5191_v35 = vpop.eup %5190  ;;  %v2052_v0 = vmul.f32 %v5189_v24, %v2048_v34  ;;  %v6898_v4 = vrot.slane %v7706_v36, %v6442_v13  ;;  %v7711_v34 = vld [vmem:[#allocation71_spill] sm:$0xff]  ;;  %v7713_v24 = vld [vmem:[#allocation20_spill] sm:$0xff] }
 0x2f3   : > { %v2053_v17 = vmul.f32 %v5191_v35, %v2049_v10  ;;  %v2087_v15 = vadd.f32 %v2083_v47, %v2051_v6  ;;  %v2156_v27 = vpack.c.bf16 %v2086_v22, %v2086_v22  ;;  %v7714_v10 = vld [vmem:[#allocation72_spill] sm:$0xff]  ;;  %v7720_v35 = vld [vmem:[#allocation27_spill] sm:$0xff] }
 0x2f4   : > { %v2088_v57 = vadd.f32 %v2084_v33, %v2052_v0  ;;  %v7712_v33 = vld [vmem:[#allocation19_spill] sm:$0xff]  ;;  %v7717_v6 = vld [vmem:[#allocation24_spill] sm:$0xff] }
 0x2f5   : > { %v2089_v54 = vadd.f32 %v2085_v28, %v2053_v17  ;;  %v2170_v49 = vrot.slane %v2156_v27, %v6613_v46  ;;  %v2247_v40 = vcombine.low %v2086_v22, %v2087_v15  ;;  %v2157_v60 = vpack.c.bf16 %v2087_v15, %v2087_v15  ;;  %v7718_v28 = vld [vmem:[#allocation74_spill] sm:$0xff]  ;;  %v7719_v22 = vld [vmem:[#allocation75_spill] sm:$0xff]  ;;  %v7721_v0 = vld [vmem:[#allocation28_spill] sm:$0xff] }
 0x2f6   : > { %v2158_v29 = vpack.c.bf16 %v2088_v57, %v2088_v57  ;;  %v7722_v17 = vld [vmem:[#allocation76_spill] sm:$0xff]  ;;  %v7723_v15 = vld [vmem:[#allocation77_spill] sm:$0xff]  ;;  %v7724_v27 = vld [vmem:[#allocation31_spill] sm:$0xff] }
 0x2f7   : > { %v2192_v8 = vrot.slane %v2170_v49, 7  ;;  %v2248_v50 = vcombine.low %v2088_v57, %v2089_v54  ;;  %v2255_v58 = vrot.slane %v2247_v40, %v6442_v13  ;;  %v2177_v53 = vrot.slane %v2157_v60, %v6613_v46  ;;  %v7725_v57 = vld [vmem:[#allocation32_spill] sm:$0xff]  ;;  %v7727_v49 = vld [vmem:[#allocation79_spill] sm:$0xff]  ;;  %v7731_v60 = vld [vmem:[#allocation81_spill] sm:$0xff] }
 0x2f8   : > { %v2184_v45 = vrot.slane %v2158_v29, %v6613_v46  ;;  %v2159_v19 = vpack.c.bf16 %v2089_v54, %v2089_v54  ;;  %v7726_v54 = vld [vmem:[#allocation78_spill] sm:$0xff]  ;;  %v7728_v40 = vld [vmem:[#allocation35_spill] sm:$0xff]  ;;  %v7738_v36 = vld [vmem:[#allocation84_spill] sm:$0xff] }
 0x2f9   : > { %v2203_v11 = vsel %vm6880_vm9, %v2192_v8, %v2202_v23  ;;  %v2262_v39 = vrot.slane %v2248_v50, %v6442_v13  ;;  %v2193_v5 = vrot.slane %v2177_v53, 7  ;;  %v7729_v8 = vld [vmem:[#allocation36_spill] sm:$0xff]  ;;  %v7732_v23 = vld [vmem:[#allocation39_spill] sm:$0xff] }
 0x2fa   : > { %2204 = vst [vmem:[%s6620_s16] sm:$0x2] %v2203_v11  ;;  %v2194_v47 = vrot.slane %v2184_v45, 7  ;;  %v7730_v50 = vld [vmem:[#allocation80_spill] sm:$0xff]  ;;  %v7740_v29 = vld [vmem:[#allocation47_spill] sm:$0xff]  ;;  %v7743_v45 = vld [vmem:[#allocation6_spill] sm:$0xff] }
 0x2fb   : > { %v2263_v12 = vcombine.low %v2255_v58, %v2262_v39  ;;  %v2206_v51 = vsel %vm6880_vm9, %v2193_v5, %v2205_v59  ;;  %v7733_v11 = vld [vmem:[#allocation40_spill] sm:$0xff]  ;;  %v7734_v58 = vld [vmem:[#allocation82_spill] sm:$0xff]  ;;  %v7735_v39 = vld [vmem:[#allocation83_spill] sm:$0xff] }
 0x2fc   : > { %2207 = vst [vmem:[%s6620_s16 + $0x2] sm:$0x2] %v2206_v51  ;;  %v7737_v53 = vld [vmem:[#allocation44_spill] sm:$0xff]  ;;  %v7739_v5 = vld [vmem:[#allocation85_spill] sm:$0xff]  ;;  %v7742_v51 = vld [vmem:[#allocation86_spill] sm:$0xff] }
 0x2fd   : > { %v6892_v7 = vrot.slane %v2263_v12, %v6442_v13  ;;  %v7736_v12 = vld [vmem:[#allocation43_spill] sm:$0xff]  ;;  %v7741_v59 = vld [vmem:[#allocation48_spill] sm:$0xff] }
 0x2ff   : > { %2336 = vmatprep.mubr.f32.mxu0 %v6892_v7  ;;  %2407 = vmatprep.mubr.f32.mxu1 %v6892_v7 }
 0x300   : > { %2337 = vmatmul.mubr.f32.vlgmr.msra.gmra.mrb[6].mxu0 %v6898_v4  ;;  %2408 = vmatmul.mubr.f32.vlgmr.msra.gmra.mrb[6].mxu1 %v6898_v4 }
 0x301   : > { %4732 = vmatpush1.bf16.msra.mxu0 %v6062_v41  ;;  %2478 = vmatprep.mubr.f32.mxu0 %v6892_v7 }
 0x302   : > { %4734 = vmatprep.subr.bf16.mxu0 %v7622_v55  ;;  %4796 = vmatpush1.bf16.msra.mxu1 %v5507_v25  ;;  %v2208_v25 = vld [vmem:[%s6620_s16 + $0x4] sm:$0x2] }
 0x303   : > { %4798 = vmatprep.subr.bf16.mxu1 %v5509_v26  ;;  %v2209_v26 = vsel %vm6880_vm9, %v2194_v47, %v2208_v25  ;;  %v7744_v47 = vld [vmem:[#allocation51_spill] sm:$0xff] }
 0x304   : > { %2210 = vst [vmem:[%s6620_s16 + $0x4] sm:$0x2] %v2209_v26  ;;  %v7746_v25 = vld [vmem:[#allocation7_spill] sm:$0xff]  ;;  %v7747_v26 = vld [vmem:[#allocation8_spill] sm:$0xff] }
 0x305   : > { %4736 = vmatpush1.bf16.msra.mxu0 %v6099_v62 }
 0x306   : > { %4738 = vmatprep.subr.bf16.mxu0 %v7623_v1  ;;  %4800 = vmatpush1.bf16.msra.mxu1 %v5526_v31  ;;  %v2191_v31 = vrot.slane %v2159_v19, %v6613_v46  ;;  %v7745_v19 = vld [vmem:[#allocation52_spill] sm:$0xff] }
 0x307   : > { %4802 = vmatprep.subr.bf16.mxu1 %v5530_v32 }
 0x308   : > { %v2195_v32 = vrot.slane %v2191_v31, 7  ;;  %v7748_v31 = vld [vmem:[#allocation9_spill] sm:$0xff] }
 0x309   : > { %4740 = vmatpush1.bf16.msra.mxu0 %v7624_v20 }
 0x30a   : > { %4742 = vmatprep.subr.bf16.mxu0 %v7625_v43  ;;  %4804 = vmatpush1.bf16.msra.mxu1 %v5545_v37  ;;  %v2211_v37 = vld [vmem:[%s6620_s16 + $0x6] sm:$0x2] }
 0x30b   : > { %4806 = vmatprep.subr.bf16.mxu1 %v5548_v38  ;;  %v2212_v38 = vsel %vm6880_vm9, %v2195_v32, %v2211_v37  ;;  %v7749_v32 = vld [vmem:[#allocation10_spill] sm:$0xff]  ;;  %v7750_v37 = vld [vmem:[#allocation11_spill] sm:$0xff] }
 0x30c   : > { %2213 = vst [vmem:[%s6620_s16 + $0x6] sm:$0x2] %v2212_v38  ;;  %v7751_v38 = vld [vmem:[#allocation12_spill] sm:$0xff] }
 0x30d   : > { %4744 = vmatpush1.bf16.msra.mxu0 %v7626_v44 }
 0x30e   : > { %4746 = vmatprep.subr.bf16.mxu0 %v7627_v56  ;;  %4808 = vmatpush1.bf16.msra.mxu1 %v5577_v48  ;;  %v7707_v48 = vld [vmem:[#allocation69_spill] sm:$0xff] }
 0x30f   : > { %4810 = vmatprep.subr.bf16.mxu1 %v5588_v52  ;;  %v7708_v52 = vld [vmem:[#allocation15_spill] sm:$0xff] }
 0x311   : > { %4748 = vmatpush1.bf16.msra.mxu0 %v7628_v61 }
 0x312   : > { %4750 = vmatprep.subr.bf16.mxu0 %v7629_v18  ;;  %4812 = vmatpush1.bf16.msra.mxu1 %v5621_v63  ;;  %v7709_v63 = vld [vmem:[#allocation16_spill] sm:$0xff] }
 0x313   : > { %4814 = vmatprep.subr.bf16.mxu1 %v5633_v3  ;;  %v7710_v3 = vld [vmem:[#allocation70_spill] sm:$0xff] }
 0x315   : > { %4752 = vmatpush1.bf16.msra.mxu0 %v7630_v2 }
 0x316   : > { %4754 = vmatprep.subr.bf16.mxu0 %v7631_v9  ;;  %4816 = vmatpush1.bf16.msra.mxu1 %v5666_v14  ;;  %v7715_v14 = vld [vmem:[#allocation73_spill] sm:$0xff] }
 0x317   : > { %4818 = vmatprep.subr.bf16.mxu1 %v5672_v16  ;;  %v7716_v16 = vld [vmem:[#allocation23_spill] sm:$0xff] }
 0x319   : > { %4756 = vmatpush1.bf16.msra.mxu0 %v7632_v42 }
 0x31a   : > { %4758 = vmatprep.subr.bf16.mxu0 %v7707_v48  ;;  %4820 = vmatpush1.bf16.msra.mxu1 %v7708_v52  ;;  %v7752_v52 = vld [vmem:[#allocation13_spill] sm:$0xff] }
 0x31b   : > { %4822 = vmatprep.subr.bf16.mxu1 %v7709_v63  ;;  %v7753_v63 = vld [vmem:[#allocation14_spill] sm:$0xff] }
 0x31d   : > { %4760 = vmatpush1.bf16.msra.mxu0 %v7710_v3 }
 0x31e   : > { %4762 = vmatprep.subr.bf16.mxu0 %v7711_v34  ;;  %4824 = vmatpush1.bf16.msra.mxu1 %v7712_v33  ;;  %v7754_v33 = vld [vmem:[#allocation17_spill] sm:$0xff] }
 0x31f   : > { %4826 = vmatprep.subr.bf16.mxu1 %v7713_v24  ;;  %v7755_v24 = vld [vmem:[#allocation18_spill] sm:$0xff] }
 0x321   : > { %4764 = vmatpush1.bf16.msra.mxu0 %v7714_v10 }
 0x322   : > { %4766 = vmatprep.subr.bf16.mxu0 %v7715_v14  ;;  %4828 = vmatpush1.bf16.msra.mxu1 %v7716_v16  ;;  %v7756_v16 = vld [vmem:[#allocation21_spill] sm:$0xff] }
 0x323   : > { %4830 = vmatprep.subr.bf16.mxu1 %v7717_v6  ;;  %v7757_v6 = vld [vmem:[#allocation22_spill] sm:$0xff] }
 0x325   : > { %4768 = vmatpush1.bf16.msra.mxu0 %v7718_v28 }
 0x326   : > { %4770 = vmatprep.subr.bf16.mxu0 %v7719_v22  ;;  %4832 = vmatpush1.bf16.msra.mxu1 %v7720_v35  ;;  %v7758_v35 = vld [vmem:[#allocation25_spill] sm:$0xff] }
 0x327   : > { %4834 = vmatprep.subr.bf16.mxu1 %v7721_v0  ;;  %v7759_v0 = vld [vmem:[#allocation26_spill] sm:$0xff] }
 0x329   : > { %4772 = vmatpush1.bf16.msra.mxu0 %v7722_v17 }
 0x32a   : > { %4774 = vmatprep.subr.bf16.mxu0 %v7723_v15  ;;  %4836 = vmatpush1.bf16.msra.mxu1 %v7724_v27  ;;  %v7760_v27 = vld [vmem:[#allocation29_spill] sm:$0xff] }
 0x32b   : > { %4838 = vmatprep.subr.bf16.mxu1 %v7725_v57  ;;  %v7761_v57 = vld [vmem:[#allocation30_spill] sm:$0xff] }
 0x32d   : > { %4776 = vmatpush1.bf16.msra.mxu0 %v7726_v54 }
 0x32e   : > { %4778 = vmatprep.subr.bf16.mxu0 %v7727_v49  ;;  %4840 = vmatpush1.bf16.msra.mxu1 %v7728_v40  ;;  %v7762_v40 = vld [vmem:[#allocation33_spill] sm:$0xff] }
 0x32f   : > { %4842 = vmatprep.subr.bf16.mxu1 %v7729_v8  ;;  %v7763_v8 = vld [vmem:[#allocation34_spill] sm:$0xff] }
 0x331   : > { %4780 = vmatpush1.bf16.msra.mxu0 %v7730_v50 }
 0x332   : > { %4782 = vmatprep.subr.bf16.mxu0 %v7731_v60  ;;  %4844 = vmatpush1.bf16.msra.mxu1 %v7732_v23  ;;  %v7764_v23 = vld [vmem:[#allocation37_spill] sm:$0xff] }
 0x333   : > { %4846 = vmatprep.subr.bf16.mxu1 %v7733_v11  ;;  %v7765_v11 = vld [vmem:[#allocation38_spill] sm:$0xff] }
 0x335   : > { %4784 = vmatpush1.bf16.msra.mxu0 %v7734_v58 }
 0x336   : > { %4786 = vmatprep.subr.bf16.mxu0 %v7735_v39  ;;  %4848 = vmatpush1.bf16.msra.mxu1 %v7736_v12  ;;  %v7766_v12 = vld [vmem:[#allocation41_spill] sm:$0xff] }
 0x337   : > { %4850 = vmatprep.subr.bf16.mxu1 %v7737_v53  ;;  %v7767_v53 = vld [vmem:[#allocation42_spill] sm:$0xff] }
 0x339   : > { %4788 = vmatpush1.bf16.msra.mxu0 %v7738_v36 }
 0x33a   : > { %4790 = vmatprep.subr.bf16.mxu0 %v7739_v5  ;;  %4852 = vmatpush1.bf16.msra.mxu1 %v7740_v29  ;;  %v7768_v29 = vld [vmem:[#allocation45_spill] sm:$0xff] }
 0x33b   : > { %4854 = vmatprep.subr.bf16.mxu1 %v7741_v59  ;;  %v7769_v59 = vld [vmem:[#allocation46_spill] sm:$0xff] }
 0x33d   : > { %4792 = vmatpush1.bf16.msra.mxu0 %v7742_v51 }
 0x33e   : > { %4858 = vmatprep.subr.bf16.mxu0 %v7743_v45  ;;  %4856 = vmatpush1.bf16.msra.mxu1 %v7744_v47  ;;  %v7770_v45 = vld [vmem:[#allocation49_spill] sm:$0xff]  ;;  %v7771_v47 = vld [vmem:[#allocation50_spill] sm:$0xff] }
 0x33f   : > { %4922 = vmatprep.subr.bf16.mxu1 %v7745_v19  ;;  %v7772_v19 = vld [vmem:[#allocation53_spill] sm:$0xff] }
 0x340   : > { %2479 = vmatmul.mubr.f32.vlgmr.msra.gmra.mrb[8].mxu0 %v6898_v4 }
 0x341   : > { %4860 = vmatpush1.bf16.msra.mxu0 %v7746_v25  ;;  %v7773_v25 = vld [vmem:[#allocation54_spill] sm:$0xff] }
 0x342   : > { %4862 = vmatprep.subr.bf16.mxu0 %v7747_v26  ;;  %v7774_v26 = vld [vmem:[#allocation56_spill] sm:$0xff] }
 0x345   : > { %4864 = vmatpush1.bf16.msra.mxu0 %v7748_v31  ;;  %v7775_v31 = vld [vmem:[#allocation57_spill] sm:$0xff] }
 0x346   : > { %4866 = vmatprep.subr.bf16.mxu0 %v7749_v32  ;;  %v7776_v32 = vld [vmem:[#allocation59_spill] sm:$0xff] }
 0x349   : > { %4868 = vmatpush1.bf16.msra.mxu0 %v7750_v37 }
 0x34a   : > { %4870 = vmatprep.subr.bf16.mxu0 %v7751_v38 }
 0x34d   : > { %4872 = vmatpush1.bf16.msra.mxu0 %v7752_v52  ;;  %v7777_v52 = vld [vmem:[#allocation87_spill] sm:$0xff] }
 0x34e   : > { %4874 = vmatprep.subr.bf16.mxu0 %v7753_v63 }
 0x351   : > { %4876 = vmatpush1.bf16.msra.mxu0 %v7754_v33 }
 0x352   : > { %4878 = vmatprep.subr.bf16.mxu0 %v7755_v24 }
 0x355   : > { %4880 = vmatpush1.bf16.msra.mxu0 %v7756_v16  ;;  %v7778_v16 = vld [vmem:[#allocation88_spill] sm:$0xff] }
 0x356   : > { %4882 = vmatprep.subr.bf16.mxu0 %v7757_v6 }
 0x359   : > { %4884 = vmatpush1.bf16.msra.mxu0 %v7758_v35  ;;  %v7018_v35 = vld [vmem:[%s6446_s18 + $0x2] ss:$4 sm:$0x7] }
 0x35a   : > { %4886 = vmatprep.subr.bf16.mxu0 %v7759_v0  ;;  %v7021_v0 = vld [vmem:[%s6446_s18 + $0xe] ss:$4 sm:$0x7] }
 0x35d   : > { %4888 = vmatpush1.bf16.msra.mxu0 %v7760_v27 }
 0x35e   : > { %4890 = vmatprep.subr.bf16.mxu0 %v7761_v57 }
 0x361   : > { %4892 = vmatpush1.bf16.msra.mxu0 %v7762_v40  ;;  %v7026_v40 = vld [vmem:[%s6446_s18 + $0x1a] ss:$4 sm:$0x7] }
 0x362   : > { %4894 = vmatprep.subr.bf16.mxu0 %v7763_v8  ;;  %v7029_v8 = vld [vmem:[%s6446_s18 + $0x26] ss:$4 sm:$0x7] }
 0x365   : > { %4896 = vmatpush1.bf16.msra.mxu0 %v7764_v23 }
 0x366   : > { %4898 = vmatprep.subr.bf16.mxu0 %v7765_v11 }
 0x369   : > { %4900 = vmatpush1.bf16.msra.mxu0 %v7766_v12  ;;  %v2554_v12 = vrot.slane %v7018_v35, 1 }
 0x36a   : > { %4902 = vmatprep.subr.bf16.mxu0 %v7767_v53  ;;  %v2555_v53 = vrot.slane %v7021_v0, 1 }
 0x36d   : > { %4904 = vmatpush1.bf16.msra.mxu0 %v7768_v29 }
 0x36e   : > { %4906 = vmatprep.subr.bf16.mxu0 %v7769_v59 }
 0x371   : > { %4908 = vmatpush1.bf16.msra.mxu0 %v7770_v45 }
 0x372   : > { %4910 = vmatprep.subr.bf16.mxu0 %v7771_v47 }
 0x375   : > { %4912 = vmatpush1.bf16.msra.mxu0 %v7772_v19 }
 0x376   : > { %4914 = vmatprep.subr.bf16.mxu0 %v7773_v25  ;;  %v2556_v25 = vrot.slane %v7026_v40, 1 }
 0x379   : > { %4916 = vmatpush1.bf16.msra.mxu0 %v7774_v26  ;;  %v2557_v26 = vrot.slane %v7029_v8, 1 }
 0x37a   : > { %4918 = vmatprep.subr.bf16.mxu0 %v7775_v31 }
 0x37d   : > { %4920 = vmatpush1.bf16.msra.mxu0 %v7776_v32 }
 0x3d3   : > { %v2338_v37 = vpop.f32.mrb[6].mxu0  ;;  %v2409_v38 = vpop.f32.mrb[6].mxu1 }
 0x3d4   : > { %v2339_v63 = vadd.f32 %v2338_v37, %v7777_v52  ;;  %v2340_v33 = vpop.f32.mrb[7].mxu0  ;;  %v2411_v24 = vpop.f32.mrb[7].mxu1 }
 0x3d5   : > { %v2341_v6 = vadd.f32 %v2340_v33, %v7778_v16 }
 0x3d6   : > { %v2500_v27 = vrot.slane %v2339_v63, %v6442_v13 }
 0x3d7   : > { %v2569_v57 = vrot.slane %v2341_v6, %v6442_v13 }
 0x3d8   : > { %v2501_v23 = vcombine.high %v2500_v27, %v2500_v27  ;;  %v2508_v11 = vrot.slane %v2500_v27, %v6442_v13 }
 0x3d9   : > { %v2570_v29 = vcombine.high %v2569_v57, %v2569_v57  ;;  %v2577_v59 = vrot.slane %v2569_v57, %v6442_v13 }
 0x3da   : > { %v2515_v45 = vrot.slane %v2501_v23, %v6442_v13  ;;  %v2516_v47 = vcombine.high %v2508_v11, %v2508_v11  ;;  %v2522_v19 = vadd.f32 %v7018_v35, %v2508_v11 }
 0x3db   : > { %v2584_v31 = vrot.slane %v2570_v29, %v6442_v13  ;;  %v2585_v32 = vcombine.high %v2577_v59, %v2577_v59  ;;  %v2591_v57 = vadd.f32 %v2577_v59, %v2554_v12 }
 0x3dc   : > { %v2517_v37 = vcombine.high %v2515_v45, %v2515_v45  ;;  %v2523_v63 = vadd.f32 %v7021_v0, %v2515_v45  ;;  %v2524_v33 = vadd.f32 %v7026_v40, %v2516_v47  ;;  %v4172_v6 = vmul.f32 -1.442695, %v2522_v19  ;;  %v7779_v47 = vld [vmem:[#allocation90_spill] sm:$0xff] }
 0x3dd   : > { %v2586_v27 = vcombine.high %v2584_v31, %v2584_v31  ;;  %v2592_v16 = vadd.f32 %v2584_v31, %v2555_v53  ;;  %v2593_v51 = vadd.f32 %v2585_v32, %v2556_v25  ;;  %v4176_v29 = vmul.f32 -1.442695, %v2591_v57  ;;  %v7780_v53 = vld [vmem:[#allocation89_spill] sm:$0xff] }
 0x3de   : > { %v2525_v23 = vadd.f32 %v7029_v8, %v2517_v37  ;;  %5192 = vpow2.f32 %v4172_v6  ;;  %v4173_v11 = vmul.f32 -1.442695, %v2523_v63  ;;  %v4174_v52 = vmul.f32 -1.442695, %v2524_v33 }
 0x3df   : > { %v2594_v36 = vadd.f32 %v2586_v27, %v2557_v26  ;;  %v4177_v39 = vmul.f32 -1.442695, %v2592_v16  ;;  %v4178_v45 = vmul.f32 -1.442695, %v2593_v51  ;;  %v2410_v12 = vadd.f32 %v2409_v38, %v7779_v47 }
 0x3e0   : > { %5194 = vpow2.f32 %v4173_v11  ;;  %v4175_v5 = vmul.f32 -1.442695, %v2525_v23  ;;  %v2412_v59 = vadd.f32 %v2411_v24, %v7780_v53 }
 0x3e1   : > { %5196 = vpow2.f32 %v4174_v52  ;;  %v4179_v58 = vmul.f32 -1.442695, %v2594_v36  ;;  %v2626_v52 = vrot.slane %v2410_v12, %v6442_v13  ;;  %v7053_v12 = vld [vmem:[%s6489_s9 + $0x1] ss:$4 sm:$0x7] }
 0x3e2   : > { %5198 = vpow2.f32 %v4175_v5  ;;  %v2727_v5 = vrot.slane %v2412_v59, %v6442_v13 }
 0x3e3   : > { %5200 = vpow2.f32 %v4176_v29  ;;  %v2627_v38 = vcombine.high %v2626_v52, %v2626_v52  ;;  %v2634_v6 = vrot.slane %v2626_v52, %v6442_v13  ;;  %v2652_v29 = vrot.slane %v7018_v35, 2 }
 0x3e4   : > { %5202 = vpow2.f32 %v4177_v39  ;;  %v2728_v24 = vcombine.high %v2727_v5, %v2727_v5  ;;  %v2735_v63 = vrot.slane %v2727_v5, %v6442_v13 }
 0x3e5   : > { %5204 = vpow2.f32 %v4178_v45  ;;  %v2641_v57 = vrot.slane %v2627_v38, %v6442_v13  ;;  %v2642_v52 = vcombine.high %v2634_v6, %v2634_v6 }
 0x3e6   : > { %5206 = vpow2.f32 %v4179_v58  ;;  %v2742_v11 = vrot.slane %v2728_v24, %v6442_v13 }
 0x3e8   : > { %v5193_v19 = vpop.eup %5192 }
 0x3e9   : > { %v2538_v31 = vadd.f32 1.0, %v5193_v19  ;;  %v2653_v19 = vrot.slane %v7021_v0, 2  ;;  %v2749_v0 = vadd.f32 %v7053_v12, %v2735_v63 }
 0x3ea   : > { %v5195_v25 = vpop.eup %5194 }
 0x3eb   : > { %v5197_v32 = vpop.eup %5196  ;;  %v2539_v37 = vadd.f32 1.0, %v5195_v25  ;;  %5208 = vrcp.f32 %v2538_v31  ;;  %v2654_v31 = vrot.slane %v7026_v40, 2 }
 0x3ec   : > { %v5199_v51 = vpop.eup %5198  ;;  %v2540_v36 = vadd.f32 1.0, %v5197_v32  ;;  %v7058_v32 = vld [vmem:[%s6489_s9 + $0xd] ss:$4 sm:$0x7] }
 0x3ed   : > { %v2541_v16 = vadd.f32 1.0, %v5199_v51  ;;  %5210 = vrcp.f32 %v2539_v37  ;;  %v5201_v39 = vpop.eup %5200  ;;  %v2743_v37 = vcombine.high %v2735_v63, %v2735_v63  ;;  %v2655_v51 = vrot.slane %v7029_v8, 2 }
 0x3ee   : > { %5212 = vrcp.f32 %v2540_v36  ;;  %v5203_v58 = vpop.eup %5202  ;;  %v2607_v27 = vadd.f32 1.0, %v5201_v39  ;;  %v7062_v36 = vld [vmem:[%s6489_s9 + $0x19] ss:$4 sm:$0x7]  ;;  %v2744_v39 = vcombine.high %v2742_v11, %v2742_v11 }
 0x3ef   : > { %5214 = vrcp.f32 %v2541_v16  ;;  %v5205_v26 = vpop.eup %5204  ;;  %v2608_v23 = vadd.f32 1.0, %v5203_v58  ;;  %v2643_v16 = vcombine.high %v2641_v57, %v2641_v57  ;;  %v7066_v58 = vld [vmem:[%s6489_s9 + $0x25] ss:$4 sm:$0x7]  ;;  %v2751_v8 = vadd.f32 %v7062_v36, %v2743_v37 }
 0x3f0   : > { %v5207_v33 = vpop.eup %5206  ;;  %v2609_v45 = vadd.f32 1.0, %v5205_v26  ;;  %5216 = vrcp.f32 %v2607_v27  ;;  %v2750_v26 = vadd.f32 %v7058_v32, %v2742_v11  ;;  %v2682_v27 = vrot.slane %v6898_v4, %v6442_v13 }
 0x3f1   : > { %v2610_v25 = vadd.f32 1.0, %v5207_v33  ;;  %5218 = vrcp.f32 %v2608_v23  ;;  %v4186_v11 = vmul.f32 -1.442695, %v2751_v8 }
 0x3f2   : > { %5220 = vrcp.f32 %v2609_v45 }
 0x3f3   : > { %5222 = vrcp.f32 %v2610_v25 }
 0x3f5   : > { %v5209_v59 = vpop.eup %5208 }
 0x3f6   : > { %v2648_v5 = vmul.f32 %v5209_v59, %v2634_v6 }
 0x3f7   : > { %v5211_v35 = vpop.eup %5210 }
 0x3f8   : > { %v5213_v38 = vpop.eup %5212  ;;  %v2649_v40 = vmul.f32 %v5211_v35, %v2641_v57  ;;  %v2660_v24 = vadd.f32 %v2652_v29, %v2648_v5  ;;  %v2752_v57 = vadd.f32 %v7066_v58, %v2744_v39  ;;  %v4184_v29 = vmul.f32 -1.442695, %v2749_v0 }
 0x3f9   : > { %v5215_v33 = vpop.eup %5214  ;;  %v2650_v6 = vmul.f32 %v5213_v38, %v2642_v52  ;;  %v4185_v5 = vmul.f32 -1.442695, %v2750_v26  ;;  %v2683_v35 = vcombine.high %v2682_v27, %v2682_v27 }
 0x3fa   : > { %v2651_v23 = vmul.f32 %v5215_v33, %v2643_v16  ;;  %v2661_v59 = vadd.f32 %v2653_v19, %v2649_v40  ;;  %5224 = vtanh.f32 %v2660_v24  ;;  %v4187_v25 = vmul.f32 -1.442695, %v2752_v57  ;;  %v5217_v37 = vpop.eup %5216 }
 0x3fb   : > { %v2662_v63 = vadd.f32 %v2654_v31, %v2650_v6  ;;  %v5219_v52 = vpop.eup %5218  ;;  %v2690_v19 = vrot.slane %v2682_v27, %v6442_v13  ;;  %v2697_v31 = vrot.slane %v2683_v35, %v6442_v13 }
 0x3fc   : > { %v2663_v45 = vadd.f32 %v2655_v51, %v2651_v23  ;;  %5226 = vtanh.f32 %v2661_v59  ;;  %v5221_v4 = vpop.eup %5220  ;;  %v2668_v51 = vsub.f32 1.0, %v5217_v37  ;;  %v2669_v0 = vsub.f32 1.0, %v5219_v52 }
 0x3fd   : > { %5228 = vtanh.f32 %v2662_v63  ;;  %v5223_v16 = vpop.eup %5222  ;;  %v2704_v40 = vmul.f32 %v5217_v37, %v2690_v19  ;;  %v2670_v26 = vsub.f32 1.0, %v5221_v4  ;;  %v2698_v33 = vcombine.high %v2690_v19, %v2690_v19 }
 0x3fe   : > { %5230 = vtanh.f32 %v2663_v45  ;;  %v2699_v6 = vcombine.high %v2697_v31, %v2697_v31  ;;  %v2671_v23 = vsub.f32 1.0, %v5223_v16  ;;  %v2705_v63 = vmul.f32 %v5219_v52, %v2697_v31  ;;  %v2983_v31 = vld [vmem:[%s6539_s13] sm:$0x2] }
 0x3ff   : > { %5232 = vpow2.f32 %v4184_v29  ;;  %v2706_v45 = vmul.f32 %v5221_v4, %v2698_v33 }
 0x400   : > { %5234 = vpow2.f32 %v4185_v5  ;;  %v2707_v35 = vmul.f32 %v5223_v16, %v2699_v6 }
 0x401   : > { %5236 = vpow2.f32 %v4186_v11 }
 0x402   : > { %5238 = vpow2.f32 %v4187_v25 }
 0x404   : > { %v5225_v39 = vpop.eup %5224 }
 0x405   : > { %v2672_v38 = vmul.f32 %v5225_v39, %v2668_v51 }
 0x406   : > { %v5227_v24 = vpop.eup %5226 }
 0x407   : > { %v5229_v8 = vpop.eup %5228  ;;  %v2673_v59 = vmul.f32 %v5227_v24, %v2669_v0  ;;  %v2708_v57 = vadd.f32 %v2704_v40, %v2672_v38 }
 0x408   : > { %v5231_v27 = vpop.eup %5230  ;;  %v2674_v29 = vmul.f32 %v5229_v8, %v2670_v26 }
 0x409   : > { %v5233_v5 = vpop.eup %5232  ;;  %v2675_v11 = vmul.f32 %v5231_v27, %v2671_v23  ;;  %v2709_v25 = vadd.f32 %v2705_v63, %v2673_v59  ;;  %v2939_v53 = vpack.c.bf16 %v2708_v57, %v2708_v57 }
 0x40a   : > { %v5235_v51 = vpop.eup %5234  ;;  %v2710_v37 = vadd.f32 %v2706_v45, %v2674_v29  ;;  %v2765_v52 = vadd.f32 1.0, %v5233_v5  ;;  %v7782_v45 = vld [vmem:[#allocation93_spill] sm:$0xff] }
 0x40b   : > { %v5237_v39 = vpop.eup %5236  ;;  %v7075_v47 = vadd.f32 %v2707_v35, %v2675_v11  ;;  %v2953_v19 = vrot.slane %v2939_v53, %v6613_v46  ;;  %v3063_v0 = vcombine.low %v2708_v57, %v2709_v25  ;;  %v2766_v40 = vadd.f32 1.0, %v5235_v51  ;;  %v7781_v57 = vld [vmem:[#allocation92_spill] sm:$0xff] }
 0x40c   : > { %v5239_v38 = vpop.eup %5238  ;;  %v2767_v26 = vadd.f32 1.0, %v5237_v39  ;;  %v2940_v16 = vpack.c.bf16 %v2709_v25, %v2709_v25  ;;  %5240 = vrcp.f32 %v2765_v52  ;;  %v2781_v11 = vrot.slane %v7053_v12, 1 }
 0x40d   : > { %v2975_v24 = vrot.slane %v2953_v19, 7  ;;  %v3064_v4 = vcombine.low %v2710_v37, %v7075_v47  ;;  %v7083_v6 = vrot.slane %v3063_v0, %v6442_v13  ;;  %v2768_v53 = vadd.f32 1.0, %v5239_v38  ;;  %v2986_v0 = vld [vmem:[%s6539_s13 + $0x2] sm:$0x2] }
 0x40e   : > { %5242 = vrcp.f32 %v2766_v40  ;;  %v2960_v59 = vrot.slane %v2940_v16, %v6613_v46  ;;  %v2782_v51 = vrot.slane %v7058_v32, 1  ;;  %v2941_v19 = vpack.c.bf16 %v2710_v37, %v2710_v37 }
 0x40f   : > { %v2984_v33 = vsel %vm6880_vm9, %v2975_v24, %v2983_v31  ;;  %v7086_v8 = vrot.slane %v3064_v4, %v6442_v13  ;;  %5244 = vrcp.f32 %v2767_v26  ;;  %v2783_v52 = vrot.slane %v7062_v36, 1 }
 0x410   : > { %2985 = vst [vmem:[%s6539_s13] sm:$0x2] %v2984_v33  ;;  %5246 = vrcp.f32 %v2768_v53  ;;  %v2976_v25 = vrot.slane %v2960_v59, 7  ;;  %v2784_v16 = vrot.slane %v7066_v58, 1 }
 0x412   : > { %v2987_v40 = vsel %vm6880_vm9, %v2976_v25, %v2986_v0 }
 0x413   : > { %v2480_v63 = vpop.f32.mrb[8].mxu0  ;;  %2988 = vst [vmem:[%s6539_s13 + $0x2] sm:$0x2] %v2987_v40 }
 0x414   : > { %v2481_v27 = vadd.f32 %v2480_v63, %v7781_v57  ;;  %v2482_v29 = vpop.f32.mrb[9].mxu0 }
 0x415   : > { %v2483_v5 = vadd.f32 %v2482_v29, %v7782_v45 }
 0x416   : > { %v2796_v35 = vrot.slane %v2481_v27, %v6442_v13  ;;  %v5241_v26 = vpop.eup %5240 }
 0x417   : > { %v2853_v39 = vrot.slane %v2483_v5, %v6442_v13  ;;  %v2967_v5 = vrot.slane %v2941_v19, %v6613_v46  ;;  %v2942_v19 = vpack.c.bf16 %v7075_v47, %v7075_v47 }
 0x418   : > { %v2797_v31 = vcombine.high %v2796_v35, %v2796_v35  ;;  %v2804_v38 = vrot.slane %v2796_v35, %v6442_v13  ;;  %v5243_v59 = vpop.eup %5242 }
 0x419   : > { %v2854_v24 = vcombine.high %v2853_v39, %v2853_v39  ;;  %v2861_v4 = vrot.slane %v2853_v39, %v6442_v13  ;;  %v5245_v35 = vpop.eup %5244  ;;  %v2977_v50 = vrot.slane %v2967_v5, 7 }
 0x41a   : > { %v2811_v33 = vrot.slane %v2797_v31, %v6442_v13  ;;  %v2812_v53 = vcombine.high %v2804_v38, %v2804_v38  ;;  %v2818_v37 = vadd.f32 %v2804_v38, %v2781_v11  ;;  %v5247_v31 = vpop.eup %5246 }
 0x41b   : > { %v2868_v63 = vrot.slane %v2854_v24, %v6442_v13  ;;  %v2869_v27 = vcombine.high %v2861_v4, %v2861_v4  ;;  %v2875_v29 = vmul.f32 %v5241_v26, %v2861_v4  ;;  %v2879_v26 = vrot.slane %v7053_v12, 2 }
 0x41c   : > { %v2813_v25 = vcombine.high %v2811_v33, %v2811_v33  ;;  %v2819_v0 = vadd.f32 %v2811_v33, %v2782_v51  ;;  %v2820_v39 = vadd.f32 %v2812_v53, %v2783_v52  ;;  %v4188_v40 = vmul.f32 -1.442695, %v2818_v37  ;;  %v2989_v51 = vld [vmem:[%s6539_s13 + $0x4] sm:$0x2] }
 0x41d   : > { %v2870_v23 = vcombine.high %v2868_v63, %v2868_v63  ;;  %v2876_v45 = vmul.f32 %v5243_v59, %v2868_v63  ;;  %v2877_v57 = vmul.f32 %v5245_v35, %v2869_v27  ;;  %v2990_v52 = vsel %vm6880_vm9, %v2977_v50, %v2989_v51  ;;  %v2992_v27 = vld [vmem:[%s6539_s13 + $0x6] sm:$0x2] }
 0x41e   : > { %v2821_v60 = vadd.f32 %v2813_v25, %v2784_v16  ;;  %5248 = vpow2.f32 %v4188_v40  ;;  %v4189_v11 = vmul.f32 -1.442695, %v2819_v0  ;;  %v4190_v38 = vmul.f32 -1.442695, %v2820_v39  ;;  %2991 = vst [vmem:[%s6539_s13 + $0x4] sm:$0x2] %v2990_v52 }
 0x41f   : > { %v2878_v24 = vmul.f32 %v5247_v31, %v2870_v23  ;;  %v2880_v16 = vrot.slane %v7058_v32, 2  ;;  %v2974_v23 = vrot.slane %v2942_v19, %v6613_v46  ;;  %v2887_v33 = vadd.f32 %v2879_v26, %v2875_v29 }
 0x420   : > { %5250 = vpow2.f32 %v4189_v11  ;;  %v4191_v4 = vmul.f32 -1.442695, %v2821_v60  ;;  %v2881_v53 = vrot.slane %v7062_v36, 2  ;;  %v2882_v63 = vrot.slane %v7066_v58, 2 }
 0x421   : > { %5252 = vpow2.f32 %v4190_v38  ;;  %v2888_v47 = vadd.f32 %v2880_v16, %v2876_v45  ;;  %v2978_v37 = vrot.slane %v2974_v23, 7  ;;  %v2909_v29 = vrot.slane %v6892_v7, %v6442_v13 }
 0x422   : > { %5254 = vpow2.f32 %v4191_v4  ;;  %v2889_v45 = vadd.f32 %v2881_v53, %v2877_v57  ;;  %v2890_v58 = vadd.f32 %v2882_v63, %v2878_v24 }
 0x423   : > { %5256 = vtanh.f32 %v2887_v33  ;;  %v2993_v12 = vsel %vm6880_vm9, %v2978_v37, %v2992_v27  ;;  %v2910_v0 = vcombine.high %v2909_v29, %v2909_v29  ;;  %v2917_v30 = vrot.slane %v2909_v29, %v6442_v13 }
 0x424   : > { %2994 = vst [vmem:[%s6539_s13 + $0x6] sm:$0x2] %v2993_v12 }
 0x425   : > { %v2924_v40 = vrot.slane %v2910_v0, %v6442_v13  ;;  %v2925_v57 = vcombine.high %v2917_v30, %v2917_v30 }
 0x427   : > { %v2926_v24 = vcombine.high %v2924_v40, %v2924_v40 }
 0x428   : > { %v5249_v60 = vpop.eup %5248 }
 0x429   : > { %v2834_v59 = vadd.f32 1.0, %v5249_v60 }
 0x42a   : > { %v5251_v50 = vpop.eup %5250 }
 0x42b   : > { %v5253_v5 = vpop.eup %5252  ;;  %v2835_v32 = vadd.f32 1.0, %v5251_v50  ;;  %5258 = vrcp.f32 %v2834_v59 }
 0x42c   : > { %v5255_v35 = vpop.eup %5254  ;;  %v2836_v36 = vadd.f32 1.0, %v5253_v5  ;;  %5260 = vtanh.f32 %v2888_v47 }
 0x42d   : > { %v2837_v25 = vadd.f32 1.0, %v5255_v35  ;;  %5262 = vrcp.f32 %v2835_v32  ;;  %v5257_v39 = vpop.eup %5256 }
 0x42e   : > { %5264 = vrcp.f32 %v2836_v36 }
 0x42f   : > { %5266 = vrcp.f32 %v2837_v25 }
 0x430   : > { %5268 = vtanh.f32 %v2889_v45  ;;  %v3047_v45 = vld [vmem:[%s6620_s16] sm:$0x1] }
 0x431   : > { %5270 = vtanh.f32 %v2890_v58 }
 0x435   : > { %v5259_v31 = vpop.eup %5258 }
 0x436   : > { %v5261_v11 = vpop.eup %5260  ;;  %v2895_v38 = vsub.f32 1.0, %v5259_v31  ;;  %v2931_v7 = vmul.f32 %v5259_v31, %v2917_v30 }
 0x437   : > { %v5263_v4 = vpop.eup %5262 }
 0x438   : > { %v5265_v19 = vpop.eup %5264  ;;  %v2896_v51 = vsub.f32 1.0, %v5263_v4  ;;  %v2899_v52 = vmul.f32 %v5257_v39, %v2895_v38  ;;  %v2932_v26 = vmul.f32 %v5263_v4, %v2924_v40 }
 0x439   : > { %v5267_v16 = vpop.eup %5266  ;;  %v2897_v23 = vsub.f32 1.0, %v5265_v19  ;;  %v2933_v33 = vmul.f32 %v5265_v19, %v2925_v57 }
 0x43a   : > { %v5269_v60 = vpop.eup %5268  ;;  %v2898_v53 = vsub.f32 1.0, %v5267_v16  ;;  %v2900_v47 = vmul.f32 %v5261_v11, %v2896_v51  ;;  %v2934_v37 = vmul.f32 %v5267_v16, %v2926_v24  ;;  %v2935_v59 = vadd.f32 %v2931_v7, %v2899_v52  ;;  %v3050_v51 = vld [vmem:[%s6620_s16 + $0x2] sm:$0x1]  ;;  %v3053_v24 = vld [vmem:[%s6620_s16 + $0x4] sm:$0x1] }
 0x43b   : > { %v5271_v63 = vpop.eup %5270  ;;  %v2901_v27 = vmul.f32 %v5269_v60, %v2897_v23  ;;  %v7783_v7 = vcombine.low %v7083_v6, %v7086_v8  ;;  %v7210_v16 = vld [vmem:[%s6446_s18 + $0x27] ss:$4 sm:$0x7] }
 0x43c   : > { %v2902_v50 = vmul.f32 %v5271_v63, %v2898_v53  ;;  %v2936_v12 = vadd.f32 %v2932_v26, %v2900_v47  ;;  %v2995_v5 = vpack.c.bf16 %v2935_v59, %v2935_v59 }
 0x43d   : > { %v2937_v32 = vadd.f32 %v2933_v33, %v2901_v27  ;;  %v7143_v4 = vrot.slane %v7783_v7, %v6442_v13 }
 0x43e   : > { %v2938_v35 = vadd.f32 %v2934_v37, %v2902_v50  ;;  %v3009_v29 = vrot.slane %v2995_v5, %v6613_v46  ;;  %v3092_v36 = vcombine.low %v2935_v59, %v2936_v12  ;;  %v2996_v0 = vpack.c.bf16 %v2936_v12, %v2936_v12 }
 0x43f   : > { %v2997_v19 = vpack.c.bf16 %v2937_v32, %v2937_v32  ;;  %v3402_v12 = vrot.slane %v7210_v16, 1 }
 0x440   : > { %v3032_v25 = vshll.u32 %v3009_v29, 16  ;;  %v3093_v58 = vcombine.low %v2937_v32, %v2938_v35  ;;  %v3100_v39 = vrot.slane %v3092_v36, %v6442_v13  ;;  %v3016_v11 = vrot.slane %v2996_v0, %v6613_v46 }
 0x441   : > { %v3023_v8 = vrot.slane %v2997_v19, %v6613_v46 }
 0x442   : > { %v3048_v30 = vsel %vm6824_vm7, %v3032_v25, %v3047_v45  ;;  %v3107_v40 = vrot.slane %v3093_v58, %v6442_v13  ;;  %v3035_v57 = vshll.u32 %v3016_v11, 16 }
 0x443   : > { %3049 = vst [vmem:[%s6620_s16] sm:$0x1] %v3048_v30  ;;  %v3038_v52 = vshll.u32 %v3023_v8, 16  ;;  %v7793_v8 = vld [vmem:[#allocation90_spill] sm:$0xff] }
 0x444   : > { %v3108_v31 = vcombine.low %v3100_v39, %v3107_v40  ;;  %v3051_v6 = vsel %vm6824_vm7, %v3035_v57, %v3050_v51 }
 0x445   : > { %3052 = vst [vmem:[%s6620_s16 + $0x2] sm:$0x1] %v3051_v6  ;;  %v3054_v26 = vsel %vm6824_vm7, %v3038_v52, %v3053_v24 }
 0x446   : > { %v7137_v38 = vrot.slane %v3108_v31, %v6442_v13  ;;  %3055 = vst [vmem:[%s6620_s16 + $0x4] sm:$0x1] %v3054_v26 }
 0x448   : > { %3181 = vmatprep.mubr.f32.mxu1 %v7137_v38  ;;  %3252 = vmatprep.mubr.f32.mxu0 %v7137_v38 }
 0x449   : > { %3182 = vmatmul.mubr.f32.vlgmr.msra.gmra.mrb[8].mxu1 %v7143_v4  ;;  %3253 = vmatmul.mubr.f32.vlgmr.msra.gmra.mrb[10].mxu0 %v7143_v4 }
 0x44a   : > { %4924 = vmatpush1.bf16.msra.mxu1 %v6062_v41  ;;  %3323 = vmatprep.mubr.f32.mxu1 %v7137_v38  ;;  %v2998_v41 = vpack.c.bf16 %v2938_v35, %v2938_v35 }
 0x44b   : > { %4926 = vmatprep.subr.bf16.mxu1 %v7622_v55 }
 0x44c   : > { %v3030_v55 = vrot.slane %v2998_v41, %v6613_v46  ;;  %v7794_v41 = vld [vmem:[#allocation89_spill] sm:$0xff] }
 0x44e   : > { %4928 = vmatpush1.bf16.msra.mxu1 %v6099_v62  ;;  %v3041_v62 = vshll.u32 %v3030_v55, 16 }
 0x44f   : > { %4930 = vmatprep.subr.bf16.mxu1 %v7623_v1  ;;  %v3056_v1 = vld [vmem:[%s6620_s16 + $0x6] sm:$0x1] }
 0x452   : > { %4932 = vmatpush1.bf16.msra.mxu1 %v7624_v20  ;;  %v3057_v20 = vsel %vm6824_vm7, %v3041_v62, %v3056_v1 }
 0x453   : > { %4934 = vmatprep.subr.bf16.mxu1 %v7625_v43  ;;  %3058 = vst [vmem:[%s6620_s16 + $0x6] sm:$0x1] %v3057_v20  ;;  %v7784_v43 = vld [vmem:[#allocation80_spill] sm:$0xff] }
 0x456   : > { %4936 = vmatpush1.bf16.msra.mxu1 %v7626_v44  ;;  %v7785_v44 = vld [vmem:[#allocation81_spill] sm:$0xff] }
 0x457   : > { %4938 = vmatprep.subr.bf16.mxu1 %v7627_v56  ;;  %v7786_v56 = vld [vmem:[#allocation82_spill] sm:$0xff] }
 0x45a   : > { %4940 = vmatpush1.bf16.msra.mxu1 %v7628_v61  ;;  %v7787_v61 = vld [vmem:[#allocation83_spill] sm:$0xff] }
 0x45b   : > { %4942 = vmatprep.subr.bf16.mxu1 %v7629_v18  ;;  %v7788_v18 = vld [vmem:[#allocation84_spill] sm:$0xff] }
 0x45e   : > { %4944 = vmatpush1.bf16.msra.mxu1 %v7630_v2  ;;  %v7789_v2 = vld [vmem:[#allocation85_spill] sm:$0xff] }
 0x45f   : > { %4946 = vmatprep.subr.bf16.mxu1 %v7631_v9  ;;  %v7790_v9 = vld [vmem:[#allocation86_spill] sm:$0xff] }
 0x462   : > { %4948 = vmatpush1.bf16.msra.mxu1 %v7632_v42 }
 0x463   : > { %4950 = vmatprep.subr.bf16.mxu1 %v7707_v48  ;;  %v7791_v48 = vld [vmem:[#allocation87_spill] sm:$0xff] }
 0x466   : > { %4952 = vmatpush1.bf16.msra.mxu1 %v7710_v3 }
 0x467   : > { %4954 = vmatprep.subr.bf16.mxu1 %v7711_v34 }
 0x46a   : > { %4956 = vmatpush1.bf16.msra.mxu1 %v7714_v10 }
 0x46b   : > { %4958 = vmatprep.subr.bf16.mxu1 %v7715_v14  ;;  %v7792_v14 = vld [vmem:[#allocation88_spill] sm:$0xff] }
 0x46e   : > { %4960 = vmatpush1.bf16.msra.mxu1 %v7718_v28 }
 0x46f   : > { %4962 = vmatprep.subr.bf16.mxu1 %v7719_v22  ;;  %v7199_v22 = vld [vmem:[%s6446_s18 + $0x3] ss:$4 sm:$0x7] }
 0x470   : > { %v3399_v60 = vrot.slane %v7199_v22, 1 }
 0x472   : > { %4964 = vmatpush1.bf16.msra.mxu1 %v7722_v17  ;;  %v7202_v17 = vld [vmem:[%s6446_s18 + $0xf] ss:$4 sm:$0x7] }
 0x473   : > { %4966 = vmatprep.subr.bf16.mxu1 %v7723_v15  ;;  %v3400_v53 = vrot.slane %v7202_v17, 1 }
 0x476   : > { %4968 = vmatpush1.bf16.msra.mxu1 %v7726_v54 }
 0x477   : > { %4970 = vmatprep.subr.bf16.mxu1 %v7727_v49  ;;  %v7207_v49 = vld [vmem:[%s6446_s18 + $0x1b] ss:$4 sm:$0x7] }
 0x478   : > { %v3401_v50 = vrot.slane %v7207_v49, 1 }
 0x47a   : > { %4972 = vmatpush1.bf16.msra.mxu1 %v7784_v43 }
 0x47b   : > { %4974 = vmatprep.subr.bf16.mxu1 %v7785_v44 }
 0x47e   : > { %4976 = vmatpush1.bf16.msra.mxu1 %v7786_v56 }
 0x47f   : > { %4978 = vmatprep.subr.bf16.mxu1 %v7787_v61 }
 0x482   : > { %4980 = vmatpush1.bf16.msra.mxu1 %v7788_v18 }
 0x483   : > { %4982 = vmatprep.subr.bf16.mxu1 %v7789_v2 }
 0x486   : > { %4984 = vmatpush1.bf16.msra.mxu1 %v7790_v9 }
 0x489   : > { %3324 = vmatmul.mubr.f32.vlgmr.msra.gmra.mrb[10].mxu1 %v7143_v4 }
 0x51c   : > { %v3183_v42 = vpop.f32.mrb[8].mxu1  ;;  %v3254_v21 = vpop.f32.mrb[10].mxu0 }
 0x51d   : > { %v3184_v3 = vadd.f32 %v3183_v42, %v7791_v48  ;;  %v3185_v34 = vpop.f32.mrb[9].mxu1  ;;  %v3256_v10 = vpop.f32.mrb[11].mxu0  ;;  %v3255_v52 = vadd.f32 %v3254_v21, %v7793_v8 }
 0x51e   : > { %v3186_v28 = vadd.f32 %v3185_v34, %v7792_v14  ;;  %v3257_v24 = vadd.f32 %v3256_v10, %v7794_v41 }
 0x51f   : > { %v3345_v15 = vrot.slane %v3184_v3, %v6442_v13  ;;  %v3471_v43 = vrot.slane %v3255_v52, %v6442_v13 }
 0x520   : > { %v3414_v54 = vrot.slane %v3186_v28, %v6442_v13  ;;  %v3571_v44 = vrot.slane %v3257_v24, %v6442_v13 }
 0x521   : > { %v3346_v23 = vcombine.high %v3345_v15, %v3345_v15  ;;  %v3353_v33 = vrot.slane %v3345_v15, %v6442_v13  ;;  %v3472_v9 = vcombine.high %v3471_v43, %v3471_v43  ;;  %v3479_v10 = vrot.slane %v3471_v43, %v6442_v13 }
 0x522   : > { %v3415_v47 = vcombine.high %v3414_v54, %v3414_v54  ;;  %v3422_v37 = vrot.slane %v3414_v54, %v6442_v13  ;;  %v3572_v42 = vcombine.high %v3571_v44, %v3571_v44  ;;  %v3579_v3 = vrot.slane %v3571_v44, %v6442_v13 }
 0x523   : > { %v3360_v59 = vrot.slane %v3346_v23, %v6442_v13  ;;  %v3361_v63 = vcombine.high %v3353_v33, %v3353_v33  ;;  %v3367_v27 = vadd.f32 %v7199_v22, %v3353_v33  ;;  %v3486_v28 = vrot.slane %v3472_v9, %v6442_v13 }
 0x524   : > { %v3429_v5 = vrot.slane %v3415_v47, %v6442_v13  ;;  %v3430_v32 = vcombine.high %v3422_v37, %v3422_v37  ;;  %v3436_v58 = vadd.f32 %v3422_v37, %v3399_v60  ;;  %v3586_v54 = vrot.slane %v3572_v42, %v6442_v13  ;;  %v7234_v60 = vld [vmem:[%s6489_s9] ss:$4 sm:$0x7] }
 0x525   : > { %v3362_v35 = vcombine.high %v3360_v59, %v3360_v59  ;;  %v3368_v29 = vadd.f32 %v7202_v17, %v3360_v59  ;;  %v3369_v36 = vadd.f32 %v7207_v49, %v3361_v63  ;;  %v4196_v45 = vmul.f32 -1.442695, %v3367_v27  ;;  %v7239_v63 = vld [vmem:[%s6489_s9 + $0xc] ss:$4 sm:$0x7] }
 0x526   : > { %v3431_v25 = vcombine.high %v3429_v5, %v3429_v5  ;;  %v3437_v0 = vadd.f32 %v3429_v5, %v3400_v53  ;;  %v3438_v31 = vadd.f32 %v3430_v32, %v3401_v50  ;;  %v4200_v57 = vmul.f32 -1.442695, %v3436_v58  ;;  %v7243_v32 = vld [vmem:[%s6489_s9 + $0x18] ss:$4 sm:$0x7] }
 0x527   : > { %v3370_v30 = vadd.f32 %v7210_v16, %v3362_v35  ;;  %5272 = vpow2.f32 %v4196_v45  ;;  %v4197_v39 = vmul.f32 -1.442695, %v3368_v29  ;;  %v4198_v40 = vmul.f32 -1.442695, %v3369_v36 }
 0x528   : > { %v3439_v7 = vadd.f32 %v3431_v25, %v3402_v12  ;;  %v4201_v19 = vmul.f32 -1.442695, %v3437_v0  ;;  %v4202_v51 = vmul.f32 -1.442695, %v3438_v31  ;;  %v3497_v23 = vrot.slane %v7199_v22, 2 }
 0x529   : > { %5274 = vpow2.f32 %v4197_v39  ;;  %v4199_v11 = vmul.f32 -1.442695, %v3370_v30  ;;  %v3498_v47 = vrot.slane %v7202_v17, 2  ;;  %v3499_v37 = vrot.slane %v7207_v49, 2 }
 0x52a   : > { %5276 = vpow2.f32 %v4198_v40  ;;  %v4203_v6 = vmul.f32 -1.442695, %v3439_v7  ;;  %v3587_v27 = vcombine.high %v3579_v3, %v3579_v3  ;;  %v3487_v50 = vcombine.high %v3479_v10, %v3479_v10  ;;  %v7247_v25 = vld [vmem:[%s6489_s9 + $0x24] ss:$4 sm:$0x7] }
 0x52b   : > { %5278 = vpow2.f32 %v4199_v11  ;;  %v3500_v5 = vrot.slane %v7210_v16, 2  ;;  %v3488_v35 = vcombine.high %v3486_v28, %v3486_v28  ;;  %v3588_v29 = vcombine.high %v3586_v54, %v3586_v54 }
 0x52c   : > { %5280 = vpow2.f32 %v4200_v57  ;;  %v3593_v17 = vadd.f32 %v3579_v3, %v7234_v60  ;;  %v3594_v58 = vadd.f32 %v7239_v63, %v3586_v54  ;;  %v3595_v16 = vadd.f32 %v7243_v32, %v3587_v27 }
 0x52d   : > { %5282 = vpow2.f32 %v4201_v19  ;;  %v3527_v39 = vrot.slane %v7143_v4, %v6442_v13  ;;  %v3596_v7 = vadd.f32 %v7247_v25, %v3588_v29 }
 0x52e   : > { %5284 = vpow2.f32 %v4202_v51  ;;  %v4207_v57 = vmul.f32 -1.442695, %v3593_v17  ;;  %v4208_v51 = vmul.f32 -1.442695, %v3594_v58 }
 0x52f   : > { %5286 = vpow2.f32 %v4203_v6  ;;  %v4209_v6 = vmul.f32 -1.442695, %v3595_v16  ;;  %v3528_v8 = vcombine.high %v3527_v39, %v3527_v39  ;;  %v4210_v52 = vmul.f32 -1.442695, %v3596_v7 }
 0x531   : > { %v5273_v26 = vpop.eup %5272 }
 0x532   : > { %v3383_v55 = vadd.f32 1.0, %v5273_v26  ;;  %v3535_v26 = vrot.slane %v3527_v39, %v6442_v13 }
 0x533   : > { %v5275_v62 = vpop.eup %5274 }
 0x534   : > { %v5277_v1 = vpop.eup %5276  ;;  %v3384_v20 = vadd.f32 1.0, %v5275_v62  ;;  %5288 = vrcp.f32 %v3383_v55  ;;  %v3542_v55 = vrot.slane %v3528_v8, %v6442_v13  ;;  %v3626_v8 = vrot.slane %v7239_v63, 1 }
 0x535   : > { %v5279_v56 = vpop.eup %5278  ;;  %v3385_v61 = vadd.f32 1.0, %v5277_v1 }
 0x536   : > { %v3386_v18 = vadd.f32 1.0, %v5279_v56  ;;  %5290 = vrcp.f32 %v3384_v20  ;;  %v5281_v2 = vpop.eup %5280 }
 0x537   : > { %5292 = vrcp.f32 %v3385_v61  ;;  %v5283_v21 = vpop.eup %5282  ;;  %v3452_v14 = vadd.f32 1.0, %v5281_v2  ;;  %v3544_v2 = vcombine.high %v3542_v55, %v3542_v55 }
 0x538   : > { %5294 = vrcp.f32 %v3386_v18  ;;  %v5285_v48 = vpop.eup %5284  ;;  %v3453_v15 = vadd.f32 1.0, %v5283_v21  ;;  %v3543_v18 = vcombine.high %v3535_v26, %v3535_v26 }
 0x539   : > { %v5287_v34 = vpop.eup %5286  ;;  %v3454_v33 = vadd.f32 1.0, %v5285_v48  ;;  %5296 = vrcp.f32 %v3452_v14 }
 0x53a   : > { %v3455_v59 = vadd.f32 1.0, %v5287_v34  ;;  %5298 = vrcp.f32 %v3453_v15 }
 0x53b   : > { %5300 = vrcp.f32 %v3454_v33 }
 0x53c   : > { %5302 = vrcp.f32 %v3455_v59 }
 0x53e   : > { %v5289_v53 = vpop.eup %5288 }
 0x53f   : > { %v3493_v12 = vmul.f32 %v5289_v53, %v3479_v10 }
 0x540   : > { %v5291_v22 = vpop.eup %5290 }
 0x541   : > { %v5293_v36 = vpop.eup %5292  ;;  %v3494_v49 = vmul.f32 %v5291_v22, %v3486_v28  ;;  %v3505_v45 = vadd.f32 %v3497_v23, %v3493_v12 }
 0x542   : > { %v5295_v0 = vpop.eup %5294  ;;  %v3495_v30 = vmul.f32 %v5293_v36, %v3487_v50 }
 0x543   : > { %v3496_v40 = vmul.f32 %v5295_v0, %v3488_v35  ;;  %v3506_v31 = vadd.f32 %v3498_v47, %v3494_v49  ;;  %5304 = vtanh.f32 %v3505_v45  ;;  %v5297_v41 = vpop.eup %5296  ;;  %v3839_v45 = vld [vmem:[%s6539_s13] sm:$0x2] }
 0x544   : > { %v3507_v11 = vadd.f32 %v3499_v37, %v3495_v30  ;;  %v5299_v24 = vpop.eup %5298  ;;  %v3513_v1 = vsub.f32 1.0, %v5297_v41  ;;  %v3549_v56 = vmul.f32 %v5297_v41, %v3535_v26 }
 0x545   : > { %v3508_v19 = vadd.f32 %v3500_v5, %v3496_v40  ;;  %5306 = vtanh.f32 %v3506_v31  ;;  %v5301_v4 = vpop.eup %5300  ;;  %v3514_v43 = vsub.f32 1.0, %v5299_v24  ;;  %v3550_v3 = vmul.f32 %v5299_v24, %v3542_v55  ;;  %v7796_v40 = vld [vmem:[#allocation92_spill] sm:$0xff] }
 0x546   : > { %5308 = vtanh.f32 %v3507_v11  ;;  %v5303_v62 = vpop.eup %5302  ;;  %v3515_v9 = vsub.f32 1.0, %v5301_v4  ;;  %v3551_v28 = vmul.f32 %v5301_v4, %v3543_v18  ;;  %v3627_v24 = vrot.slane %v7243_v32, 1 }
 0x547   : > { %5310 = vtanh.f32 %v3508_v19  ;;  %v3516_v21 = vsub.f32 1.0, %v5303_v62  ;;  %v3552_v23 = vmul.f32 %v5303_v62, %v3544_v2  ;;  %v3842_v62 = vld [vmem:[%s6539_s13 + $0x2] sm:$0x2] }
 0x548   : > { %5312 = vpow2.f32 %v4207_v57  ;;  %v7797_v57 = vld [vmem:[#allocation93_spill] sm:$0xff] }
 0x549   : > { %5314 = vpow2.f32 %v4208_v51  ;;  %v3625_v51 = vrot.slane %v7234_v60, 1 }
 0x54a   : > { %5316 = vpow2.f32 %v4209_v6 }
 0x54b   : > { %5318 = vpow2.f32 %v4210_v52 }
 0x54d   : > { %v5305_v20 = vpop.eup %5304 }
 0x54e   : > { %v3517_v44 = vmul.f32 %v5305_v20, %v3513_v1  ;;  %v3628_v1 = vrot.slane %v7247_v25, 1 }
 0x54f   : > { %v5307_v61 = vpop.eup %5306 }
 0x550   : > { %v5309_v42 = vpop.eup %5308  ;;  %v3518_v48 = vmul.f32 %v5307_v61, %v3514_v43  ;;  %v3553_v34 = vadd.f32 %v3549_v56, %v3517_v44 }
 0x551   : > { %v5311_v10 = vpop.eup %5310  ;;  %v3519_v14 = vmul.f32 %v5309_v42, %v3515_v9 }
 0x552   : > { %v5313_v15 = vpop.eup %5312  ;;  %v3520_v54 = vmul.f32 %v5311_v10, %v3516_v21  ;;  %v3554_v33 = vadd.f32 %v3550_v3, %v3518_v48  ;;  %v3783_v53 = vpack.c.bf16 %v3553_v34, %v3553_v34 }
 0x553   : > { %v5315_v47 = vpop.eup %5314  ;;  %v3555_v37 = vadd.f32 %v3551_v28, %v3519_v14  ;;  %v3609_v5 = vadd.f32 1.0, %v5313_v15 }
 0x554   : > { %v5317_v59 = vpop.eup %5316  ;;  %v7256_v27 = vadd.f32 %v3552_v23, %v3520_v54  ;;  %v3797_v50 = vrot.slane %v3783_v53, %v6613_v46  ;;  %v3784_v12 = vpack.c.bf16 %v3554_v33, %v3554_v33  ;;  %v3610_v29 = vadd.f32 1.0, %v5315_v47 }
 0x555   : > { %v5319_v22 = vpop.eup %5318  ;;  %v3611_v17 = vadd.f32 1.0, %v5317_v59  ;;  %5320 = vrcp.f32 %v3609_v5  ;;  %v3785_v7 = vpack.c.bf16 %v3555_v37, %v3555_v37 }
 0x556   : > { %v3820_v35 = vshll.u32 %v3797_v50, 16  ;;  %v3804_v49 = vrot.slane %v3784_v12, %v6613_v46  ;;  %v3612_v58 = vadd.f32 1.0, %v5319_v22  ;;  %5322 = vrcp.f32 %v3610_v29 }
 0x557   : > { %5324 = vrcp.f32 %v3611_v17  ;;  %v3811_v55 = vrot.slane %v3785_v7, %v6613_v46  ;;  %v3786_v42 = vpack.c.bf16 %v7256_v27, %v7256_v27  ;;  %v3723_v29 = vrot.slane %v7234_v60, 2  ;;  %v3848_v7 = vld [vmem:[%s6539_s13 + $0x6] sm:$0x2] }
 0x558   : > { %v3822_v36 = vrot.slane %v3820_v35, 7  ;;  %v3824_v39 = vshll.u32 %v3804_v49, 16  ;;  %5326 = vrcp.f32 %v3612_v58  ;;  %v3845_v35 = vld [vmem:[%s6539_s13 + $0x4] sm:$0x2] }
 0x559   : > { %v3828_v54 = vshll.u32 %v3811_v55, 16  ;;  %v3818_v22 = vrot.slane %v3786_v42, %v6613_v46  ;;  %v3726_v46 = vrot.slane %v7247_v25, 2 }
 0x55a   : > { %v3840_v30 = vsel %vm6624_vm5, %v3822_v36, %v3839_v45  ;;  %v3826_v41 = vrot.slane %v3824_v39, 7  ;;  %v3724_v36 = vrot.slane %v7239_v63, 2 }
 0x55b   : > { %3841 = vst [vmem:[%s6539_s13] sm:$0x2] %v3840_v30  ;;  %v3830_v5 = vrot.slane %v3828_v54, 7  ;;  %v3832_v49 = vshll.u32 %v3818_v22, 16  ;;  %v3725_v30 = vrot.slane %v7243_v32, 2  ;;  %v3855_v54 = vld [vmem:[%s6620_s16] sm:$0x1] }
 0x55c   : > { %v3325_v16 = vpop.f32.mrb[10].mxu1  ;;  %v3843_v56 = vsel %vm6624_vm5, %v3826_v41, %v3842_v62  ;;  %v3864_v22 = vld [vmem:[%s6620_s16 + $0x6] sm:$0x1] }
 0x55d   : > { %v3326_v31 = vadd.f32 %v3325_v16, %v7796_v40  ;;  %v3327_v11 = vpop.f32.mrb[11].mxu1  ;;  %3844 = vst [vmem:[%s6539_s13 + $0x2] sm:$0x2] %v3843_v56  ;;  %v3846_v17 = vsel %vm6624_vm5, %v3830_v5, %v3845_v35 }
 0x55e   : > { %v3328_v19 = vadd.f32 %v3327_v11, %v7797_v57  ;;  %3847 = vst [vmem:[%s6539_s13 + $0x4] sm:$0x2] %v3846_v17  ;;  %v3753_v11 = vrot.slane %v7137_v38, %v6442_v13 }
 0x55f   : > { %v3640_v6 = vrot.slane %v3326_v31, %v6442_v13  ;;  %v5321_v44 = vpop.eup %5320  ;;  %v3834_v31 = vrot.slane %v3832_v49, 7 }
 0x560   : > { %v3697_v52 = vrot.slane %v3328_v19, %v6442_v13  ;;  %v5323_v9 = vpop.eup %5322  ;;  %v3761_v38 = vrot.slane %v3753_v11, %v6442_v13 }
 0x561   : > { %v3641_v4 = vcombine.high %v3640_v6, %v3640_v6  ;;  %v3648_v26 = vrot.slane %v3640_v6, %v6442_v13  ;;  %v5325_v34 = vpop.eup %5324  ;;  %v3849_v19 = vsel %vm6624_vm5, %v3834_v31, %v3848_v7 }
 0x562   : > { %v3698_v20 = vcombine.high %v3697_v52, %v3697_v52  ;;  %v3705_v43 = vrot.slane %v3697_v52, %v6442_v13  ;;  %v5327_v47 = vpop.eup %5326  ;;  %3850 = vst [vmem:[%s6539_s13 + $0x6] sm:$0x2] %v3849_v19  ;;  %v3769_v62 = vcombine.high %v3761_v38, %v3761_v38 }
 0x563   : > { %v3655_v61 = vrot.slane %v3641_v4, %v6442_v13  ;;  %v3656_v18 = vcombine.high %v3648_v26, %v3648_v26  ;;  %v3662_v2 = vadd.f32 %v3648_v26, %v3625_v51 }
 0x564   : > { %v3712_v21 = vrot.slane %v3698_v20, %v6442_v13  ;;  %v3713_v48 = vcombine.high %v3705_v43, %v3705_v43  ;;  %v3719_v3 = vmul.f32 %v5321_v44, %v3705_v43 }
 0x565   : > { %v3657_v10 = vcombine.high %v3655_v61, %v3655_v61  ;;  %v3663_v14 = vadd.f32 %v3655_v61, %v3626_v8  ;;  %v3664_v28 = vadd.f32 %v3656_v18, %v3627_v24  ;;  %v4211_v15 = vmul.f32 -1.442695, %v3662_v2 }
 0x566   : > { %v3714_v23 = vcombine.high %v3712_v21, %v3712_v21  ;;  %v3720_v33 = vmul.f32 %v5323_v9, %v3712_v21  ;;  %v3721_v53 = vmul.f32 %v5325_v34, %v3713_v48  ;;  %v3731_v45 = vadd.f32 %v3723_v29, %v3719_v3 }
 0x567   : > { %v3665_v37 = vadd.f32 %v3657_v10, %v3628_v1  ;;  %5328 = vpow2.f32 %v4211_v15  ;;  %v4212_v59 = vmul.f32 -1.442695, %v3663_v14  ;;  %v4213_v27 = vmul.f32 -1.442695, %v3664_v28 }
 0x568   : > { %v3722_v50 = vmul.f32 %v5327_v47, %v3714_v23  ;;  %v3732_v16 = vadd.f32 %v3724_v36, %v3720_v33  ;;  %v3733_v51 = vadd.f32 %v3725_v30, %v3721_v53  ;;  %v3754_v8 = vcombine.high %v3753_v11, %v3753_v11 }
 0x569   : > { %5330 = vpow2.f32 %v4212_v59  ;;  %v4214_v12 = vmul.f32 -1.442695, %v3665_v37  ;;  %v3858_v37 = vld [vmem:[%s6620_s16 + $0x2] sm:$0x1] }
 0x56a   : > { %5332 = vpow2.f32 %v4213_v27  ;;  %v3734_v25 = vadd.f32 %v3726_v46, %v3722_v50  ;;  %v3768_v41 = vrot.slane %v3754_v8, %v6442_v13  ;;  %v3861_v50 = vld [vmem:[%s6620_s16 + $0x4] sm:$0x1] }
 0x56b   : > { %5334 = vpow2.f32 %v4214_v12 }
 0x56c   : > { %5336 = vtanh.f32 %v3731_v45  ;;  %v3770_v20 = vcombine.high %v3768_v41, %v3768_v41 }
 0x571   : > { %v5329_v58 = vpop.eup %5328 }
 0x572   : > { %v3678_v39 = vadd.f32 1.0, %v5329_v58 }
 0x573   : > { %v5331_v40 = vpop.eup %5330 }
 0x574   : > { %v5333_v60 = vpop.eup %5332  ;;  %v3679_v57 = vadd.f32 1.0, %v5331_v40  ;;  %5338 = vrcp.f32 %v3678_v39 }
 0x575   : > { %v5335_v63 = vpop.eup %5334  ;;  %v3680_v32 = vadd.f32 1.0, %v5333_v60  ;;  %5340 = vtanh.f32 %v3732_v16 }
 0x576   : > { %v3681_v6 = vadd.f32 1.0, %v5335_v63  ;;  %5342 = vrcp.f32 %v3679_v57  ;;  %v5337_v52 = vpop.eup %5336 }
 0x577   : > { %5344 = vrcp.f32 %v3680_v32 }
 0x578   : > { %5346 = vrcp.f32 %v3681_v6 }
 0x579   : > { %5348 = vtanh.f32 %v3733_v51 }
 0x57a   : > { %5350 = vtanh.f32 %v3734_v25 }
 0x57e   : > { %v5339_v24 = vpop.eup %5338 }
 0x57f   : > { %v5341_v0 = vpop.eup %5340  ;;  %v3739_v4 = vsub.f32 1.0, %v5339_v24  ;;  %v3775_v26 = vmul.f32 %v5339_v24, %v3761_v38 }
 0x580   : > { %v5343_v55 = vpop.eup %5342 }
 0x581   : > { %v5345_v1 = vpop.eup %5344  ;;  %v3740_v43 = vsub.f32 1.0, %v5343_v55  ;;  %v3776_v44 = vmul.f32 %v5343_v55, %v3768_v41  ;;  %v3743_v56 = vmul.f32 %v5337_v52, %v3739_v4 }
 0x582   : > { %v5347_v61 = vpop.eup %5346  ;;  %v3741_v18 = vsub.f32 1.0, %v5345_v1  ;;  %v3777_v2 = vmul.f32 %v5345_v1, %v3769_v62 }
 0x583   : > { %v5349_v9 = vpop.eup %5348  ;;  %v3742_v42 = vsub.f32 1.0, %v5347_v61  ;;  %v3778_v13 = vmul.f32 %v5347_v61, %v3770_v20  ;;  %v3744_v21 = vmul.f32 %v5341_v0, %v3740_v43  ;;  %v3779_v48 = vadd.f32 %v3775_v26, %v3743_v56 }
 0x584   : > { %v5351_v3 = vpop.eup %5350  ;;  %v3745_v34 = vmul.f32 %v5349_v9, %v3741_v18 }
 0x585   : > { %v3746_v10 = vmul.f32 %v5351_v3, %v3742_v42  ;;  %v3780_v14 = vadd.f32 %v3776_v44, %v3744_v21  ;;  %v3851_v28 = vpack.c.bf16 %v3779_v48, %v3779_v48 }
 0x586   : > { %v3781_v15 = vadd.f32 %v3777_v2, %v3745_v34 }
 0x587   : > { %v3782_v23 = vadd.f32 %v3778_v13, %v3746_v10  ;;  %v3856_v53 = vsel %vm6545_vm2, %v3851_v28, %v3855_v54  ;;  %v3852_v47 = vpack.c.bf16 %v3780_v14, %v3780_v14 }
 0x588   : > { %3857 = vst [vmem:[%s6620_s16] sm:$0x1] %v3856_v53  ;;  %v3853_v27 = vpack.c.bf16 %v3781_v15, %v3781_v15 }
 0x589   : > { %v3859_v59 = vsel %vm6545_vm2, %v3852_v47, %v3858_v37  ;;  %v3854_v5 = vpack.c.bf16 %v3782_v23, %v3782_v23 }
 0x58a   : > { %3860 = vst [vmem:[%s6620_s16 + $0x2] sm:$0x1] %v3859_v59  ;;  %v3862_v12 = vsel %vm6545_vm2, %v3853_v27, %v3861_v50 }
 0x58b   : > { %3863 = vst [vmem:[%s6620_s16 + $0x4] sm:$0x1] %v3862_v12  ;;  %v3865_v35 = vsel %vm6545_vm2, %v3854_v5, %v3864_v22 }
 0x58c   : > { %3866 = vst [vmem:[%s6620_s16 + $0x6] sm:$0x1] %v3865_v35 }
 0x58d PF: > { %s16_s22 = sadd.s32 1, %s5390_s22   ;;  %s7799_s18 = smov %s5378_s19 }
 0x58e   : > { %p13_p10 = scmp.ge.s32.totalorder %s16_s22, 4   ;;  %s7800_s19 = smov %s5464_s27 }
 0x58f   : > { %s7801_s20 = smov %s5386_s21  ;;  %s7802_s21 = smov %s7804_s23 }
 0x590   :  { %15 = sbr.rel (!%p13_p10) target bundleno = 3 (0x3), region = 189 }

// kernel: ctpn_forward.7
= control target key start
LH: loop header
LB: loop body
LE: loop exit
PB: predicated region body
PF: predicated region fallthrough
CT: control target
= control target key end

     0   :  { %v1424_v1 = vmov 0   ;;  %s1821_s3 = inlined_call_operand.vmem [shape: bf16[128,512], index: 3, kind: input, shape index: {}]   ;;  %s1822_s2 = inlined_call_operand.vmem [shape: bf16[128,512], index: 2, kind: input, shape index: {}]   ;;  %s1823_s1 = inlined_call_operand.vmem [shape: bf16[32,128], index: 1, kind: input, shape index: {}]   ;;  %s1824_s0 = inlined_call_operand.vmem [shape: bf16[32,128], index: 0, kind: input, shape index: {}]   ;;  %s1825_s5 = inlined_call_operand.vmem [shape: bf16[512,128], index: 5, kind: input, shape index: {}]   ;;  %s1826_s4 = inlined_call_operand.vmem [shape: f32[1,512], index: 4, kind: input, shape index: {}]   ;;  %s1827_s6 = inlined_call_operand.vmem [shape: f32[1,128], index: 6, kind: input, shape index: {}]   ;;  %s1828_s7 = inlined_call_operand.vmem [shape: f32[32,128], index: 7, kind: output, shape index: {}]  }
   0x1   :  { %v1292_v0 = vld [vmem:[%s1821_s3 + $0x4] ss:$16 sps:$4 sm:$0xff]   ;;  %303 = vmatprep.mubr.bf16.mxu0 %v1424_v1  ;;  %356 = vmatprep.mubr.bf16.mxu1 %v1424_v1  ;;  %v1294_v2 = vld [vmem:[%s1821_s3 + $0xc] ss:$16 sps:$4 sm:$0xff]   ;;  %v1296_v3 = vld [vmem:[%s1821_s3] ss:$16 sps:$4 sm:$0xff]  }
   0x2   :  { %271 = vmatprep.subr.bf16.mxu0 %v1292_v0  ;;  %v1297_v4 = vld [vmem:[%s1821_s3 + $0x8] ss:$16 sps:$4 sm:$0xff]   ;;  %324 = vmatprep.subr.bf16.mxu1 %v1294_v2  ;;  %v1298_v5 = vld [vmem:[%s1821_s3 + $0x24] ss:$16 sps:$4 sm:$0xff]   ;;  %v1300_v6 = vld [vmem:[%s1821_s3 + $0x2c] ss:$16 sps:$4 sm:$0xff]  }
   0x3   :  { %272 = vmatpush1.bf16.msra.mxu0 %v1296_v3  ;;  %325 = vmatpush1.bf16.msra.mxu1 %v1297_v4  ;;  %v1302_v7 = vld [vmem:[%s1821_s3 + $0x20] ss:$16 sps:$4 sm:$0xff]   ;;  %v1303_v8 = vld [vmem:[%s1821_s3 + $0x28] ss:$16 sps:$4 sm:$0xff]   ;;  %v1304_v9 = vld [vmem:[%s1821_s3 + $0x44] ss:$16 sps:$4 sm:$0xff]  }
   0x4   :  { %273 = vmatprep.subr.bf16.mxu0 %v1298_v5  ;;  %326 = vmatprep.subr.bf16.mxu1 %v1300_v6  ;;  %v1306_v10 = vld [vmem:[%s1821_s3 + $0x4c] ss:$16 sps:$4 sm:$0xff]   ;;  %v1308_v11 = vld [vmem:[%s1821_s3 + $0x40] ss:$16 sps:$4 sm:$0xff]   ;;  %v1309_v12 = vld [vmem:[%s1821_s3 + $0x48] ss:$16 sps:$4 sm:$0xff]  }
   0x5   :  { %v1310_v13 = vld [vmem:[%s1821_s3 + $0x64] ss:$16 sps:$4 sm:$0xff]   ;;  %v1312_v14 = vld [vmem:[%s1821_s3 + $0x6c] ss:$16 sps:$4 sm:$0xff]   ;;  %v1314_v15 = vld [vmem:[%s1821_s3 + $0x60] ss:$16 sps:$4 sm:$0xff]  }
   0x6   :  { %v1315_v16 = vld [vmem:[%s1821_s3 + $0x68] ss:$16 sps:$4 sm:$0xff]   ;;  %v1316_v17 = vld [vmem:[%s1821_s3 + $0x84] ss:$16 sps:$4 sm:$0xff]   ;;  %v1318_v18 = vld [vmem:[%s1821_s3 + $0x8c] ss:$16 sps:$4 sm:$0xff]  }
   0x7   :  { %274 = vmatpush1.bf16.msra.mxu0 %v1302_v7  ;;  %327 = vmatpush1.bf16.msra.mxu1 %v1303_v8  ;;  %v1320_v19 = vld [vmem:[%s1821_s3 + $0x80] ss:$16 sps:$4 sm:$0xff]   ;;  %v1321_v20 = vld [vmem:[%s1821_s3 + $0x88] ss:$16 sps:$4 sm:$0xff]   ;;  %v1322_v21 = vld [vmem:[%s1821_s3 + $0xa4] ss:$16 sps:$4 sm:$0xff]  }
   0x8   :  { %275 = vmatprep.subr.bf16.mxu0 %v1304_v9  ;;  %328 = vmatprep.subr.bf16.mxu1 %v1306_v10  ;;  %v1324_v22 = vld [vmem:[%s1821_s3 + $0xac] ss:$16 sps:$4 sm:$0xff]   ;;  %v1326_v23 = vld [vmem:[%s1821_s3 + $0xa0] ss:$16 sps:$4 sm:$0xff]   ;;  %v1327_v24 = vld [vmem:[%s1821_s3 + $0xa8] ss:$16 sps:$4 sm:$0xff]  }
   0x9   :  { %v1328_v25 = vld [vmem:[%s1821_s3 + $0xc4] ss:$16 sps:$4 sm:$0xff]   ;;  %v1330_v26 = vld [vmem:[%s1821_s3 + $0xcc] ss:$16 sps:$4 sm:$0xff]   ;;  %v1332_v27 = vld [vmem:[%s1821_s3 + $0xc0] ss:$16 sps:$4 sm:$0xff]  }
   0xa   :  { %v1333_v28 = vld [vmem:[%s1821_s3 + $0xc8] ss:$16 sps:$4 sm:$0xff]   ;;  %v1334_v29 = vld [vmem:[%s1821_s3 + $0xe4] ss:$16 sps:$4 sm:$0xff]   ;;  %v1336_v30 = vld [vmem:[%s1821_s3 + $0xec] ss:$16 sps:$4 sm:$0xff]  }
   0xb   :  { %276 = vmatpush1.bf16.msra.mxu0 %v1308_v11  ;;  %329 = vmatpush1.bf16.msra.mxu1 %v1309_v12  ;;  %v1338_v31 = vld [vmem:[%s1821_s3 + $0xe0] ss:$16 sps:$4 sm:$0xff]   ;;  %v1339_v32 = vld [vmem:[%s1821_s3 + $0xe8] ss:$16 sps:$4 sm:$0xff]   ;;  %v1342_v33 = vld [vmem:[%s1822_s2 + $0x4] ss:$16 sps:$4 sm:$0xff]  }
   0xc   :  { %277 = vmatprep.subr.bf16.mxu0 %v1310_v13  ;;  %330 = vmatprep.subr.bf16.mxu1 %v1312_v14  ;;  %v1345_v34 = vld [vmem:[%s1822_s2 + $0xc] ss:$16 sps:$4 sm:$0xff]   ;;  %v1340_v35 = vld [vmem:[%s1822_s2] ss:$16 sps:$4 sm:$0xff]   ;;  %v1343_v37 = vld [vmem:[%s1822_s2 + $0x8] ss:$16 sps:$4 sm:$0xff]  }
   0xd   :  { %v1346_v36 = vld [vmem:[%s1823_s1] sm:$0xff]   ;;  %v1352_v39 = vld [vmem:[%s1822_s2 + $0x2c] ss:$16 sps:$4 sm:$0xff]   ;;  %v1350_v41 = vld [vmem:[%s1822_s2 + $0x28] ss:$16 sps:$4 sm:$0xff]  }
   0xe   :  { %v1349_v38 = vld [vmem:[%s1822_s2 + $0x24] ss:$16 sps:$4 sm:$0xff]   ;;  %v1347_v40 = vld [vmem:[%s1822_s2 + $0x20] ss:$16 sps:$4 sm:$0xff]   ;;  %v1358_v43 = vld [vmem:[%s1822_s2 + $0x4c] ss:$16 sps:$4 sm:$0xff]  }
   0xf   :  { %278 = vmatpush1.bf16.msra.mxu0 %v1314_v15  ;;  %331 = vmatpush1.bf16.msra.mxu1 %v1315_v16  ;;  %v1355_v42 = vld [vmem:[%s1822_s2 + $0x44] ss:$16 sps:$4 sm:$0xff]   ;;  %v1377_v44 = vld [vmem:[%s1823_s1 + $0x8] sm:$0xff]   ;;  %v1353_v45 = vld [vmem:[%s1822_s2 + $0x40] ss:$16 sps:$4 sm:$0xff]  }
  0x10   :  { %279 = vmatprep.subr.bf16.mxu0 %v1316_v17  ;;  %332 = vmatprep.subr.bf16.mxu1 %v1318_v18  ;;  %v1356_v46 = vld [vmem:[%s1822_s2 + $0x48] ss:$16 sps:$4 sm:$0xff]   ;;  %v1361_v47 = vld [vmem:[%s1822_s2 + $0x64] ss:$16 sps:$4 sm:$0xff]   ;;  %v1364_v48 = vld [vmem:[%s1822_s2 + $0x6c] ss:$16 sps:$4 sm:$0xff]  }
  0x11   :  { %v1359_v49 = vld [vmem:[%s1822_s2 + $0x60] ss:$16 sps:$4 sm:$0xff]   ;;  %v1362_v50 = vld [vmem:[%s1822_s2 + $0x68] ss:$16 sps:$4 sm:$0xff]   ;;  %v1367_v51 = vld [vmem:[%s1822_s2 + $0x84] ss:$16 sps:$4 sm:$0xff]  }
  0x12   :  { %v1370_v52 = vld [vmem:[%s1822_s2 + $0x8c] ss:$16 sps:$4 sm:$0xff]   ;;  %v1365_v53 = vld [vmem:[%s1822_s2 + $0x80] ss:$16 sps:$4 sm:$0xff]   ;;  %v1368_v54 = vld [vmem:[%s1822_s2 + $0x88] ss:$16 sps:$4 sm:$0xff]  }
  0x13   :  { %280 = vmatpush1.bf16.msra.mxu0 %v1320_v19  ;;  %333 = vmatpush1.bf16.msra.mxu1 %v1321_v20  ;;  %v1373_v55 = vld [vmem:[%s1822_s2 + $0xa4] ss:$16 sps:$4 sm:$0xff]   ;;  %v1376_v56 = vld [vmem:[%s1822_s2 + $0xac] ss:$16 sps:$4 sm:$0xff]   ;;  %v1371_v57 = vld [vmem:[%s1822_s2 + $0xa0] ss:$16 sps:$4 sm:$0xff]  }
  0x14   :  { %281 = vmatprep.subr.bf16.mxu0 %v1322_v21  ;;  %334 = vmatprep.subr.bf16.mxu1 %v1324_v22  ;;  %v1374_v58 = vld [vmem:[%s1822_s2 + $0xa8] ss:$16 sps:$4 sm:$0xff]   ;;  %v1380_v59 = vld [vmem:[%s1822_s2 + $0xc4] ss:$16 sps:$4 sm:$0xff]   ;;  %v1383_v60 = vld [vmem:[%s1822_s2 + $0xcc] ss:$16 sps:$4 sm:$0xff]  }
  0x15   :  { %v1378_v61 = vld [vmem:[%s1822_s2 + $0xc0] ss:$16 sps:$4 sm:$0xff]   ;;  %v1381_v62 = vld [vmem:[%s1822_s2 + $0xc8] ss:$16 sps:$4 sm:$0xff]   ;;  %v1386_v63 = vld [vmem:[%s1822_s2 + $0xe4] ss:$16 sps:$4 sm:$0xff]  }
  0x16   :  { %v1389_v0 = vld [vmem:[%s1822_s2 + $0xec] ss:$16 sps:$4 sm:$0xff]   ;;  %v1384_v2 = vld [vmem:[%s1822_s2 + $0xe0] ss:$16 sps:$4 sm:$0xff]   ;;  %v1387_v3 = vld [vmem:[%s1822_s2 + $0xe8] ss:$16 sps:$4 sm:$0xff]  }
  0x17   :  { %282 = vmatpush1.bf16.msra.mxu0 %v1326_v23  ;;  %335 = vmatpush1.bf16.msra.mxu1 %v1327_v24  ;;  %v1392_v4 = vld [vmem:[%s1825_s5 + $0x40] sm:$0xff]   ;;  %v1396_v9 = vld [vmem:[%s1825_s5 + $0x48] sm:$0xff]   ;;  %v1400_v13 = vld [vmem:[%s1825_s5 + $0x50] sm:$0xff]  }
  0x18   :  { %283 = vmatprep.subr.bf16.mxu0 %v1328_v25  ;;  %336 = vmatprep.subr.bf16.mxu1 %v1330_v26  ;;  %v1393_v5 = vld [vmem:[%s1825_s5 + $0xc0] sm:$0xff]   ;;  %v1397_v10 = vld [vmem:[%s1825_s5 + $0xc8] sm:$0xff]   ;;  %v1401_v14 = vld [vmem:[%s1825_s5 + $0xd0] sm:$0xff]  }
  0x19   :  { %v1390_v6 = vld [vmem:[%s1824_s0] sm:$0xff]   ;;  %v1398_v11 = vld [vmem:[%s1825_s5 + $0x8] sm:$0xff]   ;;  %v1403_v16 = vld [vmem:[%s1825_s5 + $0x90] sm:$0xff]  }
  0x1a   :  { %v1394_v7 = vld [vmem:[%s1825_s5] sm:$0xff]   ;;  %v1399_v12 = vld [vmem:[%s1825_s5 + $0x88] sm:$0xff]   ;;  %v1404_v17 = vld [vmem:[%s1825_s5 + $0x58] sm:$0xff]  }
  0x1b   :  { %284 = vmatpush1.bf16.msra.mxu0 %v1332_v27  ;;  %337 = vmatpush1.bf16.msra.mxu1 %v1333_v28  ;;  %v1395_v8 = vld [vmem:[%s1825_s5 + $0x80] sm:$0xff]   ;;  %v1391_v15 = vld [vmem:[%s1824_s0 + $0x8] sm:$0xff]   ;;  %v1405_v18 = vld [vmem:[%s1825_s5 + $0xd8] sm:$0xff]  }
  0x1c   :  { %285 = vmatprep.subr.bf16.mxu0 %v1334_v29  ;;  %338 = vmatprep.subr.bf16.mxu1 %v1336_v30  ;;  %v1406_v19 = vld [vmem:[%s1825_s5 + $0x18] sm:$0xff]   ;;  %v1408_v21 = vld [vmem:[%s1825_s5 + $0x60] sm:$0xff]   ;;  %v1412_v25 = vld [vmem:[%s1825_s5 + $0x68] sm:$0xff]  }
  0x1d   :  { %v1407_v20 = vld [vmem:[%s1825_s5 + $0x98] sm:$0xff]   ;;  %v1409_v22 = vld [vmem:[%s1825_s5 + $0xe0] sm:$0xff]   ;;  %v1413_v26 = vld [vmem:[%s1825_s5 + $0xe8] sm:$0xff]  }
  0x1e   :  { %v1410_v23 = vld [vmem:[%s1825_s5 + $0x20] sm:$0xff]   ;;  %v1414_v27 = vld [vmem:[%s1825_s5 + $0x28] sm:$0xff]   ;;  %v1416_v29 = vld [vmem:[%s1825_s5 + $0x70] sm:$0xff]  }
  0x1f   :  { %286 = vmatpush1.bf16.msra.mxu0 %v1338_v31  ;;  %339 = vmatpush1.bf16.msra.mxu1 %v1339_v32  ;;  %v1411_v24 = vld [vmem:[%s1825_s5 + $0xa0] sm:$0xff]   ;;  %v1415_v28 = vld [vmem:[%s1825_s5 + $0xa8] sm:$0xff]   ;;  %v1417_v30 = vld [vmem:[%s1825_s5 + $0xf0] sm:$0xff]  }
  0x20   :  { %549 = vmatprep.subr.bf16.mxu0 %v1342_v33  ;;  %602 = vmatprep.subr.bf16.mxu1 %v1345_v34  ;;  %v1418_v31 = vld [vmem:[%s1825_s5 + $0x30] sm:$0xff]   ;;  %v1420_v33 = vld [vmem:[%s1825_s5 + $0x78] sm:$0xff]  }
  0x21   :  { %v1419_v32 = vld [vmem:[%s1825_s5 + $0xb0] sm:$0xff]   ;;  %v1421_v34 = vld [vmem:[%s1825_s5 + $0xf8] sm:$0xff]  }
  0x22   :  { %304 = vmatmul.mubr.bf16.vlgmr.msra.gmra.mrb[0].mxu0 %v1346_v36  ;;  %357 = vmatmul.mubr.bf16.vlgmr.msra.gmra.mrb[0].mxu1 %v1346_v36  ;;  %v1423_v36 = vld [vmem:[%s1825_s5 + $0xb8] sm:$0xff]  }
  0x23   :  { %550 = vmatpush1.bf16.msra.mxu0 %v1340_v35  ;;  %603 = vmatpush1.bf16.msra.mxu1 %v1343_v37  ;;  %v1422_v35 = vld [vmem:[%s1825_s5 + $0x38] sm:$0xff]   ;;  %v657_v37 = vlaneseq }
  0x24   :  { %551 = vmatprep.subr.bf16.mxu0 %v1349_v38  ;;  %604 = vmatprep.subr.bf16.mxu1 %v1352_v39 }
  0x25   :  { %313 = vmatprep.mubr.bf16.mxu0 %v1424_v1  ;;  %366 = vmatprep.mubr.bf16.mxu1 %v1424_v1  ;;  %v658_v38 = vshrl.u32 %v657_v37, 7 }
  0x27   :  { %552 = vmatpush1.bf16.msra.mxu0 %v1347_v40  ;;  %605 = vmatpush1.bf16.msra.mxu1 %v1350_v41  ;;  %v659_v39 = vsub.s32 0, %v658_v38  ;;  %v667_v40 = vsub.s32 2, %v658_v38  ;;  %v655_v41 = vld [vmem:[%s1826_s4] sm:$0xf] }
  0x28   :  { %553 = vmatprep.subr.bf16.mxu0 %v1355_v42  ;;  %606 = vmatprep.subr.bf16.mxu1 %v1358_v43  ;;  %v663_v42 = vsub.s32 1, %v658_v38  ;;  %v671_v43 = vsub.s32 3, %v658_v38 }
  0x2a   :  { %314 = vmatmul.mubr.bf16.gmra.mrb[4].mxu0 %v1377_v44  ;;  %367 = vmatmul.mubr.bf16.gmra.mrb[4].mxu1 %v1377_v44  ;;  %v1776_v44 = vrot.slane %v655_v41, %v659_v39 }
  0x2b   :  { %554 = vmatpush1.bf16.msra.mxu0 %v1353_v45  ;;  %607 = vmatpush1.bf16.msra.mxu1 %v1356_v46  ;;  %v1778_v45 = vrot.slane %v655_v41, %v667_v40  ;;  %v1780_v46 = vrot.slane %v655_v41, %v663_v42 }
  0x2c   :  { %555 = vmatprep.subr.bf16.mxu0 %v1361_v47  ;;  %608 = vmatprep.subr.bf16.mxu1 %v1364_v48  ;;  %v1782_v47 = vrot.slane %v655_v41, %v671_v43 }
  0x2d   :  { %581 = vmatprep.mubr.bf16.mxu0 %v1424_v1  ;;  %634 = vmatprep.mubr.bf16.mxu1 %v1424_v1 }
  0x2f   :  { %556 = vmatpush1.bf16.msra.mxu0 %v1359_v49  ;;  %609 = vmatpush1.bf16.msra.mxu1 %v1362_v50 }
  0x30   :  { %557 = vmatprep.subr.bf16.mxu0 %v1367_v51  ;;  %610 = vmatprep.subr.bf16.mxu1 %v1370_v52 }
  0x33   :  { %558 = vmatpush1.bf16.msra.mxu0 %v1365_v53  ;;  %611 = vmatpush1.bf16.msra.mxu1 %v1368_v54 }
  0x34   :  { %559 = vmatprep.subr.bf16.mxu0 %v1373_v55  ;;  %612 = vmatprep.subr.bf16.mxu1 %v1376_v56 }
  0x37   :  { %560 = vmatpush1.bf16.msra.mxu0 %v1371_v57  ;;  %613 = vmatpush1.bf16.msra.mxu1 %v1374_v58 }
  0x38   :  { %561 = vmatprep.subr.bf16.mxu0 %v1380_v59  ;;  %614 = vmatprep.subr.bf16.mxu1 %v1383_v60 }
  0x3b   :  { %562 = vmatpush1.bf16.msra.mxu0 %v1378_v61  ;;  %615 = vmatpush1.bf16.msra.mxu1 %v1381_v62 }
  0x3c   :  { %563 = vmatprep.subr.bf16.mxu0 %v1386_v63  ;;  %616 = vmatprep.subr.bf16.mxu1 %v1389_v0 }
  0x3f   :  { %564 = vmatpush1.bf16.msra.mxu0 %v1384_v2  ;;  %617 = vmatpush1.bf16.msra.mxu1 %v1387_v3 }
  0x40   :  { %1219 = vmatprep.subr.bf16.mxu0 %v1392_v4  ;;  %1247 = vmatprep.subr.bf16.mxu1 %v1393_v5 }
  0x42   :  { %582 = vmatmul.mubr.bf16.vlgmr.msra.gmra.mrb[0].mxu0 %v1390_v6  ;;  %635 = vmatmul.mubr.bf16.vlgmr.msra.gmra.mrb[0].mxu1 %v1390_v6 }
  0x43   :  { %591 = vmatprep.mubr.bf16.mxu0 %v1424_v1  ;;  %644 = vmatprep.mubr.bf16.mxu1 %v1424_v1  ;;  %v1402_v1 = vld [vmem:[%s1825_s5 + $0x10] sm:$0xff]  }
  0x44   :  { %1220 = vmatpush3.bf16.msra.mxu0 %v1394_v7  ;;  %1248 = vmatpush3.bf16.msra.mxu1 %v1395_v8 }
  0x45   :  { %1221 = vmatprep.subr.bf16.mxu0 %v1396_v9  ;;  %1249 = vmatprep.subr.bf16.mxu1 %v1397_v10 }
  0x48   :  { %1222 = vmatpush3.bf16.msra.mxu0 %v1398_v11  ;;  %1250 = vmatpush3.bf16.msra.mxu1 %v1399_v12 }
  0x49   :  { %1223 = vmatprep.subr.bf16.mxu0 %v1400_v13  ;;  %1251 = vmatprep.subr.bf16.mxu1 %v1401_v14 }
  0x4a   :  { %592 = vmatmul.mubr.bf16.gmra.mrb[4].mxu0 %v1391_v15  ;;  %645 = vmatmul.mubr.bf16.gmra.mrb[4].mxu1 %v1391_v15 }
  0x4c   :  { %1224 = vmatpush3.bf16.msra.mxu0 %v1402_v1  ;;  %1252 = vmatpush3.bf16.msra.mxu1 %v1403_v16 }
  0x4d   :  { %1225 = vmatprep.subr.bf16.mxu0 %v1404_v17  ;;  %1253 = vmatprep.subr.bf16.mxu1 %v1405_v18 }
  0x50   :  { %1226 = vmatpush3.bf16.msra.mxu0 %v1406_v19  ;;  %1254 = vmatpush3.bf16.msra.mxu1 %v1407_v20 }
  0x51   :  { %1227 = vmatprep.subr.bf16.mxu0 %v1408_v21  ;;  %1255 = vmatprep.subr.bf16.mxu1 %v1409_v22 }
  0x54   :  { %1228 = vmatpush3.bf16.msra.mxu0 %v1410_v23  ;;  %1256 = vmatpush3.bf16.msra.mxu1 %v1411_v24 }
  0x55   :  { %1229 = vmatprep.subr.bf16.mxu0 %v1412_v25  ;;  %1257 = vmatprep.subr.bf16.mxu1 %v1413_v26 }
  0x58   :  { %1230 = vmatpush3.bf16.msra.mxu0 %v1414_v27  ;;  %1258 = vmatpush3.bf16.msra.mxu1 %v1415_v28 }
  0x59   :  { %1231 = vmatprep.subr.bf16.mxu0 %v1416_v29  ;;  %1259 = vmatprep.subr.bf16.mxu1 %v1417_v30 }
  0x5c   :  { %1232 = vmatpush3.bf16.msra.mxu0 %v1418_v31  ;;  %1260 = vmatpush3.bf16.msra.mxu1 %v1419_v32 }
  0x5d   :  { %1233 = vmatprep.subr.bf16.mxu0 %v1420_v33  ;;  %1261 = vmatprep.subr.bf16.mxu1 %v1421_v34 }
  0x60   :  { %1234 = vmatpush3.bf16.msra.mxu0 %v1422_v35  ;;  %1262 = vmatpush3.bf16.msra.mxu1 %v1423_v36 }
 0x115   :  { %v583_v48 = vpop.f32.mrb[0].mxu0  ;;  %v636_v49 = vpop.f32.mrb[0].mxu1 }
 0x116   :  { %v677_v50 = vadd.f32 %v1776_v44, %v583_v48  ;;  %v679_v51 = vadd.f32 %v1778_v45, %v636_v49  ;;  %v585_v52 = vpop.f32.mrb[1].mxu0  ;;  %v638_v53 = vpop.f32.mrb[1].mxu1 }
 0x117   :  { %v678_v54 = vadd.f32 %v1780_v46, %v585_v52  ;;  %v680_v55 = vadd.f32 %v1782_v47, %v638_v53  ;;  %v587_v56 = vpop.f32.mrb[2].mxu0  ;;  %v640_v57 = vpop.f32.mrb[2].mxu1 }
 0x118   :  { %vm693_vm0 = vcmp.gt.f32.partialorder %v677_v50, 0.0  ;;  %v709_v58 = vmul.f32 0.15, %v677_v50  ;;  %vm695_vm1 = vcmp.gt.f32.partialorder %v679_v51, 0.0  ;;  %v711_v59 = vmul.f32 0.15, %v679_v51 }
 0x119   :  { %vm694_vm2 = vcmp.gt.f32.partialorder %v678_v54, 0.0  ;;  %v710_v60 = vmul.f32 0.15, %v678_v54  ;;  %vm696_vm3 = vcmp.gt.f32.partialorder %v680_v55, 0.0  ;;  %v712_v61 = vmul.f32 0.15, %v680_v55 }
 0x11a   :  { %v681_v62 = vadd.f32 %v1776_v44, %v587_v56  ;;  %v683_v63 = vadd.f32 %v1778_v45, %v640_v57  ;;  %v589_v0 = vpop.f32.mrb[3].mxu0  ;;  %v642_v2 = vpop.f32.mrb[3].mxu1  ;;  %v725_v3 = vsel %vm693_vm0, %v677_v50, %v709_v58  ;;  %v727_v4 = vsel %vm695_vm1, %v679_v51, %v711_v59  ;;  %v1186_v58 = vld [vmem:[%s1827_s6] ss:$0 sm:$0xff] }
 0x11b   :  { %v682_v5 = vadd.f32 %v1780_v46, %v589_v0  ;;  %v684_v6 = vadd.f32 %v1782_v47, %v642_v2  ;;  %v726_v15 = vsel %vm694_vm2, %v678_v54, %v710_v60  ;;  %v728_v1 = vsel %vm696_vm3, %v680_v55, %v712_v61 }
 0x11c   :  { %vm697_vm4 = vcmp.gt.f32.partialorder %v681_v62, 0.0  ;;  %v713_v7 = vmul.f32 0.15, %v681_v62  ;;  %vm699_vm5 = vcmp.gt.f32.partialorder %v683_v63, 0.0  ;;  %v715_v8 = vmul.f32 0.15, %v683_v63 }
 0x11d   :  { %vm698_vm6 = vcmp.gt.f32.partialorder %v682_v5, 0.0  ;;  %v714_v9 = vmul.f32 0.15, %v682_v5  ;;  %vm700_vm7 = vcmp.gt.f32.partialorder %v684_v6, 0.0  ;;  %v716_v10 = vmul.f32 0.15, %v684_v6 }
 0x11e   :  { %v729_v11 = vsel %vm697_vm4, %v681_v62, %v713_v7  ;;  %v731_v12 = vsel %vm699_vm5, %v683_v63, %v715_v8  ;;  %v593_v13 = vpop.f32.mrb[4].mxu0  ;;  %v646_v14 = vpop.f32.mrb[4].mxu1 }
 0x11f   :  { %v741_v16 = vpack.c.bf16 %v729_v11, %v725_v3  ;;  %v743_v17 = vpack.c.bf16 %v731_v12, %v727_v4  ;;  %v685_v18 = vadd.f32 %v1776_v44, %v593_v13  ;;  %v687_v19 = vadd.f32 %v1778_v45, %v646_v14  ;;  %v595_v20 = vpop.f32.mrb[5].mxu0  ;;  %v648_v21 = vpop.f32.mrb[5].mxu1 }
 0x120   :  { %v686_v22 = vadd.f32 %v1780_v46, %v595_v20  ;;  %v688_v23 = vadd.f32 %v1782_v47, %v648_v21  ;;  %v597_v24 = vpop.f32.mrb[6].mxu0  ;;  %v650_v25 = vpop.f32.mrb[6].mxu1  ;;  %v730_v26 = vsel %vm698_vm6, %v682_v5, %v714_v9  ;;  %v732_v27 = vsel %vm700_vm7, %v684_v6, %v716_v10 }
 0x121   :  { %vm701_vm8 = vcmp.gt.f32.partialorder %v685_v18, 0.0  ;;  %v717_v28 = vmul.f32 0.15, %v685_v18  ;;  %vm703_vm9 = vcmp.gt.f32.partialorder %v687_v19, 0.0  ;;  %v719_v29 = vmul.f32 0.15, %v687_v19 }
 0x122   :  { %vm702_vm10 = vcmp.gt.f32.partialorder %v686_v22, 0.0  ;;  %v718_v30 = vmul.f32 0.15, %v686_v22  ;;  %vm704_vm11 = vcmp.gt.f32.partialorder %v688_v23, 0.0  ;;  %v720_v31 = vmul.f32 0.15, %v688_v23 }
 0x123   :  { %v689_v32 = vadd.f32 %v1776_v44, %v597_v24  ;;  %v691_v33 = vadd.f32 %v1778_v45, %v650_v25  ;;  %v599_v34 = vpop.f32.mrb[7].mxu0  ;;  %v652_v35 = vpop.f32.mrb[7].mxu1  ;;  %v742_v36 = vpack.c.bf16 %v730_v26, %v726_v15  ;;  %v744_v37 = vpack.c.bf16 %v732_v27, %v728_v1 }
 0x124   :  { %v690_v38 = vadd.f32 %v1780_v46, %v599_v34  ;;  %v692_v39 = vadd.f32 %v1782_v47, %v652_v35  ;;  %v734_v40 = vsel %vm702_vm10, %v686_v22, %v718_v30  ;;  %v736_v41 = vsel %vm704_vm11, %v688_v23, %v720_v31 }
 0x125   :  { %vm705_vm12 = vcmp.gt.f32.partialorder %v689_v32, 0.0  ;;  %v721_v42 = vmul.f32 0.15, %v689_v32  ;;  %vm707_vm13 = vcmp.gt.f32.partialorder %v691_v33, 0.0  ;;  %v723_v43 = vmul.f32 0.15, %v691_v33  ;;  %1044 = vmatprep.mubr.bf16.mxu0 %v742_v36  ;;  %1093 = vmatprep.mubr.bf16.mxu1 %v744_v37 }
 0x126   :  { %vm706_vm14 = vcmp.gt.f32.partialorder %v690_v38, 0.0  ;;  %v722_v44 = vmul.f32 0.15, %v690_v38  ;;  %vm708_vm15 = vcmp.gt.f32.partialorder %v692_v39, 0.0  ;;  %v724_v45 = vmul.f32 0.15, %v692_v39  ;;  %1045 = vmatmul.mubr.bf16.vlgmr.msra.gmra.mrb[8].mxu0 %v741_v16  ;;  %1094 = vmatmul.mubr.bf16.vlgmr.msra.gmra.mrb[8].mxu1 %v743_v17 }
 0x127   :  { %v733_v48 = vsel %vm701_vm8, %v685_v18, %v717_v28  ;;  %v737_v49 = vsel %vm705_vm12, %v689_v32, %v721_v42  ;;  %v735_v46 = vsel %vm703_vm9, %v687_v19, %v719_v29  ;;  %v739_v47 = vsel %vm707_vm13, %v691_v33, %v723_v43 }
 0x128   :  { %v738_v50 = vsel %vm706_vm14, %v690_v38, %v722_v44  ;;  %v740_v51 = vsel %vm708_vm15, %v692_v39, %v724_v45  ;;  %v745_v52 = vpack.c.bf16 %v737_v49, %v733_v48  ;;  %v747_v53 = vpack.c.bf16 %v739_v47, %v735_v46 }
 0x129   :  { %v746_v54 = vpack.c.bf16 %v738_v50, %v734_v40  ;;  %v748_v55 = vpack.c.bf16 %v740_v51, %v736_v41 }
 0x12b   :  { %1052 = vmatprep.mubr.bf16.mxu0 %v746_v54  ;;  %1101 = vmatprep.mubr.bf16.mxu1 %v748_v55 }
 0x12e   :  { %1053 = vmatmul.mubr.bf16.gmra.mrb[12].mxu0 %v745_v52  ;;  %1102 = vmatmul.mubr.bf16.gmra.mrb[12].mxu1 %v747_v53 }
 0x1f9   :  { %v1235_v56 = vpop.f32.mrb[8].mxu0  ;;  %v1263_v57 = vpop.f32.mrb[8].mxu1 }
 0x1fa   :  { %v1236_v59 = vpop.f32.mrb[9].mxu0  ;;  %v1264_v60 = vpop.f32.mrb[9].mxu1 }
 0x1fb   :  { %v1237_v61 = vadd.f32 %v1236_v59, %v1235_v56  ;;  %v1265_v62 = vadd.f32 %v1264_v60, %v1263_v57  ;;  %v1238_v63 = vpop.f32.mrb[10].mxu0  ;;  %v1266_v0 = vpop.f32.mrb[10].mxu1 }
 0x1fc   :  { %v1239_v2 = vpop.f32.mrb[11].mxu0  ;;  %v1267_v3 = vpop.f32.mrb[11].mxu1 }
 0x1fd   :  { %v1047_v4 = vadd.f32 %v1237_v61, %v1186_v58  ;;  %v1240_v5 = vadd.f32 %v1239_v2, %v1238_v63  ;;  %v1268_v6 = vadd.f32 %v1267_v3, %v1266_v0 }
 0x1ff   :  { %v1096_v7 = vadd.f32 %v1265_v62, %v1047_v4  ;;  %v1050_v8 = vadd.f32 %v1240_v5, %v1186_v58 }
 0x201   :  { %1110 = vst [vmem:[%s1828_s7] sm:$0xff] %v1096_v7  ;;  %v1099_v9 = vadd.f32 %v1268_v6, %v1050_v8  ;;  %v1241_v10 = vpop.f32.mrb[12].mxu0  ;;  %v1269_v11 = vpop.f32.mrb[12].mxu1 }
 0x202   :  { %v1242_v12 = vpop.f32.mrb[13].mxu0  ;;  %v1270_v13 = vpop.f32.mrb[13].mxu1 }
 0x203   :  { %1111 = vst [vmem:[%s1828_s7 + $0x8] sm:$0xff] %v1099_v9  ;;  %v1243_v14 = vadd.f32 %v1242_v12, %v1241_v10  ;;  %v1271_v15 = vadd.f32 %v1270_v13, %v1269_v11  ;;  %v1244_v1 = vpop.f32.mrb[14].mxu0  ;;  %v1272_v16 = vpop.f32.mrb[14].mxu1 }
 0x204   :  { %v1245_v17 = vpop.f32.mrb[15].mxu0  ;;  %v1273_v18 = vpop.f32.mrb[15].mxu1 }
 0x205   :  { %v1055_v19 = vadd.f32 %v1243_v14, %v1186_v58  ;;  %v1246_v20 = vadd.f32 %v1245_v17, %v1244_v1  ;;  %v1274_v21 = vadd.f32 %v1273_v18, %v1272_v16 }
 0x207   :  { %v1104_v22 = vadd.f32 %v1271_v15, %v1055_v19  ;;  %v1058_v23 = vadd.f32 %v1246_v20, %v1186_v58 }
 0x209   :  { %1112 = vst [vmem:[%s1828_s7 + $0x10] sm:$0xff] %v1104_v22  ;;  %v1107_v24 = vadd.f32 %v1274_v21, %v1058_v23 }
 0x20b   :  { %1113 = vst [vmem:[%s1828_s7 + $0x18] sm:$0xff] %v1107_v24 }

</bundles_post_ra>
